<compile_context>
chip_gen: v5e
topology: v5e:2x2
jax: 0.10.0
libtpu: 0.0.40
codegen_flags: <defaults>
</compile_context>

<pallas_src>
import functools
import math

import jax
import jax.numpy as jnp
from jax import lax
from jax.experimental import pallas as pl
from jax.experimental.pallas import tpu as pltpu

N = 28          # floor(mean + std) in the original script; must equal input_size=28
HIDDEN = 100
LAYERS = 3
OUT = 10
HP = 128        # hidden padded to full lane width


def _pad_to(a, shape):
    pads = [(0, s - d) for d, s in zip(a.shape, shape)]
    return jnp.pad(a, pads)


def _rnn_kernel(T, BT,
                x_ref,                        # (T, BT, 28)  f32, time-major batch tile
                wih0_ref, whh0_ref, b0_ref,   # (28,128) bf16, (128,128) bf16, (1,128) f32
                wih1_ref, whh1_ref, b1_ref,   # (128,128) bf16 x2, (1,128) f32
                wih2_ref, whh2_ref, b2_ref,   # (128,128) bf16 x2, (1,128) f32
                wfc_ref, bfc_ref,             # (128,128) bf16, (1,128) f32
                out_ref):                     # (BT, 128)    f32
    # Biases are 1 vreg each: hoisting them adds negligible vreg pressure.
    b0 = b0_ref[...]
    b1 = b1_ref[...]
    b2 = b2_ref[...]

    zeros = jnp.zeros((BT, HP), jnp.bfloat16)

    def step(t, carry):
        h0p, h1p, h2p = carry
        # Layer 0: the input projection does not depend on the carry, so under
        # the full unroll it overlaps with the previous step's recurrence.
        xt = x_ref[t].astype(jnp.bfloat16)                           # (BT, 28)
        a0 = (jnp.dot(xt, wih0_ref[...], preferred_element_type=jnp.float32)
              + jnp.dot(h0p, whh0_ref[...], preferred_element_type=jnp.float32)
              + b0)
        h0 = jnp.maximum(a0, 0.0).astype(jnp.bfloat16)
        # Layers 1 & 2: two K=128 dots (no concat); f32 accumulate, bf16 carry.
        a1 = (jnp.dot(h0, wih1_ref[...], preferred_element_type=jnp.float32)
              + jnp.dot(h1p, whh1_ref[...], preferred_element_type=jnp.float32)
              + b1)
        h1 = jnp.maximum(a1, 0.0).astype(jnp.bfloat16)
        a2 = (jnp.dot(h1, wih2_ref[...], preferred_element_type=jnp.float32)
              + jnp.dot(h2p, whh2_ref[...], preferred_element_type=jnp.float32)
              + b2)
        h2 = jnp.maximum(a2, 0.0).astype(jnp.bfloat16)
        return (h0, h1, h2)

    # T = 28 static: fully unroll for cross-timestep MXU overlap.  Weights are
    # re-read from VMEM per use and the carry is bf16, so no spill pressure.
    _, _, h2 = lax.fori_loop(0, T, step, (zeros, zeros, zeros), unroll=True)

    # out[:, -1, :] of the top layer -> Linear(100 -> 10), lane-dense (padded).
    out_ref[...] = (
        jnp.dot(h2, wfc_ref[...], preferred_element_type=jnp.float32)
        + bfc_ref[...])


def init_params(key):
    """Deterministic init matching the PyTorch parameter shapes.

    nn.RNN layer l: W_ih (100, in_l), W_hh (100, 100), b_ih (100,), b_hh (100,)
    nn.Linear: W (10, 100), b (10,).  PyTorch-style U(-1/sqrt(H), 1/sqrt(H)).
    """
    bound = 1.0 / math.sqrt(HIDDEN)
    keys = jax.random.split(key, 14)
    ki = iter(keys)

    def u(k, shape):
        return jax.random.uniform(k, shape, jnp.float32, -bound, bound)

    params = {}
    for l in range(LAYERS):
        in_dim = N if l == 0 else HIDDEN
        params[f"w_ih{l}"] = u(next(ki), (HIDDEN, in_dim))
        params[f"w_hh{l}"] = u(next(ki), (HIDDEN, HIDDEN))
        params[f"b_ih{l}"] = u(next(ki), (HIDDEN,))
        params[f"b_hh{l}"] = u(next(ki), (HIDDEN,))
    params["w_fc"] = u(next(ki), (OUT, HIDDEN))
    params["b_fc"] = u(next(ki), (OUT,))
    return params


def rnn_model_forward(x, params, *, batch_tile=128):
    """Equivalent of RNNModel.forward.  x: any shape with total size B*28*28.

    batch_tile: batch rows per kernel instance (MXU M fill).  128 fills the
    v5e MXU; use 256 on v6e/v7x for full M width when B is large.
    """
    x = jnp.asarray(x, jnp.float32).reshape(-1, N, N)   # x.view(-1, N, N)
    B = x.shape[0]
    BT = batch_tile if B >= batch_tile else max(8, -(-B // 8) * 8)
    Bp = -(-B // BT) * BT
    n_tiles = Bp // BT

    x_tm = jnp.transpose(x, (1, 0, 2))                  # (T, B, 28) time-major
    if Bp != B:
        x_tm = jnp.pad(x_tm, ((0, 0), (0, Bp - B), (0, 0)))

    # Weight prep: pre-transpose, zero-pad to 128 lanes, cast weights to bf16.
    # Biases stay f32 (added to the f32 accumulator), with b_ih + b_hh folded.
    def w_bf16(w, shape):
        return _pad_to(w, shape).astype(jnp.bfloat16)

    def bias_f32(l):
        return _pad_to((params[f"b_ih{l}"] + params[f"b_hh{l}"]).reshape(1, HIDDEN),
                       (1, HP))

    wih0 = w_bf16(params["w_ih0"].T, (N, HP))
    whh0 = w_bf16(params["w_hh0"].T, (HP, HP))
    wih1 = w_bf16(params["w_ih1"].T, (HP, HP))
    whh1 = w_bf16(params["w_hh1"].T, (HP, HP))
    wih2 = w_bf16(params["w_ih2"].T, (HP, HP))
    whh2 = w_bf16(params["w_hh2"].T, (HP, HP))
    b0, b1, b2 = bias_f32(0), bias_f32(1), bias_f32(2)
    wfc = w_bf16(params["w_fc"].T, (HP, HP))
    bfc = _pad_to(params["b_fc"].reshape(1, OUT), (1, HP))

    def const_spec(shape):
        # Same block for every grid step -> fetched once, stays resident.
        return pl.BlockSpec(shape, lambda i: (0, 0))

    in_specs = [
        pl.BlockSpec((N, BT, N), lambda i: (0, i, 0)),   # batch tile of x
        const_spec((N, HP)), const_spec((HP, HP)), const_spec((1, HP)),
        const_spec((HP, HP)), const_spec((HP, HP)), const_spec((1, HP)),
        const_spec((HP, HP)), const_spec((HP, HP)), const_spec((1, HP)),
        const_spec((HP, HP)), const_spec((1, HP)),
    ]

    out = pl.pallas_call(
        functools.partial(_rnn_kernel, N, BT),
        out_shape=jax.ShapeDtypeStruct((Bp, HP), jnp.float32),
        grid=(n_tiles,),
        in_specs=in_specs,
        out_specs=pl.BlockSpec((BT, HP), lambda i: (i, 0)),
        compiler_params=pltpu.CompilerParams(
            dimension_semantics=("parallel",)),   # megacore-shards batch tiles on v7x
    )(x_tm, wih0, whh0, b0, wih1, whh1, b1, wih2, whh2, b2, wfc, bfc)

    return out[:B, :OUT]


def _reference_forward(x, params):
    """Pure-JAX f32 reference of the PyTorch forward, for a sanity check."""
    x = jnp.asarray(x, jnp.float32).reshape(-1, N, N)
    B = x.shape[0]
    h = [jnp.zeros((B, HIDDEN), jnp.float32) for _ in range(LAYERS)]
    for t in range(N):
        inp = x[:, t, :]
        for l in range(LAYERS):
            h[l] = jax.nn.relu(inp @ params[f"w_ih{l}"].T
                               + h[l] @ params[f"w_hh{l}"].T
                               + params[f"b_ih{l}"] + params[f"b_hh{l}"])
            inp = h[l]
    return h[-1] @ params["w_fc"].T + params["b_fc"]


if __name__ == "__main__":
    key = jax.random.PRNGKey(0)
    pkey, xkey, xkey2 = jax.random.split(key, 3)
    params = init_params(pkey)

    # Case 1: tiny batch (B=2), single batch tile.
    x = jax.random.normal(xkey, (2, N * N), jnp.float32)   # flat rows, like the view input
    out = jax.block_until_ready(rnn_model_forward(x, params))
    ref = _reference_forward(x, params)
    assert out.shape == (2, OUT)
    # bf16 weights/operands (f32 accumulation) -> loosened tolerance vs f32 ref.
    assert jnp.allclose(out, ref, atol=2e-2, rtol=2e-2), "mismatch vs reference (B=2)"

    # Case 2: exercise the batch grid (3 tiles) with a small forced tile size.
    x2 = jax.random.normal(xkey2, (20, N * N), jnp.float32)
    out2 = jax.block_until_ready(rnn_model_forward(x2, params, batch_tile=8))
    ref2 = _reference_forward(x2, params)
    assert out2.shape == (20, OUT)
    assert jnp.allclose(out2, ref2, atol=2e-2, rtol=2e-2), "mismatch vs reference (B=20)"

    print("KERNEL_OK")
</pallas_src>

<mosaic_0001>
module attributes {stable_mosaic.version = 11 : i64} {
  func.func @_rnn_kernel(%arg0: i32, %arg1: memref<28x8x28xf32, #tpu.memory_space<vmem>>, %arg2: memref<28x128xbf16, #tpu.memory_space<vmem>>, %arg3: memref<128x128xbf16, #tpu.memory_space<vmem>>, %arg4: memref<1x128xf32, #tpu.memory_space<vmem>>, %arg5: memref<128x128xbf16, #tpu.memory_space<vmem>>, %arg6: memref<128x128xbf16, #tpu.memory_space<vmem>>, %arg7: memref<1x128xf32, #tpu.memory_space<vmem>>, %arg8: memref<128x128xbf16, #tpu.memory_space<vmem>>, %arg9: memref<128x128xbf16, #tpu.memory_space<vmem>>, %arg10: memref<1x128xf32, #tpu.memory_space<vmem>>, %arg11: memref<128x128xbf16, #tpu.memory_space<vmem>>, %arg12: memref<1x128xf32, #tpu.memory_space<vmem>>, %arg13: memref<8x128xf32, #tpu.memory_space<vmem>>) attributes {dimension_semantics = [#tpu.dimension_semantics<parallel>], iteration_bounds = array<i64: 1>, scalar_prefetch = 0 : i64, scratch_operands = 0 : i64, tpu.core_type = #tpu.core_type<tc>, window_params = [{transform_indices = @transform_0, window_bounds = array<i64: 28, 8, 28>}, {pipeline_mode = #tpu.pipeline_mode<synchronous>, transform_indices = @transform_1, window_bounds = array<i64: 28, 128>}, {pipeline_mode = #tpu.pipeline_mode<synchronous>, transform_indices = @transform_2, window_bounds = array<i64: 128, 128>}, {pipeline_mode = #tpu.pipeline_mode<synchronous>, transform_indices = @transform_3, window_bounds = array<i64: 1, 128>}, {pipeline_mode = #tpu.pipeline_mode<synchronous>, transform_indices = @transform_4, window_bounds = array<i64: 128, 128>}, {pipeline_mode = #tpu.pipeline_mode<synchronous>, transform_indices = @transform_5, window_bounds = array<i64: 128, 128>}, {pipeline_mode = #tpu.pipeline_mode<synchronous>, transform_indices = @transform_6, window_bounds = array<i64: 1, 128>}, {pipeline_mode = #tpu.pipeline_mode<synchronous>, transform_indices = @transform_7, window_bounds = array<i64: 128, 128>}, {pipeline_mode = #tpu.pipeline_mode<synchronous>, transform_indices = @transform_8, window_bounds = array<i64: 128, 128>}, {pipeline_mode = #tpu.pipeline_mode<synchronous>, transform_indices = @transform_9, window_bounds = array<i64: 1, 128>}, {pipeline_mode = #tpu.pipeline_mode<synchronous>, transform_indices = @transform_10, window_bounds = array<i64: 128, 128>}, {pipeline_mode = #tpu.pipeline_mode<synchronous>, transform_indices = @transform_11, window_bounds = array<i64: 1, 128>}, {transform_indices = @transform_12, window_bounds = array<i64: 8, 128>}]} {
    %c0 = arith.constant 0 : index
    %c0_0 = arith.constant 0 : index
    %0 = vector.load %arg4[%c0, %c0_0] : memref<1x128xf32, #tpu.memory_space<vmem>>, vector<1x128xf32>
    %c0_1 = arith.constant 0 : index
    %c0_2 = arith.constant 0 : index
    %1 = vector.load %arg7[%c0_1, %c0_2] : memref<1x128xf32, #tpu.memory_space<vmem>>, vector<1x128xf32>
    %c0_3 = arith.constant 0 : index
    %c0_4 = arith.constant 0 : index
    %2 = vector.load %arg10[%c0_3, %c0_4] : memref<1x128xf32, #tpu.memory_space<vmem>>, vector<1x128xf32>
    %cst = arith.constant 0.000000e+00 : bf16
    %3 = vector.broadcast %cst : bf16 to vector<8x128xbf16>
    %c0_i32 = arith.constant 0 : i32
    %4 = arith.index_cast %c0_i32 : i32 to index
    %c0_5 = arith.constant 0 : index
    %c0_6 = arith.constant 0 : index
    %5 = vector.load %arg1[%4, %c0_5, %c0_6] : memref<28x8x28xf32, #tpu.memory_space<vmem>>, vector<1x8x28xf32>
    %6 = vector.shape_cast %5 : vector<1x8x28xf32> to vector<8x28xf32>
    %7 = arith.truncf %6 : vector<8x28xf32> to vector<8x28xbf16>
    %c0_7 = arith.constant 0 : index
    %c0_8 = arith.constant 0 : index
    %8 = vector.load %arg2[%c0_7, %c0_8] : memref<28x128xbf16, #tpu.memory_space<vmem>>, vector<28x128xbf16>
    %cst_9 = arith.constant dense<0.000000e+00> : vector<8x128xf32>
    %9 = tpu.matmul %7, %8, %cst_9 {dimension_numbers = #tpu.dot_dimension_numbers<[1], [0], [0], [1], [0, 0, 1, 1], [], []>} : vector<8x28xbf16>, vector<28x128xbf16>, vector<8x128xf32> -> vector<8x128xf32>
    %c0_10 = arith.constant 0 : index
    %c0_11 = arith.constant 0 : index
    %10 = vector.load %arg3[%c0_10, %c0_11] : memref<128x128xbf16, #tpu.memory_space<vmem>>, vector<128x128xbf16>
    %cst_12 = arith.constant dense<0.000000e+00> : vector<8x128xf32>
    %11 = tpu.matmul %3, %10, %cst_12 {dimension_numbers = #tpu.dot_dimension_numbers<[1], [0], [0], [1], [0, 0, 1, 1], [], []>} : vector<8x128xbf16>, vector<128x128xbf16>, vector<8x128xf32> -> vector<8x128xf32>
    %12 = arith.addf %9, %11 : vector<8x128xf32>
    %13 = vector.broadcast %0 : vector<1x128xf32> to vector<8x128xf32>
    %14 = arith.addf %12, %13 : vector<8x128xf32>
    %cst_13 = arith.constant 0.000000e+00 : f32
    %15 = vector.broadcast %cst_13 : f32 to vector<8x128xf32>
    %16 = arith.maximumf %14, %15 : vector<8x128xf32>
    %17 = arith.truncf %16 : vector<8x128xf32> to vector<8x128xbf16>
    %c0_14 = arith.constant 0 : index
    %c0_15 = arith.constant 0 : index
    %18 = vector.load %arg5[%c0_14, %c0_15] : memref<128x128xbf16, #tpu.memory_space<vmem>>, vector<128x128xbf16>
    %cst_16 = arith.constant dense<0.000000e+00> : vector<8x128xf32>
    %19 = tpu.matmul %17, %18, %cst_16 {dimension_numbers = #tpu.dot_dimension_numbers<[1], [0], [0], [1], [0, 0, 1, 1], [], []>} : vector<8x128xbf16>, vector<128x128xbf16>, vector<8x128xf32> -> vector<8x128xf32>
    %c0_17 = arith.constant 0 : index
    %c0_18 = arith.constant 0 : index
    %20 = vector.load %arg6[%c0_17, %c0_18] : memref<128x128xbf16, #tpu.memory_space<vmem>>, vector<128x128xbf16>
    %cst_19 = arith.constant dense<0.000000e+00> : vector<8x128xf32>
    %21 = tpu.matmul %3, %20, %cst_19 {dimension_numbers = #tpu.dot_dimension_numbers<[1], [0], [0], [1], [0, 0, 1, 1], [], []>} : vector<8x128xbf16>, vector<128x128xbf16>, vector<8x128xf32> -> vector<8x128xf32>
    %22 = arith.addf %19, %21 : vector<8x128xf32>
    %23 = vector.broadcast %1 : vector<1x128xf32> to vector<8x128xf32>
    %24 = arith.addf %22, %23 : vector<8x128xf32>
    %cst_20 = arith.constant 0.000000e+00 : f32
    %25 = vector.broadcast %cst_20 : f32 to vector<8x128xf32>
    %26 = arith.maximumf %24, %25 : vector<8x128xf32>
    %27 = arith.truncf %26 : vector<8x128xf32> to vector<8x128xbf16>
    %c0_21 = arith.constant 0 : index
    %c0_22 = arith.constant 0 : index
    %28 = vector.load %arg8[%c0_21, %c0_22] : memref<128x128xbf16, #tpu.memory_space<vmem>>, vector<128x128xbf16>
    %cst_23 = arith.constant dense<0.000000e+00> : vector<8x128xf32>
    %29 = tpu.matmul %27, %28, %cst_23 {dimension_numbers = #tpu.dot_dimension_numbers<[1], [0], [0], [1], [0, 0, 1, 1], [], []>} : vector<8x128xbf16>, vector<128x128xbf16>, vector<8x128xf32> -> vector<8x128xf32>
    %c0_24 = arith.constant 0 : index
    %c0_25 = arith.constant 0 : index
    %30 = vector.load %arg9[%c0_24, %c0_25] : memref<128x128xbf16, #tpu.memory_space<vmem>>, vector<128x128xbf16>
    %cst_26 = arith.constant dense<0.000000e+00> : vector<8x128xf32>
    %31 = tpu.matmul %3, %30, %cst_26 {dimension_numbers = #tpu.dot_dimension_numbers<[1], [0], [0], [1], [0, 0, 1, 1], [], []>} : vector<8x128xbf16>, vector<128x128xbf16>, vector<8x128xf32> -> vector<8x128xf32>
    %32 = arith.addf %29, %31 : vector<8x128xf32>
    %33 = vector.broadcast %2 : vector<1x128xf32> to vector<8x128xf32>
    %34 = arith.addf %32, %33 : vector<8x128xf32>
    %cst_27 = arith.constant 0.000000e+00 : f32
    %35 = vector.broadcast %cst_27 : f32 to vector<8x128xf32>
    %36 = arith.maximumf %34, %35 : vector<8x128xf32>
    %37 = arith.truncf %36 : vector<8x128xf32> to vector<8x128xbf16>
    %c1_i32 = arith.constant 1 : i32
    %38 = arith.index_cast %c1_i32 : i32 to index
    %c0_28 = arith.constant 0 : index
    %c0_29 = arith.constant 0 : index
    %39 = vector.load %arg1[%38, %c0_28, %c0_29] : memref<28x8x28xf32, #tpu.memory_space<vmem>>, vector<1x8x28xf32>
    %40 = vector.shape_cast %39 : vector<1x8x28xf32> to vector<8x28xf32>
    %41 = arith.truncf %40 : vector<8x28xf32> to vector<8x28xbf16>
    %c0_30 = arith.constant 0 : index
    %c0_31 = arith.constant 0 : index
    %42 = vector.load %arg2[%c0_30, %c0_31] : memref<28x128xbf16, #tpu.memory_space<vmem>>, vector<28x128xbf16>
    %cst_32 = arith.constant dense<0.000000e+00> : vector<8x128xf32>
    %43 = tpu.matmul %41, %42, %cst_32 {dimension_numbers = #tpu.dot_dimension_numbers<[1], [0], [0], [1], [0, 0, 1, 1], [], []>} : vector<8x28xbf16>, vector<28x128xbf16>, vector<8x128xf32> -> vector<8x128xf32>
    %c0_33 = arith.constant 0 : index
    %c0_34 = arith.constant 0 : index
    %44 = vector.load %arg3[%c0_33, %c0_34] : memref<128x128xbf16, #tpu.memory_space<vmem>>, vector<128x128xbf16>
    %cst_35 = arith.constant dense<0.000000e+00> : vector<8x128xf32>
    %45 = tpu.matmul %17, %44, %cst_35 {dimension_numbers = #tpu.dot_dimension_numbers<[1], [0], [0], [1], [0, 0, 1, 1], [], []>} : vector<8x128xbf16>, vector<128x128xbf16>, vector<8x128xf32> -> vector<8x128xf32>
    %46 = arith.addf %43, %45 : vector<8x128xf32>
    %47 = vector.broadcast %0 : vector<1x128xf32> to vector<8x128xf32>
    %48 = arith.addf %46, %47 : vector<8x128xf32>
    %cst_36 = arith.constant 0.000000e+00 : f32
    %49 = vector.broadcast %cst_36 : f32 to vector<8x128xf32>
    %50 = arith.maximumf %48, %49 : vector<8x128xf32>
    %51 = arith.truncf %50 : vector<8x128xf32> to vector<8x128xbf16>
    %c0_37 = arith.constant 0 : index
    %c0_38 = arith.constant 0 : index
    %52 = vector.load %arg5[%c0_37, %c0_38] : memref<128x128xbf16, #tpu.memory_space<vmem>>, vector<128x128xbf16>
    %cst_39 = arith.constant dense<0.000000e+00> : vector<8x128xf32>
    %53 = tpu.matmul %51, %52, %cst_39 {dimension_numbers = #tpu.dot_dimension_numbers<[1], [0], [0], [1], [0, 0, 1, 1], [], []>} : vector<8x128xbf16>, vector<128x128xbf16>, vector<8x128xf32> -> vector<8x128xf32>
    %c0_40 = arith.constant 0 : index
    %c0_41 = arith.constant 0 : index
    %54 = vector.load %arg6[%c0_40, %c0_41] : memref<128x128xbf16, #tpu.memory_space<vmem>>, vector<128x128xbf16>
    %cst_42 = arith.constant dense<0.000000e+00> : vector<8x128xf32>
    %55 = tpu.matmul %27, %54, %cst_42 {dimension_numbers = #tpu.dot_dimension_numbers<[1], [0], [0], [1], [0, 0, 1, 1], [], []>} : vector<8x128xbf16>, vector<128x128xbf16>, vector<8x128xf32> -> vector<8x128xf32>
    %56 = arith.addf %53, %55 : vector<8x128xf32>
    %57 = vector.broadcast %1 : vector<1x128xf32> to vector<8x128xf32>
    %58 = arith.addf %56, %57 : vector<8x128xf32>
    %cst_43 = arith.constant 0.000000e+00 : f32
    %59 = vector.broadcast %cst_43 : f32 to vector<8x128xf32>
    %60 = arith.maximumf %58, %59 : vector<8x128xf32>
    %61 = arith.truncf %60 : vector<8x128xf32> to vector<8x128xbf16>
    %c0_44 = arith.constant 0 : index
    %c0_45 = arith.constant 0 : index
    %62 = vector.load %arg8[%c0_44, %c0_45] : memref<128x128xbf16, #tpu.memory_space<vmem>>, vector<128x128xbf16>
    %cst_46 = arith.constant dense<0.000000e+00> : vector<8x128xf32>
    %63 = tpu.matmul %61, %62, %cst_46 {dimension_numbers = #tpu.dot_dimension_numbers<[1], [0], [0], [1], [0, 0, 1, 1], [], []>} : vector<8x128xbf16>, vector<128x128xbf16>, vector<8x128xf32> -> vector<8x128xf32>
    %c0_47 = arith.constant 0 : index
    %c0_48 = arith.constant 0 : index
    %64 = vector.load %arg9[%c0_47, %c0_48] : memref<128x128xbf16, #tpu.memory_space<vmem>>, vector<128x128xbf16>
    %cst_49 = arith.constant dense<0.000000e+00> : vector<8x128xf32>
    %65 = tpu.matmul %37, %64, %cst_49 {dimension_numbers = #tpu.dot_dimension_numbers<[1], [0], [0], [1], [0, 0, 1, 1], [], []>} : vector<8x128xbf16>, vector<128x128xbf16>, vector<8x128xf32> -> vector<8x128xf32>
    %66 = arith.addf %63, %65 : vector<8x128xf32>
    %67 = vector.broadcast %2 : vector<1x128xf32> to vector<8x128xf32>
    %68 = arith.addf %66, %67 : vector<8x128xf32>
    %cst_50 = arith.constant 0.000000e+00 : f32
    %69 = vector.broadcast %cst_50 : f32 to vector<8x128xf32>
    %70 = arith.maximumf %68, %69 : vector<8x128xf32>
    %71 = arith.truncf %70 : vector<8x128xf32> to vector<8x128xbf16>
    %c2_i32 = arith.constant 2 : i32
    %72 = arith.index_cast %c2_i32 : i32 to index
    %c0_51 = arith.constant 0 : index
    %c0_52 = arith.constant 0 : index
    %73 = vector.load %arg1[%72, %c0_51, %c0_52] : memref<28x8x28xf32, #tpu.memory_space<vmem>>, vector<1x8x28xf32>
    %74 = vector.shape_cast %73 : vector<1x8x28xf32> to vector<8x28xf32>
    %75 = arith.truncf %74 : vector<8x28xf32> to vector<8x28xbf16>
    %c0_53 = arith.constant 0 : index
    %c0_54 = arith.constant 0 : index
    %76 = vector.load %arg2[%c0_53, %c0_54] : memref<28x128xbf16, #tpu.memory_space<vmem>>, vector<28x128xbf16>
    %cst_55 = arith.constant dense<0.000000e+00> : vector<8x128xf32>
    %77 = tpu.matmul %75, %76, %cst_55 {dimension_numbers = #tpu.dot_dimension_numbers<[1], [0], [0], [1], [0, 0, 1, 1], [], []>} : vector<8x28xbf16>, vector<28x128xbf16>, vector<8x128xf32> -> vector<8x128xf32>
    %c0_56 = arith.constant 0 : index
    %c0_57 = arith.constant 0 : index
    %78 = vector.load %arg3[%c0_56, %c0_57] : memref<128x128xbf16, #tpu.memory_space<vmem>>, vector<128x128xbf16>
    %cst_58 = arith.constant dense<0.000000e+00> : vector<8x128xf32>
    %79 = tpu.matmul %51, %78, %cst_58 {dimension_numbers = #tpu.dot_dimension_numbers<[1], [0], [0], [1], [0, 0, 1, 1], [], []>} : vector<8x128xbf16>, vector<128x128xbf16>, vector<8x128xf32> -> vector<8x128xf32>
    %80 = arith.addf %77, %79 : vector<8x128xf32>
    %81 = vector.broadcast %0 : vector<1x128xf32> to vector<8x128xf32>
    %82 = arith.addf %80, %81 : vector<8x128xf32>
    %cst_59 = arith.constant 0.000000e+00 : f32
    %83 = vector.broadcast %cst_59 : f32 to vector<8x128xf32>
    %84 = arith.maximumf %82, %83 : vector<8x128xf32>
    %85 = arith.truncf %84 : vector<8x128xf32> to vector<8x128xbf16>
    %c0_60 = arith.constant 0 : index
    %c0_61 = arith.constant 0 : index
    %86 = vector.load %arg5[%c0_60, %c0_61] : memref<128x128xbf16, #tpu.memory_space<vmem>>, vector<128x128xbf16>
    %cst_62 = arith.constant dense<0.000000e+00> : vector<8x128xf32>
    %87 = tpu.matmul %85, %86, %cst_62 {dimension_numbers = #tpu.dot_dimension_numbers<[1], [0], [0], [1], [0, 0, 1, 1], [], []>} : vector<8x128xbf16>, vector<128x128xbf16>, vector<8x128xf32> -> vector<8x128xf32>
    %c0_63 = arith.constant 0 : index
    %c0_64 = arith.constant 0 : index
    %88 = vector.load %arg6[%c0_63, %c0_64] : memref<128x128xbf16, #tpu.memory_space<vmem>>, vector<128x128xbf16>
    %cst_65 = arith.constant dense<0.000000e+00> : vector<8x128xf32>
    %89 = tpu.matmul %61, %88, %cst_65 {dimension_numbers = #tpu.dot_dimension_numbers<[1], [0], [0], [1], [0, 0, 1, 1], [], []>} : vector<8x128xbf16>, vector<128x128xbf16>, vector<8x128xf32> -> vector<8x128xf32>
    %90 = arith.addf %87, %89 : vector<8x128xf32>
    %91 = vector.broadcast %1 : vector<1x128xf32> to vector<8x128xf32>
    %92 = arith.addf %90, %91 : vector<8x128xf32>
    %cst_66 = arith.constant 0.000000e+00 : f32
    %93 = vector.broadcast %cst_66 : f32 to vector<8x128xf32>
    %94 = arith.maximumf %92, %93 : vector<8x128xf32>
    %95 = arith.truncf %94 : vector<8x128xf32> to vector<8x128xbf16>
    %c0_67 = arith.constant 0 : index
    %c0_68 = arith.constant 0 : index
    %96 = vector.load %arg8[%c0_67, %c0_68] : memref<128x128xbf16, #tpu.memory_space<vmem>>, vector<128x128xbf16>
    %cst_69 = arith.constant dense<0.000000e+00> : vector<8x128xf32>
    %97 = tpu.matmul %95, %96, %cst_69 {dimension_numbers = #tpu.dot_dimension_numbers<[1], [0], [0], [1], [0, 0, 1, 1], [], []>} : vector<8x128xbf16>, vector<128x128xbf16>, vector<8x128xf32> -> vector<8x128xf32>
    %c0_70 = arith.constant 0 : index
    %c0_71 = arith.constant 0 : index
    %98 = vector.load %arg9[%c0_70, %c0_71] : memref<128x128xbf16, #tpu.memory_space<vmem>>, vector<128x128xbf16>
    %cst_72 = arith.constant dense<0.000000e+00> : vector<8x128xf32>
    %99 = tpu.matmul %71, %98, %cst_72 {dimension_numbers = #tpu.dot_dimension_numbers<[1], [0], [0], [1], [0, 0, 1, 1], [], []>} : vector<8x128xbf16>, vector<128x128xbf16>, vector<8x128xf32> -> vector<8x128xf32>
    %100 = arith.addf %97, %99 : vector<8x128xf32>
    %101 = vector.broadcast %2 : vector<1x128xf32> to vector<8x128xf32>
    %102 = arith.addf %100, %101 : vector<8x128xf32>
    %cst_73 = arith.constant 0.000000e+00 : f32
    %103 = vector.broadcast %cst_73 : f32 to vector<8x128xf32>
    %104 = arith.maximumf %102, %103 : vector<8x128xf32>
    %105 = arith.truncf %104 : vector<8x128xf32> to vector<8x128xbf16>
    %c3_i32 = arith.constant 3 : i32
    %106 = arith.index_cast %c3_i32 : i32 to index
    %c0_74 = arith.constant 0 : index
    %c0_75 = arith.constant 0 : index
    %107 = vector.load %arg1[%106, %c0_74, %c0_75] : memref<28x8x28xf32, #tpu.memory_space<vmem>>, vector<1x8x28xf32>
    %108 = vector.shape_cast %107 : vector<1x8x28xf32> to vector<8x28xf32>
    %109 = arith.truncf %108 : vector<8x28xf32> to vector<8x28xbf16>
    %c0_76 = arith.constant 0 : index
    %c0_77 = arith.constant 0 : index
    %110 = vector.load %arg2[%c0_76, %c0_77] : memref<28x128xbf16, #tpu.memory_space<vmem>>, vector<28x128xbf16>
    %cst_78 = arith.constant dense<0.000000e+00> : vector<8x128xf32>
    %111 = tpu.matmul %109, %110, %cst_78 {dimension_numbers = #tpu.dot_dimension_numbers<[1], [0], [0], [1], [0, 0, 1, 1], [], []>} : vector<8x28xbf16>, vector<28x128xbf16>, vector<8x128xf32> -> vector<8x128xf32>
    %c0_79 = arith.constant 0 : index
    %c0_80 = arith.constant 0 : index
    %112 = vector.load %arg3[%c0_79, %c0_80] : memref<128x128xbf16, #tpu.memory_space<vmem>>, vector<128x128xbf16>
    %cst_81 = arith.constant dense<0.000000e+00> : vector<8x128xf32>
    %113 = tpu.matmul %85, %112, %cst_81 {dimension_numbers = #tpu.dot_dimension_numbers<[1], [0], [0], [1], [0, 0, 1, 1], [], []>} : vector<8x128xbf16>, vector<128x128xbf16>, vector<8x128xf32> -> vector<8x128xf32>
    %114 = arith.addf %111, %113 : vector<8x128xf32>
    %115 = vector.broadcast %0 : vector<1x128xf32> to vector<8x128xf32>
    %116 = arith.addf %114, %115 : vector<8x128xf32>
    %cst_82 = arith.constant 0.000000e+00 : f32
    %117 = vector.broadcast %cst_82 : f32 to vector<8x128xf32>
    %118 = arith.maximumf %116, %117 : vector<8x128xf32>
    %119 = arith.truncf %118 : vector<8x128xf32> to vector<8x128xbf16>
    %c0_83 = arith.constant 0 : index
    %c0_84 = arith.constant 0 : index
    %120 = vector.load %arg5[%c0_83, %c0_84] : memref<128x128xbf16, #tpu.memory_space<vmem>>, vector<128x128xbf16>
    %cst_85 = arith.constant dense<0.000000e+00> : vector<8x128xf32>
    %121 = tpu.matmul %119, %120, %cst_85 {dimension_numbers = #tpu.dot_dimension_numbers<[1], [0], [0], [1], [0, 0, 1, 1], [], []>} : vector<8x128xbf16>, vector<128x128xbf16>, vector<8x128xf32> -> vector<8x128xf32>
    %c0_86 = arith.constant 0 : index
    %c0_87 = arith.constant 0 : index
    %122 = vector.load %arg6[%c0_86, %c0_87] : memref<128x128xbf16, #tpu.memory_space<vmem>>, vector<128x128xbf16>
    %cst_88 = arith.constant dense<0.000000e+00> : vector<8x128xf32>
    %123 = tpu.matmul %95, %122, %cst_88 {dimension_numbers = #tpu.dot_dimension_numbers<[1], [0], [0], [1], [0, 0, 1, 1], [], []>} : vector<8x128xbf16>, vector<128x128xbf16>, vector<8x128xf32> -> vector<8x128xf32>
    %124 = arith.addf %121, %123 : vector<8x128xf32>
    %125 = vector.broadcast %1 : vector<1x128xf32> to vector<8x128xf32>
    %126 = arith.addf %124, %125 : vector<8x128xf32>
    %cst_89 = arith.constant 0.000000e+00 : f32
    %127 = vector.broadcast %cst_89 : f32 to vector<8x128xf32>
    %128 = arith.maximumf %126, %127 : vector<8x128xf32>
    %129 = arith.truncf %128 : vector<8x128xf32> to vector<8x128xbf16>
    %c0_90 = arith.constant 0 : index
    %c0_91 = arith.constant 0 : index
    %130 = vector.load %arg8[%c0_90, %c0_91] : memref<128x128xbf16, #tpu.memory_space<vmem>>, vector<128x128xbf16>
    %cst_92 = arith.constant dense<0.000000e+00> : vector<8x128xf32>
    %131 = tpu.matmul %129, %130, %cst_92 {dimension_numbers = #tpu.dot_dimension_numbers<[1], [0], [0], [1], [0, 0, 1, 1], [], []>} : vector<8x128xbf16>, vector<128x128xbf16>, vector<8x128xf32> -> vector<8x128xf32>
    %c0_93 = arith.constant 0 : index
    %c0_94 = arith.constant 0 : index
    %132 = vector.load %arg9[%c0_93, %c0_94] : memref<128x128xbf16, #tpu.memory_space<vmem>>, vector<128x128xbf16>
    %cst_95 = arith.constant dense<0.000000e+00> : vector<8x128xf32>
    %133 = tpu.matmul %105, %132, %cst_95 {dimension_numbers = #tpu.dot_dimension_numbers<[1], [0], [0], [1], [0, 0, 1, 1], [], []>} : vector<8x128xbf16>, vector<128x128xbf16>, vector<8x128xf32> -> vector<8x128xf32>
    %134 = arith.addf %131, %133 : vector<8x128xf32>
    %135 = vector.broadcast %2 : vector<1x128xf32> to vector<8x128xf32>
    %136 = arith.addf %134, %135 : vector<8x128xf32>
    %cst_96 = arith.constant 0.000000e+00 : f32
    %137 = vector.broadcast %cst_96 : f32 to vector<8x128xf32>
    %138 = arith.maximumf %136, %137 : vector<8x128xf32>
    %139 = arith.truncf %138 : vector<8x128xf32> to vector<8x128xbf16>
    %c4_i32 = arith.constant 4 : i32
    %140 = arith.index_cast %c4_i32 : i32 to index
    %c0_97 = arith.constant 0 : index
    %c0_98 = arith.constant 0 : index
    %141 = vector.load %arg1[%140, %c0_97, %c0_98] : memref<28x8x28xf32, #tpu.memory_space<vmem>>, vector<1x8x28xf32>
    %142 = vector.shape_cast %141 : vector<1x8x28xf32> to vector<8x28xf32>
    %143 = arith.truncf %142 : vector<8x28xf32> to vector<8x28xbf16>
    %c0_99 = arith.constant 0 : index
    %c0_100 = arith.constant 0 : index
    %144 = vector.load %arg2[%c0_99, %c0_100] : memref<28x128xbf16, #tpu.memory_space<vmem>>, vector<28x128xbf16>
    %cst_101 = arith.constant dense<0.000000e+00> : vector<8x128xf32>
    %145 = tpu.matmul %143, %144, %cst_101 {dimension_numbers = #tpu.dot_dimension_numbers<[1], [0], [0], [1], [0, 0, 1, 1], [], []>} : vector<8x28xbf16>, vector<28x128xbf16>, vector<8x128xf32> -> vector<8x128xf32>
    %c0_102 = arith.constant 0 : index
    %c0_103 = arith.constant 0 : index
    %146 = vector.load %arg3[%c0_102, %c0_103] : memref<128x128xbf16, #tpu.memory_space<vmem>>, vector<128x128xbf16>
    %cst_104 = arith.constant dense<0.000000e+00> : vector<8x128xf32>
    %147 = tpu.matmul %119, %146, %cst_104 {dimension_numbers = #tpu.dot_dimension_numbers<[1], [0], [0], [1], [0, 0, 1, 1], [], []>} : vector<8x128xbf16>, vector<128x128xbf16>, vector<8x128xf32> -> vector<8x128xf32>
    %148 = arith.addf %145, %147 : vector<8x128xf32>
    %149 = vector.broadcast %0 : vector<1x128xf32> to vector<8x128xf32>
    %150 = arith.addf %148, %149 : vector<8x128xf32>
    %cst_105 = arith.constant 0.000000e+00 : f32
    %151 = vector.broadcast %cst_105 : f32 to vector<8x128xf32>
    %152 = arith.maximumf %150, %151 : vector<8x128xf32>
    %153 = arith.truncf %152 : vector<8x128xf32> to vector<8x128xbf16>
    %c0_106 = arith.constant 0 : index
    %c0_107 = arith.constant 0 : index
    %154 = vector.load %arg5[%c0_106, %c0_107] : memref<128x128xbf16, #tpu.memory_space<vmem>>, vector<128x128xbf16>
    %cst_108 = arith.constant dense<0.000000e+00> : vector<8x128xf32>
    %155 = tpu.matmul %153, %154, %cst_108 {dimension_numbers = #tpu.dot_dimension_numbers<[1], [0], [0], [1], [0, 0, 1, 1], [], []>} : vector<8x128xbf16>, vector<128x128xbf16>, vector<8x128xf32> -> vector<8x128xf32>
    %c0_109 = arith.constant 0 : index
    %c0_110 = arith.constant 0 : index
    %156 = vector.load %arg6[%c0_109, %c0_110] : memref<128x128xbf16, #tpu.memory_space<vmem>>, vector<128x128xbf16>
    %cst_111 = arith.constant dense<0.000000e+00> : vector<8x128xf32>
    %157 = tpu.matmul %129, %156, %cst_111 {dimension_numbers = #tpu.dot_dimension_numbers<[1], [0], [0], [1], [0, 0, 1, 1], [], []>} : vector<8x128xbf16>, vector<128x128xbf16>, vector<8x128xf32> -> vector<8x128xf32>
    %158 = arith.addf %155, %157 : vector<8x128xf32>
    %159 = vector.broadcast %1 : vector<1x128xf32> to vector<8x128xf32>
    %160 = arith.addf %158, %159 : vector<8x128xf32>
    %cst_112 = arith.constant 0.000000e+00 : f32
    %161 = vector.broadcast %cst_112 : f32 to vector<8x128xf32>
    %162 = arith.maximumf %160, %161 : vector<8x128xf32>
    %163 = arith.truncf %162 : vector<8x128xf32> to vector<8x128xbf16>
    %c0_113 = arith.constant 0 : index
    %c0_114 = arith.constant 0 : index
    %164 = vector.load %arg8[%c0_113, %c0_114] : memref<128x128xbf16, #tpu.memory_space<vmem>>, vector<128x128xbf16>
    %cst_115 = arith.constant dense<0.000000e+00> : vector<8x128xf32>
    %165 = tpu.matmul %163, %164, %cst_115 {dimension_numbers = #tpu.dot_dimension_numbers<[1], [0], [0], [1], [0, 0, 1, 1], [], []>} : vector<8x128xbf16>, vector<128x128xbf16>, vector<8x128xf32> -> vector<8x128xf32>
    %c0_116 = arith.constant 0 : index
    %c0_117 = arith.constant 0 : index
    %166 = vector.load %arg9[%c0_116, %c0_117] : memref<128x128xbf16, #tpu.memory_space<vmem>>, vector<128x128xbf16>
    %cst_118 = arith.constant dense<0.000000e+00> : vector<8x128xf32>
    %167 = tpu.matmul %139, %166, %cst_118 {dimension_numbers = #tpu.dot_dimension_numbers<[1], [0], [0], [1], [0, 0, 1, 1], [], []>} : vector<8x128xbf16>, vector<128x128xbf16>, vector<8x128xf32> -> vector<8x128xf32>
    %168 = arith.addf %165, %167 : vector<8x128xf32>
    %169 = vector.broadcast %2 : vector<1x128xf32> to vector<8x128xf32>
    %170 = arith.addf %168, %169 : vector<8x128xf32>
    %cst_119 = arith.constant 0.000000e+00 : f32
    %171 = vector.broadcast %cst_119 : f32 to vector<8x128xf32>
    %172 = arith.maximumf %170, %171 : vector<8x128xf32>
    %173 = arith.truncf %172 : vector<8x128xf32> to vector<8x128xbf16>
    %c5_i32 = arith.constant 5 : i32
    %174 = arith.index_cast %c5_i32 : i32 to index
    %c0_120 = arith.constant 0 : index
    %c0_121 = arith.constant 0 : index
    %175 = vector.load %arg1[%174, %c0_120, %c0_121] : memref<28x8x28xf32, #tpu.memory_space<vmem>>, vector<1x8x28xf32>
    %176 = vector.shape_cast %175 : vector<1x8x28xf32> to vector<8x28xf32>
    %177 = arith.truncf %176 : vector<8x28xf32> to vector<8x28xbf16>
    %c0_122 = arith.constant 0 : index
    %c0_123 = arith.constant 0 : index
    %178 = vector.load %arg2[%c0_122, %c0_123] : memref<28x128xbf16, #tpu.memory_space<vmem>>, vector<28x128xbf16>
    %cst_124 = arith.constant dense<0.000000e+00> : vector<8x128xf32>
    %179 = tpu.matmul %177, %178, %cst_124 {dimension_numbers = #tpu.dot_dimension_numbers<[1], [0], [0], [1], [0, 0, 1, 1], [], []>} : vector<8x28xbf16>, vector<28x128xbf16>, vector<8x128xf32> -> vector<8x128xf32>
    %c0_125 = arith.constant 0 : index
    %c0_126 = arith.constant 0 : index
    %180 = vector.load %arg3[%c0_125, %c0_126] : memref<128x128xbf16, #tpu.memory_space<vmem>>, vector<128x128xbf16>
    %cst_127 = arith.constant dense<0.000000e+00> : vector<8x128xf32>
    %181 = tpu.matmul %153, %180, %cst_127 {dimension_numbers = #tpu.dot_dimension_numbers<[1], [0], [0], [1], [0, 0, 1, 1], [], []>} : vector<8x128xbf16>, vector<128x128xbf16>, vector<8x128xf32> -> vector<8x128xf32>
    %182 = arith.addf %179, %181 : vector<8x128xf32>
    %183 = vector.broadcast %0 : vector<1x128xf32> to vector<8x128xf32>
    %184 = arith.addf %182, %183 : vector<8x128xf32>
    %cst_128 = arith.constant 0.000000e+00 : f32
    %185 = vector.broadcast %cst_128 : f32 to vector<8x128xf32>
    %186 = arith.maximumf %184, %185 : vector<8x128xf32>
    %187 = arith.truncf %186 : vector<8x128xf32> to vector<8x128xbf16>
    %c0_129 = arith.constant 0 : index
    %c0_130 = arith.constant 0 : index
    %188 = vector.load %arg5[%c0_129, %c0_130] : memref<128x128xbf16, #tpu.memory_space<vmem>>, vector<128x128xbf16>
    %cst_131 = arith.constant dense<0.000000e+00> : vector<8x128xf32>
    %189 = tpu.matmul %187, %188, %cst_131 {dimension_numbers = #tpu.dot_dimension_numbers<[1], [0], [0], [1], [0, 0, 1, 1], [], []>} : vector<8x128xbf16>, vector<128x128xbf16>, vector<8x128xf32> -> vector<8x128xf32>
    %c0_132 = arith.constant 0 : index
    %c0_133 = arith.constant 0 : index
    %190 = vector.load %arg6[%c0_132, %c0_133] : memref<128x128xbf16, #tpu.memory_space<vmem>>, vector<128x128xbf16>
    %cst_134 = arith.constant dense<0.000000e+00> : vector<8x128xf32>
    %191 = tpu.matmul %163, %190, %cst_134 {dimension_numbers = #tpu.dot_dimension_numbers<[1], [0], [0], [1], [0, 0, 1, 1], [], []>} : vector<8x128xbf16>, vector<128x128xbf16>, vector<8x128xf32> -> vector<8x128xf32>
    %192 = arith.addf %189, %191 : vector<8x128xf32>
    %193 = vector.broadcast %1 : vector<1x128xf32> to vector<8x128xf32>
    %194 = arith.addf %192, %193 : vector<8x128xf32>
    %cst_135 = arith.constant 0.000000e+00 : f32
    %195 = vector.broadcast %cst_135 : f32 to vector<8x128xf32>
    %196 = arith.maximumf %194, %195 : vector<8x128xf32>
    %197 = arith.truncf %196 : vector<8x128xf32> to vector<8x128xbf16>
    %c0_136 = arith.constant 0 : index
    %c0_137 = arith.constant 0 : index
    %198 = vector.load %arg8[%c0_136, %c0_137] : memref<128x128xbf16, #tpu.memory_space<vmem>>, vector<128x128xbf16>
    %cst_138 = arith.constant dense<0.000000e+00> : vector<8x128xf32>
    %199 = tpu.matmul %197, %198, %cst_138 {dimension_numbers = #tpu.dot_dimension_numbers<[1], [0], [0], [1], [0, 0, 1, 1], [], []>} : vector<8x128xbf16>, vector<128x128xbf16>, vector<8x128xf32> -> vector<8x128xf32>
    %c0_139 = arith.constant 0 : index
    %c0_140 = arith.constant 0 : index
    %200 = vector.load %arg9[%c0_139, %c0_140] : memref<128x128xbf16, #tpu.memory_space<vmem>>, vector<128x128xbf16>
    %cst_141 = arith.constant dense<0.000000e+00> : vector<8x128xf32>
    %201 = tpu.matmul %173, %200, %cst_141 {dimension_numbers = #tpu.dot_dimension_numbers<[1], [0], [0], [1], [0, 0, 1, 1], [], []>} : vector<8x128xbf16>, vector<128x128xbf16>, vector<8x128xf32> -> vector<8x128xf32>
    %202 = arith.addf %199, %201 : vector<8x128xf32>
    %203 = vector.broadcast %2 : vector<1x128xf32> to vector<8x128xf32>
    %204 = arith.addf %202, %203 : vector<8x128xf32>
    %cst_142 = arith.constant 0.000000e+00 : f32
    %205 = vector.broadcast %cst_142 : f32 to vector<8x128xf32>
    %206 = arith.maximumf %204, %205 : vector<8x128xf32>
    %207 = arith.truncf %206 : vector<8x128xf32> to vector<8x128xbf16>
    %c6_i32 = arith.constant 6 : i32
    %208 = arith.index_cast %c6_i32 : i32 to index
    %c0_143 = arith.constant 0 : index
    %c0_144 = arith.constant 0 : index
    %209 = vector.load %arg1[%208, %c0_143, %c0_144] : memref<28x8x28xf32, #tpu.memory_space<vmem>>, vector<1x8x28xf32>
    %210 = vector.shape_cast %209 : vector<1x8x28xf32> to vector<8x28xf32>
    %211 = arith.truncf %210 : vector<8x28xf32> to vector<8x28xbf16>
    %c0_145 = arith.constant 0 : index
    %c0_146 = arith.constant 0 : index
    %212 = vector.load %arg2[%c0_145, %c0_146] : memref<28x128xbf16, #tpu.memory_space<vmem>>, vector<28x128xbf16>
    %cst_147 = arith.constant dense<0.000000e+00> : vector<8x128xf32>
    %213 = tpu.matmul %211, %212, %cst_147 {dimension_numbers = #tpu.dot_dimension_numbers<[1], [0], [0], [1], [0, 0, 1, 1], [], []>} : vector<8x28xbf16>, vector<28x128xbf16>, vector<8x128xf32> -> vector<8x128xf32>
    %c0_148 = arith.constant 0 : index
    %c0_149 = arith.constant 0 : index
    %214 = vector.load %arg3[%c0_148, %c0_149] : memref<128x128xbf16, #tpu.memory_space<vmem>>, vector<128x128xbf16>
    %cst_150 = arith.constant dense<0.000000e+00> : vector<8x128xf32>
    %215 = tpu.matmul %187, %214, %cst_150 {dimension_numbers = #tpu.dot_dimension_numbers<[1], [0], [0], [1], [0, 0, 1, 1], [], []>} : vector<8x128xbf16>, vector<128x128xbf16>, vector<8x128xf32> -> vector<8x128xf32>
    %216 = arith.addf %213, %215 : vector<8x128xf32>
    %217 = vector.broadcast %0 : vector<1x128xf32> to vector<8x128xf32>
    %218 = arith.addf %216, %217 : vector<8x128xf32>
    %cst_151 = arith.constant 0.000000e+00 : f32
    %219 = vector.broadcast %cst_151 : f32 to vector<8x128xf32>
    %220 = arith.maximumf %218, %219 : vector<8x128xf32>
    %221 = arith.truncf %220 : vector<8x128xf32> to vector<8x128xbf16>
    %c0_152 = arith.constant 0 : index
    %c0_153 = arith.constant 0 : index
    %222 = vector.load %arg5[%c0_152, %c0_153] : memref<128x128xbf16, #tpu.memory_space<vmem>>, vector<128x128xbf16>
    %cst_154 = arith.constant dense<0.000000e+00> : vector<8x128xf32>
    %223 = tpu.matmul %221, %222, %cst_154 {dimension_numbers = #tpu.dot_dimension_numbers<[1], [0], [0], [1], [0, 0, 1, 1], [], []>} : vector<8x128xbf16>, vector<128x128xbf16>, vector<8x128xf32> -> vector<8x128xf32>
    %c0_155 = arith.constant 0 : index
    %c0_156 = arith.constant 0 : index
    %224 = vector.load %arg6[%c0_155, %c0_156] : memref<128x128xbf16, #tpu.memory_space<vmem>>, vector<128x128xbf16>
    %cst_157 = arith.constant dense<0.000000e+00> : vector<8x128xf32>
    %225 = tpu.matmul %197, %224, %cst_157 {dimension_numbers = #tpu.dot_dimension_numbers<[1], [0], [0], [1], [0, 0, 1, 1], [], []>} : vector<8x128xbf16>, vector<128x128xbf16>, vector<8x128xf32> -> vector<8x128xf32>
    %226 = arith.addf %223, %225 : vector<8x128xf32>
    %227 = vector.broadcast %1 : vector<1x128xf32> to vector<8x128xf32>
    %228 = arith.addf %226, %227 : vector<8x128xf32>
    %cst_158 = arith.constant 0.000000e+00 : f32
    %229 = vector.broadcast %cst_158 : f32 to vector<8x128xf32>
    %230 = arith.maximumf %228, %229 : vector<8x128xf32>
    %231 = arith.truncf %230 : vector<8x128xf32> to vector<8x128xbf16>
    %c0_159 = arith.constant 0 : index
    %c0_160 = arith.constant 0 : index
    %232 = vector.load %arg8[%c0_159, %c0_160] : memref<128x128xbf16, #tpu.memory_space<vmem>>, vector<128x128xbf16>
    %cst_161 = arith.constant dense<0.000000e+00> : vector<8x128xf32>
    %233 = tpu.matmul %231, %232, %cst_161 {dimension_numbers = #tpu.dot_dimension_numbers<[1], [0], [0], [1], [0, 0, 1, 1], [], []>} : vector<8x128xbf16>, vector<128x128xbf16>, vector<8x128xf32> -> vector<8x128xf32>
    %c0_162 = arith.constant 0 : index
    %c0_163 = arith.constant 0 : index
    %234 = vector.load %arg9[%c0_162, %c0_163] : memref<128x128xbf16, #tpu.memory_space<vmem>>, vector<128x128xbf16>
    %cst_164 = arith.constant dense<0.000000e+00> : vector<8x128xf32>
    %235 = tpu.matmul %207, %234, %cst_164 {dimension_numbers = #tpu.dot_dimension_numbers<[1], [0], [0], [1], [0, 0, 1, 1], [], []>} : vector<8x128xbf16>, vector<128x128xbf16>, vector<8x128xf32> -> vector<8x128xf32>
    %236 = arith.addf %233, %235 : vector<8x128xf32>
    %237 = vector.broadcast %2 : vector<1x128xf32> to vector<8x128xf32>
    %238 = arith.addf %236, %237 : vector<8x128xf32>
    %cst_165 = arith.constant 0.000000e+00 : f32
    %239 = vector.broadcast %cst_165 : f32 to vector<8x128xf32>
    %240 = arith.maximumf %238, %239 : vector<8x128xf32>
    %241 = arith.truncf %240 : vector<8x128xf32> to vector<8x128xbf16>
    %c7_i32 = arith.constant 7 : i32
    %242 = arith.index_cast %c7_i32 : i32 to index
    %c0_166 = arith.constant 0 : index
    %c0_167 = arith.constant 0 : index
    %243 = vector.load %arg1[%242, %c0_166, %c0_167] : memref<28x8x28xf32, #tpu.memory_space<vmem>>, vector<1x8x28xf32>
    %244 = vector.shape_cast %243 : vector<1x8x28xf32> to vector<8x28xf32>
    %245 = arith.truncf %244 : vector<8x28xf32> to vector<8x28xbf16>
    %c0_168 = arith.constant 0 : index
    %c0_169 = arith.constant 0 : index
    %246 = vector.load %arg2[%c0_168, %c0_169] : memref<28x128xbf16, #tpu.memory_space<vmem>>, vector<28x128xbf16>
    %cst_170 = arith.constant dense<0.000000e+00> : vector<8x128xf32>
    %247 = tpu.matmul %245, %246, %cst_170 {dimension_numbers = #tpu.dot_dimension_numbers<[1], [0], [0], [1], [0, 0, 1, 1], [], []>} : vector<8x28xbf16>, vector<28x128xbf16>, vector<8x128xf32> -> vector<8x128xf32>
    %c0_171 = arith.constant 0 : index
    %c0_172 = arith.constant 0 : index
    %248 = vector.load %arg3[%c0_171, %c0_172] : memref<128x128xbf16, #tpu.memory_space<vmem>>, vector<128x128xbf16>
    %cst_173 = arith.constant dense<0.000000e+00> : vector<8x128xf32>
    %249 = tpu.matmul %221, %248, %cst_173 {dimension_numbers = #tpu.dot_dimension_numbers<[1], [0], [0], [1], [0, 0, 1, 1], [], []>} : vector<8x128xbf16>, vector<128x128xbf16>, vector<8x128xf32> -> vector<8x128xf32>
    %250 = arith.addf %247, %249 : vector<8x128xf32>
    %251 = vector.broadcast %0 : vector<1x128xf32> to vector<8x128xf32>
    %252 = arith.addf %250, %251 : vector<8x128xf32>
    %cst_174 = arith.constant 0.000000e+00 : f32
    %253 = vector.broadcast %cst_174 : f32 to vector<8x128xf32>
    %254 = arith.maximumf %252, %253 : vector<8x128xf32>
    %255 = arith.truncf %254 : vector<8x128xf32> to vector<8x128xbf16>
    %c0_175 = arith.constant 0 : index
    %c0_176 = arith.constant 0 : index
    %256 = vector.load %arg5[%c0_175, %c0_176] : memref<128x128xbf16, #tpu.memory_space<vmem>>, vector<128x128xbf16>
    %cst_177 = arith.constant dense<0.000000e+00> : vector<8x128xf32>
    %257 = tpu.matmul %255, %256, %cst_177 {dimension_numbers = #tpu.dot_dimension_numbers<[1], [0], [0], [1], [0, 0, 1, 1], [], []>} : vector<8x128xbf16>, vector<128x128xbf16>, vector<8x128xf32> -> vector<8x128xf32>
    %c0_178 = arith.constant 0 : index
    %c0_179 = arith.constant 0 : index
    %258 = vector.load %arg6[%c0_178, %c0_179] : memref<128x128xbf16, #tpu.memory_space<vmem>>, vector<128x128xbf16>
    %cst_180 = arith.constant dense<0.000000e+00> : vector<8x128xf32>
    %259 = tpu.matmul %231, %258, %cst_180 {dimension_numbers = #tpu.dot_dimension_numbers<[1], [0], [0], [1], [0, 0, 1, 1], [], []>} : vector<8x128xbf16>, vector<128x128xbf16>, vector<8x128xf32> -> vector<8x128xf32>
    %260 = arith.addf %257, %259 : vector<8x128xf32>
    %261 = vector.broadcast %1 : vector<1x128xf32> to vector<8x128xf32>
    %262 = arith.addf %260, %261 : vector<8x128xf32>
    %cst_181 = arith.constant 0.000000e+00 : f32
    %263 = vector.broadcast %cst_181 : f32 to vector<8x128xf32>
    %264 = arith.maximumf %262, %263 : vector<8x128xf32>
    %265 = arith.truncf %264 : vector<8x128xf32> to vector<8x128xbf16>
    %c0_182 = arith.constant 0 : index
    %c0_183 = arith.constant 0 : index
    %266 = vector.load %arg8[%c0_182, %c0_183] : memref<128x128xbf16, #tpu.memory_space<vmem>>, vector<128x128xbf16>
    %cst_184 = arith.constant dense<0.000000e+00> : vector<8x128xf32>
    %267 = tpu.matmul %265, %266, %cst_184 {dimension_numbers = #tpu.dot_dimension_numbers<[1], [0], [0], [1], [0, 0, 1, 1], [], []>} : vector<8x128xbf16>, vector<128x128xbf16>, vector<8x128xf32> -> vector<8x128xf32>
    %c0_185 = arith.constant 0 : index
    %c0_186 = arith.constant 0 : index
    %268 = vector.load %arg9[%c0_185, %c0_186] : memref<128x128xbf16, #tpu.memory_space<vmem>>, vector<128x128xbf16>
    %cst_187 = arith.constant dense<0.000000e+00> : vector<8x128xf32>
    %269 = tpu.matmul %241, %268, %cst_187 {dimension_numbers = #tpu.dot_dimension_numbers<[1], [0], [0], [1], [0, 0, 1, 1], [], []>} : vector<8x128xbf16>, vector<128x128xbf16>, vector<8x128xf32> -> vector<8x128xf32>
    %270 = arith.addf %267, %269 : vector<8x128xf32>
    %271 = vector.broadcast %2 : vector<1x128xf32> to vector<8x128xf32>
    %272 = arith.addf %270, %271 : vector<8x128xf32>
    %cst_188 = arith.constant 0.000000e+00 : f32
    %273 = vector.broadcast %cst_188 : f32 to vector<8x128xf32>
    %274 = arith.maximumf %272, %273 : vector<8x128xf32>
    %275 = arith.truncf %274 : vector<8x128xf32> to vector<8x128xbf16>
    %c8_i32 = arith.constant 8 : i32
    %276 = arith.index_cast %c8_i32 : i32 to index
    %c0_189 = arith.constant 0 : index
    %c0_190 = arith.constant 0 : index
    %277 = vector.load %arg1[%276, %c0_189, %c0_190] : memref<28x8x28xf32, #tpu.memory_space<vmem>>, vector<1x8x28xf32>
    %278 = vector.shape_cast %277 : vector<1x8x28xf32> to vector<8x28xf32>
    %279 = arith.truncf %278 : vector<8x28xf32> to vector<8x28xbf16>
    %c0_191 = arith.constant 0 : index
    %c0_192 = arith.constant 0 : index
    %280 = vector.load %arg2[%c0_191, %c0_192] : memref<28x128xbf16, #tpu.memory_space<vmem>>, vector<28x128xbf16>
    %cst_193 = arith.constant dense<0.000000e+00> : vector<8x128xf32>
    %281 = tpu.matmul %279, %280, %cst_193 {dimension_numbers = #tpu.dot_dimension_numbers<[1], [0], [0], [1], [0, 0, 1, 1], [], []>} : vector<8x28xbf16>, vector<28x128xbf16>, vector<8x128xf32> -> vector<8x128xf32>
    %c0_194 = arith.constant 0 : index
    %c0_195 = arith.constant 0 : index
    %282 = vector.load %arg3[%c0_194, %c0_195] : memref<128x128xbf16, #tpu.memory_space<vmem>>, vector<128x128xbf16>
    %cst_196 = arith.constant dense<0.000000e+00> : vector<8x128xf32>
    %283 = tpu.matmul %255, %282, %cst_196 {dimension_numbers = #tpu.dot_dimension_numbers<[1], [0], [0], [1], [0, 0, 1, 1], [], []>} : vector<8x128xbf16>, vector<128x128xbf16>, vector<8x128xf32> -> vector<8x128xf32>
    %284 = arith.addf %281, %283 : vector<8x128xf32>
    %285 = vector.broadcast %0 : vector<1x128xf32> to vector<8x128xf32>
    %286 = arith.addf %284, %285 : vector<8x128xf32>
    %cst_197 = arith.constant 0.000000e+00 : f32
    %287 = vector.broadcast %cst_197 : f32 to vector<8x128xf32>
    %288 = arith.maximumf %286, %287 : vector<8x128xf32>
    %289 = arith.truncf %288 : vector<8x128xf32> to vector<8x128xbf16>
    %c0_198 = arith.constant 0 : index
    %c0_199 = arith.constant 0 : index
    %290 = vector.load %arg5[%c0_198, %c0_199] : memref<128x128xbf16, #tpu.memory_space<vmem>>, vector<128x128xbf16>
    %cst_200 = arith.constant dense<0.000000e+00> : vector<8x128xf32>
    %291 = tpu.matmul %289, %290, %cst_200 {dimension_numbers = #tpu.dot_dimension_numbers<[1], [0], [0], [1], [0, 0, 1, 1], [], []>} : vector<8x128xbf16>, vector<128x128xbf16>, vector<8x128xf32> -> vector<8x128xf32>
    %c0_201 = arith.constant 0 : index
    %c0_202 = arith.constant 0 : index
    %292 = vector.load %arg6[%c0_201, %c0_202] : memref<128x128xbf16, #tpu.memory_space<vmem>>, vector<128x128xbf16>
    %cst_203 = arith.constant dense<0.000000e+00> : vector<8x128xf32>
    %293 = tpu.matmul %265, %292, %cst_203 {dimension_numbers = #tpu.dot_dimension_numbers<[1], [0], [0], [1], [0, 0, 1, 1], [], []>} : vector<8x128xbf16>, vector<128x128xbf16>, vector<8x128xf32> -> vector<8x128xf32>
    %294 = arith.addf %291, %293 : vector<8x128xf32>
    %295 = vector.broadcast %1 : vector<1x128xf32> to vector<8x128xf32>
    %296 = arith.addf %294, %295 : vector<8x128xf32>
    %cst_204 = arith.constant 0.000000e+00 : f32
    %297 = vector.broadcast %cst_204 : f32 to vector<8x128xf32>
    %298 = arith.maximumf %296, %297 : vector<8x128xf32>
    %299 = arith.truncf %298 : vector<8x128xf32> to vector<8x128xbf16>
    %c0_205 = arith.constant 0 : index
    %c0_206 = arith.constant 0 : index
    %300 = vector.load %arg8[%c0_205, %c0_206] : memref<128x128xbf16, #tpu.memory_space<vmem>>, vector<128x128xbf16>
    %cst_207 = arith.constant dense<0.000000e+00> : vector<8x128xf32>
    %301 = tpu.matmul %299, %300, %cst_207 {dimension_numbers = #tpu.dot_dimension_numbers<[1], [0], [0], [1], [0, 0, 1, 1], [], []>} : vector<8x128xbf16>, vector<128x128xbf16>, vector<8x128xf32> -> vector<8x128xf32>
    %c0_208 = arith.constant 0 : index
    %c0_209 = arith.constant 0 : index
    %302 = vector.load %arg9[%c0_208, %c0_209] : memref<128x128xbf16, #tpu.memory_space<vmem>>, vector<128x128xbf16>
    %cst_210 = arith.constant dense<0.000000e+00> : vector<8x128xf32>
    %303 = tpu.matmul %275, %302, %cst_210 {dimension_numbers = #tpu.dot_dimension_numbers<[1], [0], [0], [1], [0, 0, 1, 1], [], []>} : vector<8x128xbf16>, vector<128x128xbf16>, vector<8x128xf32> -> vector<8x128xf32>
    %304 = arith.addf %301, %303 : vector<8x128xf32>
    %305 = vector.broadcast %2 : vector<1x128xf32> to vector<8x128xf32>
    %306 = arith.addf %304, %305 : vector<8x128xf32>
    %cst_211 = arith.constant 0.000000e+00 : f32
    %307 = vector.broadcast %cst_211 : f32 to vector<8x128xf32>
    %308 = arith.maximumf %306, %307 : vector<8x128xf32>
    %309 = arith.truncf %308 : vector<8x128xf32> to vector<8x128xbf16>
    %c9_i32 = arith.constant 9 : i32
    %310 = arith.index_cast %c9_i32 : i32 to index
    %c0_212 = arith.constant 0 : index
    %c0_213 = arith.constant 0 : index
    %311 = vector.load %arg1[%310, %c0_212, %c0_213] : memref<28x8x28xf32, #tpu.memory_space<vmem>>, vector<1x8x28xf32>
    %312 = vector.shape_cast %311 : vector<1x8x28xf32> to vector<8x28xf32>
    %313 = arith.truncf %312 : vector<8x28xf32> to vector<8x28xbf16>
    %c0_214 = arith.constant 0 : index
    %c0_215 = arith.constant 0 : index
    %314 = vector.load %arg2[%c0_214, %c0_215] : memref<28x128xbf16, #tpu.memory_space<vmem>>, vector<28x128xbf16>
    %cst_216 = arith.constant dense<0.000000e+00> : vector<8x128xf32>
    %315 = tpu.matmul %313, %314, %cst_216 {dimension_numbers = #tpu.dot_dimension_numbers<[1], [0], [0], [1], [0, 0, 1, 1], [], []>} : vector<8x28xbf16>, vector<28x128xbf16>, vector<8x128xf32> -> vector<8x128xf32>
    %c0_217 = arith.constant 0 : index
    %c0_218 = arith.constant 0 : index
    %316 = vector.load %arg3[%c0_217, %c0_218] : memref<128x128xbf16, #tpu.memory_space<vmem>>, vector<128x128xbf16>
    %cst_219 = arith.constant dense<0.000000e+00> : vector<8x128xf32>
    %317 = tpu.matmul %289, %316, %cst_219 {dimension_numbers = #tpu.dot_dimension_numbers<[1], [0], [0], [1], [0, 0, 1, 1], [], []>} : vector<8x128xbf16>, vector<128x128xbf16>, vector<8x128xf32> -> vector<8x128xf32>
    %318 = arith.addf %315, %317 : vector<8x128xf32>
    %319 = vector.broadcast %0 : vector<1x128xf32> to vector<8x128xf32>
    %320 = arith.addf %318, %319 : vector<8x128xf32>
    %cst_220 = arith.constant 0.000000e+00 : f32
    %321 = vector.broadcast %cst_220 : f32 to vector<8x128xf32>
    %322 = arith.maximumf %320, %321 : vector<8x128xf32>
    %323 = arith.truncf %322 : vector<8x128xf32> to vector<8x128xbf16>
    %c0_221 = arith.constant 0 : index
    %c0_222 = arith.constant 0 : index
    %324 = vector.load %arg5[%c0_221, %c0_222] : memref<128x128xbf16, #tpu.memory_space<vmem>>, vector<128x128xbf16>
    %cst_223 = arith.constant dense<0.000000e+00> : vector<8x128xf32>
    %325 = tpu.matmul %323, %324, %cst_223 {dimension_numbers = #tpu.dot_dimension_numbers<[1], [0], [0], [1], [0, 0, 1, 1], [], []>} : vector<8x128xbf16>, vector<128x128xbf16>, vector<8x128xf32> -> vector<8x128xf32>
    %c0_224 = arith.constant 0 : index
    %c0_225 = arith.constant 0 : index
    %326 = vector.load %arg6[%c0_224, %c0_225] : memref<128x128xbf16, #tpu.memory_space<vmem>>, vector<128x128xbf16>
    %cst_226 = arith.constant dense<0.000000e+00> : vector<8x128xf32>
    %327 = tpu.matmul %299, %326, %cst_226 {dimension_numbers = #tpu.dot_dimension_numbers<[1], [0], [0], [1], [0, 0, 1, 1], [], []>} : vector<8x128xbf16>, vector<128x128xbf16>, vector<8x128xf32> -> vector<8x128xf32>
    %328 = arith.addf %325, %327 : vector<8x128xf32>
    %329 = vector.broadcast %1 : vector<1x128xf32> to vector<8x128xf32>
    %330 = arith.addf %328, %329 : vector<8x128xf32>
    %cst_227 = arith.constant 0.000000e+00 : f32
    %331 = vector.broadcast %cst_227 : f32 to vector<8x128xf32>
    %332 = arith.maximumf %330, %331 : vector<8x128xf32>
    %333 = arith.truncf %332 : vector<8x128xf32> to vector<8x128xbf16>
    %c0_228 = arith.constant 0 : index
    %c0_229 = arith.constant 0 : index
    %334 = vector.load %arg8[%c0_228, %c0_229] : memref<128x128xbf16, #tpu.memory_space<vmem>>, vector<128x128xbf16>
    %cst_230 = arith.constant dense<0.000000e+00> : vector<8x128xf32>
    %335 = tpu.matmul %333, %334, %cst_230 {dimension_numbers = #tpu.dot_dimension_numbers<[1], [0], [0], [1], [0, 0, 1, 1], [], []>} : vector<8x128xbf16>, vector<128x128xbf16>, vector<8x128xf32> -> vector<8x128xf32>
    %c0_231 = arith.constant 0 : index
    %c0_232 = arith.constant 0 : index
    %336 = vector.load %arg9[%c0_231, %c0_232] : memref<128x128xbf16, #tpu.memory_space<vmem>>, vector<128x128xbf16>
    %cst_233 = arith.constant dense<0.000000e+00> : vector<8x128xf32>
    %337 = tpu.matmul %309, %336, %cst_233 {dimension_numbers = #tpu.dot_dimension_numbers<[1], [0], [0], [1], [0, 0, 1, 1], [], []>} : vector<8x128xbf16>, vector<128x128xbf16>, vector<8x128xf32> -> vector<8x128xf32>
    %338 = arith.addf %335, %337 : vector<8x128xf32>
    %339 = vector.broadcast %2 : vector<1x128xf32> to vector<8x128xf32>
    %340 = arith.addf %338, %339 : vector<8x128xf32>
    %cst_234 = arith.constant 0.000000e+00 : f32
    %341 = vector.broadcast %cst_234 : f32 to vector<8x128xf32>
    %342 = arith.maximumf %340, %341 : vector<8x128xf32>
    %343 = arith.truncf %342 : vector<8x128xf32> to vector<8x128xbf16>
    %c10_i32 = arith.constant 10 : i32
    %344 = arith.index_cast %c10_i32 : i32 to index
    %c0_235 = arith.constant 0 : index
    %c0_236 = arith.constant 0 : index
    %345 = vector.load %arg1[%344, %c0_235, %c0_236] : memref<28x8x28xf32, #tpu.memory_space<vmem>>, vector<1x8x28xf32>
    %346 = vector.shape_cast %345 : vector<1x8x28xf32> to vector<8x28xf32>
    %347 = arith.truncf %346 : vector<8x28xf32> to vector<8x28xbf16>
    %c0_237 = arith.constant 0 : index
    %c0_238 = arith.constant 0 : index
    %348 = vector.load %arg2[%c0_237, %c0_238] : memref<28x128xbf16, #tpu.memory_space<vmem>>, vector<28x128xbf16>
    %cst_239 = arith.constant dense<0.000000e+00> : vector<8x128xf32>
    %349 = tpu.matmul %347, %348, %cst_239 {dimension_numbers = #tpu.dot_dimension_numbers<[1], [0], [0], [1], [0, 0, 1, 1], [], []>} : vector<8x28xbf16>, vector<28x128xbf16>, vector<8x128xf32> -> vector<8x128xf32>
    %c0_240 = arith.constant 0 : index
    %c0_241 = arith.constant 0 : index
    %350 = vector.load %arg3[%c0_240, %c0_241] : memref<128x128xbf16, #tpu.memory_space<vmem>>, vector<128x128xbf16>
    %cst_242 = arith.constant dense<0.000000e+00> : vector<8x128xf32>
    %351 = tpu.matmul %323, %350, %cst_242 {dimension_numbers = #tpu.dot_dimension_numbers<[1], [0], [0], [1], [0, 0, 1, 1], [], []>} : vector<8x128xbf16>, vector<128x128xbf16>, vector<8x128xf32> -> vector<8x128xf32>
    %352 = arith.addf %349, %351 : vector<8x128xf32>
    %353 = vector.broadcast %0 : vector<1x128xf32> to vector<8x128xf32>
    %354 = arith.addf %352, %353 : vector<8x128xf32>
    %cst_243 = arith.constant 0.000000e+00 : f32
    %355 = vector.broadcast %cst_243 : f32 to vector<8x128xf32>
    %356 = arith.maximumf %354, %355 : vector<8x128xf32>
    %357 = arith.truncf %356 : vector<8x128xf32> to vector<8x128xbf16>
    %c0_244 = arith.constant 0 : index
    %c0_245 = arith.constant 0 : index
    %358 = vector.load %arg5[%c0_244, %c0_245] : memref<128x128xbf16, #tpu.memory_space<vmem>>, vector<128x128xbf16>
    %cst_246 = arith.constant dense<0.000000e+00> : vector<8x128xf32>
    %359 = tpu.matmul %357, %358, %cst_246 {dimension_numbers = #tpu.dot_dimension_numbers<[1], [0], [0], [1], [0, 0, 1, 1], [], []>} : vector<8x128xbf16>, vector<128x128xbf16>, vector<8x128xf32> -> vector<8x128xf32>
    %c0_247 = arith.constant 0 : index
    %c0_248 = arith.constant 0 : index
    %360 = vector.load %arg6[%c0_247, %c0_248] : memref<128x128xbf16, #tpu.memory_space<vmem>>, vector<128x128xbf16>
    %cst_249 = arith.constant dense<0.000000e+00> : vector<8x128xf32>
    %361 = tpu.matmul %333, %360, %cst_249 {dimension_numbers = #tpu.dot_dimension_numbers<[1], [0], [0], [1], [0, 0, 1, 1], [], []>} : vector<8x128xbf16>, vector<128x128xbf16>, vector<8x128xf32> -> vector<8x128xf32>
    %362 = arith.addf %359, %361 : vector<8x128xf32>
    %363 = vector.broadcast %1 : vector<1x128xf32> to vector<8x128xf32>
    %364 = arith.addf %362, %363 : vector<8x128xf32>
    %cst_250 = arith.constant 0.000000e+00 : f32
    %365 = vector.broadcast %cst_250 : f32 to vector<8x128xf32>
    %366 = arith.maximumf %364, %365 : vector<8x128xf32>
    %367 = arith.truncf %366 : vector<8x128xf32> to vector<8x128xbf16>
    %c0_251 = arith.constant 0 : index
    %c0_252 = arith.constant 0 : index
    %368 = vector.load %arg8[%c0_251, %c0_252] : memref<128x128xbf16, #tpu.memory_space<vmem>>, vector<128x128xbf16>
    %cst_253 = arith.constant dense<0.000000e+00> : vector<8x128xf32>
    %369 = tpu.matmul %367, %368, %cst_253 {dimension_numbers = #tpu.dot_dimension_numbers<[1], [0], [0], [1], [0, 0, 1, 1], [], []>} : vector<8x128xbf16>, vector<128x128xbf16>, vector<8x128xf32> -> vector<8x128xf32>
    %c0_254 = arith.constant 0 : index
    %c0_255 = arith.constant 0 : index
    %370 = vector.load %arg9[%c0_254, %c0_255] : memref<128x128xbf16, #tpu.memory_space<vmem>>, vector<128x128xbf16>
    %cst_256 = arith.constant dense<0.000000e+00> : vector<8x128xf32>
    %371 = tpu.matmul %343, %370, %cst_256 {dimension_numbers = #tpu.dot_dimension_numbers<[1], [0], [0], [1], [0, 0, 1, 1], [], []>} : vector<8x128xbf16>, vector<128x128xbf16>, vector<8x128xf32> -> vector<8x128xf32>
    %372 = arith.addf %369, %371 : vector<8x128xf32>
    %373 = vector.broadcast %2 : vector<1x128xf32> to vector<8x128xf32>
    %374 = arith.addf %372, %373 : vector<8x128xf32>
    %cst_257 = arith.constant 0.000000e+00 : f32
    %375 = vector.broadcast %cst_257 : f32 to vector<8x128xf32>
    %376 = arith.maximumf %374, %375 : vector<8x128xf32>
    %377 = arith.truncf %376 : vector<8x128xf32> to vector<8x128xbf16>
    %c11_i32 = arith.constant 11 : i32
    %378 = arith.index_cast %c11_i32 : i32 to index
    %c0_258 = arith.constant 0 : index
    %c0_259 = arith.constant 0 : index
    %379 = vector.load %arg1[%378, %c0_258, %c0_259] : memref<28x8x28xf32, #tpu.memory_space<vmem>>, vector<1x8x28xf32>
    %380 = vector.shape_cast %379 : vector<1x8x28xf32> to vector<8x28xf32>
    %381 = arith.truncf %380 : vector<8x28xf32> to vector<8x28xbf16>
    %c0_260 = arith.constant 0 : index
    %c0_261 = arith.constant 0 : index
    %382 = vector.load %arg2[%c0_260, %c0_261] : memref<28x128xbf16, #tpu.memory_space<vmem>>, vector<28x128xbf16>
    %cst_262 = arith.constant dense<0.000000e+00> : vector<8x128xf32>
    %383 = tpu.matmul %381, %382, %cst_262 {dimension_numbers = #tpu.dot_dimension_numbers<[1], [0], [0], [1], [0, 0, 1, 1], [], []>} : vector<8x28xbf16>, vector<28x128xbf16>, vector<8x128xf32> -> vector<8x128xf32>
    %c0_263 = arith.constant 0 : index
    %c0_264 = arith.constant 0 : index
    %384 = vector.load %arg3[%c0_263, %c0_264] : memref<128x128xbf16, #tpu.memory_space<vmem>>, vector<128x128xbf16>
    %cst_265 = arith.constant dense<0.000000e+00> : vector<8x128xf32>
    %385 = tpu.matmul %357, %384, %cst_265 {dimension_numbers = #tpu.dot_dimension_numbers<[1], [0], [0], [1], [0, 0, 1, 1], [], []>} : vector<8x128xbf16>, vector<128x128xbf16>, vector<8x128xf32> -> vector<8x128xf32>
    %386 = arith.addf %383, %385 : vector<8x128xf32>
    %387 = vector.broadcast %0 : vector<1x128xf32> to vector<8x128xf32>
    %388 = arith.addf %386, %387 : vector<8x128xf32>
    %cst_266 = arith.constant 0.000000e+00 : f32
    %389 = vector.broadcast %cst_266 : f32 to vector<8x128xf32>
    %390 = arith.maximumf %388, %389 : vector<8x128xf32>
    %391 = arith.truncf %390 : vector<8x128xf32> to vector<8x128xbf16>
    %c0_267 = arith.constant 0 : index
    %c0_268 = arith.constant 0 : index
    %392 = vector.load %arg5[%c0_267, %c0_268] : memref<128x128xbf16, #tpu.memory_space<vmem>>, vector<128x128xbf16>
    %cst_269 = arith.constant dense<0.000000e+00> : vector<8x128xf32>
    %393 = tpu.matmul %391, %392, %cst_269 {dimension_numbers = #tpu.dot_dimension_numbers<[1], [0], [0], [1], [0, 0, 1, 1], [], []>} : vector<8x128xbf16>, vector<128x128xbf16>, vector<8x128xf32> -> vector<8x128xf32>
    %c0_270 = arith.constant 0 : index
    %c0_271 = arith.constant 0 : index
    %394 = vector.load %arg6[%c0_270, %c0_271] : memref<128x128xbf16, #tpu.memory_space<vmem>>, vector<128x128xbf16>
    %cst_272 = arith.constant dense<0.000000e+00> : vector<8x128xf32>
    %395 = tpu.matmul %367, %394, %cst_272 {dimension_numbers = #tpu.dot_dimension_numbers<[1], [0], [0], [1], [0, 0, 1, 1], [], []>} : vector<8x128xbf16>, vector<128x128xbf16>, vector<8x128xf32> -> vector<8x128xf32>
    %396 = arith.addf %393, %395 : vector<8x128xf32>
    %397 = vector.broadcast %1 : vector<1x128xf32> to vector<8x128xf32>
    %398 = arith.addf %396, %397 : vector<8x128xf32>
    %cst_273 = arith.constant 0.000000e+00 : f32
    %399 = vector.broadcast %cst_273 : f32 to vector<8x128xf32>
    %400 = arith.maximumf %398, %399 : vector<8x128xf32>
    %401 = arith.truncf %400 : vector<8x128xf32> to vector<8x128xbf16>
    %c0_274 = arith.constant 0 : index
    %c0_275 = arith.constant 0 : index
    %402 = vector.load %arg8[%c0_274, %c0_275] : memref<128x128xbf16, #tpu.memory_space<vmem>>, vector<128x128xbf16>
    %cst_276 = arith.constant dense<0.000000e+00> : vector<8x128xf32>
    %403 = tpu.matmul %401, %402, %cst_276 {dimension_numbers = #tpu.dot_dimension_numbers<[1], [0], [0], [1], [0, 0, 1, 1], [], []>} : vector<8x128xbf16>, vector<128x128xbf16>, vector<8x128xf32> -> vector<8x128xf32>
    %c0_277 = arith.constant 0 : index
    %c0_278 = arith.constant 0 : index
    %404 = vector.load %arg9[%c0_277, %c0_278] : memref<128x128xbf16, #tpu.memory_space<vmem>>, vector<128x128xbf16>
    %cst_279 = arith.constant dense<0.000000e+00> : vector<8x128xf32>
    %405 = tpu.matmul %377, %404, %cst_279 {dimension_numbers = #tpu.dot_dimension_numbers<[1], [0], [0], [1], [0, 0, 1, 1], [], []>} : vector<8x128xbf16>, vector<128x128xbf16>, vector<8x128xf32> -> vector<8x128xf32>
    %406 = arith.addf %403, %405 : vector<8x128xf32>
    %407 = vector.broadcast %2 : vector<1x128xf32> to vector<8x128xf32>
    %408 = arith.addf %406, %407 : vector<8x128xf32>
    %cst_280 = arith.constant 0.000000e+00 : f32
    %409 = vector.broadcast %cst_280 : f32 to vector<8x128xf32>
    %410 = arith.maximumf %408, %409 : vector<8x128xf32>
    %411 = arith.truncf %410 : vector<8x128xf32> to vector<8x128xbf16>
    %c12_i32 = arith.constant 12 : i32
    %412 = arith.index_cast %c12_i32 : i32 to index
    %c0_281 = arith.constant 0 : index
    %c0_282 = arith.constant 0 : index
    %413 = vector.load %arg1[%412, %c0_281, %c0_282] : memref<28x8x28xf32, #tpu.memory_space<vmem>>, vector<1x8x28xf32>
    %414 = vector.shape_cast %413 : vector<1x8x28xf32> to vector<8x28xf32>
    %415 = arith.truncf %414 : vector<8x28xf32> to vector<8x28xbf16>
    %c0_283 = arith.constant 0 : index
    %c0_284 = arith.constant 0 : index
    %416 = vector.load %arg2[%c0_283, %c0_284] : memref<28x128xbf16, #tpu.memory_space<vmem>>, vector<28x128xbf16>
    %cst_285 = arith.constant dense<0.000000e+00> : vector<8x128xf32>
    %417 = tpu.matmul %415, %416, %cst_285 {dimension_numbers = #tpu.dot_dimension_numbers<[1], [0], [0], [1], [0, 0, 1, 1], [], []>} : vector<8x28xbf16>, vector<28x128xbf16>, vector<8x128xf32> -> vector<8x128xf32>
    %c0_286 = arith.constant 0 : index
    %c0_287 = arith.constant 0 : index
    %418 = vector.load %arg3[%c0_286, %c0_287] : memref<128x128xbf16, #tpu.memory_space<vmem>>, vector<128x128xbf16>
    %cst_288 = arith.constant dense<0.000000e+00> : vector<8x128xf32>
    %419 = tpu.matmul %391, %418, %cst_288 {dimension_numbers = #tpu.dot_dimension_numbers<[1], [0], [0], [1], [0, 0, 1, 1], [], []>} : vector<8x128xbf16>, vector<128x128xbf16>, vector<8x128xf32> -> vector<8x128xf32>
    %420 = arith.addf %417, %419 : vector<8x128xf32>
    %421 = vector.broadcast %0 : vector<1x128xf32> to vector<8x128xf32>
    %422 = arith.addf %420, %421 : vector<8x128xf32>
    %cst_289 = arith.constant 0.000000e+00 : f32
    %423 = vector.broadcast %cst_289 : f32 to vector<8x128xf32>
    %424 = arith.maximumf %422, %423 : vector<8x128xf32>
    %425 = arith.truncf %424 : vector<8x128xf32> to vector<8x128xbf16>
    %c0_290 = arith.constant 0 : index
    %c0_291 = arith.constant 0 : index
    %426 = vector.load %arg5[%c0_290, %c0_291] : memref<128x128xbf16, #tpu.memory_space<vmem>>, vector<128x128xbf16>
    %cst_292 = arith.constant dense<0.000000e+00> : vector<8x128xf32>
    %427 = tpu.matmul %425, %426, %cst_292 {dimension_numbers = #tpu.dot_dimension_numbers<[1], [0], [0], [1], [0, 0, 1, 1], [], []>} : vector<8x128xbf16>, vector<128x128xbf16>, vector<8x128xf32> -> vector<8x128xf32>
    %c0_293 = arith.constant 0 : index
    %c0_294 = arith.constant 0 : index
    %428 = vector.load %arg6[%c0_293, %c0_294] : memref<128x128xbf16, #tpu.memory_space<vmem>>, vector<128x128xbf16>
    %cst_295 = arith.constant dense<0.000000e+00> : vector<8x128xf32>
    %429 = tpu.matmul %401, %428, %cst_295 {dimension_numbers = #tpu.dot_dimension_numbers<[1], [0], [0], [1], [0, 0, 1, 1], [], []>} : vector<8x128xbf16>, vector<128x128xbf16>, vector<8x128xf32> -> vector<8x128xf32>
    %430 = arith.addf %427, %429 : vector<8x128xf32>
    %431 = vector.broadcast %1 : vector<1x128xf32> to vector<8x128xf32>
    %432 = arith.addf %430, %431 : vector<8x128xf32>
    %cst_296 = arith.constant 0.000000e+00 : f32
    %433 = vector.broadcast %cst_296 : f32 to vector<8x128xf32>
    %434 = arith.maximumf %432, %433 : vector<8x128xf32>
    %435 = arith.truncf %434 : vector<8x128xf32> to vector<8x128xbf16>
    %c0_297 = arith.constant 0 : index
    %c0_298 = arith.constant 0 : index
    %436 = vector.load %arg8[%c0_297, %c0_298] : memref<128x128xbf16, #tpu.memory_space<vmem>>, vector<128x128xbf16>
    %cst_299 = arith.constant dense<0.000000e+00> : vector<8x128xf32>
    %437 = tpu.matmul %435, %436, %cst_299 {dimension_numbers = #tpu.dot_dimension_numbers<[1], [0], [0], [1], [0, 0, 1, 1], [], []>} : vector<8x128xbf16>, vector<128x128xbf16>, vector<8x128xf32> -> vector<8x128xf32>
    %c0_300 = arith.constant 0 : index
    %c0_301 = arith.constant 0 : index
    %438 = vector.load %arg9[%c0_300, %c0_301] : memref<128x128xbf16, #tpu.memory_space<vmem>>, vector<128x128xbf16>
    %cst_302 = arith.constant dense<0.000000e+00> : vector<8x128xf32>
    %439 = tpu.matmul %411, %438, %cst_302 {dimension_numbers = #tpu.dot_dimension_numbers<[1], [0], [0], [1], [0, 0, 1, 1], [], []>} : vector<8x128xbf16>, vector<128x128xbf16>, vector<8x128xf32> -> vector<8x128xf32>
    %440 = arith.addf %437, %439 : vector<8x128xf32>
    %441 = vector.broadcast %2 : vector<1x128xf32> to vector<8x128xf32>
    %442 = arith.addf %440, %441 : vector<8x128xf32>
    %cst_303 = arith.constant 0.000000e+00 : f32
    %443 = vector.broadcast %cst_303 : f32 to vector<8x128xf32>
    %444 = arith.maximumf %442, %443 : vector<8x128xf32>
    %445 = arith.truncf %444 : vector<8x128xf32> to vector<8x128xbf16>
    %c13_i32 = arith.constant 13 : i32
    %446 = arith.index_cast %c13_i32 : i32 to index
    %c0_304 = arith.constant 0 : index
    %c0_305 = arith.constant 0 : index
    %447 = vector.load %arg1[%446, %c0_304, %c0_305] : memref<28x8x28xf32, #tpu.memory_space<vmem>>, vector<1x8x28xf32>
    %448 = vector.shape_cast %447 : vector<1x8x28xf32> to vector<8x28xf32>
    %449 = arith.truncf %448 : vector<8x28xf32> to vector<8x28xbf16>
    %c0_306 = arith.constant 0 : index
    %c0_307 = arith.constant 0 : index
    %450 = vector.load %arg2[%c0_306, %c0_307] : memref<28x128xbf16, #tpu.memory_space<vmem>>, vector<28x128xbf16>
    %cst_308 = arith.constant dense<0.000000e+00> : vector<8x128xf32>
    %451 = tpu.matmul %449, %450, %cst_308 {dimension_numbers = #tpu.dot_dimension_numbers<[1], [0], [0], [1], [0, 0, 1, 1], [], []>} : vector<8x28xbf16>, vector<28x128xbf16>, vector<8x128xf32> -> vector<8x128xf32>
    %c0_309 = arith.constant 0 : index
    %c0_310 = arith.constant 0 : index
    %452 = vector.load %arg3[%c0_309, %c0_310] : memref<128x128xbf16, #tpu.memory_space<vmem>>, vector<128x128xbf16>
    %cst_311 = arith.constant dense<0.000000e+00> : vector<8x128xf32>
    %453 = tpu.matmul %425, %452, %cst_311 {dimension_numbers = #tpu.dot_dimension_numbers<[1], [0], [0], [1], [0, 0, 1, 1], [], []>} : vector<8x128xbf16>, vector<128x128xbf16>, vector<8x128xf32> -> vector<8x128xf32>
    %454 = arith.addf %451, %453 : vector<8x128xf32>
    %455 = vector.broadcast %0 : vector<1x128xf32> to vector<8x128xf32>
    %456 = arith.addf %454, %455 : vector<8x128xf32>
    %cst_312 = arith.constant 0.000000e+00 : f32
    %457 = vector.broadcast %cst_312 : f32 to vector<8x128xf32>
    %458 = arith.maximumf %456, %457 : vector<8x128xf32>
    %459 = arith.truncf %458 : vector<8x128xf32> to vector<8x128xbf16>
    %c0_313 = arith.constant 0 : index
    %c0_314 = arith.constant 0 : index
    %460 = vector.load %arg5[%c0_313, %c0_314] : memref<128x128xbf16, #tpu.memory_space<vmem>>, vector<128x128xbf16>
    %cst_315 = arith.constant dense<0.000000e+00> : vector<8x128xf32>
    %461 = tpu.matmul %459, %460, %cst_315 {dimension_numbers = #tpu.dot_dimension_numbers<[1], [0], [0], [1], [0, 0, 1, 1], [], []>} : vector<8x128xbf16>, vector<128x128xbf16>, vector<8x128xf32> -> vector<8x128xf32>
    %c0_316 = arith.constant 0 : index
    %c0_317 = arith.constant 0 : index
    %462 = vector.load %arg6[%c0_316, %c0_317] : memref<128x128xbf16, #tpu.memory_space<vmem>>, vector<128x128xbf16>
    %cst_318 = arith.constant dense<0.000000e+00> : vector<8x128xf32>
    %463 = tpu.matmul %435, %462, %cst_318 {dimension_numbers = #tpu.dot_dimension_numbers<[1], [0], [0], [1], [0, 0, 1, 1], [], []>} : vector<8x128xbf16>, vector<128x128xbf16>, vector<8x128xf32> -> vector<8x128xf32>
    %464 = arith.addf %461, %463 : vector<8x128xf32>
    %465 = vector.broadcast %1 : vector<1x128xf32> to vector<8x128xf32>
    %466 = arith.addf %464, %465 : vector<8x128xf32>
    %cst_319 = arith.constant 0.000000e+00 : f32
    %467 = vector.broadcast %cst_319 : f32 to vector<8x128xf32>
    %468 = arith.maximumf %466, %467 : vector<8x128xf32>
    %469 = arith.truncf %468 : vector<8x128xf32> to vector<8x128xbf16>
    %c0_320 = arith.constant 0 : index
    %c0_321 = arith.constant 0 : index
    %470 = vector.load %arg8[%c0_320, %c0_321] : memref<128x128xbf16, #tpu.memory_space<vmem>>, vector<128x128xbf16>
    %cst_322 = arith.constant dense<0.000000e+00> : vector<8x128xf32>
    %471 = tpu.matmul %469, %470, %cst_322 {dimension_numbers = #tpu.dot_dimension_numbers<[1], [0], [0], [1], [0, 0, 1, 1], [], []>} : vector<8x128xbf16>, vector<128x128xbf16>, vector<8x128xf32> -> vector<8x128xf32>
    %c0_323 = arith.constant 0 : index
    %c0_324 = arith.constant 0 : index
    %472 = vector.load %arg9[%c0_323, %c0_324] : memref<128x128xbf16, #tpu.memory_space<vmem>>, vector<128x128xbf16>
    %cst_325 = arith.constant dense<0.000000e+00> : vector<8x128xf32>
    %473 = tpu.matmul %445, %472, %cst_325 {dimension_numbers = #tpu.dot_dimension_numbers<[1], [0], [0], [1], [0, 0, 1, 1], [], []>} : vector<8x128xbf16>, vector<128x128xbf16>, vector<8x128xf32> -> vector<8x128xf32>
    %474 = arith.addf %471, %473 : vector<8x128xf32>
    %475 = vector.broadcast %2 : vector<1x128xf32> to vector<8x128xf32>
    %476 = arith.addf %474, %475 : vector<8x128xf32>
    %cst_326 = arith.constant 0.000000e+00 : f32
    %477 = vector.broadcast %cst_326 : f32 to vector<8x128xf32>
    %478 = arith.maximumf %476, %477 : vector<8x128xf32>
    %479 = arith.truncf %478 : vector<8x128xf32> to vector<8x128xbf16>
    %c14_i32 = arith.constant 14 : i32
    %480 = arith.index_cast %c14_i32 : i32 to index
    %c0_327 = arith.constant 0 : index
    %c0_328 = arith.constant 0 : index
    %481 = vector.load %arg1[%480, %c0_327, %c0_328] : memref<28x8x28xf32, #tpu.memory_space<vmem>>, vector<1x8x28xf32>
    %482 = vector.shape_cast %481 : vector<1x8x28xf32> to vector<8x28xf32>
    %483 = arith.truncf %482 : vector<8x28xf32> to vector<8x28xbf16>
    %c0_329 = arith.constant 0 : index
    %c0_330 = arith.constant 0 : index
    %484 = vector.load %arg2[%c0_329, %c0_330] : memref<28x128xbf16, #tpu.memory_space<vmem>>, vector<28x128xbf16>
    %cst_331 = arith.constant dense<0.000000e+00> : vector<8x128xf32>
    %485 = tpu.matmul %483, %484, %cst_331 {dimension_numbers = #tpu.dot_dimension_numbers<[1], [0], [0], [1], [0, 0, 1, 1], [], []>} : vector<8x28xbf16>, vector<28x128xbf16>, vector<8x128xf32> -> vector<8x128xf32>
    %c0_332 = arith.constant 0 : index
    %c0_333 = arith.constant 0 : index
    %486 = vector.load %arg3[%c0_332, %c0_333] : memref<128x128xbf16, #tpu.memory_space<vmem>>, vector<128x128xbf16>
    %cst_334 = arith.constant dense<0.000000e+00> : vector<8x128xf32>
    %487 = tpu.matmul %459, %486, %cst_334 {dimension_numbers = #tpu.dot_dimension_numbers<[1], [0], [0], [1], [0, 0, 1, 1], [], []>} : vector<8x128xbf16>, vector<128x128xbf16>, vector<8x128xf32> -> vector<8x128xf32>
    %488 = arith.addf %485, %487 : vector<8x128xf32>
    %489 = vector.broadcast %0 : vector<1x128xf32> to vector<8x128xf32>
    %490 = arith.addf %488, %489 : vector<8x128xf32>
    %cst_335 = arith.constant 0.000000e+00 : f32
    %491 = vector.broadcast %cst_335 : f32 to vector<8x128xf32>
    %492 = arith.maximumf %490, %491 : vector<8x128xf32>
    %493 = arith.truncf %492 : vector<8x128xf32> to vector<8x128xbf16>
    %c0_336 = arith.constant 0 : index
    %c0_337 = arith.constant 0 : index
    %494 = vector.load %arg5[%c0_336, %c0_337] : memref<128x128xbf16, #tpu.memory_space<vmem>>, vector<128x128xbf16>
    %cst_338 = arith.constant dense<0.000000e+00> : vector<8x128xf32>
    %495 = tpu.matmul %493, %494, %cst_338 {dimension_numbers = #tpu.dot_dimension_numbers<[1], [0], [0], [1], [0, 0, 1, 1], [], []>} : vector<8x128xbf16>, vector<128x128xbf16>, vector<8x128xf32> -> vector<8x128xf32>
    %c0_339 = arith.constant 0 : index
    %c0_340 = arith.constant 0 : index
    %496 = vector.load %arg6[%c0_339, %c0_340] : memref<128x128xbf16, #tpu.memory_space<vmem>>, vector<128x128xbf16>
    %cst_341 = arith.constant dense<0.000000e+00> : vector<8x128xf32>
    %497 = tpu.matmul %469, %496, %cst_341 {dimension_numbers = #tpu.dot_dimension_numbers<[1], [0], [0], [1], [0, 0, 1, 1], [], []>} : vector<8x128xbf16>, vector<128x128xbf16>, vector<8x128xf32> -> vector<8x128xf32>
    %498 = arith.addf %495, %497 : vector<8x128xf32>
    %499 = vector.broadcast %1 : vector<1x128xf32> to vector<8x128xf32>
    %500 = arith.addf %498, %499 : vector<8x128xf32>
    %cst_342 = arith.constant 0.000000e+00 : f32
    %501 = vector.broadcast %cst_342 : f32 to vector<8x128xf32>
    %502 = arith.maximumf %500, %501 : vector<8x128xf32>
    %503 = arith.truncf %502 : vector<8x128xf32> to vector<8x128xbf16>
    %c0_343 = arith.constant 0 : index
    %c0_344 = arith.constant 0 : index
    %504 = vector.load %arg8[%c0_343, %c0_344] : memref<128x128xbf16, #tpu.memory_space<vmem>>, vector<128x128xbf16>
    %cst_345 = arith.constant dense<0.000000e+00> : vector<8x128xf32>
    %505 = tpu.matmul %503, %504, %cst_345 {dimension_numbers = #tpu.dot_dimension_numbers<[1], [0], [0], [1], [0, 0, 1, 1], [], []>} : vector<8x128xbf16>, vector<128x128xbf16>, vector<8x128xf32> -> vector<8x128xf32>
    %c0_346 = arith.constant 0 : index
    %c0_347 = arith.constant 0 : index
    %506 = vector.load %arg9[%c0_346, %c0_347] : memref<128x128xbf16, #tpu.memory_space<vmem>>, vector<128x128xbf16>
    %cst_348 = arith.constant dense<0.000000e+00> : vector<8x128xf32>
    %507 = tpu.matmul %479, %506, %cst_348 {dimension_numbers = #tpu.dot_dimension_numbers<[1], [0], [0], [1], [0, 0, 1, 1], [], []>} : vector<8x128xbf16>, vector<128x128xbf16>, vector<8x128xf32> -> vector<8x128xf32>
    %508 = arith.addf %505, %507 : vector<8x128xf32>
    %509 = vector.broadcast %2 : vector<1x128xf32> to vector<8x128xf32>
    %510 = arith.addf %508, %509 : vector<8x128xf32>
    %cst_349 = arith.constant 0.000000e+00 : f32
    %511 = vector.broadcast %cst_349 : f32 to vector<8x128xf32>
    %512 = arith.maximumf %510, %511 : vector<8x128xf32>
    %513 = arith.truncf %512 : vector<8x128xf32> to vector<8x128xbf16>
    %c15_i32 = arith.constant 15 : i32
    %514 = arith.index_cast %c15_i32 : i32 to index
    %c0_350 = arith.constant 0 : index
    %c0_351 = arith.constant 0 : index
    %515 = vector.load %arg1[%514, %c0_350, %c0_351] : memref<28x8x28xf32, #tpu.memory_space<vmem>>, vector<1x8x28xf32>
    %516 = vector.shape_cast %515 : vector<1x8x28xf32> to vector<8x28xf32>
    %517 = arith.truncf %516 : vector<8x28xf32> to vector<8x28xbf16>
    %c0_352 = arith.constant 0 : index
    %c0_353 = arith.constant 0 : index
    %518 = vector.load %arg2[%c0_352, %c0_353] : memref<28x128xbf16, #tpu.memory_space<vmem>>, vector<28x128xbf16>
    %cst_354 = arith.constant dense<0.000000e+00> : vector<8x128xf32>
    %519 = tpu.matmul %517, %518, %cst_354 {dimension_numbers = #tpu.dot_dimension_numbers<[1], [0], [0], [1], [0, 0, 1, 1], [], []>} : vector<8x28xbf16>, vector<28x128xbf16>, vector<8x128xf32> -> vector<8x128xf32>
    %c0_355 = arith.constant 0 : index
    %c0_356 = arith.constant 0 : index
    %520 = vector.load %arg3[%c0_355, %c0_356] : memref<128x128xbf16, #tpu.memory_space<vmem>>, vector<128x128xbf16>
    %cst_357 = arith.constant dense<0.000000e+00> : vector<8x128xf32>
    %521 = tpu.matmul %493, %520, %cst_357 {dimension_numbers = #tpu.dot_dimension_numbers<[1], [0], [0], [1], [0, 0, 1, 1], [], []>} : vector<8x128xbf16>, vector<128x128xbf16>, vector<8x128xf32> -> vector<8x128xf32>
    %522 = arith.addf %519, %521 : vector<8x128xf32>
    %523 = vector.broadcast %0 : vector<1x128xf32> to vector<8x128xf32>
    %524 = arith.addf %522, %523 : vector<8x128xf32>
    %cst_358 = arith.constant 0.000000e+00 : f32
    %525 = vector.broadcast %cst_358 : f32 to vector<8x128xf32>
    %526 = arith.maximumf %524, %525 : vector<8x128xf32>
    %527 = arith.truncf %526 : vector<8x128xf32> to vector<8x128xbf16>
    %c0_359 = arith.constant 0 : index
    %c0_360 = arith.constant 0 : index
    %528 = vector.load %arg5[%c0_359, %c0_360] : memref<128x128xbf16, #tpu.memory_space<vmem>>, vector<128x128xbf16>
    %cst_361 = arith.constant dense<0.000000e+00> : vector<8x128xf32>
    %529 = tpu.matmul %527, %528, %cst_361 {dimension_numbers = #tpu.dot_dimension_numbers<[1], [0], [0], [1], [0, 0, 1, 1], [], []>} : vector<8x128xbf16>, vector<128x128xbf16>, vector<8x128xf32> -> vector<8x128xf32>
    %c0_362 = arith.constant 0 : index
    %c0_363 = arith.constant 0 : index
    %530 = vector.load %arg6[%c0_362, %c0_363] : memref<128x128xbf16, #tpu.memory_space<vmem>>, vector<128x128xbf16>
    %cst_364 = arith.constant dense<0.000000e+00> : vector<8x128xf32>
    %531 = tpu.matmul %503, %530, %cst_364 {dimension_numbers = #tpu.dot_dimension_numbers<[1], [0], [0], [1], [0, 0, 1, 1], [], []>} : vector<8x128xbf16>, vector<128x128xbf16>, vector<8x128xf32> -> vector<8x128xf32>
    %532 = arith.addf %529, %531 : vector<8x128xf32>
    %533 = vector.broadcast %1 : vector<1x128xf32> to vector<8x128xf32>
    %534 = arith.addf %532, %533 : vector<8x128xf32>
    %cst_365 = arith.constant 0.000000e+00 : f32
    %535 = vector.broadcast %cst_365 : f32 to vector<8x128xf32>
    %536 = arith.maximumf %534, %535 : vector<8x128xf32>
    %537 = arith.truncf %536 : vector<8x128xf32> to vector<8x128xbf16>
    %c0_366 = arith.constant 0 : index
    %c0_367 = arith.constant 0 : index
    %538 = vector.load %arg8[%c0_366, %c0_367] : memref<128x128xbf16, #tpu.memory_space<vmem>>, vector<128x128xbf16>
    %cst_368 = arith.constant dense<0.000000e+00> : vector<8x128xf32>
    %539 = tpu.matmul %537, %538, %cst_368 {dimension_numbers = #tpu.dot_dimension_numbers<[1], [0], [0], [1], [0, 0, 1, 1], [], []>} : vector<8x128xbf16>, vector<128x128xbf16>, vector<8x128xf32> -> vector<8x128xf32>
    %c0_369 = arith.constant 0 : index
    %c0_370 = arith.constant 0 : index
    %540 = vector.load %arg9[%c0_369, %c0_370] : memref<128x128xbf16, #tpu.memory_space<vmem>>, vector<128x128xbf16>
    %cst_371 = arith.constant dense<0.000000e+00> : vector<8x128xf32>
    %541 = tpu.matmul %513, %540, %cst_371 {dimension_numbers = #tpu.dot_dimension_numbers<[1], [0], [0], [1], [0, 0, 1, 1], [], []>} : vector<8x128xbf16>, vector<128x128xbf16>, vector<8x128xf32> -> vector<8x128xf32>
    %542 = arith.addf %539, %541 : vector<8x128xf32>
    %543 = vector.broadcast %2 : vector<1x128xf32> to vector<8x128xf32>
    %544 = arith.addf %542, %543 : vector<8x128xf32>
    %cst_372 = arith.constant 0.000000e+00 : f32
    %545 = vector.broadcast %cst_372 : f32 to vector<8x128xf32>
    %546 = arith.maximumf %544, %545 : vector<8x128xf32>
    %547 = arith.truncf %546 : vector<8x128xf32> to vector<8x128xbf16>
    %c16_i32 = arith.constant 16 : i32
    %548 = arith.index_cast %c16_i32 : i32 to index
    %c0_373 = arith.constant 0 : index
    %c0_374 = arith.constant 0 : index
    %549 = vector.load %arg1[%548, %c0_373, %c0_374] : memref<28x8x28xf32, #tpu.memory_space<vmem>>, vector<1x8x28xf32>
    %550 = vector.shape_cast %549 : vector<1x8x28xf32> to vector<8x28xf32>
    %551 = arith.truncf %550 : vector<8x28xf32> to vector<8x28xbf16>
    %c0_375 = arith.constant 0 : index
    %c0_376 = arith.constant 0 : index
    %552 = vector.load %arg2[%c0_375, %c0_376] : memref<28x128xbf16, #tpu.memory_space<vmem>>, vector<28x128xbf16>
    %cst_377 = arith.constant dense<0.000000e+00> : vector<8x128xf32>
    %553 = tpu.matmul %551, %552, %cst_377 {dimension_numbers = #tpu.dot_dimension_numbers<[1], [0], [0], [1], [0, 0, 1, 1], [], []>} : vector<8x28xbf16>, vector<28x128xbf16>, vector<8x128xf32> -> vector<8x128xf32>
    %c0_378 = arith.constant 0 : index
    %c0_379 = arith.constant 0 : index
    %554 = vector.load %arg3[%c0_378, %c0_379] : memref<128x128xbf16, #tpu.memory_space<vmem>>, vector<128x128xbf16>
    %cst_380 = arith.constant dense<0.000000e+00> : vector<8x128xf32>
    %555 = tpu.matmul %527, %554, %cst_380 {dimension_numbers = #tpu.dot_dimension_numbers<[1], [0], [0], [1], [0, 0, 1, 1], [], []>} : vector<8x128xbf16>, vector<128x128xbf16>, vector<8x128xf32> -> vector<8x128xf32>
    %556 = arith.addf %553, %555 : vector<8x128xf32>
    %557 = vector.broadcast %0 : vector<1x128xf32> to vector<8x128xf32>
    %558 = arith.addf %556, %557 : vector<8x128xf32>
    %cst_381 = arith.constant 0.000000e+00 : f32
    %559 = vector.broadcast %cst_381 : f32 to vector<8x128xf32>
    %560 = arith.maximumf %558, %559 : vector<8x128xf32>
    %561 = arith.truncf %560 : vector<8x128xf32> to vector<8x128xbf16>
    %c0_382 = arith.constant 0 : index
    %c0_383 = arith.constant 0 : index
    %562 = vector.load %arg5[%c0_382, %c0_383] : memref<128x128xbf16, #tpu.memory_space<vmem>>, vector<128x128xbf16>
    %cst_384 = arith.constant dense<0.000000e+00> : vector<8x128xf32>
    %563 = tpu.matmul %561, %562, %cst_384 {dimension_numbers = #tpu.dot_dimension_numbers<[1], [0], [0], [1], [0, 0, 1, 1], [], []>} : vector<8x128xbf16>, vector<128x128xbf16>, vector<8x128xf32> -> vector<8x128xf32>
    %c0_385 = arith.constant 0 : index
    %c0_386 = arith.constant 0 : index
    %564 = vector.load %arg6[%c0_385, %c0_386] : memref<128x128xbf16, #tpu.memory_space<vmem>>, vector<128x128xbf16>
    %cst_387 = arith.constant dense<0.000000e+00> : vector<8x128xf32>
    %565 = tpu.matmul %537, %564, %cst_387 {dimension_numbers = #tpu.dot_dimension_numbers<[1], [0], [0], [1], [0, 0, 1, 1], [], []>} : vector<8x128xbf16>, vector<128x128xbf16>, vector<8x128xf32> -> vector<8x128xf32>
    %566 = arith.addf %563, %565 : vector<8x128xf32>
    %567 = vector.broadcast %1 : vector<1x128xf32> to vector<8x128xf32>
    %568 = arith.addf %566, %567 : vector<8x128xf32>
    %cst_388 = arith.constant 0.000000e+00 : f32
    %569 = vector.broadcast %cst_388 : f32 to vector<8x128xf32>
    %570 = arith.maximumf %568, %569 : vector<8x128xf32>
    %571 = arith.truncf %570 : vector<8x128xf32> to vector<8x128xbf16>
    %c0_389 = arith.constant 0 : index
    %c0_390 = arith.constant 0 : index
    %572 = vector.load %arg8[%c0_389, %c0_390] : memref<128x128xbf16, #tpu.memory_space<vmem>>, vector<128x128xbf16>
    %cst_391 = arith.constant dense<0.000000e+00> : vector<8x128xf32>
    %573 = tpu.matmul %571, %572, %cst_391 {dimension_numbers = #tpu.dot_dimension_numbers<[1], [0], [0], [1], [0, 0, 1, 1], [], []>} : vector<8x128xbf16>, vector<128x128xbf16>, vector<8x128xf32> -> vector<8x128xf32>
    %c0_392 = arith.constant 0 : index
    %c0_393 = arith.constant 0 : index
    %574 = vector.load %arg9[%c0_392, %c0_393] : memref<128x128xbf16, #tpu.memory_space<vmem>>, vector<128x128xbf16>
    %cst_394 = arith.constant dense<0.000000e+00> : vector<8x128xf32>
    %575 = tpu.matmul %547, %574, %cst_394 {dimension_numbers = #tpu.dot_dimension_numbers<[1], [0], [0], [1], [0, 0, 1, 1], [], []>} : vector<8x128xbf16>, vector<128x128xbf16>, vector<8x128xf32> -> vector<8x128xf32>
    %576 = arith.addf %573, %575 : vector<8x128xf32>
    %577 = vector.broadcast %2 : vector<1x128xf32> to vector<8x128xf32>
    %578 = arith.addf %576, %577 : vector<8x128xf32>
    %cst_395 = arith.constant 0.000000e+00 : f32
    %579 = vector.broadcast %cst_395 : f32 to vector<8x128xf32>
    %580 = arith.maximumf %578, %579 : vector<8x128xf32>
    %581 = arith.truncf %580 : vector<8x128xf32> to vector<8x128xbf16>
    %c17_i32 = arith.constant 17 : i32
    %582 = arith.index_cast %c17_i32 : i32 to index
    %c0_396 = arith.constant 0 : index
    %c0_397 = arith.constant 0 : index
    %583 = vector.load %arg1[%582, %c0_396, %c0_397] : memref<28x8x28xf32, #tpu.memory_space<vmem>>, vector<1x8x28xf32>
    %584 = vector.shape_cast %583 : vector<1x8x28xf32> to vector<8x28xf32>
    %585 = arith.truncf %584 : vector<8x28xf32> to vector<8x28xbf16>
    %c0_398 = arith.constant 0 : index
    %c0_399 = arith.constant 0 : index
    %586 = vector.load %arg2[%c0_398, %c0_399] : memref<28x128xbf16, #tpu.memory_space<vmem>>, vector<28x128xbf16>
    %cst_400 = arith.constant dense<0.000000e+00> : vector<8x128xf32>
    %587 = tpu.matmul %585, %586, %cst_400 {dimension_numbers = #tpu.dot_dimension_numbers<[1], [0], [0], [1], [0, 0, 1, 1], [], []>} : vector<8x28xbf16>, vector<28x128xbf16>, vector<8x128xf32> -> vector<8x128xf32>
    %c0_401 = arith.constant 0 : index
    %c0_402 = arith.constant 0 : index
    %588 = vector.load %arg3[%c0_401, %c0_402] : memref<128x128xbf16, #tpu.memory_space<vmem>>, vector<128x128xbf16>
    %cst_403 = arith.constant dense<0.000000e+00> : vector<8x128xf32>
    %589 = tpu.matmul %561, %588, %cst_403 {dimension_numbers = #tpu.dot_dimension_numbers<[1], [0], [0], [1], [0, 0, 1, 1], [], []>} : vector<8x128xbf16>, vector<128x128xbf16>, vector<8x128xf32> -> vector<8x128xf32>
    %590 = arith.addf %587, %589 : vector<8x128xf32>
    %591 = vector.broadcast %0 : vector<1x128xf32> to vector<8x128xf32>
    %592 = arith.addf %590, %591 : vector<8x128xf32>
    %cst_404 = arith.constant 0.000000e+00 : f32
    %593 = vector.broadcast %cst_404 : f32 to vector<8x128xf32>
    %594 = arith.maximumf %592, %593 : vector<8x128xf32>
    %595 = arith.truncf %594 : vector<8x128xf32> to vector<8x128xbf16>
    %c0_405 = arith.constant 0 : index
    %c0_406 = arith.constant 0 : index
    %596 = vector.load %arg5[%c0_405, %c0_406] : memref<128x128xbf16, #tpu.memory_space<vmem>>, vector<128x128xbf16>
    %cst_407 = arith.constant dense<0.000000e+00> : vector<8x128xf32>
    %597 = tpu.matmul %595, %596, %cst_407 {dimension_numbers = #tpu.dot_dimension_numbers<[1], [0], [0], [1], [0, 0, 1, 1], [], []>} : vector<8x128xbf16>, vector<128x128xbf16>, vector<8x128xf32> -> vector<8x128xf32>
    %c0_408 = arith.constant 0 : index
    %c0_409 = arith.constant 0 : index
    %598 = vector.load %arg6[%c0_408, %c0_409] : memref<128x128xbf16, #tpu.memory_space<vmem>>, vector<128x128xbf16>
    %cst_410 = arith.constant dense<0.000000e+00> : vector<8x128xf32>
    %599 = tpu.matmul %571, %598, %cst_410 {dimension_numbers = #tpu.dot_dimension_numbers<[1], [0], [0], [1], [0, 0, 1, 1], [], []>} : vector<8x128xbf16>, vector<128x128xbf16>, vector<8x128xf32> -> vector<8x128xf32>
    %600 = arith.addf %597, %599 : vector<8x128xf32>
    %601 = vector.broadcast %1 : vector<1x128xf32> to vector<8x128xf32>
    %602 = arith.addf %600, %601 : vector<8x128xf32>
    %cst_411 = arith.constant 0.000000e+00 : f32
    %603 = vector.broadcast %cst_411 : f32 to vector<8x128xf32>
    %604 = arith.maximumf %602, %603 : vector<8x128xf32>
    %605 = arith.truncf %604 : vector<8x128xf32> to vector<8x128xbf16>
    %c0_412 = arith.constant 0 : index
    %c0_413 = arith.constant 0 : index
    %606 = vector.load %arg8[%c0_412, %c0_413] : memref<128x128xbf16, #tpu.memory_space<vmem>>, vector<128x128xbf16>
    %cst_414 = arith.constant dense<0.000000e+00> : vector<8x128xf32>
    %607 = tpu.matmul %605, %606, %cst_414 {dimension_numbers = #tpu.dot_dimension_numbers<[1], [0], [0], [1], [0, 0, 1, 1], [], []>} : vector<8x128xbf16>, vector<128x128xbf16>, vector<8x128xf32> -> vector<8x128xf32>
    %c0_415 = arith.constant 0 : index
    %c0_416 = arith.constant 0 : index
    %608 = vector.load %arg9[%c0_415, %c0_416] : memref<128x128xbf16, #tpu.memory_space<vmem>>, vector<128x128xbf16>
    %cst_417 = arith.constant dense<0.000000e+00> : vector<8x128xf32>
    %609 = tpu.matmul %581, %608, %cst_417 {dimension_numbers = #tpu.dot_dimension_numbers<[1], [0], [0], [1], [0, 0, 1, 1], [], []>} : vector<8x128xbf16>, vector<128x128xbf16>, vector<8x128xf32> -> vector<8x128xf32>
    %610 = arith.addf %607, %609 : vector<8x128xf32>
    %611 = vector.broadcast %2 : vector<1x128xf32> to vector<8x128xf32>
    %612 = arith.addf %610, %611 : vector<8x128xf32>
    %cst_418 = arith.constant 0.000000e+00 : f32
    %613 = vector.broadcast %cst_418 : f32 to vector<8x128xf32>
    %614 = arith.maximumf %612, %613 : vector<8x128xf32>
    %615 = arith.truncf %614 : vector<8x128xf32> to vector<8x128xbf16>
    %c18_i32 = arith.constant 18 : i32
    %616 = arith.index_cast %c18_i32 : i32 to index
    %c0_419 = arith.constant 0 : index
    %c0_420 = arith.constant 0 : index
    %617 = vector.load %arg1[%616, %c0_419, %c0_420] : memref<28x8x28xf32, #tpu.memory_space<vmem>>, vector<1x8x28xf32>
    %618 = vector.shape_cast %617 : vector<1x8x28xf32> to vector<8x28xf32>
    %619 = arith.truncf %618 : vector<8x28xf32> to vector<8x28xbf16>
    %c0_421 = arith.constant 0 : index
    %c0_422 = arith.constant 0 : index
    %620 = vector.load %arg2[%c0_421, %c0_422] : memref<28x128xbf16, #tpu.memory_space<vmem>>, vector<28x128xbf16>
    %cst_423 = arith.constant dense<0.000000e+00> : vector<8x128xf32>
    %621 = tpu.matmul %619, %620, %cst_423 {dimension_numbers = #tpu.dot_dimension_numbers<[1], [0], [0], [1], [0, 0, 1, 1], [], []>} : vector<8x28xbf16>, vector<28x128xbf16>, vector<8x128xf32> -> vector<8x128xf32>
    %c0_424 = arith.constant 0 : index
    %c0_425 = arith.constant 0 : index
    %622 = vector.load %arg3[%c0_424, %c0_425] : memref<128x128xbf16, #tpu.memory_space<vmem>>, vector<128x128xbf16>
    %cst_426 = arith.constant dense<0.000000e+00> : vector<8x128xf32>
    %623 = tpu.matmul %595, %622, %cst_426 {dimension_numbers = #tpu.dot_dimension_numbers<[1], [0], [0], [1], [0, 0, 1, 1], [], []>} : vector<8x128xbf16>, vector<128x128xbf16>, vector<8x128xf32> -> vector<8x128xf32>
    %624 = arith.addf %621, %623 : vector<8x128xf32>
    %625 = vector.broadcast %0 : vector<1x128xf32> to vector<8x128xf32>
    %626 = arith.addf %624, %625 : vector<8x128xf32>
    %cst_427 = arith.constant 0.000000e+00 : f32
    %627 = vector.broadcast %cst_427 : f32 to vector<8x128xf32>
    %628 = arith.maximumf %626, %627 : vector<8x128xf32>
    %629 = arith.truncf %628 : vector<8x128xf32> to vector<8x128xbf16>
    %c0_428 = arith.constant 0 : index
    %c0_429 = arith.constant 0 : index
    %630 = vector.load %arg5[%c0_428, %c0_429] : memref<128x128xbf16, #tpu.memory_space<vmem>>, vector<128x128xbf16>
    %cst_430 = arith.constant dense<0.000000e+00> : vector<8x128xf32>
    %631 = tpu.matmul %629, %630, %cst_430 {dimension_numbers = #tpu.dot_dimension_numbers<[1], [0], [0], [1], [0, 0, 1, 1], [], []>} : vector<8x128xbf16>, vector<128x128xbf16>, vector<8x128xf32> -> vector<8x128xf32>
    %c0_431 = arith.constant 0 : index
    %c0_432 = arith.constant 0 : index
    %632 = vector.load %arg6[%c0_431, %c0_432] : memref<128x128xbf16, #tpu.memory_space<vmem>>, vector<128x128xbf16>
    %cst_433 = arith.constant dense<0.000000e+00> : vector<8x128xf32>
    %633 = tpu.matmul %605, %632, %cst_433 {dimension_numbers = #tpu.dot_dimension_numbers<[1], [0], [0], [1], [0, 0, 1, 1], [], []>} : vector<8x128xbf16>, vector<128x128xbf16>, vector<8x128xf32> -> vector<8x128xf32>
    %634 = arith.addf %631, %633 : vector<8x128xf32>
    %635 = vector.broadcast %1 : vector<1x128xf32> to vector<8x128xf32>
    %636 = arith.addf %634, %635 : vector<8x128xf32>
    %cst_434 = arith.constant 0.000000e+00 : f32
    %637 = vector.broadcast %cst_434 : f32 to vector<8x128xf32>
    %638 = arith.maximumf %636, %637 : vector<8x128xf32>
    %639 = arith.truncf %638 : vector<8x128xf32> to vector<8x128xbf16>
    %c0_435 = arith.constant 0 : index
    %c0_436 = arith.constant 0 : index
    %640 = vector.load %arg8[%c0_435, %c0_436] : memref<128x128xbf16, #tpu.memory_space<vmem>>, vector<128x128xbf16>
    %cst_437 = arith.constant dense<0.000000e+00> : vector<8x128xf32>
    %641 = tpu.matmul %639, %640, %cst_437 {dimension_numbers = #tpu.dot_dimension_numbers<[1], [0], [0], [1], [0, 0, 1, 1], [], []>} : vector<8x128xbf16>, vector<128x128xbf16>, vector<8x128xf32> -> vector<8x128xf32>
    %c0_438 = arith.constant 0 : index
    %c0_439 = arith.constant 0 : index
    %642 = vector.load %arg9[%c0_438, %c0_439] : memref<128x128xbf16, #tpu.memory_space<vmem>>, vector<128x128xbf16>
    %cst_440 = arith.constant dense<0.000000e+00> : vector<8x128xf32>
    %643 = tpu.matmul %615, %642, %cst_440 {dimension_numbers = #tpu.dot_dimension_numbers<[1], [0], [0], [1], [0, 0, 1, 1], [], []>} : vector<8x128xbf16>, vector<128x128xbf16>, vector<8x128xf32> -> vector<8x128xf32>
    %644 = arith.addf %641, %643 : vector<8x128xf32>
    %645 = vector.broadcast %2 : vector<1x128xf32> to vector<8x128xf32>
    %646 = arith.addf %644, %645 : vector<8x128xf32>
    %cst_441 = arith.constant 0.000000e+00 : f32
    %647 = vector.broadcast %cst_441 : f32 to vector<8x128xf32>
    %648 = arith.maximumf %646, %647 : vector<8x128xf32>
    %649 = arith.truncf %648 : vector<8x128xf32> to vector<8x128xbf16>
    %c19_i32 = arith.constant 19 : i32
    %650 = arith.index_cast %c19_i32 : i32 to index
    %c0_442 = arith.constant 0 : index
    %c0_443 = arith.constant 0 : index
    %651 = vector.load %arg1[%650, %c0_442, %c0_443] : memref<28x8x28xf32, #tpu.memory_space<vmem>>, vector<1x8x28xf32>
    %652 = vector.shape_cast %651 : vector<1x8x28xf32> to vector<8x28xf32>
    %653 = arith.truncf %652 : vector<8x28xf32> to vector<8x28xbf16>
    %c0_444 = arith.constant 0 : index
    %c0_445 = arith.constant 0 : index
    %654 = vector.load %arg2[%c0_444, %c0_445] : memref<28x128xbf16, #tpu.memory_space<vmem>>, vector<28x128xbf16>
    %cst_446 = arith.constant dense<0.000000e+00> : vector<8x128xf32>
    %655 = tpu.matmul %653, %654, %cst_446 {dimension_numbers = #tpu.dot_dimension_numbers<[1], [0], [0], [1], [0, 0, 1, 1], [], []>} : vector<8x28xbf16>, vector<28x128xbf16>, vector<8x128xf32> -> vector<8x128xf32>
    %c0_447 = arith.constant 0 : index
    %c0_448 = arith.constant 0 : index
    %656 = vector.load %arg3[%c0_447, %c0_448] : memref<128x128xbf16, #tpu.memory_space<vmem>>, vector<128x128xbf16>
    %cst_449 = arith.constant dense<0.000000e+00> : vector<8x128xf32>
    %657 = tpu.matmul %629, %656, %cst_449 {dimension_numbers = #tpu.dot_dimension_numbers<[1], [0], [0], [1], [0, 0, 1, 1], [], []>} : vector<8x128xbf16>, vector<128x128xbf16>, vector<8x128xf32> -> vector<8x128xf32>
    %658 = arith.addf %655, %657 : vector<8x128xf32>
    %659 = vector.broadcast %0 : vector<1x128xf32> to vector<8x128xf32>
    %660 = arith.addf %658, %659 : vector<8x128xf32>
    %cst_450 = arith.constant 0.000000e+00 : f32
    %661 = vector.broadcast %cst_450 : f32 to vector<8x128xf32>
    %662 = arith.maximumf %660, %661 : vector<8x128xf32>
    %663 = arith.truncf %662 : vector<8x128xf32> to vector<8x128xbf16>
    %c0_451 = arith.constant 0 : index
    %c0_452 = arith.constant 0 : index
    %664 = vector.load %arg5[%c0_451, %c0_452] : memref<128x128xbf16, #tpu.memory_space<vmem>>, vector<128x128xbf16>
    %cst_453 = arith.constant dense<0.000000e+00> : vector<8x128xf32>
    %665 = tpu.matmul %663, %664, %cst_453 {dimension_numbers = #tpu.dot_dimension_numbers<[1], [0], [0], [1], [0, 0, 1, 1], [], []>} : vector<8x128xbf16>, vector<128x128xbf16>, vector<8x128xf32> -> vector<8x128xf32>
    %c0_454 = arith.constant 0 : index
    %c0_455 = arith.constant 0 : index
    %666 = vector.load %arg6[%c0_454, %c0_455] : memref<128x128xbf16, #tpu.memory_space<vmem>>, vector<128x128xbf16>
    %cst_456 = arith.constant dense<0.000000e+00> : vector<8x128xf32>
    %667 = tpu.matmul %639, %666, %cst_456 {dimension_numbers = #tpu.dot_dimension_numbers<[1], [0], [0], [1], [0, 0, 1, 1], [], []>} : vector<8x128xbf16>, vector<128x128xbf16>, vector<8x128xf32> -> vector<8x128xf32>
    %668 = arith.addf %665, %667 : vector<8x128xf32>
    %669 = vector.broadcast %1 : vector<1x128xf32> to vector<8x128xf32>
    %670 = arith.addf %668, %669 : vector<8x128xf32>
    %cst_457 = arith.constant 0.000000e+00 : f32
    %671 = vector.broadcast %cst_457 : f32 to vector<8x128xf32>
    %672 = arith.maximumf %670, %671 : vector<8x128xf32>
    %673 = arith.truncf %672 : vector<8x128xf32> to vector<8x128xbf16>
    %c0_458 = arith.constant 0 : index
    %c0_459 = arith.constant 0 : index
    %674 = vector.load %arg8[%c0_458, %c0_459] : memref<128x128xbf16, #tpu.memory_space<vmem>>, vector<128x128xbf16>
    %cst_460 = arith.constant dense<0.000000e+00> : vector<8x128xf32>
    %675 = tpu.matmul %673, %674, %cst_460 {dimension_numbers = #tpu.dot_dimension_numbers<[1], [0], [0], [1], [0, 0, 1, 1], [], []>} : vector<8x128xbf16>, vector<128x128xbf16>, vector<8x128xf32> -> vector<8x128xf32>
    %c0_461 = arith.constant 0 : index
    %c0_462 = arith.constant 0 : index
    %676 = vector.load %arg9[%c0_461, %c0_462] : memref<128x128xbf16, #tpu.memory_space<vmem>>, vector<128x128xbf16>
    %cst_463 = arith.constant dense<0.000000e+00> : vector<8x128xf32>
    %677 = tpu.matmul %649, %676, %cst_463 {dimension_numbers = #tpu.dot_dimension_numbers<[1], [0], [0], [1], [0, 0, 1, 1], [], []>} : vector<8x128xbf16>, vector<128x128xbf16>, vector<8x128xf32> -> vector<8x128xf32>
    %678 = arith.addf %675, %677 : vector<8x128xf32>
    %679 = vector.broadcast %2 : vector<1x128xf32> to vector<8x128xf32>
    %680 = arith.addf %678, %679 : vector<8x128xf32>
    %cst_464 = arith.constant 0.000000e+00 : f32
    %681 = vector.broadcast %cst_464 : f32 to vector<8x128xf32>
    %682 = arith.maximumf %680, %681 : vector<8x128xf32>
    %683 = arith.truncf %682 : vector<8x128xf32> to vector<8x128xbf16>
    %c20_i32 = arith.constant 20 : i32
    %684 = arith.index_cast %c20_i32 : i32 to index
    %c0_465 = arith.constant 0 : index
    %c0_466 = arith.constant 0 : index
    %685 = vector.load %arg1[%684, %c0_465, %c0_466] : memref<28x8x28xf32, #tpu.memory_space<vmem>>, vector<1x8x28xf32>
    %686 = vector.shape_cast %685 : vector<1x8x28xf32> to vector<8x28xf32>
    %687 = arith.truncf %686 : vector<8x28xf32> to vector<8x28xbf16>
    %c0_467 = arith.constant 0 : index
    %c0_468 = arith.constant 0 : index
    %688 = vector.load %arg2[%c0_467, %c0_468] : memref<28x128xbf16, #tpu.memory_space<vmem>>, vector<28x128xbf16>
    %cst_469 = arith.constant dense<0.000000e+00> : vector<8x128xf32>
    %689 = tpu.matmul %687, %688, %cst_469 {dimension_numbers = #tpu.dot_dimension_numbers<[1], [0], [0], [1], [0, 0, 1, 1], [], []>} : vector<8x28xbf16>, vector<28x128xbf16>, vector<8x128xf32> -> vector<8x128xf32>
    %c0_470 = arith.constant 0 : index
    %c0_471 = arith.constant 0 : index
    %690 = vector.load %arg3[%c0_470, %c0_471] : memref<128x128xbf16, #tpu.memory_space<vmem>>, vector<128x128xbf16>
    %cst_472 = arith.constant dense<0.000000e+00> : vector<8x128xf32>
    %691 = tpu.matmul %663, %690, %cst_472 {dimension_numbers = #tpu.dot_dimension_numbers<[1], [0], [0], [1], [0, 0, 1, 1], [], []>} : vector<8x128xbf16>, vector<128x128xbf16>, vector<8x128xf32> -> vector<8x128xf32>
    %692 = arith.addf %689, %691 : vector<8x128xf32>
    %693 = vector.broadcast %0 : vector<1x128xf32> to vector<8x128xf32>
    %694 = arith.addf %692, %693 : vector<8x128xf32>
    %cst_473 = arith.constant 0.000000e+00 : f32
    %695 = vector.broadcast %cst_473 : f32 to vector<8x128xf32>
    %696 = arith.maximumf %694, %695 : vector<8x128xf32>
    %697 = arith.truncf %696 : vector<8x128xf32> to vector<8x128xbf16>
    %c0_474 = arith.constant 0 : index
    %c0_475 = arith.constant 0 : index
    %698 = vector.load %arg5[%c0_474, %c0_475] : memref<128x128xbf16, #tpu.memory_space<vmem>>, vector<128x128xbf16>
    %cst_476 = arith.constant dense<0.000000e+00> : vector<8x128xf32>
    %699 = tpu.matmul %697, %698, %cst_476 {dimension_numbers = #tpu.dot_dimension_numbers<[1], [0], [0], [1], [0, 0, 1, 1], [], []>} : vector<8x128xbf16>, vector<128x128xbf16>, vector<8x128xf32> -> vector<8x128xf32>
    %c0_477 = arith.constant 0 : index
    %c0_478 = arith.constant 0 : index
    %700 = vector.load %arg6[%c0_477, %c0_478] : memref<128x128xbf16, #tpu.memory_space<vmem>>, vector<128x128xbf16>
    %cst_479 = arith.constant dense<0.000000e+00> : vector<8x128xf32>
    %701 = tpu.matmul %673, %700, %cst_479 {dimension_numbers = #tpu.dot_dimension_numbers<[1], [0], [0], [1], [0, 0, 1, 1], [], []>} : vector<8x128xbf16>, vector<128x128xbf16>, vector<8x128xf32> -> vector<8x128xf32>
    %702 = arith.addf %699, %701 : vector<8x128xf32>
    %703 = vector.broadcast %1 : vector<1x128xf32> to vector<8x128xf32>
    %704 = arith.addf %702, %703 : vector<8x128xf32>
    %cst_480 = arith.constant 0.000000e+00 : f32
    %705 = vector.broadcast %cst_480 : f32 to vector<8x128xf32>
    %706 = arith.maximumf %704, %705 : vector<8x128xf32>
    %707 = arith.truncf %706 : vector<8x128xf32> to vector<8x128xbf16>
    %c0_481 = arith.constant 0 : index
    %c0_482 = arith.constant 0 : index
    %708 = vector.load %arg8[%c0_481, %c0_482] : memref<128x128xbf16, #tpu.memory_space<vmem>>, vector<128x128xbf16>
    %cst_483 = arith.constant dense<0.000000e+00> : vector<8x128xf32>
    %709 = tpu.matmul %707, %708, %cst_483 {dimension_numbers = #tpu.dot_dimension_numbers<[1], [0], [0], [1], [0, 0, 1, 1], [], []>} : vector<8x128xbf16>, vector<128x128xbf16>, vector<8x128xf32> -> vector<8x128xf32>
    %c0_484 = arith.constant 0 : index
    %c0_485 = arith.constant 0 : index
    %710 = vector.load %arg9[%c0_484, %c0_485] : memref<128x128xbf16, #tpu.memory_space<vmem>>, vector<128x128xbf16>
    %cst_486 = arith.constant dense<0.000000e+00> : vector<8x128xf32>
    %711 = tpu.matmul %683, %710, %cst_486 {dimension_numbers = #tpu.dot_dimension_numbers<[1], [0], [0], [1], [0, 0, 1, 1], [], []>} : vector<8x128xbf16>, vector<128x128xbf16>, vector<8x128xf32> -> vector<8x128xf32>
    %712 = arith.addf %709, %711 : vector<8x128xf32>
    %713 = vector.broadcast %2 : vector<1x128xf32> to vector<8x128xf32>
    %714 = arith.addf %712, %713 : vector<8x128xf32>
    %cst_487 = arith.constant 0.000000e+00 : f32
    %715 = vector.broadcast %cst_487 : f32 to vector<8x128xf32>
    %716 = arith.maximumf %714, %715 : vector<8x128xf32>
    %717 = arith.truncf %716 : vector<8x128xf32> to vector<8x128xbf16>
    %c21_i32 = arith.constant 21 : i32
    %718 = arith.index_cast %c21_i32 : i32 to index
    %c0_488 = arith.constant 0 : index
    %c0_489 = arith.constant 0 : index
    %719 = vector.load %arg1[%718, %c0_488, %c0_489] : memref<28x8x28xf32, #tpu.memory_space<vmem>>, vector<1x8x28xf32>
    %720 = vector.shape_cast %719 : vector<1x8x28xf32> to vector<8x28xf32>
    %721 = arith.truncf %720 : vector<8x28xf32> to vector<8x28xbf16>
    %c0_490 = arith.constant 0 : index
    %c0_491 = arith.constant 0 : index
    %722 = vector.load %arg2[%c0_490, %c0_491] : memref<28x128xbf16, #tpu.memory_space<vmem>>, vector<28x128xbf16>
    %cst_492 = arith.constant dense<0.000000e+00> : vector<8x128xf32>
    %723 = tpu.matmul %721, %722, %cst_492 {dimension_numbers = #tpu.dot_dimension_numbers<[1], [0], [0], [1], [0, 0, 1, 1], [], []>} : vector<8x28xbf16>, vector<28x128xbf16>, vector<8x128xf32> -> vector<8x128xf32>
    %c0_493 = arith.constant 0 : index
    %c0_494 = arith.constant 0 : index
    %724 = vector.load %arg3[%c0_493, %c0_494] : memref<128x128xbf16, #tpu.memory_space<vmem>>, vector<128x128xbf16>
    %cst_495 = arith.constant dense<0.000000e+00> : vector<8x128xf32>
    %725 = tpu.matmul %697, %724, %cst_495 {dimension_numbers = #tpu.dot_dimension_numbers<[1], [0], [0], [1], [0, 0, 1, 1], [], []>} : vector<8x128xbf16>, vector<128x128xbf16>, vector<8x128xf32> -> vector<8x128xf32>
    %726 = arith.addf %723, %725 : vector<8x128xf32>
    %727 = vector.broadcast %0 : vector<1x128xf32> to vector<8x128xf32>
    %728 = arith.addf %726, %727 : vector<8x128xf32>
    %cst_496 = arith.constant 0.000000e+00 : f32
    %729 = vector.broadcast %cst_496 : f32 to vector<8x128xf32>
    %730 = arith.maximumf %728, %729 : vector<8x128xf32>
    %731 = arith.truncf %730 : vector<8x128xf32> to vector<8x128xbf16>
    %c0_497 = arith.constant 0 : index
    %c0_498 = arith.constant 0 : index
    %732 = vector.load %arg5[%c0_497, %c0_498] : memref<128x128xbf16, #tpu.memory_space<vmem>>, vector<128x128xbf16>
    %cst_499 = arith.constant dense<0.000000e+00> : vector<8x128xf32>
    %733 = tpu.matmul %731, %732, %cst_499 {dimension_numbers = #tpu.dot_dimension_numbers<[1], [0], [0], [1], [0, 0, 1, 1], [], []>} : vector<8x128xbf16>, vector<128x128xbf16>, vector<8x128xf32> -> vector<8x128xf32>
    %c0_500 = arith.constant 0 : index
    %c0_501 = arith.constant 0 : index
    %734 = vector.load %arg6[%c0_500, %c0_501] : memref<128x128xbf16, #tpu.memory_space<vmem>>, vector<128x128xbf16>
    %cst_502 = arith.constant dense<0.000000e+00> : vector<8x128xf32>
    %735 = tpu.matmul %707, %734, %cst_502 {dimension_numbers = #tpu.dot_dimension_numbers<[1], [0], [0], [1], [0, 0, 1, 1], [], []>} : vector<8x128xbf16>, vector<128x128xbf16>, vector<8x128xf32> -> vector<8x128xf32>
    %736 = arith.addf %733, %735 : vector<8x128xf32>
    %737 = vector.broadcast %1 : vector<1x128xf32> to vector<8x128xf32>
    %738 = arith.addf %736, %737 : vector<8x128xf32>
    %cst_503 = arith.constant 0.000000e+00 : f32
    %739 = vector.broadcast %cst_503 : f32 to vector<8x128xf32>
    %740 = arith.maximumf %738, %739 : vector<8x128xf32>
    %741 = arith.truncf %740 : vector<8x128xf32> to vector<8x128xbf16>
    %c0_504 = arith.constant 0 : index
    %c0_505 = arith.constant 0 : index
    %742 = vector.load %arg8[%c0_504, %c0_505] : memref<128x128xbf16, #tpu.memory_space<vmem>>, vector<128x128xbf16>
    %cst_506 = arith.constant dense<0.000000e+00> : vector<8x128xf32>
    %743 = tpu.matmul %741, %742, %cst_506 {dimension_numbers = #tpu.dot_dimension_numbers<[1], [0], [0], [1], [0, 0, 1, 1], [], []>} : vector<8x128xbf16>, vector<128x128xbf16>, vector<8x128xf32> -> vector<8x128xf32>
    %c0_507 = arith.constant 0 : index
    %c0_508 = arith.constant 0 : index
    %744 = vector.load %arg9[%c0_507, %c0_508] : memref<128x128xbf16, #tpu.memory_space<vmem>>, vector<128x128xbf16>
    %cst_509 = arith.constant dense<0.000000e+00> : vector<8x128xf32>
    %745 = tpu.matmul %717, %744, %cst_509 {dimension_numbers = #tpu.dot_dimension_numbers<[1], [0], [0], [1], [0, 0, 1, 1], [], []>} : vector<8x128xbf16>, vector<128x128xbf16>, vector<8x128xf32> -> vector<8x128xf32>
    %746 = arith.addf %743, %745 : vector<8x128xf32>
    %747 = vector.broadcast %2 : vector<1x128xf32> to vector<8x128xf32>
    %748 = arith.addf %746, %747 : vector<8x128xf32>
    %cst_510 = arith.constant 0.000000e+00 : f32
    %749 = vector.broadcast %cst_510 : f32 to vector<8x128xf32>
    %750 = arith.maximumf %748, %749 : vector<8x128xf32>
    %751 = arith.truncf %750 : vector<8x128xf32> to vector<8x128xbf16>
    %c22_i32 = arith.constant 22 : i32
    %752 = arith.index_cast %c22_i32 : i32 to index
    %c0_511 = arith.constant 0 : index
    %c0_512 = arith.constant 0 : index
    %753 = vector.load %arg1[%752, %c0_511, %c0_512] : memref<28x8x28xf32, #tpu.memory_space<vmem>>, vector<1x8x28xf32>
    %754 = vector.shape_cast %753 : vector<1x8x28xf32> to vector<8x28xf32>
    %755 = arith.truncf %754 : vector<8x28xf32> to vector<8x28xbf16>
    %c0_513 = arith.constant 0 : index
    %c0_514 = arith.constant 0 : index
    %756 = vector.load %arg2[%c0_513, %c0_514] : memref<28x128xbf16, #tpu.memory_space<vmem>>, vector<28x128xbf16>
    %cst_515 = arith.constant dense<0.000000e+00> : vector<8x128xf32>
    %757 = tpu.matmul %755, %756, %cst_515 {dimension_numbers = #tpu.dot_dimension_numbers<[1], [0], [0], [1], [0, 0, 1, 1], [], []>} : vector<8x28xbf16>, vector<28x128xbf16>, vector<8x128xf32> -> vector<8x128xf32>
    %c0_516 = arith.constant 0 : index
    %c0_517 = arith.constant 0 : index
    %758 = vector.load %arg3[%c0_516, %c0_517] : memref<128x128xbf16, #tpu.memory_space<vmem>>, vector<128x128xbf16>
    %cst_518 = arith.constant dense<0.000000e+00> : vector<8x128xf32>
    %759 = tpu.matmul %731, %758, %cst_518 {dimension_numbers = #tpu.dot_dimension_numbers<[1], [0], [0], [1], [0, 0, 1, 1], [], []>} : vector<8x128xbf16>, vector<128x128xbf16>, vector<8x128xf32> -> vector<8x128xf32>
    %760 = arith.addf %757, %759 : vector<8x128xf32>
    %761 = vector.broadcast %0 : vector<1x128xf32> to vector<8x128xf32>
    %762 = arith.addf %760, %761 : vector<8x128xf32>
    %cst_519 = arith.constant 0.000000e+00 : f32
    %763 = vector.broadcast %cst_519 : f32 to vector<8x128xf32>
    %764 = arith.maximumf %762, %763 : vector<8x128xf32>
    %765 = arith.truncf %764 : vector<8x128xf32> to vector<8x128xbf16>
    %c0_520 = arith.constant 0 : index
    %c0_521 = arith.constant 0 : index
    %766 = vector.load %arg5[%c0_520, %c0_521] : memref<128x128xbf16, #tpu.memory_space<vmem>>, vector<128x128xbf16>
    %cst_522 = arith.constant dense<0.000000e+00> : vector<8x128xf32>
    %767 = tpu.matmul %765, %766, %cst_522 {dimension_numbers = #tpu.dot_dimension_numbers<[1], [0], [0], [1], [0, 0, 1, 1], [], []>} : vector<8x128xbf16>, vector<128x128xbf16>, vector<8x128xf32> -> vector<8x128xf32>
    %c0_523 = arith.constant 0 : index
    %c0_524 = arith.constant 0 : index
    %768 = vector.load %arg6[%c0_523, %c0_524] : memref<128x128xbf16, #tpu.memory_space<vmem>>, vector<128x128xbf16>
    %cst_525 = arith.constant dense<0.000000e+00> : vector<8x128xf32>
    %769 = tpu.matmul %741, %768, %cst_525 {dimension_numbers = #tpu.dot_dimension_numbers<[1], [0], [0], [1], [0, 0, 1, 1], [], []>} : vector<8x128xbf16>, vector<128x128xbf16>, vector<8x128xf32> -> vector<8x128xf32>
    %770 = arith.addf %767, %769 : vector<8x128xf32>
    %771 = vector.broadcast %1 : vector<1x128xf32> to vector<8x128xf32>
    %772 = arith.addf %770, %771 : vector<8x128xf32>
    %cst_526 = arith.constant 0.000000e+00 : f32
    %773 = vector.broadcast %cst_526 : f32 to vector<8x128xf32>
    %774 = arith.maximumf %772, %773 : vector<8x128xf32>
    %775 = arith.truncf %774 : vector<8x128xf32> to vector<8x128xbf16>
    %c0_527 = arith.constant 0 : index
    %c0_528 = arith.constant 0 : index
    %776 = vector.load %arg8[%c0_527, %c0_528] : memref<128x128xbf16, #tpu.memory_space<vmem>>, vector<128x128xbf16>
    %cst_529 = arith.constant dense<0.000000e+00> : vector<8x128xf32>
    %777 = tpu.matmul %775, %776, %cst_529 {dimension_numbers = #tpu.dot_dimension_numbers<[1], [0], [0], [1], [0, 0, 1, 1], [], []>} : vector<8x128xbf16>, vector<128x128xbf16>, vector<8x128xf32> -> vector<8x128xf32>
    %c0_530 = arith.constant 0 : index
    %c0_531 = arith.constant 0 : index
    %778 = vector.load %arg9[%c0_530, %c0_531] : memref<128x128xbf16, #tpu.memory_space<vmem>>, vector<128x128xbf16>
    %cst_532 = arith.constant dense<0.000000e+00> : vector<8x128xf32>
    %779 = tpu.matmul %751, %778, %cst_532 {dimension_numbers = #tpu.dot_dimension_numbers<[1], [0], [0], [1], [0, 0, 1, 1], [], []>} : vector<8x128xbf16>, vector<128x128xbf16>, vector<8x128xf32> -> vector<8x128xf32>
    %780 = arith.addf %777, %779 : vector<8x128xf32>
    %781 = vector.broadcast %2 : vector<1x128xf32> to vector<8x128xf32>
    %782 = arith.addf %780, %781 : vector<8x128xf32>
    %cst_533 = arith.constant 0.000000e+00 : f32
    %783 = vector.broadcast %cst_533 : f32 to vector<8x128xf32>
    %784 = arith.maximumf %782, %783 : vector<8x128xf32>
    %785 = arith.truncf %784 : vector<8x128xf32> to vector<8x128xbf16>
    %c23_i32 = arith.constant 23 : i32
    %786 = arith.index_cast %c23_i32 : i32 to index
    %c0_534 = arith.constant 0 : index
    %c0_535 = arith.constant 0 : index
    %787 = vector.load %arg1[%786, %c0_534, %c0_535] : memref<28x8x28xf32, #tpu.memory_space<vmem>>, vector<1x8x28xf32>
    %788 = vector.shape_cast %787 : vector<1x8x28xf32> to vector<8x28xf32>
    %789 = arith.truncf %788 : vector<8x28xf32> to vector<8x28xbf16>
    %c0_536 = arith.constant 0 : index
    %c0_537 = arith.constant 0 : index
    %790 = vector.load %arg2[%c0_536, %c0_537] : memref<28x128xbf16, #tpu.memory_space<vmem>>, vector<28x128xbf16>
    %cst_538 = arith.constant dense<0.000000e+00> : vector<8x128xf32>
    %791 = tpu.matmul %789, %790, %cst_538 {dimension_numbers = #tpu.dot_dimension_numbers<[1], [0], [0], [1], [0, 0, 1, 1], [], []>} : vector<8x28xbf16>, vector<28x128xbf16>, vector<8x128xf32> -> vector<8x128xf32>
    %c0_539 = arith.constant 0 : index
    %c0_540 = arith.constant 0 : index
    %792 = vector.load %arg3[%c0_539, %c0_540] : memref<128x128xbf16, #tpu.memory_space<vmem>>, vector<128x128xbf16>
    %cst_541 = arith.constant dense<0.000000e+00> : vector<8x128xf32>
    %793 = tpu.matmul %765, %792, %cst_541 {dimension_numbers = #tpu.dot_dimension_numbers<[1], [0], [0], [1], [0, 0, 1, 1], [], []>} : vector<8x128xbf16>, vector<128x128xbf16>, vector<8x128xf32> -> vector<8x128xf32>
    %794 = arith.addf %791, %793 : vector<8x128xf32>
    %795 = vector.broadcast %0 : vector<1x128xf32> to vector<8x128xf32>
    %796 = arith.addf %794, %795 : vector<8x128xf32>
    %cst_542 = arith.constant 0.000000e+00 : f32
    %797 = vector.broadcast %cst_542 : f32 to vector<8x128xf32>
    %798 = arith.maximumf %796, %797 : vector<8x128xf32>
    %799 = arith.truncf %798 : vector<8x128xf32> to vector<8x128xbf16>
    %c0_543 = arith.constant 0 : index
    %c0_544 = arith.constant 0 : index
    %800 = vector.load %arg5[%c0_543, %c0_544] : memref<128x128xbf16, #tpu.memory_space<vmem>>, vector<128x128xbf16>
    %cst_545 = arith.constant dense<0.000000e+00> : vector<8x128xf32>
    %801 = tpu.matmul %799, %800, %cst_545 {dimension_numbers = #tpu.dot_dimension_numbers<[1], [0], [0], [1], [0, 0, 1, 1], [], []>} : vector<8x128xbf16>, vector<128x128xbf16>, vector<8x128xf32> -> vector<8x128xf32>
    %c0_546 = arith.constant 0 : index
    %c0_547 = arith.constant 0 : index
    %802 = vector.load %arg6[%c0_546, %c0_547] : memref<128x128xbf16, #tpu.memory_space<vmem>>, vector<128x128xbf16>
    %cst_548 = arith.constant dense<0.000000e+00> : vector<8x128xf32>
    %803 = tpu.matmul %775, %802, %cst_548 {dimension_numbers = #tpu.dot_dimension_numbers<[1], [0], [0], [1], [0, 0, 1, 1], [], []>} : vector<8x128xbf16>, vector<128x128xbf16>, vector<8x128xf32> -> vector<8x128xf32>
    %804 = arith.addf %801, %803 : vector<8x128xf32>
    %805 = vector.broadcast %1 : vector<1x128xf32> to vector<8x128xf32>
    %806 = arith.addf %804, %805 : vector<8x128xf32>
    %cst_549 = arith.constant 0.000000e+00 : f32
    %807 = vector.broadcast %cst_549 : f32 to vector<8x128xf32>
    %808 = arith.maximumf %806, %807 : vector<8x128xf32>
    %809 = arith.truncf %808 : vector<8x128xf32> to vector<8x128xbf16>
    %c0_550 = arith.constant 0 : index
    %c0_551 = arith.constant 0 : index
    %810 = vector.load %arg8[%c0_550, %c0_551] : memref<128x128xbf16, #tpu.memory_space<vmem>>, vector<128x128xbf16>
    %cst_552 = arith.constant dense<0.000000e+00> : vector<8x128xf32>
    %811 = tpu.matmul %809, %810, %cst_552 {dimension_numbers = #tpu.dot_dimension_numbers<[1], [0], [0], [1], [0, 0, 1, 1], [], []>} : vector<8x128xbf16>, vector<128x128xbf16>, vector<8x128xf32> -> vector<8x128xf32>
    %c0_553 = arith.constant 0 : index
    %c0_554 = arith.constant 0 : index
    %812 = vector.load %arg9[%c0_553, %c0_554] : memref<128x128xbf16, #tpu.memory_space<vmem>>, vector<128x128xbf16>
    %cst_555 = arith.constant dense<0.000000e+00> : vector<8x128xf32>
    %813 = tpu.matmul %785, %812, %cst_555 {dimension_numbers = #tpu.dot_dimension_numbers<[1], [0], [0], [1], [0, 0, 1, 1], [], []>} : vector<8x128xbf16>, vector<128x128xbf16>, vector<8x128xf32> -> vector<8x128xf32>
    %814 = arith.addf %811, %813 : vector<8x128xf32>
    %815 = vector.broadcast %2 : vector<1x128xf32> to vector<8x128xf32>
    %816 = arith.addf %814, %815 : vector<8x128xf32>
    %cst_556 = arith.constant 0.000000e+00 : f32
    %817 = vector.broadcast %cst_556 : f32 to vector<8x128xf32>
    %818 = arith.maximumf %816, %817 : vector<8x128xf32>
    %819 = arith.truncf %818 : vector<8x128xf32> to vector<8x128xbf16>
    %c24_i32 = arith.constant 24 : i32
    %820 = arith.index_cast %c24_i32 : i32 to index
    %c0_557 = arith.constant 0 : index
    %c0_558 = arith.constant 0 : index
    %821 = vector.load %arg1[%820, %c0_557, %c0_558] : memref<28x8x28xf32, #tpu.memory_space<vmem>>, vector<1x8x28xf32>
    %822 = vector.shape_cast %821 : vector<1x8x28xf32> to vector<8x28xf32>
    %823 = arith.truncf %822 : vector<8x28xf32> to vector<8x28xbf16>
    %c0_559 = arith.constant 0 : index
    %c0_560 = arith.constant 0 : index
    %824 = vector.load %arg2[%c0_559, %c0_560] : memref<28x128xbf16, #tpu.memory_space<vmem>>, vector<28x128xbf16>
    %cst_561 = arith.constant dense<0.000000e+00> : vector<8x128xf32>
    %825 = tpu.matmul %823, %824, %cst_561 {dimension_numbers = #tpu.dot_dimension_numbers<[1], [0], [0], [1], [0, 0, 1, 1], [], []>} : vector<8x28xbf16>, vector<28x128xbf16>, vector<8x128xf32> -> vector<8x128xf32>
    %c0_562 = arith.constant 0 : index
    %c0_563 = arith.constant 0 : index
    %826 = vector.load %arg3[%c0_562, %c0_563] : memref<128x128xbf16, #tpu.memory_space<vmem>>, vector<128x128xbf16>
    %cst_564 = arith.constant dense<0.000000e+00> : vector<8x128xf32>
    %827 = tpu.matmul %799, %826, %cst_564 {dimension_numbers = #tpu.dot_dimension_numbers<[1], [0], [0], [1], [0, 0, 1, 1], [], []>} : vector<8x128xbf16>, vector<128x128xbf16>, vector<8x128xf32> -> vector<8x128xf32>
    %828 = arith.addf %825, %827 : vector<8x128xf32>
    %829 = vector.broadcast %0 : vector<1x128xf32> to vector<8x128xf32>
    %830 = arith.addf %828, %829 : vector<8x128xf32>
    %cst_565 = arith.constant 0.000000e+00 : f32
    %831 = vector.broadcast %cst_565 : f32 to vector<8x128xf32>
    %832 = arith.maximumf %830, %831 : vector<8x128xf32>
    %833 = arith.truncf %832 : vector<8x128xf32> to vector<8x128xbf16>
    %c0_566 = arith.constant 0 : index
    %c0_567 = arith.constant 0 : index
    %834 = vector.load %arg5[%c0_566, %c0_567] : memref<128x128xbf16, #tpu.memory_space<vmem>>, vector<128x128xbf16>
    %cst_568 = arith.constant dense<0.000000e+00> : vector<8x128xf32>
    %835 = tpu.matmul %833, %834, %cst_568 {dimension_numbers = #tpu.dot_dimension_numbers<[1], [0], [0], [1], [0, 0, 1, 1], [], []>} : vector<8x128xbf16>, vector<128x128xbf16>, vector<8x128xf32> -> vector<8x128xf32>
    %c0_569 = arith.constant 0 : index
    %c0_570 = arith.constant 0 : index
    %836 = vector.load %arg6[%c0_569, %c0_570] : memref<128x128xbf16, #tpu.memory_space<vmem>>, vector<128x128xbf16>
    %cst_571 = arith.constant dense<0.000000e+00> : vector<8x128xf32>
    %837 = tpu.matmul %809, %836, %cst_571 {dimension_numbers = #tpu.dot_dimension_numbers<[1], [0], [0], [1], [0, 0, 1, 1], [], []>} : vector<8x128xbf16>, vector<128x128xbf16>, vector<8x128xf32> -> vector<8x128xf32>
    %838 = arith.addf %835, %837 : vector<8x128xf32>
    %839 = vector.broadcast %1 : vector<1x128xf32> to vector<8x128xf32>
    %840 = arith.addf %838, %839 : vector<8x128xf32>
    %cst_572 = arith.constant 0.000000e+00 : f32
    %841 = vector.broadcast %cst_572 : f32 to vector<8x128xf32>
    %842 = arith.maximumf %840, %841 : vector<8x128xf32>
    %843 = arith.truncf %842 : vector<8x128xf32> to vector<8x128xbf16>
    %c0_573 = arith.constant 0 : index
    %c0_574 = arith.constant 0 : index
    %844 = vector.load %arg8[%c0_573, %c0_574] : memref<128x128xbf16, #tpu.memory_space<vmem>>, vector<128x128xbf16>
    %cst_575 = arith.constant dense<0.000000e+00> : vector<8x128xf32>
    %845 = tpu.matmul %843, %844, %cst_575 {dimension_numbers = #tpu.dot_dimension_numbers<[1], [0], [0], [1], [0, 0, 1, 1], [], []>} : vector<8x128xbf16>, vector<128x128xbf16>, vector<8x128xf32> -> vector<8x128xf32>
    %c0_576 = arith.constant 0 : index
    %c0_577 = arith.constant 0 : index
    %846 = vector.load %arg9[%c0_576, %c0_577] : memref<128x128xbf16, #tpu.memory_space<vmem>>, vector<128x128xbf16>
    %cst_578 = arith.constant dense<0.000000e+00> : vector<8x128xf32>
    %847 = tpu.matmul %819, %846, %cst_578 {dimension_numbers = #tpu.dot_dimension_numbers<[1], [0], [0], [1], [0, 0, 1, 1], [], []>} : vector<8x128xbf16>, vector<128x128xbf16>, vector<8x128xf32> -> vector<8x128xf32>
    %848 = arith.addf %845, %847 : vector<8x128xf32>
    %849 = vector.broadcast %2 : vector<1x128xf32> to vector<8x128xf32>
    %850 = arith.addf %848, %849 : vector<8x128xf32>
    %cst_579 = arith.constant 0.000000e+00 : f32
    %851 = vector.broadcast %cst_579 : f32 to vector<8x128xf32>
    %852 = arith.maximumf %850, %851 : vector<8x128xf32>
    %853 = arith.truncf %852 : vector<8x128xf32> to vector<8x128xbf16>
    %c25_i32 = arith.constant 25 : i32
    %854 = arith.index_cast %c25_i32 : i32 to index
    %c0_580 = arith.constant 0 : index
    %c0_581 = arith.constant 0 : index
    %855 = vector.load %arg1[%854, %c0_580, %c0_581] : memref<28x8x28xf32, #tpu.memory_space<vmem>>, vector<1x8x28xf32>
    %856 = vector.shape_cast %855 : vector<1x8x28xf32> to vector<8x28xf32>
    %857 = arith.truncf %856 : vector<8x28xf32> to vector<8x28xbf16>
    %c0_582 = arith.constant 0 : index
    %c0_583 = arith.constant 0 : index
    %858 = vector.load %arg2[%c0_582, %c0_583] : memref<28x128xbf16, #tpu.memory_space<vmem>>, vector<28x128xbf16>
    %cst_584 = arith.constant dense<0.000000e+00> : vector<8x128xf32>
    %859 = tpu.matmul %857, %858, %cst_584 {dimension_numbers = #tpu.dot_dimension_numbers<[1], [0], [0], [1], [0, 0, 1, 1], [], []>} : vector<8x28xbf16>, vector<28x128xbf16>, vector<8x128xf32> -> vector<8x128xf32>
    %c0_585 = arith.constant 0 : index
    %c0_586 = arith.constant 0 : index
    %860 = vector.load %arg3[%c0_585, %c0_586] : memref<128x128xbf16, #tpu.memory_space<vmem>>, vector<128x128xbf16>
    %cst_587 = arith.constant dense<0.000000e+00> : vector<8x128xf32>
    %861 = tpu.matmul %833, %860, %cst_587 {dimension_numbers = #tpu.dot_dimension_numbers<[1], [0], [0], [1], [0, 0, 1, 1], [], []>} : vector<8x128xbf16>, vector<128x128xbf16>, vector<8x128xf32> -> vector<8x128xf32>
    %862 = arith.addf %859, %861 : vector<8x128xf32>
    %863 = vector.broadcast %0 : vector<1x128xf32> to vector<8x128xf32>
    %864 = arith.addf %862, %863 : vector<8x128xf32>
    %cst_588 = arith.constant 0.000000e+00 : f32
    %865 = vector.broadcast %cst_588 : f32 to vector<8x128xf32>
    %866 = arith.maximumf %864, %865 : vector<8x128xf32>
    %867 = arith.truncf %866 : vector<8x128xf32> to vector<8x128xbf16>
    %c0_589 = arith.constant 0 : index
    %c0_590 = arith.constant 0 : index
    %868 = vector.load %arg5[%c0_589, %c0_590] : memref<128x128xbf16, #tpu.memory_space<vmem>>, vector<128x128xbf16>
    %cst_591 = arith.constant dense<0.000000e+00> : vector<8x128xf32>
    %869 = tpu.matmul %867, %868, %cst_591 {dimension_numbers = #tpu.dot_dimension_numbers<[1], [0], [0], [1], [0, 0, 1, 1], [], []>} : vector<8x128xbf16>, vector<128x128xbf16>, vector<8x128xf32> -> vector<8x128xf32>
    %c0_592 = arith.constant 0 : index
    %c0_593 = arith.constant 0 : index
    %870 = vector.load %arg6[%c0_592, %c0_593] : memref<128x128xbf16, #tpu.memory_space<vmem>>, vector<128x128xbf16>
    %cst_594 = arith.constant dense<0.000000e+00> : vector<8x128xf32>
    %871 = tpu.matmul %843, %870, %cst_594 {dimension_numbers = #tpu.dot_dimension_numbers<[1], [0], [0], [1], [0, 0, 1, 1], [], []>} : vector<8x128xbf16>, vector<128x128xbf16>, vector<8x128xf32> -> vector<8x128xf32>
    %872 = arith.addf %869, %871 : vector<8x128xf32>
    %873 = vector.broadcast %1 : vector<1x128xf32> to vector<8x128xf32>
    %874 = arith.addf %872, %873 : vector<8x128xf32>
    %cst_595 = arith.constant 0.000000e+00 : f32
    %875 = vector.broadcast %cst_595 : f32 to vector<8x128xf32>
    %876 = arith.maximumf %874, %875 : vector<8x128xf32>
    %877 = arith.truncf %876 : vector<8x128xf32> to vector<8x128xbf16>
    %c0_596 = arith.constant 0 : index
    %c0_597 = arith.constant 0 : index
    %878 = vector.load %arg8[%c0_596, %c0_597] : memref<128x128xbf16, #tpu.memory_space<vmem>>, vector<128x128xbf16>
    %cst_598 = arith.constant dense<0.000000e+00> : vector<8x128xf32>
    %879 = tpu.matmul %877, %878, %cst_598 {dimension_numbers = #tpu.dot_dimension_numbers<[1], [0], [0], [1], [0, 0, 1, 1], [], []>} : vector<8x128xbf16>, vector<128x128xbf16>, vector<8x128xf32> -> vector<8x128xf32>
    %c0_599 = arith.constant 0 : index
    %c0_600 = arith.constant 0 : index
    %880 = vector.load %arg9[%c0_599, %c0_600] : memref<128x128xbf16, #tpu.memory_space<vmem>>, vector<128x128xbf16>
    %cst_601 = arith.constant dense<0.000000e+00> : vector<8x128xf32>
    %881 = tpu.matmul %853, %880, %cst_601 {dimension_numbers = #tpu.dot_dimension_numbers<[1], [0], [0], [1], [0, 0, 1, 1], [], []>} : vector<8x128xbf16>, vector<128x128xbf16>, vector<8x128xf32> -> vector<8x128xf32>
    %882 = arith.addf %879, %881 : vector<8x128xf32>
    %883 = vector.broadcast %2 : vector<1x128xf32> to vector<8x128xf32>
    %884 = arith.addf %882, %883 : vector<8x128xf32>
    %cst_602 = arith.constant 0.000000e+00 : f32
    %885 = vector.broadcast %cst_602 : f32 to vector<8x128xf32>
    %886 = arith.maximumf %884, %885 : vector<8x128xf32>
    %887 = arith.truncf %886 : vector<8x128xf32> to vector<8x128xbf16>
    %c26_i32 = arith.constant 26 : i32
    %888 = arith.index_cast %c26_i32 : i32 to index
    %c0_603 = arith.constant 0 : index
    %c0_604 = arith.constant 0 : index
    %889 = vector.load %arg1[%888, %c0_603, %c0_604] : memref<28x8x28xf32, #tpu.memory_space<vmem>>, vector<1x8x28xf32>
    %890 = vector.shape_cast %889 : vector<1x8x28xf32> to vector<8x28xf32>
    %891 = arith.truncf %890 : vector<8x28xf32> to vector<8x28xbf16>
    %c0_605 = arith.constant 0 : index
    %c0_606 = arith.constant 0 : index
    %892 = vector.load %arg2[%c0_605, %c0_606] : memref<28x128xbf16, #tpu.memory_space<vmem>>, vector<28x128xbf16>
    %cst_607 = arith.constant dense<0.000000e+00> : vector<8x128xf32>
    %893 = tpu.matmul %891, %892, %cst_607 {dimension_numbers = #tpu.dot_dimension_numbers<[1], [0], [0], [1], [0, 0, 1, 1], [], []>} : vector<8x28xbf16>, vector<28x128xbf16>, vector<8x128xf32> -> vector<8x128xf32>
    %c0_608 = arith.constant 0 : index
    %c0_609 = arith.constant 0 : index
    %894 = vector.load %arg3[%c0_608, %c0_609] : memref<128x128xbf16, #tpu.memory_space<vmem>>, vector<128x128xbf16>
    %cst_610 = arith.constant dense<0.000000e+00> : vector<8x128xf32>
    %895 = tpu.matmul %867, %894, %cst_610 {dimension_numbers = #tpu.dot_dimension_numbers<[1], [0], [0], [1], [0, 0, 1, 1], [], []>} : vector<8x128xbf16>, vector<128x128xbf16>, vector<8x128xf32> -> vector<8x128xf32>
    %896 = arith.addf %893, %895 : vector<8x128xf32>
    %897 = vector.broadcast %0 : vector<1x128xf32> to vector<8x128xf32>
    %898 = arith.addf %896, %897 : vector<8x128xf32>
    %cst_611 = arith.constant 0.000000e+00 : f32
    %899 = vector.broadcast %cst_611 : f32 to vector<8x128xf32>
    %900 = arith.maximumf %898, %899 : vector<8x128xf32>
    %901 = arith.truncf %900 : vector<8x128xf32> to vector<8x128xbf16>
    %c0_612 = arith.constant 0 : index
    %c0_613 = arith.constant 0 : index
    %902 = vector.load %arg5[%c0_612, %c0_613] : memref<128x128xbf16, #tpu.memory_space<vmem>>, vector<128x128xbf16>
    %cst_614 = arith.constant dense<0.000000e+00> : vector<8x128xf32>
    %903 = tpu.matmul %901, %902, %cst_614 {dimension_numbers = #tpu.dot_dimension_numbers<[1], [0], [0], [1], [0, 0, 1, 1], [], []>} : vector<8x128xbf16>, vector<128x128xbf16>, vector<8x128xf32> -> vector<8x128xf32>
    %c0_615 = arith.constant 0 : index
    %c0_616 = arith.constant 0 : index
    %904 = vector.load %arg6[%c0_615, %c0_616] : memref<128x128xbf16, #tpu.memory_space<vmem>>, vector<128x128xbf16>
    %cst_617 = arith.constant dense<0.000000e+00> : vector<8x128xf32>
    %905 = tpu.matmul %877, %904, %cst_617 {dimension_numbers = #tpu.dot_dimension_numbers<[1], [0], [0], [1], [0, 0, 1, 1], [], []>} : vector<8x128xbf16>, vector<128x128xbf16>, vector<8x128xf32> -> vector<8x128xf32>
    %906 = arith.addf %903, %905 : vector<8x128xf32>
    %907 = vector.broadcast %1 : vector<1x128xf32> to vector<8x128xf32>
    %908 = arith.addf %906, %907 : vector<8x128xf32>
    %cst_618 = arith.constant 0.000000e+00 : f32
    %909 = vector.broadcast %cst_618 : f32 to vector<8x128xf32>
    %910 = arith.maximumf %908, %909 : vector<8x128xf32>
    %911 = arith.truncf %910 : vector<8x128xf32> to vector<8x128xbf16>
    %c0_619 = arith.constant 0 : index
    %c0_620 = arith.constant 0 : index
    %912 = vector.load %arg8[%c0_619, %c0_620] : memref<128x128xbf16, #tpu.memory_space<vmem>>, vector<128x128xbf16>
    %cst_621 = arith.constant dense<0.000000e+00> : vector<8x128xf32>
    %913 = tpu.matmul %911, %912, %cst_621 {dimension_numbers = #tpu.dot_dimension_numbers<[1], [0], [0], [1], [0, 0, 1, 1], [], []>} : vector<8x128xbf16>, vector<128x128xbf16>, vector<8x128xf32> -> vector<8x128xf32>
    %c0_622 = arith.constant 0 : index
    %c0_623 = arith.constant 0 : index
    %914 = vector.load %arg9[%c0_622, %c0_623] : memref<128x128xbf16, #tpu.memory_space<vmem>>, vector<128x128xbf16>
    %cst_624 = arith.constant dense<0.000000e+00> : vector<8x128xf32>
    %915 = tpu.matmul %887, %914, %cst_624 {dimension_numbers = #tpu.dot_dimension_numbers<[1], [0], [0], [1], [0, 0, 1, 1], [], []>} : vector<8x128xbf16>, vector<128x128xbf16>, vector<8x128xf32> -> vector<8x128xf32>
    %916 = arith.addf %913, %915 : vector<8x128xf32>
    %917 = vector.broadcast %2 : vector<1x128xf32> to vector<8x128xf32>
    %918 = arith.addf %916, %917 : vector<8x128xf32>
    %cst_625 = arith.constant 0.000000e+00 : f32
    %919 = vector.broadcast %cst_625 : f32 to vector<8x128xf32>
    %920 = arith.maximumf %918, %919 : vector<8x128xf32>
    %921 = arith.truncf %920 : vector<8x128xf32> to vector<8x128xbf16>
    %c27_i32 = arith.constant 27 : i32
    %922 = arith.index_cast %c27_i32 : i32 to index
    %c0_626 = arith.constant 0 : index
    %c0_627 = arith.constant 0 : index
    %923 = vector.load %arg1[%922, %c0_626, %c0_627] : memref<28x8x28xf32, #tpu.memory_space<vmem>>, vector<1x8x28xf32>
    %924 = vector.shape_cast %923 : vector<1x8x28xf32> to vector<8x28xf32>
    %925 = arith.truncf %924 : vector<8x28xf32> to vector<8x28xbf16>
    %c0_628 = arith.constant 0 : index
    %c0_629 = arith.constant 0 : index
    %926 = vector.load %arg2[%c0_628, %c0_629] : memref<28x128xbf16, #tpu.memory_space<vmem>>, vector<28x128xbf16>
    %cst_630 = arith.constant dense<0.000000e+00> : vector<8x128xf32>
    %927 = tpu.matmul %925, %926, %cst_630 {dimension_numbers = #tpu.dot_dimension_numbers<[1], [0], [0], [1], [0, 0, 1, 1], [], []>} : vector<8x28xbf16>, vector<28x128xbf16>, vector<8x128xf32> -> vector<8x128xf32>
    %c0_631 = arith.constant 0 : index
    %c0_632 = arith.constant 0 : index
    %928 = vector.load %arg3[%c0_631, %c0_632] : memref<128x128xbf16, #tpu.memory_space<vmem>>, vector<128x128xbf16>
    %cst_633 = arith.constant dense<0.000000e+00> : vector<8x128xf32>
    %929 = tpu.matmul %901, %928, %cst_633 {dimension_numbers = #tpu.dot_dimension_numbers<[1], [0], [0], [1], [0, 0, 1, 1], [], []>} : vector<8x128xbf16>, vector<128x128xbf16>, vector<8x128xf32> -> vector<8x128xf32>
    %930 = arith.addf %927, %929 : vector<8x128xf32>
    %931 = vector.broadcast %0 : vector<1x128xf32> to vector<8x128xf32>
    %932 = arith.addf %930, %931 : vector<8x128xf32>
    %cst_634 = arith.constant 0.000000e+00 : f32
    %933 = vector.broadcast %cst_634 : f32 to vector<8x128xf32>
    %934 = arith.maximumf %932, %933 : vector<8x128xf32>
    %935 = arith.truncf %934 : vector<8x128xf32> to vector<8x128xbf16>
    %c0_635 = arith.constant 0 : index
    %c0_636 = arith.constant 0 : index
    %936 = vector.load %arg5[%c0_635, %c0_636] : memref<128x128xbf16, #tpu.memory_space<vmem>>, vector<128x128xbf16>
    %cst_637 = arith.constant dense<0.000000e+00> : vector<8x128xf32>
    %937 = tpu.matmul %935, %936, %cst_637 {dimension_numbers = #tpu.dot_dimension_numbers<[1], [0], [0], [1], [0, 0, 1, 1], [], []>} : vector<8x128xbf16>, vector<128x128xbf16>, vector<8x128xf32> -> vector<8x128xf32>
    %c0_638 = arith.constant 0 : index
    %c0_639 = arith.constant 0 : index
    %938 = vector.load %arg6[%c0_638, %c0_639] : memref<128x128xbf16, #tpu.memory_space<vmem>>, vector<128x128xbf16>
    %cst_640 = arith.constant dense<0.000000e+00> : vector<8x128xf32>
    %939 = tpu.matmul %911, %938, %cst_640 {dimension_numbers = #tpu.dot_dimension_numbers<[1], [0], [0], [1], [0, 0, 1, 1], [], []>} : vector<8x128xbf16>, vector<128x128xbf16>, vector<8x128xf32> -> vector<8x128xf32>
    %940 = arith.addf %937, %939 : vector<8x128xf32>
    %941 = vector.broadcast %1 : vector<1x128xf32> to vector<8x128xf32>
    %942 = arith.addf %940, %941 : vector<8x128xf32>
    %cst_641 = arith.constant 0.000000e+00 : f32
    %943 = vector.broadcast %cst_641 : f32 to vector<8x128xf32>
    %944 = arith.maximumf %942, %943 : vector<8x128xf32>
    %945 = arith.truncf %944 : vector<8x128xf32> to vector<8x128xbf16>
    %c0_642 = arith.constant 0 : index
    %c0_643 = arith.constant 0 : index
    %946 = vector.load %arg8[%c0_642, %c0_643] : memref<128x128xbf16, #tpu.memory_space<vmem>>, vector<128x128xbf16>
    %cst_644 = arith.constant dense<0.000000e+00> : vector<8x128xf32>
    %947 = tpu.matmul %945, %946, %cst_644 {dimension_numbers = #tpu.dot_dimension_numbers<[1], [0], [0], [1], [0, 0, 1, 1], [], []>} : vector<8x128xbf16>, vector<128x128xbf16>, vector<8x128xf32> -> vector<8x128xf32>
    %c0_645 = arith.constant 0 : index
    %c0_646 = arith.constant 0 : index
    %948 = vector.load %arg9[%c0_645, %c0_646] : memref<128x128xbf16, #tpu.memory_space<vmem>>, vector<128x128xbf16>
    %cst_647 = arith.constant dense<0.000000e+00> : vector<8x128xf32>
    %949 = tpu.matmul %921, %948, %cst_647 {dimension_numbers = #tpu.dot_dimension_numbers<[1], [0], [0], [1], [0, 0, 1, 1], [], []>} : vector<8x128xbf16>, vector<128x128xbf16>, vector<8x128xf32> -> vector<8x128xf32>
    %950 = arith.addf %947, %949 : vector<8x128xf32>
    %951 = vector.broadcast %2 : vector<1x128xf32> to vector<8x128xf32>
    %952 = arith.addf %950, %951 : vector<8x128xf32>
    %cst_648 = arith.constant 0.000000e+00 : f32
    %953 = vector.broadcast %cst_648 : f32 to vector<8x128xf32>
    %954 = arith.maximumf %952, %953 : vector<8x128xf32>
    %955 = arith.truncf %954 : vector<8x128xf32> to vector<8x128xbf16>
    %c28_i32 = arith.constant 28 : i32
    %c0_649 = arith.constant 0 : index
    %c0_650 = arith.constant 0 : index
    %956 = vector.load %arg11[%c0_649, %c0_650] : memref<128x128xbf16, #tpu.memory_space<vmem>>, vector<128x128xbf16>
    %cst_651 = arith.constant dense<0.000000e+00> : vector<8x128xf32>
    %957 = tpu.matmul %955, %956, %cst_651 {dimension_numbers = #tpu.dot_dimension_numbers<[1], [0], [0], [1], [0, 0, 1, 1], [], []>} : vector<8x128xbf16>, vector<128x128xbf16>, vector<8x128xf32> -> vector<8x128xf32>
    %c0_652 = arith.constant 0 : index
    %c0_653 = arith.constant 0 : index
    %958 = vector.load %arg12[%c0_652, %c0_653] : memref<1x128xf32, #tpu.memory_space<vmem>>, vector<1x128xf32>
    %959 = vector.broadcast %958 : vector<1x128xf32> to vector<8x128xf32>
    %960 = arith.addf %957, %959 : vector<8x128xf32>
    %c0_654 = arith.constant 0 : index
    %c0_655 = arith.constant 0 : index
    %961 = vector.load %arg13[%c0_654, %c0_655] : memref<8x128xf32, #tpu.memory_space<vmem>>, vector<8x128xf32>
    tpu.vector_store %arg13[%c0_654, %c0_655], %960 {strides = array<i32>} : memref<8x128xf32, #tpu.memory_space<vmem>>, vector<8x128xf32>,
    return
  }
  func.func @transform_0(%arg0: i32) -> (i32, i32, i32) {
    %c0_i32 = arith.constant 0 : i32
    %c0_i32_0 = arith.constant 0 : i32
    %c0_i32_1 = arith.constant 0 : i32
    return %c0_i32, %arg0, %c0_i32_0 : i32, i32, i32
  }
  func.func @transform_1(%arg0: i32) -> (i32, i32) {
    %c0_i32 = arith.constant 0 : i32
    %c0_i32_0 = arith.constant 0 : i32
    %c0_i32_1 = arith.constant 0 : i32
    return %c0_i32, %c0_i32_0 : i32, i32
  }
  func.func @transform_2(%arg0: i32) -> (i32, i32) {
    %c0_i32 = arith.constant 0 : i32
    %c0_i32_0 = arith.constant 0 : i32
    %c0_i32_1 = arith.constant 0 : i32
    return %c0_i32, %c0_i32_0 : i32, i32
  }
  func.func @transform_3(%arg0: i32) -> (i32, i32) {
    %c0_i32 = arith.constant 0 : i32
    %c0_i32_0 = arith.constant 0 : i32
    %c0_i32_1 = arith.constant 0 : i32
    return %c0_i32, %c0_i32_0 : i32, i32
  }
  func.func @transform_4(%arg0: i32) -> (i32, i32) {
    %c0_i32 = arith.constant 0 : i32
    %c0_i32_0 = arith.constant 0 : i32
    %c0_i32_1 = arith.constant 0 : i32
    return %c0_i32, %c0_i32_0 : i32, i32
  }
  func.func @transform_5(%arg0: i32) -> (i32, i32) {
    %c0_i32 = arith.constant 0 : i32
    %c0_i32_0 = arith.constant 0 : i32
    %c0_i32_1 = arith.constant 0 : i32
    return %c0_i32, %c0_i32_0 : i32, i32
  }
  func.func @transform_6(%arg0: i32) -> (i32, i32) {
    %c0_i32 = arith.constant 0 : i32
    %c0_i32_0 = arith.constant 0 : i32
    %c0_i32_1 = arith.constant 0 : i32
    return %c0_i32, %c0_i32_0 : i32, i32
  }
  func.func @transform_7(%arg0: i32) -> (i32, i32) {
    %c0_i32 = arith.constant 0 : i32
    %c0_i32_0 = arith.constant 0 : i32
    %c0_i32_1 = arith.constant 0 : i32
    return %c0_i32, %c0_i32_0 : i32, i32
  }
  func.func @transform_8(%arg0: i32) -> (i32, i32) {
    %c0_i32 = arith.constant 0 : i32
    %c0_i32_0 = arith.constant 0 : i32
    %c0_i32_1 = arith.constant 0 : i32
    return %c0_i32, %c0_i32_0 : i32, i32
  }
  func.func @transform_9(%arg0: i32) -> (i32, i32) {
    %c0_i32 = arith.constant 0 : i32
    %c0_i32_0 = arith.constant 0 : i32
    %c0_i32_1 = arith.constant 0 : i32
    return %c0_i32, %c0_i32_0 : i32, i32
  }
  func.func @transform_10(%arg0: i32) -> (i32, i32) {
    %c0_i32 = arith.constant 0 : i32
    %c0_i32_0 = arith.constant 0 : i32
    %c0_i32_1 = arith.constant 0 : i32
    return %c0_i32, %c0_i32_0 : i32, i32
  }
  func.func @transform_11(%arg0: i32) -> (i32, i32) {
    %c0_i32 = arith.constant 0 : i32
    %c0_i32_0 = arith.constant 0 : i32
    %c0_i32_1 = arith.constant 0 : i32
    return %c0_i32, %c0_i32_0 : i32, i32
  }
  func.func @transform_12(%arg0: i32) -> (i32, i32) {
    %c0_i32 = arith.constant 0 : i32
    %c0_i32_0 = arith.constant 0 : i32
    return %arg0, %c0_i32 : i32, i32
  }
}

</mosaic_0001>

<bundles_post_ra>
// kernel: tpu_custom_call.1
= control target key start
LH: loop header
LB: loop body
LE: loop exit
PB: predicated region body
PF: predicated region fallthrough
CT: control target
= control target key end

     0   :  { %17 = vsyncpa [#allocation3], 0  ;;  %s5696_s0 = inlined_call_operand.hbm [shape: f32[28,8,28], index: 0, kind: input, shape index: {}]   ;;  %s5697_s1 = inlined_call_operand.hbm [shape: bf16[28,128], index: 1, kind: input, shape index: {}]   ;;  %s5698_s2 = inlined_call_operand.hbm [shape: bf16[128,128], index: 2, kind: input, shape index: {}]   ;;  %s5699_s3 = inlined_call_operand.vmem [shape: f32[1,128], index: 3, kind: input, shape index: {}]   ;;  %s5700_s4 = inlined_call_operand.hbm [shape: bf16[128,128], index: 4, kind: input, shape index: {}]   ;;  %s5701_s5 = inlined_call_operand.hbm [shape: bf16[128,128], index: 5, kind: input, shape index: {}]   ;;  %s5702_s6 = inlined_call_operand.vmem [shape: f32[1,128], index: 6, kind: input, shape index: {}]   ;;  %s5703_s7 = inlined_call_operand.hbm [shape: bf16[128,128], index: 7, kind: input, shape index: {}]   ;;  %s5704_s8 = inlined_call_operand.hbm [shape: bf16[128,128], index: 8, kind: input, shape index: {}]   ;;  %s5705_s9 = inlined_call_operand.vmem [shape: f32[1,128], index: 9, kind: input, shape index: {}]   ;;  %s5706_s10 = inlined_call_operand.hbm [shape: bf16[128,128], index: 10, kind: input, shape index: {}]   ;;  %s5707_s11 = inlined_call_operand.vmem [shape: f32[1,128], index: 11, kind: input, shape index: {}]   ;;  %s5708_s12 = inlined_call_operand.hbm [shape: f32[8,128], index: 12, kind: output, shape index: {}]  }
   0x1   :  { %18 = vsyncpa [#allocation6], 0 }
   0x2   :  { %19 = vsyncpa [#allocation9], 0 }
   0x3   :  { %20 = vsyncpa [#allocation12], 0 }
   0x4   :  { %21 = vsyncpa [#allocation15], 0  ;;  %s40_s23 = sshll.u32 %s5697_s1, 4  ;;  %s41_s23 = int_to_ptr.hbm [resolvable:$true] %s40_s23 }
   0x5   :  { %22 = vsyncpa [#allocation4], 0  ;;  %s3882_s24 = smov [#allocation5]   ;;  %s68_s28 = sshll.u32 %s5700_s4, 4  ;;  %s69_s28 = int_to_ptr.hbm [resolvable:$true] %s68_s28 }
   0x6   :  { %s42_s25 = sshll.u32 %s3882_s24, 4  ;;  %s3883_s29 = smov 64   ;;  %s43_s25 = int_to_ptr.vmem [resolvable:$true] %s42_s25 }
   0x7   :  { %s3884_s30 = smov 4   ;;  %s3885_s13 = smov [#allocation8]  }
   0x8   :  { %48 = dma.hbm_to_vmem [thread:$0]  %s41_s23, 256, %s43_s25, [#allocation6], %s3883_s29, %s3883_s29, %s3884_s30  }
   0x9   :  { %s70_s14 = sshll.u32 %s3885_s13, 4  ;;  %s96_s16 = sshll.u32 %s5703_s7, 4  ;;  %s71_s14 = int_to_ptr.vmem [resolvable:$true] %s70_s14  ;;  %s97_s16 = int_to_ptr.hbm [resolvable:$true] %s96_s16 }
   0xa   :  { %76 = dma.hbm_to_vmem [thread:$0]  %s69_s28, 1024, %s71_s14, [#allocation9], %s3883_s29, %s3883_s29, %s3884_s30  }
   0xb   :  { %s27_s18 = sshll.u32 %s5696_s0, 4  ;;  %s3886_s19 = smov [#allocation11]   ;;  %s28_s18 = int_to_ptr.hbm [resolvable:$true] %s27_s18 }
   0xc   :  { %s98_s20 = sshll.u32 %s3886_s19, 4  ;;  %s3887_s21 = smov [#allocation2]   ;;  %s99_s20 = int_to_ptr.vmem [resolvable:$true] %s98_s20 }
   0xd   :  { %104 = dma.hbm_to_vmem [thread:$0]  %s97_s16, 1024, %s99_s20, [#allocation12], %s3883_s29, %s3883_s29, %s3884_s30  }
   0xe   :  { %s29_s7 = sshll.u32 %s3887_s21, 4  ;;  %s3888_s22 = smov 128   ;;  %s30_s7 = int_to_ptr.vmem [resolvable:$true] %s29_s7 }
   0xf   :  { %s3889_s23 = smov 8   ;;  %s53_s26 = sshll.u32 %s5698_s2, 4  ;;  %s54_s26 = int_to_ptr.hbm [resolvable:$true] %s53_s26 }
  0x10   :  { %35 = dma.hbm_to_vmem [thread:$0]  %s28_s18, 3584, %s30_s7, [#allocation3], %s3888_s22, %s3888_s22, %s3889_s23  }
  0x11   :  { %s3890_s0 = smov [#allocation7]   ;;  %s81_s14 = sshll.u32 %s5701_s5, 4  ;;  %s82_s14 = int_to_ptr.hbm [resolvable:$true] %s81_s14 }
  0x12   :  { %s55_s27 = sshll.u32 %s3890_s0, 4  ;;  %s3891_s15 = smov [#allocation10]   ;;  %s56_s27 = int_to_ptr.vmem [resolvable:$true] %s55_s27 }
  0x13   :  { %61 = dma.hbm_to_vmem [thread:$0]  %s54_s26, 1024, %s56_s27, [#allocation6], %s3883_s29, %s3883_s29, %s3884_s30  }
  0x14   :  { %s83_s1 = sshll.u32 %s3891_s15, 4  ;;  %s109_s17 = sshll.u32 %s5704_s8, 4  ;;  %s84_s1 = int_to_ptr.vmem [resolvable:$true] %s83_s1  ;;  %s110_s17 = int_to_ptr.hbm [resolvable:$true] %s109_s17 }
  0x15   :  { %89 = dma.hbm_to_vmem [thread:$0]  %s82_s14, 1024, %s84_s1, [#allocation9], %s3883_s29, %s3883_s29, %s3884_s30  }
  0x16   :  { %s124_s5 = sshll.u32 %s5706_s10, 4  ;;  %s3892_s19 = smov [#allocation13]   ;;  %s125_s5 = int_to_ptr.hbm [resolvable:$true] %s124_s5 }
  0x17   :  { %s111_s20 = sshll.u32 %s3892_s19, 4  ;;  %s3893_s21 = smov [#allocation14]   ;;  %s112_s20 = int_to_ptr.vmem [resolvable:$true] %s111_s20 }
  0x18   :  { %117 = dma.hbm_to_vmem [thread:$0]  %s110_s17, 1024, %s112_s20, [#allocation12], %s3883_s29, %s3883_s29, %s3884_s30  }
  0x19   :  { %s126_s8 = sshll.u32 %s3893_s21, 4  ;;  %s127_s8 = int_to_ptr.vmem [resolvable:$true] %s126_s8 }
  0x1a   :  { %132 = dma.hbm_to_vmem [thread:$0]  %s125_s5, 1024, %s127_s8, [#allocation15], %s3883_s29, %s3883_s29, %s3884_s30  }
  0x1b   :  { %3870 = dma.done.wait [#allocation3], 3584  }
  0x1c   :  { %3871 = vsyncadd [#allocation3], 4294963712 }
  0x1d   :  { %3872 = dma.done.wait [#allocation6], 1280  }
  0x1e   :  { %3873 = vsyncadd [#allocation6], 4294966016 }
  0x1f   :  { %3874 = dma.done.wait [#allocation9], 2048  }
  0x20   :  { %3875 = vsyncadd [#allocation9], 4294965248 }
  0x21   :  { %3876 = dma.done.wait [#allocation12], 2048  }
  0x22   :  { %3877 = vsyncadd [#allocation12], 4294965248 }
  0x23   :  { %3878 = dma.done.wait [#allocation15], 1024  }
  0x24   :  { %3879 = vsyncadd [#allocation15], 4294966272  ;;  %v4006_v0 = vld [vmem:[#allocation7 + $0x38] sm:$0xff]  ;;  %v4009_v2 = vld [vmem:[#allocation7 + $0x30] sm:$0xff]  ;;  %vm269_vm0 = vcmask 1045504   ;;  %vm265_vm1 = vcmask 228352  }
  0x25   :  { %v3264_v1 = vld [vmem:[#allocation5 + $0x8] sm:$0xf]  ;;  %241 = vmatpush.bf16.msra.mxu0 %v4006_v0  ;;  %v3455_v3 = vld [vmem:[#allocation5 + $0x8] sm:$0x30]  ;;  %v4013_v6 = vld [vmem:[#allocation7 + $0x28] sm:$0xff]  ;;  %v3894_v27 = vmov 0  }
  0x26   :  { %v3265_v4 = vor.u32 %v3455_v3, %v3264_v1  ;;  %v4011_v5 = vld [vmem:[#allocation10 + $0x38] sm:$0xff]  ;;  %v4019_v8 = vld [vmem:[#allocation5] sm:$0xff]  ;;  %v4030_v14 = vld [vmem:[#allocation7 + $0x20] sm:$0xff]  ;;  %s3895_s20 = smov [#allocation16]   ;;  %s3212_s29 = sshll.u32 %s5708_s12, 4  ;;  %s3213_s29 = int_to_ptr.hbm [resolvable:$true] %s3212_s29 }
  0x27   :  { %v171_v9 = vld [vmem:[#allocation2] sm:$0xff]  ;;  %v4021_v10 = vld [vmem:[#allocation8 + $0x38] sm:$0xff]  ;;  %372 = vmatpush.bf16.msra.mxu2 %v4011_v5  ;;  %v4034_v15 = vld [vmem:[#allocation10 + $0x28] sm:$0xff]  ;;  %s3210_s21 = sshll.u32 %s3895_s20, 4  ;;  %s3211_s21 = int_to_ptr.vmem [resolvable:$true] %s3210_s21 }
  0x28   :  { %v4015_v7 = vsel %vm269_vm0, %v3265_v4, 0  ;;  %v4024_v11 = vld [vmem:[#allocation10 + $0x30] sm:$0xff]  ;;  %433 = vmatpush.bf16.msra.mxu3 %v4021_v10  ;;  %v172_v13 = vpack.c.bf16 %v171_v9, %v171_v9  ;;  %v4037_v16 = vld [vmem:[#allocation8 + $0x28] sm:$0xff]  ;;  %v4041_v17 = vld [vmem:[#allocation7 + $0x18] sm:$0xff] }
  0x29   :  { %242 = vmatpush.bf16.msra.mxu0 %v4009_v2  ;;  %279 = vmatpush.bf16.msra.mxu1 %v4015_v7  ;;  %v4027_v12 = vld [vmem:[#allocation8 + $0x30] sm:$0xff]  ;;  %v4044_v18 = vld [vmem:[#allocation10 + $0x20] sm:$0xff]  ;;  %v4053_v21 = vld [vmem:[#allocation10 + $0x18] sm:$0xff] }
  0x2a   :  { %v4047_v19 = vld [vmem:[#allocation8 + $0x20] sm:$0xff]  ;;  %v4050_v20 = vld [vmem:[#allocation7 + $0x10] sm:$0xff]  ;;  %v4057_v22 = vld [vmem:[#allocation7 + $0x8] sm:$0xff] }
  0x2b   :  { %373 = vmatpush.bf16.msra.mxu2 %v4024_v11  ;;  %v4060_v23 = vld [vmem:[#allocation10 + $0x10] sm:$0xff]  ;;  %v4063_v24 = vld [vmem:[#allocation7] sm:$0xff]  ;;  %v4066_v25 = vld [vmem:[#allocation10 + $0x8] sm:$0xff] }
  0x2c   :  { %434 = vmatpush.bf16.msra.mxu3 %v4027_v12  ;;  %v4070_v26 = vld [vmem:[#allocation10] sm:$0xff]  ;;  %v4083_v28 = vld [vmem:[#allocation8 + $0x18] sm:$0xff]  ;;  %v4086_v29 = vld [vmem:[#allocation8 + $0x10] sm:$0xff] }
  0x2d   :  { %243 = vmatpush.bf16.msra.mxu0 %v4013_v6  ;;  %280 = vmatpush.bf16.msra.mxu1 %v4019_v8  ;;  %v4089_v30 = vld [vmem:[#allocation8 + $0x8] sm:$0xff]  ;;  %v4092_v31 = vld [vmem:[#allocation8] sm:$0xff]  ;;  %v4097_v34 = vld [vmem:[#allocation13 + $0x38] sm:$0xff] }
  0x2e   :  { %v4100_v35 = vld [vmem:[#allocation13 + $0x30] sm:$0xff]  ;;  %v4108_v37 = vld [vmem:[#allocation13 + $0x28] sm:$0xff]  ;;  %v4112_v41 = vld [vmem:[#allocation13 + $0x20] sm:$0xff] }
  0x2f   :  { %374 = vmatpush.bf16.msra.mxu2 %v4034_v15  ;;  %v4105_v36 = vld [vmem:[%s5699_s3] ss:$0 sm:$0xff]  ;;  %v4114_v42 = vld [vmem:[#allocation11 + $0x38] sm:$0xff]  ;;  %v4131_v50 = vld [vmem:[#allocation11 + $0x28] sm:$0xff] }
  0x30   :  { %3266 = vmatmul.msk.bf16.vlgmr.msra.gmra.mxu1 %vm265_vm1, %v172_v13  ;;  %435 = vmatpush.bf16.msra.mxu3 %v4037_v16  ;;  %v4119_v45 = vld [vmem:[#allocation13 + $0x18] sm:$0xff]  ;;  %v4121_v47 = vld [vmem:[#allocation11 + $0x30] sm:$0xff]  ;;  %v4136_v51 = vld [vmem:[#allocation13 + $0x8] sm:$0xff] }
  0x31   :  { %244 = vmatpush.bf16.msra.mxu0 %v4030_v14  ;;  %532 = vmatpush.bf16.msrb.mxu1 %v4097_v34  ;;  %v4126_v48 = vld [vmem:[#allocation13 + $0x10] sm:$0xff]  ;;  %v4139_v52 = vld [vmem:[#allocation11 + $0x20] sm:$0xff]  ;;  %v613_v53 = vld [vmem:[#allocation2 + $0x8] sm:$0xff] }
  0x32   :  { %v4144_v54 = vld [vmem:[#allocation13] sm:$0xff]  ;;  %v4147_v56 = vld [vmem:[#allocation11 + $0x18] sm:$0xff]  ;;  %v614_v57 = vpack.c.bf16 %v613_v53, %v613_v53  ;;  %v4150_v58 = vld [vmem:[#allocation11 + $0x10] sm:$0xff] }
  0x33   :  { %375 = vmatpush.bf16.msra.mxu2 %v4044_v18  ;;  %v4181_v59 = vld [vmem:[#allocation11 + $0x8] sm:$0xff]  ;;  %v4185_v60 = vld [vmem:[#allocation11] sm:$0xff]  ;;  %v4204_v61 = vld [vmem:[%s5702_s6] ss:$0 sm:$0xff] }
  0x34   :  { %436 = vmatpush.bf16.msra.mxu3 %v4047_v19 }
  0x35   :  { %245 = vmatpush.bf16.msra.mxu0 %v4041_v17  ;;  %533 = vmatpush.bf16.msrb.mxu1 %v4100_v35 }
  0x37   :  { %376 = vmatpush.bf16.msra.mxu2 %v4053_v21 }
  0x38   :  { %437 = vmatpush.bf16.msra.mxu3 %v4083_v28 }
  0x39   :  { %246 = vmatpush.bf16.msra.mxu0 %v4050_v20  ;;  %534 = vmatpush.bf16.msrb.mxu1 %v4108_v37 }
  0x3b   :  { %377 = vmatpush.bf16.msra.mxu2 %v4060_v23 }
  0x3c   :  { %438 = vmatpush.bf16.msra.mxu3 %v4086_v29 }
  0x3d   :  { %247 = vmatpush.bf16.msra.mxu0 %v4057_v22  ;;  %535 = vmatpush.bf16.msrb.mxu1 %v4112_v41 }
  0x3f   :  { %378 = vmatpush.bf16.msra.mxu2 %v4066_v25 }
  0x40   :  { %439 = vmatpush.bf16.msra.mxu3 %v4089_v30 }
  0x41   :  { %248 = vmatpush.bf16.msra.mxu0 %v4063_v24  ;;  %536 = vmatpush.bf16.msrb.mxu1 %v4119_v45 }
  0x43   :  { %379 = vmatpush.bf16.msra.mxu2 %v4070_v26 }
  0x44   :  { %249 = vmatmul.bf16.vlgmr.msra.gmra.mxu0 %v3894_v27  ;;  %440 = vmatpush.bf16.msra.mxu3 %v4092_v31 }
  0x45   :  { %593 = vmatpush.bf16.msrb.mxu0 %v4114_v42  ;;  %537 = vmatpush.bf16.msrb.mxu1 %v4126_v48 }
  0x46   :  { %380 = vmatmul.bf16.vlgmr.msra.gmra.mxu2 %v3894_v27 }
  0x47   :  { %615 = vmatpush.bf16.msrb.mxu2 %v4006_v0 }
  0x48   :  { %637 = vmatpush.bf16.msrb.mxu3 %v4015_v7 }
  0x49   :  { %594 = vmatpush.bf16.msrb.mxu0 %v4121_v47  ;;  %538 = vmatpush.bf16.msrb.mxu1 %v4136_v51 }
  0x4b   :  { %616 = vmatpush.bf16.msrb.mxu2 %v4009_v2 }
  0x4c   :  { %638 = vmatpush.bf16.msrb.mxu3 %v4019_v8 }
  0x4d   :  { %595 = vmatpush.bf16.msrb.mxu0 %v4131_v50  ;;  %539 = vmatpush.bf16.msrb.mxu1 %v4144_v54 }
  0x4f   :  { %617 = vmatpush.bf16.msrb.mxu2 %v4013_v6 }
  0x50   :  { %540 = vmatmul.bf16.vlgmr.msrb.gmra.mxu1 %v3894_v27 }
  0x51   :  { %596 = vmatpush.bf16.msrb.mxu0 %v4139_v52  ;;  %647 = vmatpush.bf16.msra.mxu1 %v4011_v5 }
  0x53   :  { %618 = vmatpush.bf16.msrb.mxu2 %v4030_v14 }
  0x55   :  { %597 = vmatpush.bf16.msrb.mxu0 %v4147_v56  ;;  %648 = vmatpush.bf16.msra.mxu1 %v4024_v11 }
  0x57   :  { %619 = vmatpush.bf16.msrb.mxu2 %v4041_v17 }
  0x59   :  { %598 = vmatpush.bf16.msrb.mxu0 %v4150_v58  ;;  %649 = vmatpush.bf16.msra.mxu1 %v4034_v15 }
  0x5b   :  { %620 = vmatpush.bf16.msrb.mxu2 %v4050_v20 }
  0x5d   :  { %650 = vmatpush.bf16.msra.mxu1 %v4044_v18  ;;  %599 = vmatpush.bf16.msrb.mxu0 %v4181_v59 }
  0x5f   :  { %621 = vmatpush.bf16.msrb.mxu2 %v4057_v22 }
  0x61   :  { %651 = vmatpush.bf16.msra.mxu1 %v4053_v21  ;;  %600 = vmatpush.bf16.msrb.mxu0 %v4185_v60 }
  0x63   :  { %622 = vmatpush.bf16.msrb.mxu2 %v4063_v24 }
  0x65   :  { %652 = vmatpush.bf16.msra.mxu1 %v4060_v23  ;;  %676 = vmatpush.bf16.msra.mxu0 %v4097_v34 }
  0x67   :  { %689 = vmatpush.bf16.msra.mxu2 %v4114_v42 }
  0x69   :  { %653 = vmatpush.bf16.msra.mxu1 %v4066_v25  ;;  %677 = vmatpush.bf16.msra.mxu0 %v4100_v35 }
  0x6b   :  { %690 = vmatpush.bf16.msra.mxu2 %v4121_v47 }
  0x6d   :  { %654 = vmatpush.bf16.msra.mxu1 %v4070_v26  ;;  %678 = vmatpush.bf16.msra.mxu0 %v4108_v37 }
  0x6f   :  { %691 = vmatpush.bf16.msra.mxu2 %v4131_v50 }
  0x71   :  { %708 = vmatpush.bf16.msrb.mxu1 %v4006_v0  ;;  %679 = vmatpush.bf16.msra.mxu0 %v4112_v41 }
  0x73   :  { %692 = vmatpush.bf16.msra.mxu2 %v4139_v52 }
  0x75   :  { %709 = vmatpush.bf16.msrb.mxu1 %v4009_v2  ;;  %680 = vmatpush.bf16.msra.mxu0 %v4119_v45 }
  0x77   :  { %693 = vmatpush.bf16.msra.mxu2 %v4147_v56 }
  0x79   :  { %710 = vmatpush.bf16.msrb.mxu1 %v4013_v6  ;;  %681 = vmatpush.bf16.msra.mxu0 %v4126_v48 }
  0x7b   :  { %694 = vmatpush.bf16.msra.mxu2 %v4150_v58 }
  0x7d   :  { %711 = vmatpush.bf16.msrb.mxu1 %v4030_v14  ;;  %682 = vmatpush.bf16.msra.mxu0 %v4136_v51 }
  0x7f   :  { %695 = vmatpush.bf16.msra.mxu2 %v4181_v59 }
  0x81   :  { %712 = vmatpush.bf16.msrb.mxu1 %v4041_v17  ;;  %683 = vmatpush.bf16.msra.mxu0 %v4144_v54 }
  0x83   :  { %696 = vmatpush.bf16.msra.mxu2 %v4185_v60 }
  0x85   :  { %713 = vmatpush.bf16.msrb.mxu1 %v4050_v20 }
  0x89   :  { %714 = vmatpush.bf16.msrb.mxu1 %v4057_v22 }
  0x8d   :  { %715 = vmatpush.bf16.msrb.mxu1 %v4063_v24 }
  0xad   :  { %v282_v32 = vpop.f32.mrf.mxu1 }
  0xb5   :  { %v284_v33 = vpop.f32.mrf.mxu1 }
  0xc1   :  { %v250_v38 = vpop.f32.mrf.mxu0 }
  0xc2   :  { %v283_v39 = vadd.f32 %v282_v32, %v250_v38 }
  0xc4   :  { %v289_v40 = vadd.f32 %v4105_v36, %v283_v39 }
  0xc6   :  { %v290_v43 = vmax.f32 %v289_v40, 0.0 }
  0xc8   :  { %v291_v44 = vpack.c.bf16 %v290_v43, %v290_v43 }
  0xc9   :  { %v252_v46 = vpop.f32.mrf.mxu0  ;;  %v4128_v49 = vpop.f32.mrf.mxu2 }
  0xca   :  { %441 = vmatmul.bf16.vlgmr.msra.gmra.mxu3 %v291_v44  ;;  %623 = vmatmul.bf16.vlgmr.msrb.gmra.mxu2 %v291_v44 }
  0xcb   :  { %660 = vmatpush.bf16.msra.mxu3 %v4021_v10  ;;  %753 = vmatpush.bf16.msrb.mxu2 %v4021_v10 }
  0xcd   :  { %v541_v32 = vpop.f32.mrf.mxu1 }
  0xcf   :  { %661 = vmatpush.bf16.msra.mxu3 %v4027_v12  ;;  %754 = vmatpush.bf16.msrb.mxu2 %v4027_v12 }
  0xd1   :  { %v383_v55 = vpop.f32.mrf.mxu2 }
  0xd2   :  { %v4257_v55 = vld [vmem:[%s5705_s9] ss:$0 sm:$0xff] }
  0xd3   :  { %662 = vmatpush.bf16.msra.mxu3 %v4037_v16  ;;  %755 = vmatpush.bf16.msrb.mxu2 %v4037_v16 }
  0xd5   :  { %v543_v40 = vpop.f32.mrf.mxu1 }
  0xd7   :  { %663 = vmatpush.bf16.msra.mxu3 %v4047_v19  ;;  %756 = vmatpush.bf16.msrb.mxu2 %v4047_v19 }
  0xda   :  { %3395 = vmatmul.msk.bf16.vlgmr.msrb.gmra.mxu3 %vm265_vm1, %v614_v57 }
  0xdb   :  { %664 = vmatpush.bf16.msra.mxu3 %v4083_v28  ;;  %757 = vmatpush.bf16.msrb.mxu2 %v4083_v28 }
  0xdf   :  { %665 = vmatpush.bf16.msra.mxu3 %v4086_v29  ;;  %758 = vmatpush.bf16.msrb.mxu2 %v4086_v29 }
  0xe3   :  { %666 = vmatpush.bf16.msra.mxu3 %v4089_v30  ;;  %759 = vmatpush.bf16.msrb.mxu2 %v4089_v30 }
  0xe7   :  { %667 = vmatpush.bf16.msra.mxu3 %v4092_v31  ;;  %760 = vmatpush.bf16.msrb.mxu2 %v4092_v31 }
  0xeb   :  { %730 = vmatpush.bf16.msrb.mxu3 %v4015_v7 }
  0xef   :  { %731 = vmatpush.bf16.msrb.mxu3 %v4019_v8 }
 0x14d   :  { %v442_v62 = vpop.f32.mrf.mxu3  ;;  %v624_v63 = vpop.f32.mrf.mxu2 }
 0x14e   :  { %v443_v1 = vadd.f32 %v442_v62, %v4128_v49  ;;  %v706_v49 = vld [vmem:[#allocation2 + $0x10] sm:$0xff] }
 0x14f   :  { %v707_v53 = vpack.c.bf16 %v706_v49, %v706_v49 }
 0x150   :  { %v449_v3 = vadd.f32 %v4204_v61, %v443_v1 }
 0x152   :  { %v450_v4 = vmax.f32 %v449_v3, 0.0 }
 0x154   :  { %v451_v9 = vpack.c.bf16 %v450_v4, %v450_v4 }
 0x155   :  { %v444_v13 = vpop.f32.mrf.mxu3  ;;  %v626_v27 = vpop.f32.mrf.mxu2 }
 0x156   :  { %601 = vmatmul.bf16.vlgmr.msrb.gmra.mxu0 %v451_v9  ;;  %655 = vmatmul.bf16.vlgmr.msra.gmra.mxu1 %v451_v9 }
 0x157   :  { %740 = vmatpush.bf16.msrb.mxu0 %v4011_v5  ;;  %782 = vmatpush.bf16.msra.mxu1 %v4114_v42 }
 0x15b   :  { %741 = vmatpush.bf16.msrb.mxu0 %v4024_v11  ;;  %783 = vmatpush.bf16.msra.mxu1 %v4121_v47 }
 0x15d   :  { %v640_v33 = vpop.f32.mrf.mxu3 }
 0x15e   :  { %v641_v38 = vadd.f32 %v640_v33, %v624_v63 }
 0x15f   :  { %742 = vmatpush.bf16.msrb.mxu0 %v4034_v15  ;;  %784 = vmatpush.bf16.msra.mxu1 %v4131_v50 }
 0x160   :  { %v644_v39 = vadd.f32 %v4105_v36, %v641_v38 }
 0x162   :  { %v645_v43 = vmax.f32 %v644_v39, 0.0 }
 0x163   :  { %743 = vmatpush.bf16.msrb.mxu0 %v4044_v18  ;;  %785 = vmatpush.bf16.msra.mxu1 %v4139_v52 }
 0x164   :  { %v646_v44 = vpack.c.bf16 %v645_v43, %v645_v43 }
 0x165   :  { %v642_v46 = vpop.f32.mrf.mxu3 }
 0x166   :  { %668 = vmatmul.bf16.vlgmr.msra.gmra.mxu3 %v646_v44  ;;  %716 = vmatmul.bf16.vlgmr.msrb.gmra.mxu1 %v646_v44 }
 0x167   :  { %744 = vmatpush.bf16.msrb.mxu0 %v4053_v21  ;;  %769 = vmatpush.bf16.msra.mxu3 %v4097_v34 }
 0x168   :  { %786 = vmatpush.bf16.msra.mxu1 %v4147_v56 }
 0x16b   :  { %745 = vmatpush.bf16.msrb.mxu0 %v4060_v23  ;;  %770 = vmatpush.bf16.msra.mxu3 %v4100_v35 }
 0x16c   :  { %787 = vmatpush.bf16.msra.mxu1 %v4150_v58 }
 0x16f   :  { %746 = vmatpush.bf16.msrb.mxu0 %v4066_v25  ;;  %771 = vmatpush.bf16.msra.mxu3 %v4108_v37 }
 0x170   :  { %788 = vmatpush.bf16.msra.mxu1 %v4181_v59 }
 0x173   :  { %747 = vmatpush.bf16.msrb.mxu0 %v4070_v26  ;;  %772 = vmatpush.bf16.msra.mxu3 %v4112_v41 }
 0x174   :  { %789 = vmatpush.bf16.msra.mxu1 %v4185_v60 }
 0x176   :  { %3396 = vmatmul.msk.bf16.vlgmr.msrb.gmra.mxu3 %vm265_vm1, %v707_v53 }
 0x177   :  { %773 = vmatpush.bf16.msra.mxu3 %v4119_v45 }
 0x178   :  { %846 = vmatpush.bf16.msrb.mxu1 %v4021_v10 }
 0x17b   :  { %774 = vmatpush.bf16.msra.mxu3 %v4126_v48 }
 0x17c   :  { %847 = vmatpush.bf16.msrb.mxu1 %v4027_v12 }
 0x17f   :  { %775 = vmatpush.bf16.msra.mxu3 %v4136_v51 }
 0x180   :  { %848 = vmatpush.bf16.msrb.mxu1 %v4037_v16 }
 0x183   :  { %776 = vmatpush.bf16.msra.mxu3 %v4144_v54 }
 0x184   :  { %849 = vmatpush.bf16.msrb.mxu1 %v4047_v19 }
 0x187   :  { %833 = vmatpush.bf16.msrb.mxu3 %v4011_v5 }
 0x188   :  { %850 = vmatpush.bf16.msrb.mxu1 %v4083_v28 }
 0x18b   :  { %834 = vmatpush.bf16.msrb.mxu3 %v4024_v11 }
 0x18c   :  { %851 = vmatpush.bf16.msrb.mxu1 %v4086_v29 }
 0x18f   :  { %835 = vmatpush.bf16.msrb.mxu3 %v4034_v15 }
 0x190   :  { %852 = vmatpush.bf16.msrb.mxu1 %v4089_v30 }
 0x193   :  { %836 = vmatpush.bf16.msrb.mxu3 %v4044_v18 }
 0x194   :  { %853 = vmatpush.bf16.msrb.mxu1 %v4092_v31 }
 0x197   :  { %837 = vmatpush.bf16.msrb.mxu3 %v4053_v21 }
 0x19b   :  { %838 = vmatpush.bf16.msrb.mxu3 %v4060_v23 }
 0x19f   :  { %839 = vmatpush.bf16.msrb.mxu3 %v4066_v25 }
 0x1a3   :  { %840 = vmatpush.bf16.msrb.mxu3 %v4070_v26 }
 0x1d3   :  { %v602_v57 = vpop.f32.mrf.mxu0  ;;  %v656_v62 = vpop.f32.mrf.mxu1 }
 0x1d4   :  { %v603_v63 = vadd.f32 %v602_v57, %v541_v32 }
 0x1d6   :  { %v609_v1 = vadd.f32 %v4257_v55, %v603_v63 }
 0x1d8   :  { %v610_v3 = vmax.f32 %v609_v1, 0.0  ;;  %v799_v1 = vld [vmem:[#allocation2 + $0x18] sm:$0xff] }
 0x1da   :  { %v611_v4 = vpack.c.bf16 %v610_v3, %v610_v3  ;;  %v800_v3 = vpack.c.bf16 %v799_v1, %v799_v1 }
 0x1db   :  { %v604_v9 = vpop.f32.mrf.mxu0  ;;  %v658_v13 = vpop.f32.mrf.mxu1 }
 0x1dc   :  { %684 = vmatmul.bf16.vlgmr.msra.gmra.mxu0 %v611_v4 }
 0x1dd   :  { %801 = vmatpush.bf16.msra.mxu0 %v4006_v0 }
 0x1e1   :  { %802 = vmatpush.bf16.msra.mxu0 %v4009_v2 }
 0x1e3   :  { %v717_v27 = vpop.f32.mrf.mxu1 }
 0x1e5   :  { %803 = vmatpush.bf16.msra.mxu0 %v4013_v6 }
 0x1e9   :  { %v669_v33 = vpop.f32.mrf.mxu3  ;;  %804 = vmatpush.bf16.msra.mxu0 %v4030_v14 }
 0x1ea   :  { %v670_v38 = vadd.f32 %v669_v33, %v656_v62 }
 0x1eb   :  { %v719_v39 = vpop.f32.mrf.mxu1 }
 0x1ec   :  { %v673_v32 = vadd.f32 %v4204_v61, %v670_v38 }
 0x1ed   :  { %805 = vmatpush.bf16.msra.mxu0 %v4041_v17 }
 0x1ee   :  { %v674_v40 = vmax.f32 %v673_v32, 0.0 }
 0x1f0   :  { %v675_v43 = vpack.c.bf16 %v674_v40, %v674_v40 }
 0x1f1   :  { %v671_v44 = vpop.f32.mrf.mxu3  ;;  %806 = vmatpush.bf16.msra.mxu0 %v4050_v20 }
 0x1f2   :  { %697 = vmatmul.bf16.vlgmr.msra.gmra.mxu2 %v675_v43  ;;  %748 = vmatmul.bf16.vlgmr.msrb.gmra.mxu0 %v675_v43 }
 0x1f3   :  { %823 = vmatpush.bf16.msra.mxu2 %v4015_v7 }
 0x1f5   :  { %807 = vmatpush.bf16.msra.mxu0 %v4057_v22 }
 0x1f7   :  { %824 = vmatpush.bf16.msra.mxu2 %v4019_v8 }
 0x1f9   :  { %v733_v46 = vpop.f32.mrf.mxu3  ;;  %808 = vmatpush.bf16.msra.mxu0 %v4063_v24 }
 0x1fa   :  { %v734_v49 = vadd.f32 %v733_v46, %v717_v27 }
 0x1fc   :  { %v737_v53 = vadd.f32 %v4105_v36, %v734_v49 }
 0x1fd   :  { %875 = vmatpush.bf16.msrb.mxu0 %v4114_v42 }
 0x1fe   :  { %v738_v57 = vmax.f32 %v737_v53, 0.0 }
 0x200   :  { %v739_v62 = vpack.c.bf16 %v738_v57, %v738_v57 }
 0x201   :  { %876 = vmatpush.bf16.msrb.mxu0 %v4121_v47  ;;  %v735_v63 = vpop.f32.mrf.mxu3 }
 0x202   :  { %761 = vmatmul.bf16.vlgmr.msrb.gmra.mxu2 %v739_v62  ;;  %809 = vmatmul.bf16.vlgmr.msra.gmra.mxu0 %v739_v62 }
 0x203   :  { %862 = vmatpush.bf16.msrb.mxu2 %v4097_v34 }
 0x205   :  { %877 = vmatpush.bf16.msrb.mxu0 %v4131_v50 }
 0x207   :  { %863 = vmatpush.bf16.msrb.mxu2 %v4100_v35 }
 0x209   :  { %878 = vmatpush.bf16.msrb.mxu0 %v4139_v52 }
 0x20b   :  { %864 = vmatpush.bf16.msrb.mxu2 %v4108_v37 }
 0x20d   :  { %879 = vmatpush.bf16.msrb.mxu0 %v4147_v56 }
 0x20f   :  { %865 = vmatpush.bf16.msrb.mxu2 %v4112_v41 }
 0x211   :  { %880 = vmatpush.bf16.msrb.mxu0 %v4150_v58 }
 0x212   :  { %3397 = vmatmul.msk.bf16.vlgmr.msra.gmra.mxu2 %vm265_vm1, %v800_v3 }
 0x213   :  { %866 = vmatpush.bf16.msrb.mxu2 %v4119_v45 }
 0x215   :  { %881 = vmatpush.bf16.msrb.mxu0 %v4181_v59 }
 0x217   :  { %867 = vmatpush.bf16.msrb.mxu2 %v4126_v48 }
 0x219   :  { %882 = vmatpush.bf16.msrb.mxu0 %v4185_v60 }
 0x21b   :  { %868 = vmatpush.bf16.msrb.mxu2 %v4136_v51 }
 0x21d   :  { %955 = vmatpush.bf16.msra.mxu0 %v4097_v34 }
 0x21f   :  { %869 = vmatpush.bf16.msrb.mxu2 %v4144_v54 }
 0x221   :  { %956 = vmatpush.bf16.msra.mxu0 %v4100_v35 }
 0x223   :  { %926 = vmatpush.bf16.msra.mxu2 %v4011_v5 }
 0x225   :  { %957 = vmatpush.bf16.msra.mxu0 %v4108_v37 }
 0x227   :  { %927 = vmatpush.bf16.msra.mxu2 %v4024_v11 }
 0x229   :  { %958 = vmatpush.bf16.msra.mxu0 %v4112_v41 }
 0x22b   :  { %928 = vmatpush.bf16.msra.mxu2 %v4034_v15 }
 0x22d   :  { %959 = vmatpush.bf16.msra.mxu0 %v4119_v45 }
 0x22f   :  { %929 = vmatpush.bf16.msra.mxu2 %v4044_v18 }
 0x231   :  { %960 = vmatpush.bf16.msra.mxu0 %v4126_v48 }
 0x233   :  { %930 = vmatpush.bf16.msra.mxu2 %v4053_v21 }
 0x235   :  { %961 = vmatpush.bf16.msra.mxu0 %v4136_v51 }
 0x237   :  { %931 = vmatpush.bf16.msra.mxu2 %v4060_v23 }
 0x239   :  { %962 = vmatpush.bf16.msra.mxu0 %v4144_v54 }
 0x23b   :  { %932 = vmatpush.bf16.msra.mxu2 %v4066_v25 }
 0x23f   :  { %933 = vmatpush.bf16.msra.mxu2 %v4070_v26 }
 0x259   :  { %v685_v4 = vpop.f32.mrf.mxu0 }
 0x261   :  { %v687_v9 = vpop.f32.mrf.mxu0 }
 0x26f   :  { %v749_v13 = vpop.f32.mrf.mxu0 }
 0x275   :  { %v698_v27 = vpop.f32.mrf.mxu2 }
 0x276   :  { %v699_v33 = vadd.f32 %v698_v27, %v685_v4 }
 0x277   :  { %v751_v38 = vpop.f32.mrf.mxu0 }
 0x278   :  { %v702_v39 = vadd.f32 %v4257_v55, %v699_v33  ;;  %v892_v38 = vld [vmem:[#allocation2 + $0x20] sm:$0xff] }
 0x27a   :  { %v703_v32 = vmax.f32 %v702_v39, 0.0  ;;  %v893_v39 = vpack.c.bf16 %v892_v38, %v892_v38 }
 0x27c   :  { %v704_v40 = vpack.c.bf16 %v703_v32, %v703_v32 }
 0x27d   :  { %v700_v43 = vpop.f32.mrf.mxu2 }
 0x27e   :  { %777 = vmatmul.bf16.vlgmr.msra.gmra.mxu3 %v704_v40 }
 0x27f   :  { %v810_v44 = vpop.f32.mrf.mxu0  ;;  %894 = vmatpush.bf16.msra.mxu3 %v4006_v0 }
 0x283   :  { %895 = vmatpush.bf16.msra.mxu3 %v4009_v2 }
 0x285   :  { %v762_v46 = vpop.f32.mrf.mxu2 }
 0x286   :  { %v763_v49 = vadd.f32 %v762_v46, %v749_v13 }
 0x287   :  { %v812_v53 = vpop.f32.mrf.mxu0  ;;  %896 = vmatpush.bf16.msra.mxu3 %v4013_v6 }
 0x288   :  { %v766_v57 = vadd.f32 %v4204_v61, %v763_v49 }
 0x28a   :  { %v767_v62 = vmax.f32 %v766_v57, 0.0 }
 0x28b   :  { %897 = vmatpush.bf16.msra.mxu3 %v4030_v14 }
 0x28c   :  { %v768_v63 = vpack.c.bf16 %v767_v62, %v767_v62 }
 0x28d   :  { %v764_v1 = vpop.f32.mrf.mxu2 }
 0x28e   :  { %790 = vmatmul.bf16.vlgmr.msra.gmra.mxu1 %v768_v63  ;;  %841 = vmatmul.bf16.vlgmr.msrb.gmra.mxu3 %v768_v63 }
 0x28f   :  { %898 = vmatpush.bf16.msra.mxu3 %v4041_v17  ;;  %916 = vmatpush.bf16.msra.mxu1 %v4015_v7 }
 0x293   :  { %899 = vmatpush.bf16.msra.mxu3 %v4050_v20  ;;  %917 = vmatpush.bf16.msra.mxu1 %v4019_v8 }
 0x295   :  { %v826_v3 = vpop.f32.mrf.mxu2 }
 0x296   :  { %v827_v4 = vadd.f32 %v826_v3, %v810_v44 }
 0x297   :  { %900 = vmatpush.bf16.msra.mxu3 %v4057_v22 }
 0x298   :  { %v830_v9 = vadd.f32 %v4105_v36, %v827_v4 }
 0x29a   :  { %v831_v13 = vmax.f32 %v830_v9, 0.0 }
 0x29b   :  { %901 = vmatpush.bf16.msra.mxu3 %v4063_v24 }
 0x29c   :  { %v832_v27 = vpack.c.bf16 %v831_v13, %v831_v13 }
 0x29d   :  { %v828_v33 = vpop.f32.mrf.mxu2 }
 0x29e   :  { %854 = vmatmul.bf16.vlgmr.msrb.gmra.mxu1 %v832_v27  ;;  %902 = vmatmul.bf16.vlgmr.msra.gmra.mxu3 %v832_v27 }
 0x29f   :  { %968 = vmatpush.bf16.msrb.mxu3 %v4114_v42  ;;  %939 = vmatpush.bf16.msrb.mxu1 %v4021_v10 }
 0x2a3   :  { %969 = vmatpush.bf16.msrb.mxu3 %v4121_v47  ;;  %940 = vmatpush.bf16.msrb.mxu1 %v4027_v12 }
 0x2a7   :  { %970 = vmatpush.bf16.msrb.mxu3 %v4131_v50  ;;  %941 = vmatpush.bf16.msrb.mxu1 %v4037_v16 }
 0x2ab   :  { %971 = vmatpush.bf16.msrb.mxu3 %v4139_v52  ;;  %942 = vmatpush.bf16.msrb.mxu1 %v4047_v19 }
 0x2ae   :  { %3398 = vmatmul.msk.bf16.vlgmr.msra.gmra.mxu1 %vm265_vm1, %v893_v39 }
 0x2af   :  { %972 = vmatpush.bf16.msrb.mxu3 %v4147_v56  ;;  %943 = vmatpush.bf16.msrb.mxu1 %v4083_v28 }
 0x2b3   :  { %973 = vmatpush.bf16.msrb.mxu3 %v4150_v58  ;;  %944 = vmatpush.bf16.msrb.mxu1 %v4086_v29 }
 0x2b7   :  { %974 = vmatpush.bf16.msrb.mxu3 %v4181_v59  ;;  %945 = vmatpush.bf16.msrb.mxu1 %v4089_v30 }
 0x2bb   :  { %975 = vmatpush.bf16.msrb.mxu3 %v4185_v60  ;;  %946 = vmatpush.bf16.msrb.mxu1 %v4092_v31 }
 0x2bf   :  { %1032 = vmatpush.bf16.msra.mxu3 %v4021_v10  ;;  %1009 = vmatpush.bf16.msra.mxu1 %v4015_v7 }
 0x2c3   :  { %1033 = vmatpush.bf16.msra.mxu3 %v4027_v12  ;;  %1010 = vmatpush.bf16.msra.mxu1 %v4019_v8 }
 0x2c7   :  { %1034 = vmatpush.bf16.msra.mxu3 %v4037_v16 }
 0x2cb   :  { %1035 = vmatpush.bf16.msra.mxu3 %v4047_v19 }
 0x2cf   :  { %1036 = vmatpush.bf16.msra.mxu3 %v4083_v28 }
 0x2d3   :  { %1037 = vmatpush.bf16.msra.mxu3 %v4086_v29 }
 0x2d7   :  { %1038 = vmatpush.bf16.msra.mxu3 %v4089_v30 }
 0x2db   :  { %1039 = vmatpush.bf16.msra.mxu3 %v4092_v31 }
 0x301   :  { %v778_v32 = vpop.f32.mrf.mxu3 }
 0x309   :  { %v780_v40 = vpop.f32.mrf.mxu3 }
 0x30b   :  { %v791_v43 = vpop.f32.mrf.mxu1 }
 0x30c   :  { %v792_v44 = vadd.f32 %v791_v43, %v778_v32 }
 0x30e   :  { %v795_v46 = vadd.f32 %v4257_v55, %v792_v44 }
 0x310   :  { %v796_v49 = vmax.f32 %v795_v46, 0.0 }
 0x311   :  { %v842_v53 = vpop.f32.mrf.mxu3 }
 0x312   :  { %v797_v57 = vpack.c.bf16 %v796_v49, %v796_v49  ;;  %v985_v49 = vld [vmem:[#allocation2 + $0x28] sm:$0xff] }
 0x313   :  { %v793_v62 = vpop.f32.mrf.mxu1 }
 0x314   :  { %870 = vmatmul.bf16.vlgmr.msrb.gmra.mxu2 %v797_v57 }
 0x315   :  { %987 = vmatpush.bf16.msrb.mxu2 %v4006_v0 }
 0x319   :  { %v844_v63 = vpop.f32.mrf.mxu3  ;;  %988 = vmatpush.bf16.msrb.mxu2 %v4009_v2 }
 0x31b   :  { %v855_v1 = vpop.f32.mrf.mxu1 }
 0x31c   :  { %v856_v3 = vadd.f32 %v855_v1, %v842_v53  ;;  %v986_v53 = vpack.c.bf16 %v985_v49, %v985_v49 }
 0x31d   :  { %989 = vmatpush.bf16.msrb.mxu2 %v4013_v6 }
 0x31e   :  { %v859_v4 = vadd.f32 %v4204_v61, %v856_v3 }
 0x320   :  { %v860_v9 = vmax.f32 %v859_v4, 0.0 }
 0x321   :  { %v903_v13 = vpop.f32.mrf.mxu3  ;;  %990 = vmatpush.bf16.msrb.mxu2 %v4030_v14 }
 0x322   :  { %v861_v27 = vpack.c.bf16 %v860_v9, %v860_v9 }
 0x323   :  { %v857_v33 = vpop.f32.mrf.mxu1 }
 0x324   :  { %883 = vmatmul.bf16.vlgmr.msrb.gmra.mxu0 %v861_v27  ;;  %934 = vmatmul.bf16.vlgmr.msra.gmra.mxu2 %v861_v27 }
 0x325   :  { %991 = vmatpush.bf16.msrb.mxu2 %v4041_v17  ;;  %1019 = vmatpush.bf16.msrb.mxu0 %v4011_v5 }
 0x329   :  { %v905_v38 = vpop.f32.mrf.mxu3  ;;  %992 = vmatpush.bf16.msrb.mxu2 %v4050_v20  ;;  %1020 = vmatpush.bf16.msrb.mxu0 %v4024_v11 }
 0x32b   :  { %v919_v39 = vpop.f32.mrf.mxu1 }
 0x32c   :  { %v920_v32 = vadd.f32 %v919_v39, %v903_v13 }
 0x32d   :  { %993 = vmatpush.bf16.msrb.mxu2 %v4057_v22  ;;  %1021 = vmatpush.bf16.msrb.mxu0 %v4034_v15 }
 0x32e   :  { %v923_v40 = vadd.f32 %v4105_v36, %v920_v32 }
 0x330   :  { %v924_v43 = vmax.f32 %v923_v40, 0.0 }
 0x331   :  { %994 = vmatpush.bf16.msrb.mxu2 %v4063_v24  ;;  %1022 = vmatpush.bf16.msrb.mxu0 %v4044_v18 }
 0x332   :  { %v925_v44 = vpack.c.bf16 %v924_v43, %v924_v43 }
 0x333   :  { %v921_v46 = vpop.f32.mrf.mxu1 }
 0x334   :  { %947 = vmatmul.bf16.vlgmr.msrb.gmra.mxu1 %v925_v44  ;;  %995 = vmatmul.bf16.vlgmr.msrb.gmra.mxu2 %v925_v44 }
 0x335   :  { %1061 = vmatpush.bf16.msra.mxu2 %v4114_v42  ;;  %1023 = vmatpush.bf16.msrb.mxu0 %v4053_v21 }
 0x336   :  { %1048 = vmatpush.bf16.msrb.mxu1 %v4097_v34 }
 0x339   :  { %1062 = vmatpush.bf16.msra.mxu2 %v4121_v47  ;;  %1024 = vmatpush.bf16.msrb.mxu0 %v4060_v23 }
 0x33a   :  { %1049 = vmatpush.bf16.msrb.mxu1 %v4100_v35 }
 0x33d   :  { %1063 = vmatpush.bf16.msra.mxu2 %v4131_v50  ;;  %1025 = vmatpush.bf16.msrb.mxu0 %v4066_v25 }
 0x33e   :  { %1050 = vmatpush.bf16.msrb.mxu1 %v4108_v37 }
 0x341   :  { %1064 = vmatpush.bf16.msra.mxu2 %v4139_v52  ;;  %1026 = vmatpush.bf16.msrb.mxu0 %v4070_v26 }
 0x342   :  { %1051 = vmatpush.bf16.msrb.mxu1 %v4112_v41 }
 0x344   :  { %3399 = vmatmul.msk.bf16.vlgmr.msra.gmra.mxu1 %vm265_vm1, %v986_v53  ;;  %v4452_v53 = vld [vmem:[#allocation7 + $0x28] sm:$0xff] }
 0x345   :  { %1065 = vmatpush.bf16.msra.mxu2 %v4147_v56 }
 0x346   :  { %1052 = vmatpush.bf16.msrb.mxu1 %v4119_v45 }
 0x349   :  { %1066 = vmatpush.bf16.msra.mxu2 %v4150_v58 }
 0x34a   :  { %1053 = vmatpush.bf16.msrb.mxu1 %v4126_v48 }
 0x34d   :  { %1067 = vmatpush.bf16.msra.mxu2 %v4181_v59 }
 0x34e   :  { %1054 = vmatpush.bf16.msrb.mxu1 %v4136_v51 }
 0x351   :  { %1068 = vmatpush.bf16.msra.mxu2 %v4185_v60 }
 0x352   :  { %1055 = vmatpush.bf16.msrb.mxu1 %v4144_v54 }
 0x355   :  { %1125 = vmatpush.bf16.msrb.mxu2 %v4021_v10 }
 0x356   :  { %1112 = vmatpush.bf16.msra.mxu1 %v4011_v5 }
 0x359   :  { %1126 = vmatpush.bf16.msrb.mxu2 %v4027_v12 }
 0x35a   :  { %1113 = vmatpush.bf16.msra.mxu1 %v4024_v11 }
 0x35d   :  { %1127 = vmatpush.bf16.msrb.mxu2 %v4037_v16 }
 0x35e   :  { %1114 = vmatpush.bf16.msra.mxu1 %v4034_v15 }
 0x361   :  { %1128 = vmatpush.bf16.msrb.mxu2 %v4047_v19 }
 0x362   :  { %1115 = vmatpush.bf16.msra.mxu1 %v4044_v18 }
 0x365   :  { %1129 = vmatpush.bf16.msrb.mxu2 %v4083_v28 }
 0x366   :  { %1116 = vmatpush.bf16.msra.mxu1 %v4053_v21 }
 0x369   :  { %1130 = vmatpush.bf16.msrb.mxu2 %v4086_v29 }
 0x36a   :  { %1117 = vmatpush.bf16.msra.mxu1 %v4060_v23 }
 0x36d   :  { %1131 = vmatpush.bf16.msrb.mxu2 %v4089_v30 }
 0x36e   :  { %1118 = vmatpush.bf16.msra.mxu1 %v4066_v25 }
 0x371   :  { %1132 = vmatpush.bf16.msrb.mxu2 %v4092_v31 }
 0x372   :  { %1119 = vmatpush.bf16.msra.mxu1 %v4070_v26 }
 0x397   :  { %v871_v5 = vpop.f32.mrf.mxu2 }
 0x39f   :  { %v873_v57 = vpop.f32.mrf.mxu2 }
 0x3a1   :  { %v884_v62 = vpop.f32.mrf.mxu0 }
 0x3a2   :  { %v885_v63 = vadd.f32 %v884_v62, %v871_v5  ;;  %v4456_v62 = vld [vmem:[#allocation7 + $0x20] sm:$0xff] }
 0x3a4   :  { %v888_v1 = vadd.f32 %v4257_v55, %v885_v63 }
 0x3a6   :  { %v889_v3 = vmax.f32 %v888_v1, 0.0 }
 0x3a7   :  { %v935_v4 = vpop.f32.mrf.mxu2 }
 0x3a8   :  { %v890_v9 = vpack.c.bf16 %v889_v3, %v889_v3  ;;  %v4459_v3 = vld [vmem:[#allocation7 + $0x18] sm:$0xff] }
 0x3a9   :  { %v886_v13 = vpop.f32.mrf.mxu0 }
 0x3aa   :  { %963 = vmatmul.bf16.vlgmr.msra.gmra.mxu0 %v890_v9  ;;  %v4466_v9 = vld [vmem:[#allocation5] sm:$0xff] }
 0x3ab   :  { %1080 = vmatpush.bf16.msra.mxu0 %v4006_v0 }
 0x3af   :  { %v937_v27 = vpop.f32.mrf.mxu2  ;;  %1081 = vmatpush.bf16.msra.mxu0 %v4009_v2 }
 0x3b1   :  { %v948_v33 = vpop.f32.mrf.mxu1 }
 0x3b2   :  { %v949_v38 = vadd.f32 %v948_v33, %v935_v4  ;;  %v4463_v4 = vld [vmem:[#allocation7 + $0x10] sm:$0xff]  ;;  %v4469_v33 = vld [vmem:[#allocation7 + $0x8] sm:$0xff] }
 0x3b3   :  { %1082 = vmatpush.bf16.msra.mxu0 %v4013_v6 }
 0x3b4   :  { %v952_v39 = vadd.f32 %v4204_v61, %v949_v38 }
 0x3b6   :  { %v953_v32 = vmax.f32 %v952_v39, 0.0 }
 0x3b7   :  { %v996_v40 = vpop.f32.mrf.mxu2  ;;  %1083 = vmatpush.bf16.msra.mxu0 %v4030_v14 }
 0x3b8   :  { %v954_v43 = vpack.c.bf16 %v953_v32, %v953_v32  ;;  %v4473_v32 = vld [vmem:[#allocation7] sm:$0xff] }
 0x3b9   :  { %v950_v44 = vpop.f32.mrf.mxu1 }
 0x3ba   :  { %976 = vmatmul.bf16.vlgmr.msrb.gmra.mxu3 %v954_v43  ;;  %1027 = vmatmul.bf16.vlgmr.msrb.gmra.mxu0 %v954_v43 }
 0x3bb   :  { %1084 = vmatpush.bf16.msra.mxu0 %v4041_v17  ;;  %1102 = vmatpush.bf16.msrb.mxu3 %v4015_v7 }
 0x3bf   :  { %v998_v0 = vpop.f32.mrf.mxu2  ;;  %1085 = vmatpush.bf16.msra.mxu0 %v4050_v20  ;;  %1103 = vmatpush.bf16.msrb.mxu3 %v4019_v8  ;;  %v1078_v8 = vld [vmem:[#allocation2 + $0x30] sm:$0xff] }
 0x3c0   :  { %v1079_v20 = vpack.c.bf16 %v1078_v8, %v1078_v8  ;;  %v4536_v0 = vld [vmem:[#allocation10] sm:$0xff] }
 0x3c1   :  { %v1012_v2 = vpop.f32.mrf.mxu1 }
 0x3c2   :  { %v1013_v6 = vadd.f32 %v1012_v2, %v996_v40 }
 0x3c3   :  { %1086 = vmatpush.bf16.msra.mxu0 %v4057_v22  ;;  %v4428_v22 = vld [vmem:[#allocation10 + $0x38] sm:$0xff] }
 0x3c4   :  { %v1016_v46 = vadd.f32 %v4105_v36, %v1013_v6 }
 0x3c6   :  { %v1017_v14 = vmax.f32 %v1016_v46, 0.0 }
 0x3c7   :  { %1087 = vmatpush.bf16.msra.mxu0 %v4063_v24 }
 0x3c8   :  { %v1018_v49 = vpack.c.bf16 %v1017_v14, %v1017_v14 }
 0x3c9   :  { %v1014_v17 = vpop.f32.mrf.mxu1 }
 0x3ca   :  { %1040 = vmatmul.bf16.vlgmr.msra.gmra.mxu3 %v1018_v49  ;;  %1088 = vmatmul.bf16.vlgmr.msra.gmra.mxu0 %v1018_v49 }
 0x3cb   :  { %1154 = vmatpush.bf16.msrb.mxu0 %v4114_v42  ;;  %1141 = vmatpush.bf16.msra.mxu3 %v4097_v34 }
 0x3cf   :  { %1155 = vmatpush.bf16.msrb.mxu0 %v4121_v47  ;;  %1142 = vmatpush.bf16.msra.mxu3 %v4100_v35 }
 0x3d3   :  { %1156 = vmatpush.bf16.msrb.mxu0 %v4131_v50  ;;  %1143 = vmatpush.bf16.msra.mxu3 %v4108_v37 }
 0x3d7   :  { %1157 = vmatpush.bf16.msrb.mxu0 %v4139_v52  ;;  %1144 = vmatpush.bf16.msra.mxu3 %v4112_v41 }
 0x3da   :  { %3400 = vmatmul.msk.bf16.vlgmr.msrb.gmra.mxu3 %vm265_vm1, %v1079_v20 }
 0x3db   :  { %1158 = vmatpush.bf16.msrb.mxu0 %v4147_v56  ;;  %1145 = vmatpush.bf16.msra.mxu3 %v4119_v45 }
 0x3df   :  { %1159 = vmatpush.bf16.msrb.mxu0 %v4150_v58  ;;  %1146 = vmatpush.bf16.msra.mxu3 %v4126_v48 }
 0x3e3   :  { %1160 = vmatpush.bf16.msrb.mxu0 %v4181_v59  ;;  %1147 = vmatpush.bf16.msra.mxu3 %v4136_v51 }
 0x3e7   :  { %1161 = vmatpush.bf16.msrb.mxu0 %v4185_v60  ;;  %1148 = vmatpush.bf16.msra.mxu3 %v4144_v54 }
 0x3eb   :  { %1218 = vmatpush.bf16.msra.mxu0 %v4021_v10  ;;  %1205 = vmatpush.bf16.msrb.mxu3 %v4428_v22 }
 0x3ef   :  { %1219 = vmatpush.bf16.msra.mxu0 %v4027_v12  ;;  %1206 = vmatpush.bf16.msrb.mxu3 %v4024_v11 }
 0x3f3   :  { %1220 = vmatpush.bf16.msra.mxu0 %v4037_v16  ;;  %1207 = vmatpush.bf16.msrb.mxu3 %v4034_v15 }
 0x3f7   :  { %1221 = vmatpush.bf16.msra.mxu0 %v4047_v19  ;;  %1208 = vmatpush.bf16.msrb.mxu3 %v4044_v18 }
 0x3fb   :  { %1222 = vmatpush.bf16.msra.mxu0 %v4083_v28  ;;  %1209 = vmatpush.bf16.msrb.mxu3 %v4053_v21 }
 0x3ff   :  { %1223 = vmatpush.bf16.msra.mxu0 %v4086_v29  ;;  %1210 = vmatpush.bf16.msrb.mxu3 %v4060_v23  ;;  %v4446_v29 = vld [vmem:[#allocation7 + $0x38] sm:$0xff] }
 0x403   :  { %1224 = vmatpush.bf16.msra.mxu0 %v4089_v30  ;;  %1211 = vmatpush.bf16.msrb.mxu3 %v4066_v25  ;;  %v4449_v25 = vld [vmem:[#allocation7 + $0x30] sm:$0xff] }
 0x407   :  { %1225 = vmatpush.bf16.msra.mxu0 %v4092_v31  ;;  %1212 = vmatpush.bf16.msrb.mxu3 %v4070_v26 }
 0x427   :  { %v964_v10 = vpop.f32.mrf.mxu0 }
 0x42f   :  { %v966_v11 = vpop.f32.mrf.mxu0 }
 0x437   :  { %v1028_v12 = vpop.f32.mrf.mxu0 }
 0x43d   :  { %v977_v15 = vpop.f32.mrf.mxu3 }
 0x43e   :  { %v978_v16 = vadd.f32 %v977_v15, %v964_v10 }
 0x43f   :  { %v1030_v18 = vpop.f32.mrf.mxu0 }
 0x440   :  { %v981_v19 = vadd.f32 %v4257_v55, %v978_v16 }
 0x442   :  { %v982_v21 = vmax.f32 %v981_v19, 0.0 }
 0x444   :  { %v983_v24 = vpack.c.bf16 %v982_v21, %v982_v21 }
 0x445   :  { %v979_v28 = vpop.f32.mrf.mxu3 }
 0x446   :  { %1056 = vmatmul.bf16.vlgmr.msrb.gmra.mxu1 %v983_v24 }
 0x447   :  { %v1089_v23 = vpop.f32.mrf.mxu0  ;;  %1173 = vmatpush.bf16.msrb.mxu1 %v4446_v29 }
 0x44b   :  { %1174 = vmatpush.bf16.msrb.mxu1 %v4449_v25 }
 0x44d   :  { %v1041_v26 = vpop.f32.mrf.mxu3 }
 0x44e   :  { %v1042_v30 = vadd.f32 %v1041_v26, %v1028_v12 }
 0x44f   :  { %v1091_v31 = vpop.f32.mrf.mxu0  ;;  %1175 = vmatpush.bf16.msrb.mxu1 %v4452_v53 }
 0x450   :  { %v1045_v5 = vadd.f32 %v4204_v61, %v1042_v30 }
 0x452   :  { %v1046_v57 = vmax.f32 %v1045_v5, 0.0 }
 0x453   :  { %1176 = vmatpush.bf16.msrb.mxu1 %v4456_v62 }
 0x454   :  { %v1047_v63 = vpack.c.bf16 %v1046_v57, %v1046_v57  ;;  %v4557_v57 = vld [vmem:[#allocation11 + $0x38] sm:$0xff] }
 0x455   :  { %v1043_v1 = vpop.f32.mrf.mxu3 }
 0x456   :  { %1069 = vmatmul.bf16.vlgmr.msra.gmra.mxu2 %v1047_v63  ;;  %1120 = vmatmul.bf16.vlgmr.msra.gmra.mxu1 %v1047_v63  ;;  %v4560_v1 = vld [vmem:[#allocation13 + $0x38] sm:$0xff] }
 0x457   :  { %1177 = vmatpush.bf16.msrb.mxu1 %v4459_v3  ;;  %1195 = vmatpush.bf16.msra.mxu2 %v4015_v7 }
 0x45b   :  { %1178 = vmatpush.bf16.msrb.mxu1 %v4463_v4  ;;  %1196 = vmatpush.bf16.msra.mxu2 %v4466_v9 }
 0x45d   :  { %v1105_v13 = vpop.f32.mrf.mxu3 }
 0x45e   :  { %v1106_v27 = vadd.f32 %v1105_v13, %v1089_v23  ;;  %v4563_v13 = vld [vmem:[#allocation11 + $0x30] sm:$0xff] }
 0x45f   :  { %1179 = vmatpush.bf16.msrb.mxu1 %v4469_v33 }
 0x460   :  { %v1109_v38 = vadd.f32 %v4105_v36, %v1106_v27  ;;  %v1171_v36 = vld [vmem:[#allocation2 + $0x38] sm:$0xff]  ;;  %v4566_v27 = vld [vmem:[#allocation13 + $0x30] sm:$0xff] }
 0x461   :  { %v1172_v44 = vpack.c.bf16 %v1171_v36, %v1171_v36 }
 0x462   :  { %v1110_v39 = vmax.f32 %v1109_v38, 0.0  ;;  %v4569_v38 = vld [vmem:[#allocation11 + $0x28] sm:$0xff] }
 0x463   :  { %1180 = vmatpush.bf16.msrb.mxu1 %v4473_v32 }
 0x464   :  { %v1111_v40 = vpack.c.bf16 %v1110_v39, %v1110_v39  ;;  %v1264_v39 = vld [vmem:[#allocation2 + $0x40] sm:$0xff] }
 0x465   :  { %v1107_v43 = vpop.f32.mrf.mxu3  ;;  %v1265_v36 = vpack.c.bf16 %v1264_v39, %v1264_v39 }
 0x466   :  { %1133 = vmatmul.bf16.vlgmr.msrb.gmra.mxu2 %v1111_v40  ;;  %1181 = vmatmul.bf16.vlgmr.msrb.gmra.mxu1 %v1111_v40  ;;  %v4572_v40 = vld [vmem:[#allocation13 + $0x28] sm:$0xff]  ;;  %v4575_v43 = vld [vmem:[#allocation11 + $0x20] sm:$0xff] }
 0x467   :  { %1247 = vmatpush.bf16.msra.mxu1 %v4114_v42  ;;  %1234 = vmatpush.bf16.msrb.mxu2 %v4097_v34  ;;  %v4492_v34 = vld [vmem:[#allocation8 + $0x38] sm:$0xff]  ;;  %v4506_v42 = vld [vmem:[#allocation10 + $0x28] sm:$0xff] }
 0x46b   :  { %1248 = vmatpush.bf16.msra.mxu1 %v4121_v47  ;;  %1235 = vmatpush.bf16.msrb.mxu2 %v4100_v35  ;;  %v4497_v35 = vld [vmem:[#allocation8 + $0x30] sm:$0xff]  ;;  %v4512_v47 = vld [vmem:[#allocation10 + $0x20] sm:$0xff] }
 0x46f   :  { %1249 = vmatpush.bf16.msra.mxu1 %v4131_v50  ;;  %1236 = vmatpush.bf16.msrb.mxu2 %v4108_v37  ;;  %v4500_v37 = vld [vmem:[#allocation10 + $0x30] sm:$0xff]  ;;  %v4518_v50 = vld [vmem:[#allocation10 + $0x18] sm:$0xff] }
 0x473   :  { %1250 = vmatpush.bf16.msra.mxu1 %v4139_v52  ;;  %1237 = vmatpush.bf16.msrb.mxu2 %v4112_v41  ;;  %v4503_v41 = vld [vmem:[#allocation8 + $0x28] sm:$0xff]  ;;  %v4524_v52 = vld [vmem:[#allocation10 + $0x10] sm:$0xff] }
 0x476   :  { %3401 = vmatmul.msk.bf16.vlgmr.msra.gmra.mxu2 %vm265_vm1, %v1172_v44  ;;  %v4578_v44 = vld [vmem:[#allocation13 + $0x20] sm:$0xff] }
 0x477   :  { %1251 = vmatpush.bf16.msra.mxu1 %v4147_v56  ;;  %1238 = vmatpush.bf16.msrb.mxu2 %v4119_v45  ;;  %v4509_v45 = vld [vmem:[#allocation8 + $0x20] sm:$0xff]  ;;  %v4530_v56 = vld [vmem:[#allocation10 + $0x8] sm:$0xff] }
 0x47b   :  { %1252 = vmatpush.bf16.msra.mxu1 %v4150_v58  ;;  %1239 = vmatpush.bf16.msrb.mxu2 %v4126_v48  ;;  %v4515_v48 = vld [vmem:[#allocation8 + $0x18] sm:$0xff]  ;;  %v4533_v58 = vld [vmem:[#allocation8] sm:$0xff] }
 0x47f   :  { %1253 = vmatpush.bf16.msra.mxu1 %v4181_v59  ;;  %1240 = vmatpush.bf16.msrb.mxu2 %v4136_v51  ;;  %v4521_v51 = vld [vmem:[#allocation8 + $0x10] sm:$0xff] }
 0x483   :  { %1254 = vmatpush.bf16.msra.mxu1 %v4185_v60  ;;  %1241 = vmatpush.bf16.msrb.mxu2 %v4144_v54  ;;  %v4527_v54 = vld [vmem:[#allocation8 + $0x8] sm:$0xff] }
 0x487   :  { %1311 = vmatpush.bf16.msrb.mxu1 %v4492_v34  ;;  %1298 = vmatpush.bf16.msra.mxu2 %v4428_v22 }
 0x48b   :  { %1312 = vmatpush.bf16.msrb.mxu1 %v4497_v35  ;;  %1299 = vmatpush.bf16.msra.mxu2 %v4500_v37 }
 0x48f   :  { %1313 = vmatpush.bf16.msrb.mxu1 %v4503_v41  ;;  %1300 = vmatpush.bf16.msra.mxu2 %v4506_v42 }
 0x493   :  { %1314 = vmatpush.bf16.msrb.mxu1 %v4509_v45  ;;  %1301 = vmatpush.bf16.msra.mxu2 %v4512_v47 }
 0x497   :  { %1315 = vmatpush.bf16.msrb.mxu1 %v4515_v48  ;;  %1302 = vmatpush.bf16.msra.mxu2 %v4518_v50 }
 0x49b   :  { %1316 = vmatpush.bf16.msrb.mxu1 %v4521_v51  ;;  %1303 = vmatpush.bf16.msra.mxu2 %v4524_v52 }
 0x49f   :  { %1317 = vmatpush.bf16.msrb.mxu1 %v4527_v54  ;;  %1304 = vmatpush.bf16.msra.mxu2 %v4530_v56 }
 0x4a3   :  { %1318 = vmatpush.bf16.msrb.mxu1 %v4533_v58  ;;  %1305 = vmatpush.bf16.msra.mxu2 %v4536_v0 }
 0x4c3   :  { %v1057_v2 = vpop.f32.mrf.mxu1 }
 0x4cb   :  { %v1059_v6 = vpop.f32.mrf.mxu1 }
 0x4cc   :  { %v4585_v6 = vld [vmem:[#allocation13 + $0x18] sm:$0xff] }
 0x4d3   :  { %v1121_v46 = vpop.f32.mrf.mxu1 }
 0x4d9   :  { %v1070_v14 = vpop.f32.mrf.mxu2 }
 0x4da   :  { %v1071_v49 = vadd.f32 %v1070_v14, %v1057_v2  ;;  %v4581_v2 = vld [vmem:[#allocation11 + $0x18] sm:$0xff]  ;;  %v4591_v14 = vld [vmem:[#allocation13 + $0x10] sm:$0xff] }
 0x4db   :  { %v1123_v17 = vpop.f32.mrf.mxu1 }
 0x4dc   :  { %v1074_v8 = vadd.f32 %v4257_v55, %v1071_v49  ;;  %v4595_v49 = vld [vmem:[#allocation13 + $0x8] sm:$0xff]  ;;  %v4600_v17 = vld [vmem:[#allocation13] sm:$0xff] }
 0x4de   :  { %v1075_v20 = vmax.f32 %v1074_v8, 0.0 }
 0x4e0   :  { %v1076_v10 = vpack.c.bf16 %v1075_v20, %v1075_v20 }
 0x4e1   :  { %v1072_v11 = vpop.f32.mrf.mxu2 }
 0x4e2   :  { %1149 = vmatmul.bf16.vlgmr.msra.gmra.mxu3 %v1076_v10 }
 0x4e3   :  { %v1182_v12 = vpop.f32.mrf.mxu1  ;;  %1266 = vmatpush.bf16.msra.mxu3 %v4446_v29 }
 0x4e7   :  { %1267 = vmatpush.bf16.msra.mxu3 %v4449_v25 }
 0x4e9   :  { %v1134_v15 = vpop.f32.mrf.mxu2 }
 0x4ea   :  { %v1135_v16 = vadd.f32 %v1134_v15, %v1121_v46  ;;  %v4588_v46 = vld [vmem:[#allocation11 + $0x10] sm:$0xff] }
 0x4eb   :  { %v1184_v18 = vpop.f32.mrf.mxu1  ;;  %1268 = vmatpush.bf16.msra.mxu3 %v4452_v53 }
 0x4ec   :  { %v1138_v19 = vadd.f32 %v4204_v61, %v1135_v16  ;;  %v4553_v61 = vld [vmem:[%s5699_s3] ss:$0 sm:$0xff] }
 0x4ee   :  { %v1139_v21 = vmax.f32 %v1138_v19, 0.0 }
 0x4ef   :  { %1269 = vmatpush.bf16.msra.mxu3 %v4456_v62 }
 0x4f0   :  { %v1140_v24 = vpack.c.bf16 %v1139_v21, %v1139_v21 }
 0x4f1   :  { %v1136_v28 = vpop.f32.mrf.mxu2 }
 0x4f2   :  { %1162 = vmatmul.bf16.vlgmr.msrb.gmra.mxu0 %v1140_v24  ;;  %1213 = vmatmul.bf16.vlgmr.msrb.gmra.mxu3 %v1140_v24  ;;  %v4625_v24 = vld [vmem:[%s5702_s6] ss:$0 sm:$0xff] }
 0x4f3   :  { %1270 = vmatpush.bf16.msra.mxu3 %v4459_v3  ;;  %1288 = vmatpush.bf16.msrb.mxu0 %v4015_v7 }
 0x4f7   :  { %1271 = vmatpush.bf16.msra.mxu3 %v4463_v4  ;;  %1289 = vmatpush.bf16.msrb.mxu0 %v4466_v9 }
 0x4f9   :  { %v1198_v23 = vpop.f32.mrf.mxu2 }
 0x4fa   :  { %v1199_v26 = vadd.f32 %v1198_v23, %v1182_v12 }
 0x4fb   :  { %1272 = vmatpush.bf16.msra.mxu3 %v4469_v33 }
 0x4fc   :  { %v1202_v30 = vadd.f32 %v4553_v61, %v1199_v26 }
 0x4fe   :  { %v1203_v31 = vmax.f32 %v1202_v30, 0.0 }
 0x4ff   :  { %1273 = vmatpush.bf16.msra.mxu3 %v4473_v32 }
 0x500   :  { %v1204_v5 = vpack.c.bf16 %v1203_v31, %v1203_v31 }
 0x501   :  { %v1200_v63 = vpop.f32.mrf.mxu2 }
 0x502   :  { %1226 = vmatmul.bf16.vlgmr.msra.gmra.mxu0 %v1204_v5  ;;  %1274 = vmatmul.bf16.vlgmr.msra.gmra.mxu3 %v1204_v5 }
 0x503   :  { %1340 = vmatpush.bf16.msrb.mxu3 %v4557_v57  ;;  %1327 = vmatpush.bf16.msra.mxu0 %v4560_v1 }
 0x507   :  { %1341 = vmatpush.bf16.msrb.mxu3 %v4563_v13  ;;  %1328 = vmatpush.bf16.msra.mxu0 %v4566_v27 }
 0x50b   :  { %1342 = vmatpush.bf16.msrb.mxu3 %v4569_v38  ;;  %1329 = vmatpush.bf16.msra.mxu0 %v4572_v40 }
 0x50f   :  { %1343 = vmatpush.bf16.msrb.mxu3 %v4575_v43  ;;  %1330 = vmatpush.bf16.msra.mxu0 %v4578_v44 }
 0x512   :  { %3402 = vmatmul.msk.bf16.vlgmr.msrb.gmra.mxu0 %vm265_vm1, %v1265_v36 }
 0x513   :  { %1344 = vmatpush.bf16.msrb.mxu3 %v4581_v2  ;;  %1331 = vmatpush.bf16.msra.mxu0 %v4585_v6 }
 0x517   :  { %1345 = vmatpush.bf16.msrb.mxu3 %v4588_v46  ;;  %1332 = vmatpush.bf16.msra.mxu0 %v4591_v14 }
 0x51b   :  { %1346 = vmatpush.bf16.msrb.mxu3 %v4181_v59  ;;  %1333 = vmatpush.bf16.msra.mxu0 %v4595_v49 }
 0x51f   :  { %1347 = vmatpush.bf16.msrb.mxu3 %v4185_v60  ;;  %1334 = vmatpush.bf16.msra.mxu0 %v4600_v17 }
 0x523   :  { %1404 = vmatpush.bf16.msra.mxu3 %v4492_v34  ;;  %1391 = vmatpush.bf16.msrb.mxu0 %v4428_v22 }
 0x527   :  { %1405 = vmatpush.bf16.msra.mxu3 %v4497_v35  ;;  %1392 = vmatpush.bf16.msrb.mxu0 %v4500_v37 }
 0x52b   :  { %1406 = vmatpush.bf16.msra.mxu3 %v4503_v41  ;;  %1393 = vmatpush.bf16.msrb.mxu0 %v4506_v42 }
 0x52f   :  { %1407 = vmatpush.bf16.msra.mxu3 %v4509_v45  ;;  %1394 = vmatpush.bf16.msrb.mxu0 %v4512_v47 }
 0x533   :  { %1408 = vmatpush.bf16.msra.mxu3 %v4515_v48  ;;  %1395 = vmatpush.bf16.msrb.mxu0 %v4518_v50 }
 0x537   :  { %1409 = vmatpush.bf16.msra.mxu3 %v4521_v51  ;;  %1396 = vmatpush.bf16.msrb.mxu0 %v4524_v52 }
 0x53b   :  { %1410 = vmatpush.bf16.msra.mxu3 %v4527_v54  ;;  %1397 = vmatpush.bf16.msrb.mxu0 %v4530_v56 }
 0x53f   :  { %1411 = vmatpush.bf16.msra.mxu3 %v4533_v58  ;;  %1398 = vmatpush.bf16.msrb.mxu0 %v4536_v0 }
 0x565   :  { %v1150_v59 = vpop.f32.mrf.mxu3 }
 0x56d   :  { %v1152_v60 = vpop.f32.mrf.mxu3 }
 0x56f   :  { %v1163_v8 = vpop.f32.mrf.mxu0 }
 0x570   :  { %v1164_v20 = vadd.f32 %v1163_v8, %v1150_v59  ;;  %v1357_v8 = vld [vmem:[#allocation2 + $0x48] sm:$0xff] }
 0x572   :  { %v1167_v10 = vadd.f32 %v4257_v55, %v1164_v20  ;;  %v1358_v20 = vpack.c.bf16 %v1357_v8, %v1357_v8 }
 0x574   :  { %v1168_v11 = vmax.f32 %v1167_v10, 0.0  ;;  %v4649_v10 = vld [vmem:[#allocation11 + $0x8] sm:$0xff] }
 0x575   :  { %v1214_v12 = vpop.f32.mrf.mxu3 }
 0x576   :  { %v1169_v15 = vpack.c.bf16 %v1168_v11, %v1168_v11  ;;  %v4653_v11 = vld [vmem:[#allocation11] sm:$0xff] }
 0x577   :  { %v1165_v16 = vpop.f32.mrf.mxu0 }
 0x578   :  { %1242 = vmatmul.bf16.vlgmr.msrb.gmra.mxu2 %v1169_v15 }
 0x579   :  { %1359 = vmatpush.bf16.msrb.mxu2 %v4446_v29 }
 0x57d   :  { %v1216_v18 = vpop.f32.mrf.mxu3  ;;  %1360 = vmatpush.bf16.msrb.mxu2 %v4449_v25 }
 0x57f   :  { %v1227_v19 = vpop.f32.mrf.mxu0 }
 0x580   :  { %v1228_v21 = vadd.f32 %v1227_v19, %v1214_v12  ;;  %v4676_v19 = vld [vmem:[%s5705_s9] ss:$0 sm:$0xff] }
 0x581   :  { %1361 = vmatpush.bf16.msrb.mxu2 %v4452_v53 }
 0x582   :  { %v1231_v55 = vadd.f32 %v4625_v24, %v1228_v21 }
 0x584   :  { %v1232_v28 = vmax.f32 %v1231_v55, 0.0 }
 0x585   :  { %v1275_v23 = vpop.f32.mrf.mxu3  ;;  %1362 = vmatpush.bf16.msrb.mxu2 %v4456_v62 }
 0x586   :  { %v1233_v26 = vpack.c.bf16 %v1232_v28, %v1232_v28 }
 0x587   :  { %v1229_v30 = vpop.f32.mrf.mxu0 }
 0x588   :  { %1255 = vmatmul.bf16.vlgmr.msra.gmra.mxu1 %v1233_v26  ;;  %1306 = vmatmul.bf16.vlgmr.msra.gmra.mxu2 %v1233_v26 }
 0x589   :  { %1363 = vmatpush.bf16.msrb.mxu2 %v4459_v3  ;;  %1381 = vmatpush.bf16.msra.mxu1 %v4015_v7 }
 0x58d   :  { %v1277_v31 = vpop.f32.mrf.mxu3  ;;  %1364 = vmatpush.bf16.msrb.mxu2 %v4463_v4  ;;  %1382 = vmatpush.bf16.msra.mxu1 %v4466_v9 }
 0x58f   :  { %v1291_v5 = vpop.f32.mrf.mxu0 }
 0x590   :  { %v1292_v63 = vadd.f32 %v1291_v5, %v1275_v23 }
 0x591   :  { %1365 = vmatpush.bf16.msrb.mxu2 %v4469_v33 }
 0x592   :  { %v1295_v39 = vadd.f32 %v4553_v61, %v1292_v63 }
 0x594   :  { %v1296_v36 = vmax.f32 %v1295_v39, 0.0 }
 0x595   :  { %1366 = vmatpush.bf16.msrb.mxu2 %v4473_v32 }
 0x596   :  { %v1297_v59 = vpack.c.bf16 %v1296_v36, %v1296_v36 }
 0x597   :  { %v1293_v60 = vpop.f32.mrf.mxu0 }
 0x598   :  { %1319 = vmatmul.bf16.vlgmr.msrb.gmra.mxu1 %v1297_v59  ;;  %1367 = vmatmul.bf16.vlgmr.msrb.gmra.mxu2 %v1297_v59 }
 0x599   :  { %1433 = vmatpush.bf16.msra.mxu2 %v4557_v57  ;;  %1420 = vmatpush.bf16.msrb.mxu1 %v4560_v1 }
 0x59d   :  { %1434 = vmatpush.bf16.msra.mxu2 %v4563_v13  ;;  %1421 = vmatpush.bf16.msrb.mxu1 %v4566_v27 }
 0x5a1   :  { %1435 = vmatpush.bf16.msra.mxu2 %v4569_v38  ;;  %1422 = vmatpush.bf16.msrb.mxu1 %v4572_v40 }
 0x5a5   :  { %1436 = vmatpush.bf16.msra.mxu2 %v4575_v43  ;;  %1423 = vmatpush.bf16.msrb.mxu1 %v4578_v44 }
 0x5a8   :  { %3403 = vmatmul.msk.bf16.vlgmr.msra.gmra.mxu1 %vm265_vm1, %v1358_v20 }
 0x5a9   :  { %1437 = vmatpush.bf16.msra.mxu2 %v4581_v2  ;;  %1424 = vmatpush.bf16.msrb.mxu1 %v4585_v6 }
 0x5ad   :  { %1438 = vmatpush.bf16.msra.mxu2 %v4588_v46  ;;  %1425 = vmatpush.bf16.msrb.mxu1 %v4591_v14 }
 0x5b1   :  { %1439 = vmatpush.bf16.msra.mxu2 %v4649_v10  ;;  %1426 = vmatpush.bf16.msrb.mxu1 %v4595_v49 }
 0x5b5   :  { %1440 = vmatpush.bf16.msra.mxu2 %v4653_v11  ;;  %1427 = vmatpush.bf16.msrb.mxu1 %v4600_v17 }
 0x5b9   :  { %1497 = vmatpush.bf16.msrb.mxu2 %v4492_v34  ;;  %1484 = vmatpush.bf16.msra.mxu1 %v4428_v22 }
 0x5bd   :  { %1498 = vmatpush.bf16.msrb.mxu2 %v4497_v35  ;;  %1485 = vmatpush.bf16.msra.mxu1 %v4500_v37 }
 0x5c1   :  { %1499 = vmatpush.bf16.msrb.mxu2 %v4503_v41  ;;  %1486 = vmatpush.bf16.msra.mxu1 %v4506_v42 }
 0x5c5   :  { %1500 = vmatpush.bf16.msrb.mxu2 %v4509_v45  ;;  %1487 = vmatpush.bf16.msra.mxu1 %v4512_v47 }
 0x5c9   :  { %1501 = vmatpush.bf16.msrb.mxu2 %v4515_v48  ;;  %1488 = vmatpush.bf16.msra.mxu1 %v4518_v50 }
 0x5cd   :  { %1502 = vmatpush.bf16.msrb.mxu2 %v4521_v51  ;;  %1489 = vmatpush.bf16.msra.mxu1 %v4524_v52 }
 0x5d1   :  { %1503 = vmatpush.bf16.msrb.mxu2 %v4527_v54  ;;  %1490 = vmatpush.bf16.msra.mxu1 %v4530_v56 }
 0x5d5   :  { %1504 = vmatpush.bf16.msrb.mxu2 %v4533_v58  ;;  %1491 = vmatpush.bf16.msra.mxu1 %v4536_v0 }
 0x5fb   :  { %v1243_v12 = vpop.f32.mrf.mxu2 }
 0x603   :  { %v1245_v15 = vpop.f32.mrf.mxu2 }
 0x605   :  { %v1256_v16 = vpop.f32.mrf.mxu1 }
 0x606   :  { %v1257_v18 = vadd.f32 %v1256_v16, %v1243_v12 }
 0x608   :  { %v1260_v21 = vadd.f32 %v4676_v19, %v1257_v18 }
 0x60a   :  { %v1261_v55 = vmax.f32 %v1260_v21, 0.0 }
 0x60b   :  { %v1307_v28 = vpop.f32.mrf.mxu2 }
 0x60c   :  { %v1262_v23 = vpack.c.bf16 %v1261_v55, %v1261_v55  ;;  %v1450_v55 = vld [vmem:[#allocation2 + $0x50] sm:$0xff] }
 0x60d   :  { %v1258_v26 = vpop.f32.mrf.mxu1 }
 0x60e   :  { %1335 = vmatmul.bf16.vlgmr.msra.gmra.mxu0 %v1262_v23 }
 0x60f   :  { %1452 = vmatpush.bf16.msra.mxu0 %v4446_v29 }
 0x613   :  { %v1309_v30 = vpop.f32.mrf.mxu2  ;;  %1453 = vmatpush.bf16.msra.mxu0 %v4449_v25 }
 0x615   :  { %v1320_v31 = vpop.f32.mrf.mxu1 }
 0x616   :  { %v1321_v5 = vadd.f32 %v1320_v31, %v1307_v28  ;;  %v1451_v28 = vpack.c.bf16 %v1450_v55, %v1450_v55 }
 0x617   :  { %1454 = vmatpush.bf16.msra.mxu0 %v4452_v53 }
 0x618   :  { %v1324_v63 = vadd.f32 %v4625_v24, %v1321_v5 }
 0x61a   :  { %v1325_v39 = vmax.f32 %v1324_v63, 0.0 }
 0x61b   :  { %v1368_v36 = vpop.f32.mrf.mxu2  ;;  %1455 = vmatpush.bf16.msra.mxu0 %v4456_v62 }
 0x61c   :  { %v1326_v59 = vpack.c.bf16 %v1325_v39, %v1325_v39 }
 0x61d   :  { %v1322_v60 = vpop.f32.mrf.mxu1 }
 0x61e   :  { %1348 = vmatmul.bf16.vlgmr.msrb.gmra.mxu3 %v1326_v59  ;;  %1399 = vmatmul.bf16.vlgmr.msrb.gmra.mxu0 %v1326_v59 }
 0x61f   :  { %1456 = vmatpush.bf16.msra.mxu0 %v4459_v3  ;;  %1474 = vmatpush.bf16.msrb.mxu3 %v4015_v7 }
 0x623   :  { %v1370_v8 = vpop.f32.mrf.mxu2  ;;  %1457 = vmatpush.bf16.msra.mxu0 %v4463_v4  ;;  %1475 = vmatpush.bf16.msrb.mxu3 %v4466_v9 }
 0x625   :  { %v1384_v20 = vpop.f32.mrf.mxu1 }
 0x626   :  { %v1385_v12 = vadd.f32 %v1384_v20, %v1368_v36 }
 0x627   :  { %1458 = vmatpush.bf16.msra.mxu0 %v4469_v33 }
 0x628   :  { %v1388_v15 = vadd.f32 %v4553_v61, %v1385_v12 }
 0x62a   :  { %v1389_v16 = vmax.f32 %v1388_v15, 0.0 }
 0x62b   :  { %1459 = vmatpush.bf16.msra.mxu0 %v4473_v32 }
 0x62c   :  { %v1390_v18 = vpack.c.bf16 %v1389_v16, %v1389_v16 }
 0x62d   :  { %v1386_v21 = vpop.f32.mrf.mxu1 }
 0x62e   :  { %1412 = vmatmul.bf16.vlgmr.msra.gmra.mxu3 %v1390_v18  ;;  %1460 = vmatmul.bf16.vlgmr.msra.gmra.mxu0 %v1390_v18 }
 0x62f   :  { %1526 = vmatpush.bf16.msrb.mxu0 %v4557_v57  ;;  %1513 = vmatpush.bf16.msra.mxu3 %v4560_v1 }
 0x633   :  { %1527 = vmatpush.bf16.msrb.mxu0 %v4563_v13  ;;  %1514 = vmatpush.bf16.msra.mxu3 %v4566_v27 }
 0x637   :  { %1528 = vmatpush.bf16.msrb.mxu0 %v4569_v38  ;;  %1515 = vmatpush.bf16.msra.mxu3 %v4572_v40 }
 0x63b   :  { %1529 = vmatpush.bf16.msrb.mxu0 %v4575_v43  ;;  %1516 = vmatpush.bf16.msra.mxu3 %v4578_v44 }
 0x63e   :  { %3404 = vmatmul.msk.bf16.vlgmr.msrb.gmra.mxu3 %vm265_vm1, %v1451_v28 }
 0x63f   :  { %1530 = vmatpush.bf16.msrb.mxu0 %v4581_v2  ;;  %1517 = vmatpush.bf16.msra.mxu3 %v4585_v6 }
 0x643   :  { %1531 = vmatpush.bf16.msrb.mxu0 %v4588_v46  ;;  %1518 = vmatpush.bf16.msra.mxu3 %v4591_v14 }
 0x647   :  { %1532 = vmatpush.bf16.msrb.mxu0 %v4649_v10  ;;  %1519 = vmatpush.bf16.msra.mxu3 %v4595_v49 }
 0x64b   :  { %1533 = vmatpush.bf16.msrb.mxu0 %v4653_v11  ;;  %1520 = vmatpush.bf16.msra.mxu3 %v4600_v17 }
 0x64f   :  { %1590 = vmatpush.bf16.msra.mxu0 %v4492_v34  ;;  %1577 = vmatpush.bf16.msrb.mxu3 %v4428_v22 }
 0x653   :  { %1591 = vmatpush.bf16.msra.mxu0 %v4497_v35  ;;  %1578 = vmatpush.bf16.msrb.mxu3 %v4500_v37 }
 0x657   :  { %1592 = vmatpush.bf16.msra.mxu0 %v4503_v41  ;;  %1579 = vmatpush.bf16.msrb.mxu3 %v4506_v42 }
 0x65b   :  { %1593 = vmatpush.bf16.msra.mxu0 %v4509_v45  ;;  %1580 = vmatpush.bf16.msrb.mxu3 %v4512_v47 }
 0x65f   :  { %1594 = vmatpush.bf16.msra.mxu0 %v4515_v48  ;;  %1581 = vmatpush.bf16.msrb.mxu3 %v4518_v50 }
 0x663   :  { %1595 = vmatpush.bf16.msra.mxu0 %v4521_v51  ;;  %1582 = vmatpush.bf16.msrb.mxu3 %v4524_v52 }
 0x667   :  { %1596 = vmatpush.bf16.msra.mxu0 %v4527_v54  ;;  %1583 = vmatpush.bf16.msrb.mxu3 %v4530_v56 }
 0x66b   :  { %1597 = vmatpush.bf16.msra.mxu0 %v4533_v58  ;;  %1584 = vmatpush.bf16.msrb.mxu3 %v4536_v0 }
 0x68b   :  { %v1336_v23 = vpop.f32.mrf.mxu0 }
 0x693   :  { %v1338_v26 = vpop.f32.mrf.mxu0 }
 0x69b   :  { %v1400_v30 = vpop.f32.mrf.mxu0 }
 0x6a1   :  { %v1349_v31 = vpop.f32.mrf.mxu3 }
 0x6a2   :  { %v1350_v5 = vadd.f32 %v1349_v31, %v1336_v23 }
 0x6a3   :  { %v1402_v63 = vpop.f32.mrf.mxu0 }
 0x6a4   :  { %v1353_v39 = vadd.f32 %v4676_v19, %v1350_v5  ;;  %v1543_v63 = vld [vmem:[#allocation2 + $0x58] sm:$0xff] }
 0x6a6   :  { %v1354_v36 = vmax.f32 %v1353_v39, 0.0  ;;  %v1544_v39 = vpack.c.bf16 %v1543_v63, %v1543_v63 }
 0x6a8   :  { %v1355_v59 = vpack.c.bf16 %v1354_v36, %v1354_v36 }
 0x6a9   :  { %v1351_v60 = vpop.f32.mrf.mxu3 }
 0x6aa   :  { %1428 = vmatmul.bf16.vlgmr.msrb.gmra.mxu1 %v1355_v59 }
 0x6ab   :  { %v1461_v8 = vpop.f32.mrf.mxu0  ;;  %1545 = vmatpush.bf16.msrb.mxu1 %v4446_v29 }
 0x6af   :  { %1546 = vmatpush.bf16.msrb.mxu1 %v4449_v25 }
 0x6b1   :  { %v1413_v20 = vpop.f32.mrf.mxu3 }
 0x6b2   :  { %v1414_v12 = vadd.f32 %v1413_v20, %v1400_v30 }
 0x6b3   :  { %v1463_v15 = vpop.f32.mrf.mxu0  ;;  %1547 = vmatpush.bf16.msrb.mxu1 %v4452_v53 }
 0x6b4   :  { %v1417_v16 = vadd.f32 %v4625_v24, %v1414_v12 }
 0x6b6   :  { %v1418_v18 = vmax.f32 %v1417_v16, 0.0 }
 0x6b7   :  { %1548 = vmatpush.bf16.msrb.mxu1 %v4456_v62 }
 0x6b8   :  { %v1419_v21 = vpack.c.bf16 %v1418_v18, %v1418_v18 }
 0x6b9   :  { %v1415_v55 = vpop.f32.mrf.mxu3 }
 0x6ba   :  { %1441 = vmatmul.bf16.vlgmr.msra.gmra.mxu2 %v1419_v21  ;;  %1492 = vmatmul.bf16.vlgmr.msra.gmra.mxu1 %v1419_v21 }
 0x6bb   :  { %1549 = vmatpush.bf16.msrb.mxu1 %v4459_v3  ;;  %1567 = vmatpush.bf16.msra.mxu2 %v4015_v7 }
 0x6bf   :  { %1550 = vmatpush.bf16.msrb.mxu1 %v4463_v4  ;;  %1568 = vmatpush.bf16.msra.mxu2 %v4466_v9 }
 0x6c1   :  { %v1477_v28 = vpop.f32.mrf.mxu3 }
 0x6c2   :  { %v1478_v23 = vadd.f32 %v1477_v28, %v1461_v8 }
 0x6c3   :  { %1551 = vmatpush.bf16.msrb.mxu1 %v4469_v33 }
 0x6c4   :  { %v1481_v26 = vadd.f32 %v4553_v61, %v1478_v23 }
 0x6c6   :  { %v1482_v30 = vmax.f32 %v1481_v26, 0.0 }
 0x6c7   :  { %1552 = vmatpush.bf16.msrb.mxu1 %v4473_v32 }
 0x6c8   :  { %v1483_v31 = vpack.c.bf16 %v1482_v30, %v1482_v30 }
 0x6c9   :  { %v1479_v5 = vpop.f32.mrf.mxu3 }
 0x6ca   :  { %1505 = vmatmul.bf16.vlgmr.msrb.gmra.mxu2 %v1483_v31  ;;  %1553 = vmatmul.bf16.vlgmr.msrb.gmra.mxu1 %v1483_v31 }
 0x6cb   :  { %1619 = vmatpush.bf16.msra.mxu1 %v4557_v57  ;;  %1606 = vmatpush.bf16.msrb.mxu2 %v4560_v1 }
 0x6cf   :  { %1620 = vmatpush.bf16.msra.mxu1 %v4563_v13  ;;  %1607 = vmatpush.bf16.msrb.mxu2 %v4566_v27 }
 0x6d3   :  { %1621 = vmatpush.bf16.msra.mxu1 %v4569_v38  ;;  %1608 = vmatpush.bf16.msrb.mxu2 %v4572_v40 }
 0x6d7   :  { %1622 = vmatpush.bf16.msra.mxu1 %v4575_v43  ;;  %1609 = vmatpush.bf16.msrb.mxu2 %v4578_v44 }
 0x6da   :  { %3405 = vmatmul.msk.bf16.vlgmr.msra.gmra.mxu2 %vm265_vm1, %v1544_v39 }
 0x6db   :  { %1623 = vmatpush.bf16.msra.mxu1 %v4581_v2  ;;  %1610 = vmatpush.bf16.msrb.mxu2 %v4585_v6 }
 0x6df   :  { %1624 = vmatpush.bf16.msra.mxu1 %v4588_v46  ;;  %1611 = vmatpush.bf16.msrb.mxu2 %v4591_v14 }
 0x6e3   :  { %1625 = vmatpush.bf16.msra.mxu1 %v4649_v10  ;;  %1612 = vmatpush.bf16.msrb.mxu2 %v4595_v49 }
 0x6e7   :  { %1626 = vmatpush.bf16.msra.mxu1 %v4653_v11  ;;  %1613 = vmatpush.bf16.msrb.mxu2 %v4600_v17 }
 0x6eb   :  { %1683 = vmatpush.bf16.msrb.mxu1 %v4492_v34  ;;  %1670 = vmatpush.bf16.msra.mxu2 %v4428_v22 }
 0x6ef   :  { %1684 = vmatpush.bf16.msrb.mxu1 %v4497_v35  ;;  %1671 = vmatpush.bf16.msra.mxu2 %v4500_v37 }
 0x6f3   :  { %1685 = vmatpush.bf16.msrb.mxu1 %v4503_v41  ;;  %1672 = vmatpush.bf16.msra.mxu2 %v4506_v42 }
 0x6f7   :  { %1686 = vmatpush.bf16.msrb.mxu1 %v4509_v45  ;;  %1673 = vmatpush.bf16.msra.mxu2 %v4512_v47 }
 0x6fb   :  { %1687 = vmatpush.bf16.msrb.mxu1 %v4515_v48  ;;  %1674 = vmatpush.bf16.msra.mxu2 %v4518_v50 }
 0x6ff   :  { %1688 = vmatpush.bf16.msrb.mxu1 %v4521_v51  ;;  %1675 = vmatpush.bf16.msra.mxu2 %v4524_v52 }
 0x703   :  { %1689 = vmatpush.bf16.msrb.mxu1 %v4527_v54  ;;  %1676 = vmatpush.bf16.msra.mxu2 %v4530_v56 }
 0x707   :  { %1690 = vmatpush.bf16.msrb.mxu1 %v4533_v58  ;;  %1677 = vmatpush.bf16.msra.mxu2 %v4536_v0 }
 0x727   :  { %v1429_v36 = vpop.f32.mrf.mxu1 }
 0x72f   :  { %v1431_v59 = vpop.f32.mrf.mxu1 }
 0x737   :  { %v1493_v60 = vpop.f32.mrf.mxu1 }
 0x73d   :  { %v1442_v8 = vpop.f32.mrf.mxu2 }
 0x73e   :  { %v1443_v20 = vadd.f32 %v1442_v8, %v1429_v36 }
 0x73f   :  { %v1495_v12 = vpop.f32.mrf.mxu1 }
 0x740   :  { %v1446_v15 = vadd.f32 %v4676_v19, %v1443_v20  ;;  %v1636_v12 = vld [vmem:[#allocation2 + $0x60] sm:$0xff] }
 0x742   :  { %v1447_v16 = vmax.f32 %v1446_v15, 0.0  ;;  %v1637_v15 = vpack.c.bf16 %v1636_v12, %v1636_v12 }
 0x744   :  { %v1448_v18 = vpack.c.bf16 %v1447_v16, %v1447_v16 }
 0x745   :  { %v1444_v21 = vpop.f32.mrf.mxu2 }
 0x746   :  { %1521 = vmatmul.bf16.vlgmr.msra.gmra.mxu3 %v1448_v18 }
 0x747   :  { %v1554_v55 = vpop.f32.mrf.mxu1  ;;  %1638 = vmatpush.bf16.msra.mxu3 %v4446_v29 }
 0x74b   :  { %1639 = vmatpush.bf16.msra.mxu3 %v4449_v25 }
 0x74d   :  { %v1506_v28 = vpop.f32.mrf.mxu2 }
 0x74e   :  { %v1507_v23 = vadd.f32 %v1506_v28, %v1493_v60 }
 0x74f   :  { %v1556_v26 = vpop.f32.mrf.mxu1  ;;  %1640 = vmatpush.bf16.msra.mxu3 %v4452_v53 }
 0x750   :  { %v1510_v30 = vadd.f32 %v4625_v24, %v1507_v23 }
 0x752   :  { %v1511_v31 = vmax.f32 %v1510_v30, 0.0 }
 0x753   :  { %1641 = vmatpush.bf16.msra.mxu3 %v4456_v62 }
 0x754   :  { %v1512_v5 = vpack.c.bf16 %v1511_v31, %v1511_v31 }
 0x755   :  { %v1508_v63 = vpop.f32.mrf.mxu2 }
 0x756   :  { %1534 = vmatmul.bf16.vlgmr.msrb.gmra.mxu0 %v1512_v5  ;;  %1585 = vmatmul.bf16.vlgmr.msrb.gmra.mxu3 %v1512_v5 }
 0x757   :  { %1642 = vmatpush.bf16.msra.mxu3 %v4459_v3  ;;  %1660 = vmatpush.bf16.msrb.mxu0 %v4015_v7 }
 0x75b   :  { %1643 = vmatpush.bf16.msra.mxu3 %v4463_v4  ;;  %1661 = vmatpush.bf16.msrb.mxu0 %v4466_v9 }
 0x75d   :  { %v1570_v39 = vpop.f32.mrf.mxu2 }
 0x75e   :  { %v1571_v36 = vadd.f32 %v1570_v39, %v1554_v55 }
 0x75f   :  { %1644 = vmatpush.bf16.msra.mxu3 %v4469_v33 }
 0x760   :  { %v1574_v59 = vadd.f32 %v4553_v61, %v1571_v36 }
 0x762   :  { %v1575_v60 = vmax.f32 %v1574_v59, 0.0 }
 0x763   :  { %1645 = vmatpush.bf16.msra.mxu3 %v4473_v32 }
 0x764   :  { %v1576_v8 = vpack.c.bf16 %v1575_v60, %v1575_v60 }
 0x765   :  { %v1572_v20 = vpop.f32.mrf.mxu2 }
 0x766   :  { %1598 = vmatmul.bf16.vlgmr.msra.gmra.mxu0 %v1576_v8  ;;  %1646 = vmatmul.bf16.vlgmr.msra.gmra.mxu3 %v1576_v8 }
 0x767   :  { %1712 = vmatpush.bf16.msrb.mxu3 %v4557_v57  ;;  %1699 = vmatpush.bf16.msra.mxu0 %v4560_v1 }
 0x76b   :  { %1713 = vmatpush.bf16.msrb.mxu3 %v4563_v13  ;;  %1700 = vmatpush.bf16.msra.mxu0 %v4566_v27 }
 0x76f   :  { %1714 = vmatpush.bf16.msrb.mxu3 %v4569_v38  ;;  %1701 = vmatpush.bf16.msra.mxu0 %v4572_v40 }
 0x773   :  { %1715 = vmatpush.bf16.msrb.mxu3 %v4575_v43  ;;  %1702 = vmatpush.bf16.msra.mxu0 %v4578_v44 }
 0x776   :  { %3406 = vmatmul.msk.bf16.vlgmr.msrb.gmra.mxu0 %vm265_vm1, %v1637_v15 }
 0x777   :  { %1716 = vmatpush.bf16.msrb.mxu3 %v4581_v2  ;;  %1703 = vmatpush.bf16.msra.mxu0 %v4585_v6 }
 0x77b   :  { %1717 = vmatpush.bf16.msrb.mxu3 %v4588_v46  ;;  %1704 = vmatpush.bf16.msra.mxu0 %v4591_v14 }
 0x77f   :  { %1718 = vmatpush.bf16.msrb.mxu3 %v4649_v10  ;;  %1705 = vmatpush.bf16.msra.mxu0 %v4595_v49 }
 0x783   :  { %1719 = vmatpush.bf16.msrb.mxu3 %v4653_v11  ;;  %1706 = vmatpush.bf16.msra.mxu0 %v4600_v17 }
 0x787   :  { %1776 = vmatpush.bf16.msra.mxu3 %v4492_v34  ;;  %1763 = vmatpush.bf16.msrb.mxu0 %v4428_v22 }
 0x78b   :  { %1777 = vmatpush.bf16.msra.mxu3 %v4497_v35  ;;  %1764 = vmatpush.bf16.msrb.mxu0 %v4500_v37 }
 0x78f   :  { %1778 = vmatpush.bf16.msra.mxu3 %v4503_v41  ;;  %1765 = vmatpush.bf16.msrb.mxu0 %v4506_v42 }
 0x793   :  { %1779 = vmatpush.bf16.msra.mxu3 %v4509_v45  ;;  %1766 = vmatpush.bf16.msrb.mxu0 %v4512_v47 }
 0x797   :  { %1780 = vmatpush.bf16.msra.mxu3 %v4515_v48  ;;  %1767 = vmatpush.bf16.msrb.mxu0 %v4518_v50 }
 0x79b   :  { %1781 = vmatpush.bf16.msra.mxu3 %v4521_v51  ;;  %1768 = vmatpush.bf16.msrb.mxu0 %v4524_v52 }
 0x79f   :  { %1782 = vmatpush.bf16.msra.mxu3 %v4527_v54  ;;  %1769 = vmatpush.bf16.msrb.mxu0 %v4530_v56 }
 0x7a3   :  { %1783 = vmatpush.bf16.msra.mxu3 %v4533_v58  ;;  %1770 = vmatpush.bf16.msrb.mxu0 %v4536_v0 }
 0x7c9   :  { %v1522_v22 = vpop.f32.mrf.mxu3 }
 0x7d1   :  { %v1524_v16 = vpop.f32.mrf.mxu3 }
 0x7d2   :  { %v4875_v16 = vld [vmem:[#allocation7 + $0x20] sm:$0xff] }
 0x7d3   :  { %v1535_v18 = vpop.f32.mrf.mxu0 }
 0x7d4   :  { %v1536_v21 = vadd.f32 %v1535_v18, %v1522_v22 }
 0x7d6   :  { %v1539_v55 = vadd.f32 %v4676_v19, %v1536_v21 }
 0x7d8   :  { %v1540_v28 = vmax.f32 %v1539_v55, 0.0  ;;  %v4878_v55 = vld [vmem:[#allocation7 + $0x18] sm:$0xff] }
 0x7d9   :  { %v1586_v23 = vpop.f32.mrf.mxu3 }
 0x7da   :  { %v1541_v26 = vpack.c.bf16 %v1540_v28, %v1540_v28 }
 0x7db   :  { %v1537_v30 = vpop.f32.mrf.mxu0 }
 0x7dc   :  { %1614 = vmatmul.bf16.vlgmr.msrb.gmra.mxu2 %v1541_v26  ;;  %v4885_v26 = vld [vmem:[#allocation5] sm:$0xff] }
 0x7dd   :  { %1731 = vmatpush.bf16.msrb.mxu2 %v4446_v29 }
 0x7e1   :  { %v1588_v31 = vpop.f32.mrf.mxu3  ;;  %1732 = vmatpush.bf16.msrb.mxu2 %v4449_v25 }
 0x7e3   :  { %v1599_v5 = vpop.f32.mrf.mxu0 }
 0x7e4   :  { %v1600_v63 = vadd.f32 %v1599_v5, %v1586_v23  ;;  %v4882_v23 = vld [vmem:[#allocation7 + $0x10] sm:$0xff]  ;;  %v4888_v5 = vld [vmem:[#allocation7 + $0x8] sm:$0xff] }
 0x7e5   :  { %1733 = vmatpush.bf16.msrb.mxu2 %v4452_v53 }
 0x7e6   :  { %v1603_v39 = vadd.f32 %v4625_v24, %v1600_v63 }
 0x7e8   :  { %v1604_v36 = vmax.f32 %v1603_v39, 0.0 }
 0x7e9   :  { %v1647_v59 = vpop.f32.mrf.mxu3  ;;  %1734 = vmatpush.bf16.msrb.mxu2 %v4456_v62 }
 0x7ea   :  { %v1605_v60 = vpack.c.bf16 %v1604_v36, %v1604_v36  ;;  %v4892_v36 = vld [vmem:[#allocation7] sm:$0xff] }
 0x7eb   :  { %v1601_v8 = vpop.f32.mrf.mxu0 }
 0x7ec   :  { %1627 = vmatmul.bf16.vlgmr.msra.gmra.mxu1 %v1605_v60  ;;  %1678 = vmatmul.bf16.vlgmr.msra.gmra.mxu2 %v1605_v60 }
 0x7ed   :  { %1735 = vmatpush.bf16.msrb.mxu2 %v4459_v3  ;;  %1753 = vmatpush.bf16.msra.mxu1 %v4015_v7 }
 0x7f1   :  { %v1649_v29 = vpop.f32.mrf.mxu3  ;;  %1736 = vmatpush.bf16.msrb.mxu2 %v4463_v4  ;;  %1754 = vmatpush.bf16.msra.mxu1 %v4466_v9  ;;  %v1729_v4 = vld [vmem:[#allocation2 + $0x68] sm:$0xff] }
 0x7f2   :  { %v1730_v9 = vpack.c.bf16 %v1729_v4, %v1729_v4  ;;  %v4955_v29 = vld [vmem:[#allocation10] sm:$0xff] }
 0x7f3   :  { %v1663_v25 = vpop.f32.mrf.mxu0 }
 0x7f4   :  { %v1664_v53 = vadd.f32 %v1663_v25, %v1647_v59 }
 0x7f5   :  { %1737 = vmatpush.bf16.msrb.mxu2 %v4469_v33  ;;  %v4847_v33 = vld [vmem:[#allocation10 + $0x38] sm:$0xff] }
 0x7f6   :  { %v1667_v20 = vadd.f32 %v4553_v61, %v1664_v53 }
 0x7f8   :  { %v1668_v62 = vmax.f32 %v1667_v20, 0.0 }
 0x7f9   :  { %1738 = vmatpush.bf16.msrb.mxu2 %v4473_v32 }
 0x7fa   :  { %v1669_v12 = vpack.c.bf16 %v1668_v62, %v1668_v62 }
 0x7fb   :  { %v1665_v3 = vpop.f32.mrf.mxu0 }
 0x7fc   :  { %1691 = vmatmul.bf16.vlgmr.msrb.gmra.mxu1 %v1669_v12  ;;  %1739 = vmatmul.bf16.vlgmr.msrb.gmra.mxu2 %v1669_v12 }
 0x7fd   :  { %1805 = vmatpush.bf16.msra.mxu2 %v4557_v57  ;;  %1792 = vmatpush.bf16.msrb.mxu1 %v4560_v1 }
 0x801   :  { %1806 = vmatpush.bf16.msra.mxu2 %v4563_v13  ;;  %1793 = vmatpush.bf16.msrb.mxu1 %v4566_v27 }
 0x805   :  { %1807 = vmatpush.bf16.msra.mxu2 %v4569_v38  ;;  %1794 = vmatpush.bf16.msrb.mxu1 %v4572_v40 }
 0x809   :  { %1808 = vmatpush.bf16.msra.mxu2 %v4575_v43  ;;  %1795 = vmatpush.bf16.msrb.mxu1 %v4578_v44 }
 0x80c   :  { %3407 = vmatmul.msk.bf16.vlgmr.msra.gmra.mxu1 %vm265_vm1, %v1730_v9 }
 0x80d   :  { %1809 = vmatpush.bf16.msra.mxu2 %v4581_v2  ;;  %1796 = vmatpush.bf16.msrb.mxu1 %v4585_v6 }
 0x811   :  { %1810 = vmatpush.bf16.msra.mxu2 %v4588_v46  ;;  %1797 = vmatpush.bf16.msrb.mxu1 %v4591_v14 }
 0x815   :  { %1811 = vmatpush.bf16.msra.mxu2 %v4649_v10  ;;  %1798 = vmatpush.bf16.msrb.mxu1 %v4595_v49 }
 0x819   :  { %1812 = vmatpush.bf16.msra.mxu2 %v4653_v11  ;;  %1799 = vmatpush.bf16.msrb.mxu1 %v4600_v17 }
 0x81d   :  { %1869 = vmatpush.bf16.msrb.mxu2 %v4492_v34  ;;  %1856 = vmatpush.bf16.msra.mxu1 %v4847_v33 }
 0x821   :  { %1870 = vmatpush.bf16.msrb.mxu2 %v4497_v35  ;;  %1857 = vmatpush.bf16.msra.mxu1 %v4500_v37 }
 0x825   :  { %1871 = vmatpush.bf16.msrb.mxu2 %v4503_v41  ;;  %1858 = vmatpush.bf16.msra.mxu1 %v4506_v42 }
 0x829   :  { %1872 = vmatpush.bf16.msrb.mxu2 %v4509_v45  ;;  %1859 = vmatpush.bf16.msra.mxu1 %v4512_v47 }
 0x82d   :  { %1873 = vmatpush.bf16.msrb.mxu2 %v4515_v48  ;;  %1860 = vmatpush.bf16.msra.mxu1 %v4518_v50  ;;  %v4865_v50 = vld [vmem:[#allocation7 + $0x38] sm:$0xff] }
 0x831   :  { %1874 = vmatpush.bf16.msrb.mxu2 %v4521_v51  ;;  %1861 = vmatpush.bf16.msra.mxu1 %v4524_v52  ;;  %v4868_v52 = vld [vmem:[#allocation7 + $0x30] sm:$0xff] }
 0x835   :  { %1875 = vmatpush.bf16.msrb.mxu2 %v4527_v54  ;;  %1862 = vmatpush.bf16.msra.mxu1 %v4530_v56 }
 0x839   :  { %1876 = vmatpush.bf16.msrb.mxu2 %v4533_v58  ;;  %1863 = vmatpush.bf16.msra.mxu1 %v4536_v0  ;;  %v4871_v58 = vld [vmem:[#allocation7 + $0x28] sm:$0xff] }
 0x85f   :  { %v1615_v32 = vpop.f32.mrf.mxu2 }
 0x867   :  { %v1617_v34 = vpop.f32.mrf.mxu2 }
 0x869   :  { %v1628_v35 = vpop.f32.mrf.mxu1 }
 0x86a   :  { %v1629_v37 = vadd.f32 %v1628_v35, %v1615_v32 }
 0x86c   :  { %v1632_v41 = vadd.f32 %v4676_v19, %v1629_v37 }
 0x86e   :  { %v1633_v42 = vmax.f32 %v1632_v41, 0.0 }
 0x86f   :  { %v1679_v45 = vpop.f32.mrf.mxu2 }
 0x870   :  { %v1634_v47 = vpack.c.bf16 %v1633_v42, %v1633_v42 }
 0x871   :  { %v1630_v48 = vpop.f32.mrf.mxu1 }
 0x872   :  { %1707 = vmatmul.bf16.vlgmr.msra.gmra.mxu0 %v1634_v47 }
 0x873   :  { %1824 = vmatpush.bf16.msra.mxu0 %v4865_v50 }
 0x877   :  { %v1681_v51 = vpop.f32.mrf.mxu2  ;;  %1825 = vmatpush.bf16.msra.mxu0 %v4868_v52 }
 0x879   :  { %v1692_v54 = vpop.f32.mrf.mxu1 }
 0x87a   :  { %v1693_v56 = vadd.f32 %v1692_v54, %v1679_v45 }
 0x87b   :  { %1826 = vmatpush.bf16.msra.mxu0 %v4871_v58 }
 0x87c   :  { %v1696_v0 = vadd.f32 %v4625_v24, %v1693_v56 }
 0x87e   :  { %v1697_v15 = vmax.f32 %v1696_v0, 0.0 }
 0x87f   :  { %v1740_v22 = vpop.f32.mrf.mxu2  ;;  %1827 = vmatpush.bf16.msra.mxu0 %v4875_v16 }
 0x880   :  { %v1698_v18 = vpack.c.bf16 %v1697_v15, %v1697_v15 }
 0x881   :  { %v1694_v21 = vpop.f32.mrf.mxu1 }
 0x882   :  { %1720 = vmatmul.bf16.vlgmr.msrb.gmra.mxu3 %v1698_v18  ;;  %1771 = vmatmul.bf16.vlgmr.msrb.gmra.mxu0 %v1698_v18  ;;  %v4976_v18 = vld [vmem:[#allocation11 + $0x38] sm:$0xff] }
 0x883   :  { %1828 = vmatpush.bf16.msra.mxu0 %v4878_v55  ;;  %1846 = vmatpush.bf16.msrb.mxu3 %v4015_v7 }
 0x887   :  { %v1742_v28 = vpop.f32.mrf.mxu2  ;;  %1829 = vmatpush.bf16.msra.mxu0 %v4882_v23  ;;  %1847 = vmatpush.bf16.msrb.mxu3 %v4885_v26 }
 0x888   :  { %v4979_v28 = vld [vmem:[#allocation13 + $0x38] sm:$0xff] }
 0x889   :  { %v1756_v30 = vpop.f32.mrf.mxu1 }
 0x88a   :  { %v1757_v31 = vadd.f32 %v1756_v30, %v1740_v22  ;;  %v4982_v30 = vld [vmem:[#allocation11 + $0x30] sm:$0xff] }
 0x88b   :  { %1830 = vmatpush.bf16.msra.mxu0 %v4888_v5 }
 0x88c   :  { %v1760_v63 = vadd.f32 %v4553_v61, %v1757_v31  ;;  %v1822_v61 = vld [vmem:[#allocation2 + $0x70] sm:$0xff]  ;;  %v4985_v31 = vld [vmem:[#allocation13 + $0x30] sm:$0xff] }
 0x88d   :  { %v1823_v8 = vpack.c.bf16 %v1822_v61, %v1822_v61 }
 0x88e   :  { %v1761_v39 = vmax.f32 %v1760_v63, 0.0  ;;  %v4988_v63 = vld [vmem:[#allocation11 + $0x28] sm:$0xff] }
 0x88f   :  { %1831 = vmatpush.bf16.msra.mxu0 %v4892_v36 }
 0x890   :  { %v1762_v59 = vpack.c.bf16 %v1761_v39, %v1761_v39  ;;  %v1915_v39 = vld [vmem:[#allocation2 + $0x78] sm:$0xff] }
 0x891   :  { %v1758_v60 = vpop.f32.mrf.mxu1  ;;  %v1916_v61 = vpack.c.bf16 %v1915_v39, %v1915_v39 }
 0x892   :  { %1784 = vmatmul.bf16.vlgmr.msra.gmra.mxu3 %v1762_v59  ;;  %1832 = vmatmul.bf16.vlgmr.msra.gmra.mxu0 %v1762_v59  ;;  %v4991_v59 = vld [vmem:[#allocation13 + $0x28] sm:$0xff]  ;;  %v4994_v60 = vld [vmem:[#allocation11 + $0x20] sm:$0xff] }
 0x893   :  { %1898 = vmatpush.bf16.msrb.mxu0 %v4557_v57  ;;  %1885 = vmatpush.bf16.msra.mxu3 %v4560_v1  ;;  %v4911_v57 = vld [vmem:[#allocation8 + $0x38] sm:$0xff]  ;;  %v4916_v1 = vld [vmem:[#allocation8 + $0x30] sm:$0xff] }
 0x897   :  { %1899 = vmatpush.bf16.msrb.mxu0 %v4563_v13  ;;  %1886 = vmatpush.bf16.msra.mxu3 %v4566_v27  ;;  %v4919_v13 = vld [vmem:[#allocation10 + $0x30] sm:$0xff]  ;;  %v4922_v27 = vld [vmem:[#allocation8 + $0x28] sm:$0xff] }
 0x89b   :  { %1900 = vmatpush.bf16.msrb.mxu0 %v4569_v38  ;;  %1887 = vmatpush.bf16.msra.mxu3 %v4572_v40  ;;  %v4925_v38 = vld [vmem:[#allocation10 + $0x28] sm:$0xff]  ;;  %v4928_v40 = vld [vmem:[#allocation8 + $0x20] sm:$0xff] }
 0x89f   :  { %1901 = vmatpush.bf16.msrb.mxu0 %v4575_v43  ;;  %1888 = vmatpush.bf16.msra.mxu3 %v4578_v44  ;;  %v4931_v43 = vld [vmem:[#allocation10 + $0x20] sm:$0xff]  ;;  %v4934_v44 = vld [vmem:[#allocation8 + $0x18] sm:$0xff] }
 0x8a2   :  { %3408 = vmatmul.msk.bf16.vlgmr.msrb.gmra.mxu3 %vm265_vm1, %v1823_v8  ;;  %v4997_v8 = vld [vmem:[#allocation13 + $0x20] sm:$0xff] }
 0x8a3   :  { %1902 = vmatpush.bf16.msrb.mxu0 %v4581_v2  ;;  %1889 = vmatpush.bf16.msra.mxu3 %v4585_v6  ;;  %v4937_v2 = vld [vmem:[#allocation10 + $0x18] sm:$0xff]  ;;  %v4940_v6 = vld [vmem:[#allocation8 + $0x10] sm:$0xff] }
 0x8a7   :  { %1903 = vmatpush.bf16.msrb.mxu0 %v4588_v46  ;;  %1890 = vmatpush.bf16.msra.mxu3 %v4591_v14  ;;  %v4943_v46 = vld [vmem:[#allocation10 + $0x10] sm:$0xff]  ;;  %v4946_v14 = vld [vmem:[#allocation8 + $0x8] sm:$0xff] }
 0x8ab   :  { %1904 = vmatpush.bf16.msrb.mxu0 %v4649_v10  ;;  %1891 = vmatpush.bf16.msra.mxu3 %v4595_v49  ;;  %v4949_v49 = vld [vmem:[#allocation10 + $0x8] sm:$0xff] }
 0x8af   :  { %1905 = vmatpush.bf16.msrb.mxu0 %v4653_v11  ;;  %1892 = vmatpush.bf16.msra.mxu3 %v4600_v17  ;;  %v4952_v17 = vld [vmem:[#allocation8] sm:$0xff] }
 0x8b3   :  { %1962 = vmatpush.bf16.msra.mxu0 %v4911_v57  ;;  %1949 = vmatpush.bf16.msrb.mxu3 %v4847_v33 }
 0x8b7   :  { %1963 = vmatpush.bf16.msra.mxu0 %v4916_v1  ;;  %1950 = vmatpush.bf16.msrb.mxu3 %v4919_v13 }
 0x8bb   :  { %1964 = vmatpush.bf16.msra.mxu0 %v4922_v27  ;;  %1951 = vmatpush.bf16.msrb.mxu3 %v4925_v38 }
 0x8bf   :  { %1965 = vmatpush.bf16.msra.mxu0 %v4928_v40  ;;  %1952 = vmatpush.bf16.msrb.mxu3 %v4931_v43 }
 0x8c3   :  { %1966 = vmatpush.bf16.msra.mxu0 %v4934_v44  ;;  %1953 = vmatpush.bf16.msrb.mxu3 %v4937_v2 }
 0x8c7   :  { %1967 = vmatpush.bf16.msra.mxu0 %v4940_v6  ;;  %1954 = vmatpush.bf16.msrb.mxu3 %v4943_v46 }
 0x8cb   :  { %1968 = vmatpush.bf16.msra.mxu0 %v4946_v14  ;;  %1955 = vmatpush.bf16.msrb.mxu3 %v4949_v49 }
 0x8cf   :  { %1969 = vmatpush.bf16.msra.mxu0 %v4952_v17  ;;  %1956 = vmatpush.bf16.msrb.mxu3 %v4955_v29 }
 0x8ef   :  { %v1708_v25 = vpop.f32.mrf.mxu0 }
 0x8f7   :  { %v1710_v53 = vpop.f32.mrf.mxu0 }
 0x8f8   :  { %v5004_v53 = vld [vmem:[#allocation13 + $0x18] sm:$0xff] }
 0x8ff   :  { %v1772_v20 = vpop.f32.mrf.mxu0 }
 0x905   :  { %v1721_v62 = vpop.f32.mrf.mxu3 }
 0x906   :  { %v1722_v12 = vadd.f32 %v1721_v62, %v1708_v25  ;;  %v5000_v25 = vld [vmem:[#allocation11 + $0x18] sm:$0xff]  ;;  %v5010_v62 = vld [vmem:[#allocation13 + $0x10] sm:$0xff] }
 0x907   :  { %v1774_v3 = vpop.f32.mrf.mxu0 }
 0x908   :  { %v1725_v4 = vadd.f32 %v4676_v19, %v1722_v12  ;;  %v5014_v12 = vld [vmem:[#allocation13 + $0x8] sm:$0xff]  ;;  %v5019_v3 = vld [vmem:[#allocation13] sm:$0xff] }
 0x90a   :  { %v1726_v9 = vmax.f32 %v1725_v4, 0.0 }
 0x90c   :  { %v1727_v32 = vpack.c.bf16 %v1726_v9, %v1726_v9 }
 0x90d   :  { %v1723_v34 = vpop.f32.mrf.mxu3 }
 0x90e   :  { %1800 = vmatmul.bf16.vlgmr.msrb.gmra.mxu1 %v1727_v32 }
 0x90f   :  { %v1833_v35 = vpop.f32.mrf.mxu0  ;;  %1917 = vmatpush.bf16.msrb.mxu1 %v4865_v50 }
 0x913   :  { %1918 = vmatpush.bf16.msrb.mxu1 %v4868_v52 }
 0x915   :  { %v1785_v37 = vpop.f32.mrf.mxu3 }
 0x916   :  { %v1786_v41 = vadd.f32 %v1785_v37, %v1772_v20  ;;  %v5007_v20 = vld [vmem:[#allocation11 + $0x10] sm:$0xff] }
 0x917   :  { %v1835_v42 = vpop.f32.mrf.mxu0  ;;  %1919 = vmatpush.bf16.msrb.mxu1 %v4871_v58 }
 0x918   :  { %v1789_v45 = vadd.f32 %v4625_v24, %v1786_v41  ;;  %v4972_v24 = vld [vmem:[%s5699_s3] ss:$0 sm:$0xff] }
 0x91a   :  { %v1790_v47 = vmax.f32 %v1789_v45, 0.0 }
 0x91b   :  { %1920 = vmatpush.bf16.msrb.mxu1 %v4875_v16 }
 0x91c   :  { %v1791_v48 = vpack.c.bf16 %v1790_v47, %v1790_v47 }
 0x91d   :  { %v1787_v51 = vpop.f32.mrf.mxu3 }
 0x91e   :  { %1813 = vmatmul.bf16.vlgmr.msra.gmra.mxu2 %v1791_v48  ;;  %1864 = vmatmul.bf16.vlgmr.msra.gmra.mxu1 %v1791_v48 }
 0x91f   :  { %1921 = vmatpush.bf16.msrb.mxu1 %v4878_v55  ;;  %1939 = vmatpush.bf16.msra.mxu2 %v4015_v7 }
 0x923   :  { %1922 = vmatpush.bf16.msrb.mxu1 %v4882_v23  ;;  %1940 = vmatpush.bf16.msra.mxu2 %v4885_v26 }
 0x925   :  { %v1849_v54 = vpop.f32.mrf.mxu3 }
 0x926   :  { %v1850_v56 = vadd.f32 %v1849_v54, %v1833_v35  ;;  %v5044_v54 = vld [vmem:[%s5702_s6] ss:$0 sm:$0xff] }
 0x927   :  { %1923 = vmatpush.bf16.msrb.mxu1 %v4888_v5 }
 0x928   :  { %v1853_v0 = vadd.f32 %v4972_v24, %v1850_v56 }
 0x92a   :  { %v1854_v15 = vmax.f32 %v1853_v0, 0.0 }
 0x92b   :  { %1924 = vmatpush.bf16.msrb.mxu1 %v4892_v36 }
 0x92c   :  { %v1855_v22 = vpack.c.bf16 %v1854_v15, %v1854_v15 }
 0x92d   :  { %v1851_v21 = vpop.f32.mrf.mxu3 }
 0x92e   :  { %1877 = vmatmul.bf16.vlgmr.msrb.gmra.mxu2 %v1855_v22  ;;  %1925 = vmatmul.bf16.vlgmr.msrb.gmra.mxu1 %v1855_v22 }
 0x92f   :  { %1991 = vmatpush.bf16.msra.mxu1 %v4976_v18  ;;  %1978 = vmatpush.bf16.msrb.mxu2 %v4979_v28 }
 0x933   :  { %1992 = vmatpush.bf16.msra.mxu1 %v4982_v30  ;;  %1979 = vmatpush.bf16.msrb.mxu2 %v4985_v31 }
 0x937   :  { %1993 = vmatpush.bf16.msra.mxu1 %v4988_v63  ;;  %1980 = vmatpush.bf16.msrb.mxu2 %v4991_v59 }
 0x93b   :  { %1994 = vmatpush.bf16.msra.mxu1 %v4994_v60  ;;  %1981 = vmatpush.bf16.msrb.mxu2 %v4997_v8 }
 0x93e   :  { %3409 = vmatmul.msk.bf16.vlgmr.msra.gmra.mxu2 %vm265_vm1, %v1916_v61 }
 0x93f   :  { %1995 = vmatpush.bf16.msra.mxu1 %v5000_v25  ;;  %1982 = vmatpush.bf16.msrb.mxu2 %v5004_v53 }
 0x943   :  { %1996 = vmatpush.bf16.msra.mxu1 %v5007_v20  ;;  %1983 = vmatpush.bf16.msrb.mxu2 %v5010_v62 }
 0x947   :  { %1997 = vmatpush.bf16.msra.mxu1 %v4649_v10  ;;  %1984 = vmatpush.bf16.msrb.mxu2 %v5014_v12 }
 0x94b   :  { %1998 = vmatpush.bf16.msra.mxu1 %v4653_v11  ;;  %1985 = vmatpush.bf16.msrb.mxu2 %v5019_v3 }
 0x94f   :  { %2055 = vmatpush.bf16.msrb.mxu1 %v4911_v57  ;;  %2042 = vmatpush.bf16.msra.mxu2 %v4847_v33 }
 0x953   :  { %2056 = vmatpush.bf16.msrb.mxu1 %v4916_v1  ;;  %2043 = vmatpush.bf16.msra.mxu2 %v4919_v13 }
 0x957   :  { %2057 = vmatpush.bf16.msrb.mxu1 %v4922_v27  ;;  %2044 = vmatpush.bf16.msra.mxu2 %v4925_v38 }
 0x95b   :  { %2058 = vmatpush.bf16.msrb.mxu1 %v4928_v40  ;;  %2045 = vmatpush.bf16.msra.mxu2 %v4931_v43 }
 0x95f   :  { %2059 = vmatpush.bf16.msrb.mxu1 %v4934_v44  ;;  %2046 = vmatpush.bf16.msra.mxu2 %v4937_v2 }
 0x963   :  { %2060 = vmatpush.bf16.msrb.mxu1 %v4940_v6  ;;  %2047 = vmatpush.bf16.msra.mxu2 %v4943_v46 }
 0x967   :  { %2061 = vmatpush.bf16.msrb.mxu1 %v4946_v14  ;;  %2048 = vmatpush.bf16.msra.mxu2 %v4949_v49 }
 0x96b   :  { %2062 = vmatpush.bf16.msrb.mxu1 %v4952_v17  ;;  %2049 = vmatpush.bf16.msra.mxu2 %v4955_v29 }
 0x98b   :  { %v1801_v10 = vpop.f32.mrf.mxu1 }
 0x993   :  { %v1803_v11 = vpop.f32.mrf.mxu1 }
 0x99b   :  { %v1865_v4 = vpop.f32.mrf.mxu1 }
 0x9a1   :  { %v1814_v9 = vpop.f32.mrf.mxu2 }
 0x9a2   :  { %v1815_v32 = vadd.f32 %v1814_v9, %v1801_v10 }
 0x9a3   :  { %v1867_v34 = vpop.f32.mrf.mxu1 }
 0x9a4   :  { %v1818_v35 = vadd.f32 %v4676_v19, %v1815_v32  ;;  %v5068_v32 = vld [vmem:[#allocation11 + $0x8] sm:$0xff]  ;;  %v5072_v34 = vld [vmem:[#allocation11] sm:$0xff] }
 0x9a6   :  { %v1819_v37 = vmax.f32 %v1818_v35, 0.0 }
 0x9a8   :  { %v1820_v41 = vpack.c.bf16 %v1819_v37, %v1819_v37 }
 0x9a9   :  { %v1816_v42 = vpop.f32.mrf.mxu2 }
 0x9aa   :  { %1893 = vmatmul.bf16.vlgmr.msra.gmra.mxu3 %v1820_v41 }
 0x9ab   :  { %v1926_v45 = vpop.f32.mrf.mxu1  ;;  %2010 = vmatpush.bf16.msra.mxu3 %v4865_v50 }
 0x9af   :  { %2011 = vmatpush.bf16.msra.mxu3 %v4868_v52 }
 0x9b1   :  { %v1878_v47 = vpop.f32.mrf.mxu2 }
 0x9b2   :  { %v1879_v48 = vadd.f32 %v1878_v47, %v1865_v4  ;;  %v2008_v4 = vld [vmem:[#allocation2 + $0x80] sm:$0xff] }
 0x9b3   :  { %v1928_v51 = vpop.f32.mrf.mxu1  ;;  %2012 = vmatpush.bf16.msra.mxu3 %v4871_v58  ;;  %v2009_v9 = vpack.c.bf16 %v2008_v4, %v2008_v4 }
 0x9b4   :  { %v1882_v19 = vadd.f32 %v5044_v54, %v1879_v48 }
 0x9b6   :  { %v1883_v56 = vmax.f32 %v1882_v19, 0.0 }
 0x9b7   :  { %2013 = vmatpush.bf16.msra.mxu3 %v4875_v16 }
 0x9b8   :  { %v1884_v0 = vpack.c.bf16 %v1883_v56, %v1883_v56 }
 0x9b9   :  { %v1880_v15 = vpop.f32.mrf.mxu2 }
 0x9ba   :  { %1906 = vmatmul.bf16.vlgmr.msrb.gmra.mxu0 %v1884_v0  ;;  %1957 = vmatmul.bf16.vlgmr.msrb.gmra.mxu3 %v1884_v0 }
 0x9bb   :  { %2014 = vmatpush.bf16.msra.mxu3 %v4878_v55  ;;  %2032 = vmatpush.bf16.msrb.mxu0 %v4015_v7 }
 0x9bf   :  { %2015 = vmatpush.bf16.msra.mxu3 %v4882_v23  ;;  %2033 = vmatpush.bf16.msrb.mxu0 %v4885_v26 }
 0x9c1   :  { %v1942_v22 = vpop.f32.mrf.mxu2 }
 0x9c2   :  { %v1943_v21 = vadd.f32 %v1942_v22, %v1926_v45  ;;  %v5095_v45 = vld [vmem:[%s5705_s9] ss:$0 sm:$0xff] }
 0x9c3   :  { %2016 = vmatpush.bf16.msra.mxu3 %v4888_v5 }
 0x9c4   :  { %v1946_v39 = vadd.f32 %v4972_v24, %v1943_v21 }
 0x9c6   :  { %v1947_v61 = vmax.f32 %v1946_v39, 0.0 }
 0x9c7   :  { %2017 = vmatpush.bf16.msra.mxu3 %v4892_v36 }
 0x9c8   :  { %v1948_v10 = vpack.c.bf16 %v1947_v61, %v1947_v61 }
 0x9c9   :  { %v1944_v11 = vpop.f32.mrf.mxu2 }
 0x9ca   :  { %1970 = vmatmul.bf16.vlgmr.msra.gmra.mxu0 %v1948_v10  ;;  %2018 = vmatmul.bf16.vlgmr.msra.gmra.mxu3 %v1948_v10 }
 0x9cb   :  { %2084 = vmatpush.bf16.msrb.mxu3 %v4976_v18  ;;  %2071 = vmatpush.bf16.msra.mxu0 %v4979_v28 }
 0x9cf   :  { %2085 = vmatpush.bf16.msrb.mxu3 %v4982_v30  ;;  %2072 = vmatpush.bf16.msra.mxu0 %v4985_v31 }
 0x9d3   :  { %2086 = vmatpush.bf16.msrb.mxu3 %v4988_v63  ;;  %2073 = vmatpush.bf16.msra.mxu0 %v4991_v59 }
 0x9d7   :  { %2087 = vmatpush.bf16.msrb.mxu3 %v4994_v60  ;;  %2074 = vmatpush.bf16.msra.mxu0 %v4997_v8 }
 0x9da   :  { %3410 = vmatmul.msk.bf16.vlgmr.msrb.gmra.mxu0 %vm265_vm1, %v2009_v9 }
 0x9db   :  { %2088 = vmatpush.bf16.msrb.mxu3 %v5000_v25  ;;  %2075 = vmatpush.bf16.msra.mxu0 %v5004_v53 }
 0x9df   :  { %2089 = vmatpush.bf16.msrb.mxu3 %v5007_v20  ;;  %2076 = vmatpush.bf16.msra.mxu0 %v5010_v62 }
 0x9e3   :  { %2090 = vmatpush.bf16.msrb.mxu3 %v5068_v32  ;;  %2077 = vmatpush.bf16.msra.mxu0 %v5014_v12 }
 0x9e7   :  { %2091 = vmatpush.bf16.msrb.mxu3 %v5072_v34  ;;  %2078 = vmatpush.bf16.msra.mxu0 %v5019_v3 }
 0x9eb   :  { %2148 = vmatpush.bf16.msra.mxu3 %v4911_v57  ;;  %2135 = vmatpush.bf16.msrb.mxu0 %v4847_v33 }
 0x9ef   :  { %2149 = vmatpush.bf16.msra.mxu3 %v4916_v1  ;;  %2136 = vmatpush.bf16.msrb.mxu0 %v4919_v13 }
 0x9f3   :  { %2150 = vmatpush.bf16.msra.mxu3 %v4922_v27  ;;  %2137 = vmatpush.bf16.msrb.mxu0 %v4925_v38 }
 0x9f7   :  { %2151 = vmatpush.bf16.msra.mxu3 %v4928_v40  ;;  %2138 = vmatpush.bf16.msrb.mxu0 %v4931_v43 }
 0x9fb   :  { %2152 = vmatpush.bf16.msra.mxu3 %v4934_v44  ;;  %2139 = vmatpush.bf16.msrb.mxu0 %v4937_v2 }
 0x9ff   :  { %2153 = vmatpush.bf16.msra.mxu3 %v4940_v6  ;;  %2140 = vmatpush.bf16.msrb.mxu0 %v4943_v46 }
 0xa03   :  { %2154 = vmatpush.bf16.msra.mxu3 %v4946_v14  ;;  %2141 = vmatpush.bf16.msrb.mxu0 %v4949_v49 }
 0xa07   :  { %2155 = vmatpush.bf16.msra.mxu3 %v4952_v17  ;;  %2142 = vmatpush.bf16.msrb.mxu0 %v4955_v29 }
 0xa2d   :  { %v1894_v35 = vpop.f32.mrf.mxu3 }
 0xa35   :  { %v1896_v37 = vpop.f32.mrf.mxu3 }
 0xa37   :  { %v1907_v41 = vpop.f32.mrf.mxu0 }
 0xa38   :  { %v1908_v42 = vadd.f32 %v1907_v41, %v1894_v35 }
 0xa3a   :  { %v1911_v47 = vadd.f32 %v5095_v45, %v1908_v42 }
 0xa3c   :  { %v1912_v48 = vmax.f32 %v1911_v47, 0.0 }
 0xa3d   :  { %v1958_v51 = vpop.f32.mrf.mxu3 }
 0xa3e   :  { %v1913_v19 = vpack.c.bf16 %v1912_v48, %v1912_v48  ;;  %v2101_v48 = vld [vmem:[#allocation2 + $0x88] sm:$0xff] }
 0xa3f   :  { %v1909_v56 = vpop.f32.mrf.mxu0 }
 0xa40   :  { %1986 = vmatmul.bf16.vlgmr.msrb.gmra.mxu2 %v1913_v19 }
 0xa41   :  { %2103 = vmatpush.bf16.msrb.mxu2 %v4865_v50 }
 0xa45   :  { %v1960_v0 = vpop.f32.mrf.mxu3  ;;  %2104 = vmatpush.bf16.msrb.mxu2 %v4868_v52 }
 0xa47   :  { %v1971_v15 = vpop.f32.mrf.mxu0 }
 0xa48   :  { %v1972_v22 = vadd.f32 %v1971_v15, %v1958_v51  ;;  %v2102_v51 = vpack.c.bf16 %v2101_v48, %v2101_v48 }
 0xa49   :  { %2105 = vmatpush.bf16.msrb.mxu2 %v4871_v58 }
 0xa4a   :  { %v1975_v21 = vadd.f32 %v5044_v54, %v1972_v22 }
 0xa4c   :  { %v1976_v39 = vmax.f32 %v1975_v21, 0.0 }
 0xa4d   :  { %v2019_v61 = vpop.f32.mrf.mxu3  ;;  %2106 = vmatpush.bf16.msrb.mxu2 %v4875_v16 }
 0xa4e   :  { %v1977_v10 = vpack.c.bf16 %v1976_v39, %v1976_v39 }
 0xa4f   :  { %v1973_v11 = vpop.f32.mrf.mxu0 }
 0xa50   :  { %1999 = vmatmul.bf16.vlgmr.msra.gmra.mxu1 %v1977_v10  ;;  %2050 = vmatmul.bf16.vlgmr.msra.gmra.mxu2 %v1977_v10 }
 0xa51   :  { %2107 = vmatpush.bf16.msrb.mxu2 %v4878_v55  ;;  %2125 = vmatpush.bf16.msra.mxu1 %v4015_v7 }
 0xa55   :  { %v2021_v4 = vpop.f32.mrf.mxu3  ;;  %2108 = vmatpush.bf16.msrb.mxu2 %v4882_v23  ;;  %2126 = vmatpush.bf16.msra.mxu1 %v4885_v26 }
 0xa57   :  { %v2035_v9 = vpop.f32.mrf.mxu0 }
 0xa58   :  { %v2036_v35 = vadd.f32 %v2035_v9, %v2019_v61 }
 0xa59   :  { %2109 = vmatpush.bf16.msrb.mxu2 %v4888_v5 }
 0xa5a   :  { %v2039_v37 = vadd.f32 %v4972_v24, %v2036_v35 }
 0xa5c   :  { %v2040_v41 = vmax.f32 %v2039_v37, 0.0 }
 0xa5d   :  { %2110 = vmatpush.bf16.msrb.mxu2 %v4892_v36 }
 0xa5e   :  { %v2041_v42 = vpack.c.bf16 %v2040_v41, %v2040_v41 }
 0xa5f   :  { %v2037_v47 = vpop.f32.mrf.mxu0 }
 0xa60   :  { %2063 = vmatmul.bf16.vlgmr.msrb.gmra.mxu1 %v2041_v42  ;;  %2111 = vmatmul.bf16.vlgmr.msrb.gmra.mxu2 %v2041_v42 }
 0xa61   :  { %2177 = vmatpush.bf16.msra.mxu2 %v4976_v18  ;;  %2164 = vmatpush.bf16.msrb.mxu1 %v4979_v28 }
 0xa65   :  { %2178 = vmatpush.bf16.msra.mxu2 %v4982_v30  ;;  %2165 = vmatpush.bf16.msrb.mxu1 %v4985_v31 }
 0xa69   :  { %2179 = vmatpush.bf16.msra.mxu2 %v4988_v63  ;;  %2166 = vmatpush.bf16.msrb.mxu1 %v4991_v59 }
 0xa6d   :  { %2180 = vmatpush.bf16.msra.mxu2 %v4994_v60  ;;  %2167 = vmatpush.bf16.msrb.mxu1 %v4997_v8 }
 0xa70   :  { %3411 = vmatmul.msk.bf16.vlgmr.msra.gmra.mxu1 %vm265_vm1, %v2102_v51 }
 0xa71   :  { %2181 = vmatpush.bf16.msra.mxu2 %v5000_v25  ;;  %2168 = vmatpush.bf16.msrb.mxu1 %v5004_v53 }
 0xa75   :  { %2182 = vmatpush.bf16.msra.mxu2 %v5007_v20  ;;  %2169 = vmatpush.bf16.msrb.mxu1 %v5010_v62 }
 0xa79   :  { %2183 = vmatpush.bf16.msra.mxu2 %v5068_v32  ;;  %2170 = vmatpush.bf16.msrb.mxu1 %v5014_v12 }
 0xa7d   :  { %2184 = vmatpush.bf16.msra.mxu2 %v5072_v34  ;;  %2171 = vmatpush.bf16.msrb.mxu1 %v5019_v3 }
 0xa81   :  { %2241 = vmatpush.bf16.msrb.mxu2 %v4911_v57  ;;  %2228 = vmatpush.bf16.msra.mxu1 %v4847_v33 }
 0xa85   :  { %2242 = vmatpush.bf16.msrb.mxu2 %v4916_v1  ;;  %2229 = vmatpush.bf16.msra.mxu1 %v4919_v13 }
 0xa89   :  { %2243 = vmatpush.bf16.msrb.mxu2 %v4922_v27  ;;  %2230 = vmatpush.bf16.msra.mxu1 %v4925_v38 }
 0xa8d   :  { %2244 = vmatpush.bf16.msrb.mxu2 %v4928_v40  ;;  %2231 = vmatpush.bf16.msra.mxu1 %v4931_v43 }
 0xa91   :  { %2245 = vmatpush.bf16.msrb.mxu2 %v4934_v44  ;;  %2232 = vmatpush.bf16.msra.mxu1 %v4937_v2 }
 0xa95   :  { %2246 = vmatpush.bf16.msrb.mxu2 %v4940_v6  ;;  %2233 = vmatpush.bf16.msra.mxu1 %v4943_v46 }
 0xa99   :  { %2247 = vmatpush.bf16.msrb.mxu2 %v4946_v14  ;;  %2234 = vmatpush.bf16.msra.mxu1 %v4949_v49 }
 0xa9d   :  { %2248 = vmatpush.bf16.msrb.mxu2 %v4952_v17  ;;  %2235 = vmatpush.bf16.msra.mxu1 %v4955_v29 }
 0xac3   :  { %v1987_v19 = vpop.f32.mrf.mxu2 }
 0xacb   :  { %v1989_v56 = vpop.f32.mrf.mxu2 }
 0xacd   :  { %v2000_v0 = vpop.f32.mrf.mxu1 }
 0xace   :  { %v2001_v15 = vadd.f32 %v2000_v0, %v1987_v19 }
 0xad0   :  { %v2004_v22 = vadd.f32 %v5095_v45, %v2001_v15 }
 0xad2   :  { %v2005_v21 = vmax.f32 %v2004_v22, 0.0 }
 0xad3   :  { %v2051_v39 = vpop.f32.mrf.mxu2 }
 0xad4   :  { %v2006_v61 = vpack.c.bf16 %v2005_v21, %v2005_v21  ;;  %v2194_v21 = vld [vmem:[#allocation2 + $0x90] sm:$0xff] }
 0xad5   :  { %v2002_v10 = vpop.f32.mrf.mxu1 }
 0xad6   :  { %2079 = vmatmul.bf16.vlgmr.msra.gmra.mxu0 %v2006_v61 }
 0xad7   :  { %2196 = vmatpush.bf16.msra.mxu0 %v4865_v50 }
 0xadb   :  { %v2053_v11 = vpop.f32.mrf.mxu2  ;;  %2197 = vmatpush.bf16.msra.mxu0 %v4868_v52 }
 0xadd   :  { %v2064_v4 = vpop.f32.mrf.mxu1 }
 0xade   :  { %v2065_v9 = vadd.f32 %v2064_v4, %v2051_v39  ;;  %v2195_v39 = vpack.c.bf16 %v2194_v21, %v2194_v21 }
 0xadf   :  { %2198 = vmatpush.bf16.msra.mxu0 %v4871_v58 }
 0xae0   :  { %v2068_v35 = vadd.f32 %v5044_v54, %v2065_v9 }
 0xae2   :  { %v2069_v37 = vmax.f32 %v2068_v35, 0.0 }
 0xae3   :  { %v2112_v41 = vpop.f32.mrf.mxu2  ;;  %2199 = vmatpush.bf16.msra.mxu0 %v4875_v16 }
 0xae4   :  { %v2070_v42 = vpack.c.bf16 %v2069_v37, %v2069_v37 }
 0xae5   :  { %v2066_v47 = vpop.f32.mrf.mxu1 }
 0xae6   :  { %2092 = vmatmul.bf16.vlgmr.msrb.gmra.mxu3 %v2070_v42  ;;  %2143 = vmatmul.bf16.vlgmr.msrb.gmra.mxu0 %v2070_v42 }
 0xae7   :  { %2200 = vmatpush.bf16.msra.mxu0 %v4878_v55  ;;  %2218 = vmatpush.bf16.msrb.mxu3 %v4015_v7 }
 0xaeb   :  { %v2114_v48 = vpop.f32.mrf.mxu2  ;;  %2201 = vmatpush.bf16.msra.mxu0 %v4882_v23  ;;  %2219 = vmatpush.bf16.msrb.mxu3 %v4885_v26 }
 0xaed   :  { %v2128_v51 = vpop.f32.mrf.mxu1 }
 0xaee   :  { %v2129_v19 = vadd.f32 %v2128_v51, %v2112_v41 }
 0xaef   :  { %2202 = vmatpush.bf16.msra.mxu0 %v4888_v5 }
 0xaf0   :  { %v2132_v56 = vadd.f32 %v4972_v24, %v2129_v19 }
 0xaf2   :  { %v2133_v0 = vmax.f32 %v2132_v56, 0.0 }
 0xaf3   :  { %2203 = vmatpush.bf16.msra.mxu0 %v4892_v36 }
 0xaf4   :  { %v2134_v15 = vpack.c.bf16 %v2133_v0, %v2133_v0 }
 0xaf5   :  { %v2130_v22 = vpop.f32.mrf.mxu1 }
 0xaf6   :  { %2156 = vmatmul.bf16.vlgmr.msra.gmra.mxu3 %v2134_v15  ;;  %2204 = vmatmul.bf16.vlgmr.msra.gmra.mxu0 %v2134_v15 }
 0xaf7   :  { %2270 = vmatpush.bf16.msrb.mxu0 %v4976_v18  ;;  %2257 = vmatpush.bf16.msra.mxu3 %v4979_v28 }
 0xafb   :  { %2271 = vmatpush.bf16.msrb.mxu0 %v4982_v30  ;;  %2258 = vmatpush.bf16.msra.mxu3 %v4985_v31 }
 0xaff   :  { %2272 = vmatpush.bf16.msrb.mxu0 %v4988_v63  ;;  %2259 = vmatpush.bf16.msra.mxu3 %v4991_v59 }
 0xb03   :  { %2273 = vmatpush.bf16.msrb.mxu0 %v4994_v60  ;;  %2260 = vmatpush.bf16.msra.mxu3 %v4997_v8 }
 0xb06   :  { %3412 = vmatmul.msk.bf16.vlgmr.msrb.gmra.mxu3 %vm265_vm1, %v2195_v39 }
 0xb07   :  { %2274 = vmatpush.bf16.msrb.mxu0 %v5000_v25  ;;  %2261 = vmatpush.bf16.msra.mxu3 %v5004_v53 }
 0xb0b   :  { %2275 = vmatpush.bf16.msrb.mxu0 %v5007_v20  ;;  %2262 = vmatpush.bf16.msra.mxu3 %v5010_v62 }
 0xb0f   :  { %2276 = vmatpush.bf16.msrb.mxu0 %v5068_v32  ;;  %2263 = vmatpush.bf16.msra.mxu3 %v5014_v12 }
 0xb13   :  { %2277 = vmatpush.bf16.msrb.mxu0 %v5072_v34  ;;  %2264 = vmatpush.bf16.msra.mxu3 %v5019_v3 }
 0xb17   :  { %2334 = vmatpush.bf16.msra.mxu0 %v4911_v57  ;;  %2321 = vmatpush.bf16.msrb.mxu3 %v4847_v33 }
 0xb1b   :  { %2335 = vmatpush.bf16.msra.mxu0 %v4916_v1  ;;  %2322 = vmatpush.bf16.msrb.mxu3 %v4919_v13 }
 0xb1f   :  { %2336 = vmatpush.bf16.msra.mxu0 %v4922_v27  ;;  %2323 = vmatpush.bf16.msrb.mxu3 %v4925_v38 }
 0xb23   :  { %2337 = vmatpush.bf16.msra.mxu0 %v4928_v40  ;;  %2324 = vmatpush.bf16.msrb.mxu3 %v4931_v43 }
 0xb27   :  { %2338 = vmatpush.bf16.msra.mxu0 %v4934_v44  ;;  %2325 = vmatpush.bf16.msrb.mxu3 %v4937_v2 }
 0xb2b   :  { %2339 = vmatpush.bf16.msra.mxu0 %v4940_v6  ;;  %2326 = vmatpush.bf16.msrb.mxu3 %v4943_v46 }
 0xb2f   :  { %2340 = vmatpush.bf16.msra.mxu0 %v4946_v14  ;;  %2327 = vmatpush.bf16.msrb.mxu3 %v4949_v49 }
 0xb33   :  { %2341 = vmatpush.bf16.msra.mxu0 %v4952_v17  ;;  %2328 = vmatpush.bf16.msrb.mxu3 %v4955_v29 }
 0xb53   :  { %v2080_v61 = vpop.f32.mrf.mxu0 }
 0xb5b   :  { %v2082_v10 = vpop.f32.mrf.mxu0 }
 0xb63   :  { %v2144_v11 = vpop.f32.mrf.mxu0 }
 0xb69   :  { %v2093_v4 = vpop.f32.mrf.mxu3 }
 0xb6a   :  { %v2094_v9 = vadd.f32 %v2093_v4, %v2080_v61 }
 0xb6b   :  { %v2146_v35 = vpop.f32.mrf.mxu0 }
 0xb6c   :  { %v2097_v37 = vadd.f32 %v5095_v45, %v2094_v9  ;;  %v2287_v35 = vld [vmem:[#allocation2 + $0x98] sm:$0xff] }
 0xb6e   :  { %v2098_v41 = vmax.f32 %v2097_v37, 0.0  ;;  %v2288_v37 = vpack.c.bf16 %v2287_v35, %v2287_v35 }
 0xb70   :  { %v2099_v42 = vpack.c.bf16 %v2098_v41, %v2098_v41 }
 0xb71   :  { %v2095_v47 = vpop.f32.mrf.mxu3 }
 0xb72   :  { %2172 = vmatmul.bf16.vlgmr.msrb.gmra.mxu1 %v2099_v42 }
 0xb73   :  { %v2205_v48 = vpop.f32.mrf.mxu0  ;;  %2289 = vmatpush.bf16.msrb.mxu1 %v4865_v50 }
 0xb77   :  { %2290 = vmatpush.bf16.msrb.mxu1 %v4868_v52 }
 0xb79   :  { %v2157_v51 = vpop.f32.mrf.mxu3 }
 0xb7a   :  { %v2158_v19 = vadd.f32 %v2157_v51, %v2144_v11 }
 0xb7b   :  { %v2207_v56 = vpop.f32.mrf.mxu0  ;;  %2291 = vmatpush.bf16.msrb.mxu1 %v4871_v58 }
 0xb7c   :  { %v2161_v0 = vadd.f32 %v5044_v54, %v2158_v19 }
 0xb7e   :  { %v2162_v15 = vmax.f32 %v2161_v0, 0.0 }
 0xb7f   :  { %2292 = vmatpush.bf16.msrb.mxu1 %v4875_v16 }
 0xb80   :  { %v2163_v22 = vpack.c.bf16 %v2162_v15, %v2162_v15 }
 0xb81   :  { %v2159_v21 = vpop.f32.mrf.mxu3 }
 0xb82   :  { %2185 = vmatmul.bf16.vlgmr.msra.gmra.mxu2 %v2163_v22  ;;  %2236 = vmatmul.bf16.vlgmr.msra.gmra.mxu1 %v2163_v22 }
 0xb83   :  { %2293 = vmatpush.bf16.msrb.mxu1 %v4878_v55  ;;  %2311 = vmatpush.bf16.msra.mxu2 %v4015_v7 }
 0xb87   :  { %2294 = vmatpush.bf16.msrb.mxu1 %v4882_v23  ;;  %2312 = vmatpush.bf16.msra.mxu2 %v4885_v26 }
 0xb89   :  { %v2221_v39 = vpop.f32.mrf.mxu3 }
 0xb8a   :  { %v2222_v61 = vadd.f32 %v2221_v39, %v2205_v48 }
 0xb8b   :  { %2295 = vmatpush.bf16.msrb.mxu1 %v4888_v5 }
 0xb8c   :  { %v2225_v10 = vadd.f32 %v4972_v24, %v2222_v61 }
 0xb8e   :  { %v2226_v11 = vmax.f32 %v2225_v10, 0.0 }
 0xb8f   :  { %2296 = vmatpush.bf16.msrb.mxu1 %v4892_v36 }
 0xb90   :  { %v2227_v4 = vpack.c.bf16 %v2226_v11, %v2226_v11 }
 0xb91   :  { %v2223_v9 = vpop.f32.mrf.mxu3 }
 0xb92   :  { %2249 = vmatmul.bf16.vlgmr.msrb.gmra.mxu2 %v2227_v4  ;;  %2297 = vmatmul.bf16.vlgmr.msrb.gmra.mxu1 %v2227_v4 }
 0xb93   :  { %2363 = vmatpush.bf16.msra.mxu1 %v4976_v18  ;;  %2350 = vmatpush.bf16.msrb.mxu2 %v4979_v28 }
 0xb97   :  { %2364 = vmatpush.bf16.msra.mxu1 %v4982_v30  ;;  %2351 = vmatpush.bf16.msrb.mxu2 %v4985_v31 }
 0xb9b   :  { %2365 = vmatpush.bf16.msra.mxu1 %v4988_v63  ;;  %2352 = vmatpush.bf16.msrb.mxu2 %v4991_v59 }
 0xb9f   :  { %2366 = vmatpush.bf16.msra.mxu1 %v4994_v60  ;;  %2353 = vmatpush.bf16.msrb.mxu2 %v4997_v8 }
 0xba2   :  { %3413 = vmatmul.msk.bf16.vlgmr.msra.gmra.mxu2 %vm265_vm1, %v2288_v37 }
 0xba3   :  { %2367 = vmatpush.bf16.msra.mxu1 %v5000_v25  ;;  %2354 = vmatpush.bf16.msrb.mxu2 %v5004_v53 }
 0xba7   :  { %2368 = vmatpush.bf16.msra.mxu1 %v5007_v20  ;;  %2355 = vmatpush.bf16.msrb.mxu2 %v5010_v62 }
 0xbab   :  { %2369 = vmatpush.bf16.msra.mxu1 %v5068_v32  ;;  %2356 = vmatpush.bf16.msrb.mxu2 %v5014_v12 }
 0xbaf   :  { %2370 = vmatpush.bf16.msra.mxu1 %v5072_v34  ;;  %2357 = vmatpush.bf16.msrb.mxu2 %v5019_v3 }
 0xbb3   :  { %2427 = vmatpush.bf16.msrb.mxu1 %v4911_v57  ;;  %2414 = vmatpush.bf16.msra.mxu2 %v4847_v33 }
 0xbb7   :  { %2428 = vmatpush.bf16.msrb.mxu1 %v4916_v1  ;;  %2415 = vmatpush.bf16.msra.mxu2 %v4919_v13 }
 0xbbb   :  { %2429 = vmatpush.bf16.msrb.mxu1 %v4922_v27  ;;  %2416 = vmatpush.bf16.msra.mxu2 %v4925_v38 }
 0xbbf   :  { %2430 = vmatpush.bf16.msrb.mxu1 %v4928_v40  ;;  %2417 = vmatpush.bf16.msra.mxu2 %v4931_v43 }
 0xbc3   :  { %2431 = vmatpush.bf16.msrb.mxu1 %v4934_v44  ;;  %2418 = vmatpush.bf16.msra.mxu2 %v4937_v2 }
 0xbc7   :  { %2432 = vmatpush.bf16.msrb.mxu1 %v4940_v6  ;;  %2419 = vmatpush.bf16.msra.mxu2 %v4943_v46 }
 0xbcb   :  { %2433 = vmatpush.bf16.msrb.mxu1 %v4946_v14  ;;  %2420 = vmatpush.bf16.msra.mxu2 %v4949_v49 }
 0xbcf   :  { %2434 = vmatpush.bf16.msrb.mxu1 %v4952_v17  ;;  %2421 = vmatpush.bf16.msra.mxu2 %v4955_v29 }
 0xbef   :  { %v2173_v33 = vpop.f32.mrf.mxu1 }
 0xbf7   :  { %v2175_v41 = vpop.f32.mrf.mxu1 }
 0xbf8   :  { %v5294_v41 = vld [vmem:[#allocation7 + $0x20] sm:$0xff] }
 0xbff   :  { %v2237_v42 = vpop.f32.mrf.mxu1 }
 0xc05   :  { %v2186_v47 = vpop.f32.mrf.mxu2 }
 0xc06   :  { %v2187_v48 = vadd.f32 %v2186_v47, %v2173_v33 }
 0xc07   :  { %v2239_v51 = vpop.f32.mrf.mxu1 }
 0xc08   :  { %v2190_v19 = vadd.f32 %v5095_v45, %v2187_v48  ;;  %v5297_v48 = vld [vmem:[#allocation7 + $0x18] sm:$0xff] }
 0xc0a   :  { %v2191_v56 = vmax.f32 %v2190_v19, 0.0  ;;  %v5301_v19 = vld [vmem:[#allocation7 + $0x10] sm:$0xff] }
 0xc0c   :  { %v2192_v0 = vpack.c.bf16 %v2191_v56, %v2191_v56  ;;  %v5304_v56 = vld [vmem:[#allocation5] sm:$0xff] }
 0xc0d   :  { %v2188_v15 = vpop.f32.mrf.mxu2 }
 0xc0e   :  { %2265 = vmatmul.bf16.vlgmr.msra.gmra.mxu3 %v2192_v0 }
 0xc0f   :  { %v2298_v22 = vpop.f32.mrf.mxu1  ;;  %2382 = vmatpush.bf16.msra.mxu3 %v4865_v50 }
 0xc13   :  { %2383 = vmatpush.bf16.msra.mxu3 %v4868_v52 }
 0xc15   :  { %v2250_v21 = vpop.f32.mrf.mxu2 }
 0xc16   :  { %v2251_v39 = vadd.f32 %v2250_v21, %v2237_v42 }
 0xc17   :  { %v2300_v61 = vpop.f32.mrf.mxu1  ;;  %2384 = vmatpush.bf16.msra.mxu3 %v4871_v58 }
 0xc18   :  { %v2254_v10 = vadd.f32 %v5044_v54, %v2251_v39  ;;  %v5311_v61 = vld [vmem:[#allocation7] sm:$0xff] }
 0xc1a   :  { %v2255_v11 = vmax.f32 %v2254_v10, 0.0 }
 0xc1b   :  { %2385 = vmatpush.bf16.msra.mxu3 %v4875_v16 }
 0xc1c   :  { %v2256_v4 = vpack.c.bf16 %v2255_v11, %v2255_v11 }
 0xc1d   :  { %v2252_v9 = vpop.f32.mrf.mxu2 }
 0xc1e   :  { %2278 = vmatmul.bf16.vlgmr.msrb.gmra.mxu0 %v2256_v4  ;;  %2329 = vmatmul.bf16.vlgmr.msrb.gmra.mxu3 %v2256_v4  ;;  %v5374_v9 = vld [vmem:[#allocation10] sm:$0xff] }
 0xc1f   :  { %2386 = vmatpush.bf16.msra.mxu3 %v4878_v55  ;;  %2404 = vmatpush.bf16.msrb.mxu0 %v4015_v7  ;;  %v2380_v55 = vld [vmem:[#allocation2 + $0xa0] sm:$0xff] }
 0xc23   :  { %2387 = vmatpush.bf16.msra.mxu3 %v4882_v23  ;;  %2405 = vmatpush.bf16.msrb.mxu0 %v4885_v26  ;;  %v2381_v23 = vpack.c.bf16 %v2380_v55, %v2380_v55  ;;  %v5266_v26 = vld [vmem:[#allocation10 + $0x38] sm:$0xff] }
 0xc25   :  { %v2314_v50 = vpop.f32.mrf.mxu2 }
 0xc26   :  { %v2315_v52 = vadd.f32 %v2314_v50, %v2298_v22  ;;  %v5307_v22 = vld [vmem:[#allocation7 + $0x8] sm:$0xff] }
 0xc27   :  { %2388 = vmatpush.bf16.msra.mxu3 %v4888_v5 }
 0xc28   :  { %v2318_v58 = vadd.f32 %v4972_v24, %v2315_v52 }
 0xc2a   :  { %v2319_v35 = vmax.f32 %v2318_v58, 0.0 }
 0xc2b   :  { %2389 = vmatpush.bf16.msra.mxu3 %v4892_v36 }
 0xc2c   :  { %v2320_v16 = vpack.c.bf16 %v2319_v35, %v2319_v35 }
 0xc2d   :  { %v2316_v37 = vpop.f32.mrf.mxu2 }
 0xc2e   :  { %2342 = vmatmul.bf16.vlgmr.msra.gmra.mxu0 %v2320_v16  ;;  %2390 = vmatmul.bf16.vlgmr.msra.gmra.mxu3 %v2320_v16 }
 0xc2f   :  { %2456 = vmatpush.bf16.msrb.mxu3 %v4976_v18  ;;  %2443 = vmatpush.bf16.msra.mxu0 %v4979_v28 }
 0xc33   :  { %2457 = vmatpush.bf16.msrb.mxu3 %v4982_v30  ;;  %2444 = vmatpush.bf16.msra.mxu0 %v4985_v31 }
 0xc37   :  { %2458 = vmatpush.bf16.msrb.mxu3 %v4988_v63  ;;  %2445 = vmatpush.bf16.msra.mxu0 %v4991_v59 }
 0xc3b   :  { %2459 = vmatpush.bf16.msrb.mxu3 %v4994_v60  ;;  %2446 = vmatpush.bf16.msra.mxu0 %v4997_v8 }
 0xc3e   :  { %3414 = vmatmul.msk.bf16.vlgmr.msrb.gmra.mxu0 %vm265_vm1, %v2381_v23 }
 0xc3f   :  { %2460 = vmatpush.bf16.msrb.mxu3 %v5000_v25  ;;  %2447 = vmatpush.bf16.msra.mxu0 %v5004_v53 }
 0xc43   :  { %2461 = vmatpush.bf16.msrb.mxu3 %v5007_v20  ;;  %2448 = vmatpush.bf16.msra.mxu0 %v5010_v62 }
 0xc47   :  { %2462 = vmatpush.bf16.msrb.mxu3 %v5068_v32  ;;  %2449 = vmatpush.bf16.msra.mxu0 %v5014_v12 }
 0xc4b   :  { %2463 = vmatpush.bf16.msrb.mxu3 %v5072_v34  ;;  %2450 = vmatpush.bf16.msra.mxu0 %v5019_v3 }
 0xc4f   :  { %2520 = vmatpush.bf16.msra.mxu3 %v4911_v57  ;;  %2507 = vmatpush.bf16.msrb.mxu0 %v5266_v26 }
 0xc53   :  { %2521 = vmatpush.bf16.msra.mxu3 %v4916_v1  ;;  %2508 = vmatpush.bf16.msrb.mxu0 %v4919_v13 }
 0xc57   :  { %2522 = vmatpush.bf16.msra.mxu3 %v4922_v27  ;;  %2509 = vmatpush.bf16.msrb.mxu0 %v4925_v38 }
 0xc5b   :  { %2523 = vmatpush.bf16.msra.mxu3 %v4928_v40  ;;  %2510 = vmatpush.bf16.msrb.mxu0 %v4931_v43 }
 0xc5f   :  { %2524 = vmatpush.bf16.msra.mxu3 %v4934_v44  ;;  %2511 = vmatpush.bf16.msrb.mxu0 %v4937_v2  ;;  %v5284_v44 = vld [vmem:[#allocation7 + $0x38] sm:$0xff] }
 0xc63   :  { %2525 = vmatpush.bf16.msra.mxu3 %v4940_v6  ;;  %2512 = vmatpush.bf16.msrb.mxu0 %v4943_v46  ;;  %v5287_v6 = vld [vmem:[#allocation7 + $0x30] sm:$0xff] }
 0xc67   :  { %2526 = vmatpush.bf16.msra.mxu3 %v4946_v14  ;;  %2513 = vmatpush.bf16.msrb.mxu0 %v4949_v49  ;;  %v5290_v49 = vld [vmem:[#allocation7 + $0x28] sm:$0xff] }
 0xc6b   :  { %2527 = vmatpush.bf16.msra.mxu3 %v4952_v17  ;;  %2514 = vmatpush.bf16.msrb.mxu0 %v4955_v29 }
 0xc91   :  { %v2266_v5 = vpop.f32.mrf.mxu3 }
 0xc99   :  { %v2268_v36 = vpop.f32.mrf.mxu3 }
 0xc9b   :  { %v2279_v57 = vpop.f32.mrf.mxu0 }
 0xc9c   :  { %v2280_v1 = vadd.f32 %v2279_v57, %v2266_v5 }
 0xc9e   :  { %v2283_v13 = vadd.f32 %v5095_v45, %v2280_v1 }
 0xca0   :  { %v2284_v27 = vmax.f32 %v2283_v13, 0.0 }
 0xca1   :  { %v2330_v38 = vpop.f32.mrf.mxu3 }
 0xca2   :  { %v2285_v40 = vpack.c.bf16 %v2284_v27, %v2284_v27 }
 0xca3   :  { %v2281_v43 = vpop.f32.mrf.mxu0 }
 0xca4   :  { %2358 = vmatmul.bf16.vlgmr.msrb.gmra.mxu2 %v2285_v40 }
 0xca5   :  { %2475 = vmatpush.bf16.msrb.mxu2 %v5284_v44 }
 0xca9   :  { %v2332_v2 = vpop.f32.mrf.mxu3  ;;  %2476 = vmatpush.bf16.msrb.mxu2 %v5287_v6 }
 0xcab   :  { %v2343_v46 = vpop.f32.mrf.mxu0 }
 0xcac   :  { %v2344_v14 = vadd.f32 %v2343_v46, %v2330_v38 }
 0xcad   :  { %2477 = vmatpush.bf16.msrb.mxu2 %v5290_v49 }
 0xcae   :  { %v2347_v17 = vadd.f32 %v5044_v54, %v2344_v14 }
 0xcb0   :  { %v2348_v29 = vmax.f32 %v2347_v17, 0.0 }
 0xcb1   :  { %v2391_v33 = vpop.f32.mrf.mxu3  ;;  %2478 = vmatpush.bf16.msrb.mxu2 %v5294_v41 }
 0xcb2   :  { %v2349_v42 = vpack.c.bf16 %v2348_v29, %v2348_v29 }
 0xcb3   :  { %v2345_v47 = vpop.f32.mrf.mxu0 }
 0xcb4   :  { %2371 = vmatmul.bf16.vlgmr.msra.gmra.mxu1 %v2349_v42  ;;  %2422 = vmatmul.bf16.vlgmr.msra.gmra.mxu2 %v2349_v42  ;;  %v5395_v42 = vld [vmem:[#allocation11 + $0x38] sm:$0xff] }
 0xcb5   :  { %2479 = vmatpush.bf16.msrb.mxu2 %v5297_v48  ;;  %2497 = vmatpush.bf16.msra.mxu1 %v4015_v7 }
 0xcb9   :  { %v2393_v51 = vpop.f32.mrf.mxu3  ;;  %2480 = vmatpush.bf16.msrb.mxu2 %v5301_v19  ;;  %2498 = vmatpush.bf16.msra.mxu1 %v5304_v56 }
 0xcba   :  { %v5398_v51 = vld [vmem:[#allocation13 + $0x38] sm:$0xff] }
 0xcbb   :  { %v2407_v0 = vpop.f32.mrf.mxu0 }
 0xcbc   :  { %v2408_v15 = vadd.f32 %v2407_v0, %v2391_v33  ;;  %v5401_v0 = vld [vmem:[#allocation11 + $0x30] sm:$0xff] }
 0xcbd   :  { %2481 = vmatpush.bf16.msrb.mxu2 %v5307_v22 }
 0xcbe   :  { %v2411_v21 = vadd.f32 %v4972_v24, %v2408_v15  ;;  %v2473_v24 = vld [vmem:[#allocation2 + $0xa8] sm:$0xff]  ;;  %v5404_v15 = vld [vmem:[#allocation13 + $0x30] sm:$0xff] }
 0xcbf   :  { %v2474_v4 = vpack.c.bf16 %v2473_v24, %v2473_v24 }
 0xcc0   :  { %v2412_v39 = vmax.f32 %v2411_v21, 0.0  ;;  %v5407_v21 = vld [vmem:[#allocation11 + $0x28] sm:$0xff] }
 0xcc1   :  { %2482 = vmatpush.bf16.msrb.mxu2 %v5311_v61 }
 0xcc2   :  { %v2413_v10 = vpack.c.bf16 %v2412_v39, %v2412_v39  ;;  %v2566_v39 = vld [vmem:[#allocation2 + $0xb0] sm:$0xff] }
 0xcc3   :  { %v2409_v11 = vpop.f32.mrf.mxu0  ;;  %v2567_v24 = vpack.c.bf16 %v2566_v39, %v2566_v39 }
 0xcc4   :  { %2435 = vmatmul.bf16.vlgmr.msrb.gmra.mxu1 %v2413_v10  ;;  %2483 = vmatmul.bf16.vlgmr.msrb.gmra.mxu2 %v2413_v10  ;;  %v5410_v10 = vld [vmem:[#allocation13 + $0x28] sm:$0xff]  ;;  %v5413_v11 = vld [vmem:[#allocation11 + $0x20] sm:$0xff] }
 0xcc5   :  { %2549 = vmatpush.bf16.msra.mxu2 %v4976_v18  ;;  %2536 = vmatpush.bf16.msrb.mxu1 %v4979_v28  ;;  %v5330_v18 = vld [vmem:[#allocation8 + $0x38] sm:$0xff]  ;;  %v5335_v28 = vld [vmem:[#allocation8 + $0x30] sm:$0xff] }
 0xcc9   :  { %2550 = vmatpush.bf16.msra.mxu2 %v4982_v30  ;;  %2537 = vmatpush.bf16.msrb.mxu1 %v4985_v31  ;;  %v5338_v30 = vld [vmem:[#allocation10 + $0x30] sm:$0xff]  ;;  %v5341_v31 = vld [vmem:[#allocation8 + $0x28] sm:$0xff] }
 0xccd   :  { %2551 = vmatpush.bf16.msra.mxu2 %v4988_v63  ;;  %2538 = vmatpush.bf16.msrb.mxu1 %v4991_v59  ;;  %v5344_v63 = vld [vmem:[#allocation10 + $0x28] sm:$0xff]  ;;  %v5347_v59 = vld [vmem:[#allocation8 + $0x20] sm:$0xff] }
 0xcd1   :  { %2552 = vmatpush.bf16.msra.mxu2 %v4994_v60  ;;  %2539 = vmatpush.bf16.msrb.mxu1 %v4997_v8  ;;  %v5350_v60 = vld [vmem:[#allocation10 + $0x20] sm:$0xff]  ;;  %v5353_v8 = vld [vmem:[#allocation8 + $0x18] sm:$0xff] }
 0xcd4   :  { %3415 = vmatmul.msk.bf16.vlgmr.msra.gmra.mxu1 %vm265_vm1, %v2474_v4  ;;  %v5416_v4 = vld [vmem:[#allocation13 + $0x20] sm:$0xff] }
 0xcd5   :  { %2553 = vmatpush.bf16.msra.mxu2 %v5000_v25  ;;  %2540 = vmatpush.bf16.msrb.mxu1 %v5004_v53  ;;  %v5356_v25 = vld [vmem:[#allocation10 + $0x18] sm:$0xff]  ;;  %v5359_v53 = vld [vmem:[#allocation8 + $0x10] sm:$0xff] }
 0xcd9   :  { %2554 = vmatpush.bf16.msra.mxu2 %v5007_v20  ;;  %2541 = vmatpush.bf16.msrb.mxu1 %v5010_v62  ;;  %v5362_v20 = vld [vmem:[#allocation10 + $0x10] sm:$0xff]  ;;  %v5365_v62 = vld [vmem:[#allocation8 + $0x8] sm:$0xff] }
 0xcdd   :  { %2555 = vmatpush.bf16.msra.mxu2 %v5068_v32  ;;  %2542 = vmatpush.bf16.msrb.mxu1 %v5014_v12  ;;  %v5368_v12 = vld [vmem:[#allocation10 + $0x8] sm:$0xff] }
 0xce1   :  { %2556 = vmatpush.bf16.msra.mxu2 %v5072_v34  ;;  %2543 = vmatpush.bf16.msrb.mxu1 %v5019_v3  ;;  %v5371_v3 = vld [vmem:[#allocation8] sm:$0xff] }
 0xce5   :  { %2613 = vmatpush.bf16.msrb.mxu2 %v5330_v18  ;;  %2600 = vmatpush.bf16.msra.mxu1 %v5266_v26 }
 0xce9   :  { %2614 = vmatpush.bf16.msrb.mxu2 %v5335_v28  ;;  %2601 = vmatpush.bf16.msra.mxu1 %v5338_v30 }
 0xced   :  { %2615 = vmatpush.bf16.msrb.mxu2 %v5341_v31  ;;  %2602 = vmatpush.bf16.msra.mxu1 %v5344_v63 }
 0xcf1   :  { %2616 = vmatpush.bf16.msrb.mxu2 %v5347_v59  ;;  %2603 = vmatpush.bf16.msra.mxu1 %v5350_v60 }
 0xcf5   :  { %2617 = vmatpush.bf16.msrb.mxu2 %v5353_v8  ;;  %2604 = vmatpush.bf16.msra.mxu1 %v5356_v25 }
 0xcf9   :  { %2618 = vmatpush.bf16.msrb.mxu2 %v5359_v53  ;;  %2605 = vmatpush.bf16.msra.mxu1 %v5362_v20 }
 0xcfd   :  { %2619 = vmatpush.bf16.msrb.mxu2 %v5365_v62  ;;  %2606 = vmatpush.bf16.msra.mxu1 %v5368_v12 }
 0xd01   :  { %2620 = vmatpush.bf16.msrb.mxu2 %v5371_v3  ;;  %2607 = vmatpush.bf16.msra.mxu1 %v5374_v9 }
 0xd27   :  { %v2359_v50 = vpop.f32.mrf.mxu2 }
 0xd2f   :  { %v2361_v52 = vpop.f32.mrf.mxu2 }
 0xd30   :  { %v5423_v52 = vld [vmem:[#allocation13 + $0x18] sm:$0xff] }
 0xd31   :  { %v2372_v58 = vpop.f32.mrf.mxu1 }
 0xd32   :  { %v2373_v35 = vadd.f32 %v2372_v58, %v2359_v50  ;;  %v5419_v50 = vld [vmem:[#allocation11 + $0x18] sm:$0xff]  ;;  %v5426_v58 = vld [vmem:[#allocation11 + $0x10] sm:$0xff] }
 0xd34   :  { %v2376_v16 = vadd.f32 %v5095_v45, %v2373_v35  ;;  %v5429_v35 = vld [vmem:[#allocation13 + $0x10] sm:$0xff] }
 0xd36   :  { %v2377_v37 = vmax.f32 %v2376_v16, 0.0  ;;  %v5433_v16 = vld [vmem:[#allocation13 + $0x8] sm:$0xff] }
 0xd37   :  { %v2423_v55 = vpop.f32.mrf.mxu2 }
 0xd38   :  { %v2378_v23 = vpack.c.bf16 %v2377_v37, %v2377_v37  ;;  %v5438_v37 = vld [vmem:[#allocation13] sm:$0xff] }
 0xd39   :  { %v2374_v5 = vpop.f32.mrf.mxu1 }
 0xd3a   :  { %2451 = vmatmul.bf16.vlgmr.msra.gmra.mxu0 %v2378_v23 }
 0xd3b   :  { %2568 = vmatpush.bf16.msra.mxu0 %v5284_v44 }
 0xd3f   :  { %v2425_v36 = vpop.f32.mrf.mxu2  ;;  %2569 = vmatpush.bf16.msra.mxu0 %v5287_v6 }
 0xd41   :  { %v2436_v57 = vpop.f32.mrf.mxu1 }
 0xd42   :  { %v2437_v1 = vadd.f32 %v2436_v57, %v2423_v55 }
 0xd43   :  { %2570 = vmatpush.bf16.msra.mxu0 %v5290_v49 }
 0xd44   :  { %v2440_v13 = vadd.f32 %v5044_v54, %v2437_v1  ;;  %v5391_v54 = vld [vmem:[%s5699_s3] ss:$0 sm:$0xff] }
 0xd46   :  { %v2441_v27 = vmax.f32 %v2440_v13, 0.0 }
 0xd47   :  { %v2484_v38 = vpop.f32.mrf.mxu2  ;;  %2571 = vmatpush.bf16.msra.mxu0 %v5294_v41 }
 0xd48   :  { %v2442_v40 = vpack.c.bf16 %v2441_v27, %v2441_v27 }
 0xd49   :  { %v2438_v43 = vpop.f32.mrf.mxu1 }
 0xd4a   :  { %2464 = vmatmul.bf16.vlgmr.msrb.gmra.mxu3 %v2442_v40  ;;  %2515 = vmatmul.bf16.vlgmr.msrb.gmra.mxu0 %v2442_v40 }
 0xd4b   :  { %2572 = vmatpush.bf16.msra.mxu0 %v5297_v48  ;;  %2590 = vmatpush.bf16.msrb.mxu3 %v4015_v7 }
 0xd4f   :  { %v2486_v2 = vpop.f32.mrf.mxu2  ;;  %2573 = vmatpush.bf16.msra.mxu0 %v5301_v19  ;;  %2591 = vmatpush.bf16.msrb.mxu3 %v5304_v56 }
 0xd51   :  { %v2500_v46 = vpop.f32.mrf.mxu1 }
 0xd52   :  { %v2501_v14 = vadd.f32 %v2500_v46, %v2484_v38  ;;  %v5463_v46 = vld [vmem:[%s5702_s6] ss:$0 sm:$0xff] }
 0xd53   :  { %2574 = vmatpush.bf16.msra.mxu0 %v5307_v22 }
 0xd54   :  { %v2504_v17 = vadd.f32 %v5391_v54, %v2501_v14 }
 0xd56   :  { %v2505_v29 = vmax.f32 %v2504_v17, 0.0 }
 0xd57   :  { %2575 = vmatpush.bf16.msra.mxu0 %v5311_v61 }
 0xd58   :  { %v2506_v33 = vpack.c.bf16 %v2505_v29, %v2505_v29 }
 0xd59   :  { %v2502_v47 = vpop.f32.mrf.mxu1 }
 0xd5a   :  { %2528 = vmatmul.bf16.vlgmr.msra.gmra.mxu3 %v2506_v33  ;;  %2576 = vmatmul.bf16.vlgmr.msra.gmra.mxu0 %v2506_v33 }
 0xd5b   :  { %2642 = vmatpush.bf16.msrb.mxu0 %v5395_v42  ;;  %2629 = vmatpush.bf16.msra.mxu3 %v5398_v51 }
 0xd5f   :  { %2643 = vmatpush.bf16.msrb.mxu0 %v5401_v0  ;;  %2630 = vmatpush.bf16.msra.mxu3 %v5404_v15 }
 0xd63   :  { %2644 = vmatpush.bf16.msrb.mxu0 %v5407_v21  ;;  %2631 = vmatpush.bf16.msra.mxu3 %v5410_v10 }
 0xd67   :  { %2645 = vmatpush.bf16.msrb.mxu0 %v5413_v11  ;;  %2632 = vmatpush.bf16.msra.mxu3 %v5416_v4 }
 0xd6a   :  { %3416 = vmatmul.msk.bf16.vlgmr.msrb.gmra.mxu3 %vm265_vm1, %v2567_v24 }
 0xd6b   :  { %2646 = vmatpush.bf16.msrb.mxu0 %v5419_v50  ;;  %2633 = vmatpush.bf16.msra.mxu3 %v5423_v52 }
 0xd6f   :  { %2647 = vmatpush.bf16.msrb.mxu0 %v5426_v58  ;;  %2634 = vmatpush.bf16.msra.mxu3 %v5429_v35 }
 0xd73   :  { %2648 = vmatpush.bf16.msrb.mxu0 %v5068_v32  ;;  %2635 = vmatpush.bf16.msra.mxu3 %v5433_v16 }
 0xd77   :  { %2649 = vmatpush.bf16.msrb.mxu0 %v5072_v34  ;;  %2636 = vmatpush.bf16.msra.mxu3 %v5438_v37 }
 0xd7b   :  { %2706 = vmatpush.bf16.msra.mxu0 %v5330_v18  ;;  %2693 = vmatpush.bf16.msrb.mxu3 %v5266_v26 }
 0xd7f   :  { %2707 = vmatpush.bf16.msra.mxu0 %v5335_v28  ;;  %2694 = vmatpush.bf16.msrb.mxu3 %v5338_v30 }
 0xd83   :  { %2708 = vmatpush.bf16.msra.mxu0 %v5341_v31  ;;  %2695 = vmatpush.bf16.msrb.mxu3 %v5344_v63 }
 0xd87   :  { %2709 = vmatpush.bf16.msra.mxu0 %v5347_v59  ;;  %2696 = vmatpush.bf16.msrb.mxu3 %v5350_v60 }
 0xd8b   :  { %2710 = vmatpush.bf16.msra.mxu0 %v5353_v8  ;;  %2697 = vmatpush.bf16.msrb.mxu3 %v5356_v25 }
 0xd8f   :  { %2711 = vmatpush.bf16.msra.mxu0 %v5359_v53  ;;  %2698 = vmatpush.bf16.msrb.mxu3 %v5362_v20 }
 0xd93   :  { %2712 = vmatpush.bf16.msra.mxu0 %v5365_v62  ;;  %2699 = vmatpush.bf16.msrb.mxu3 %v5368_v12 }
 0xd97   :  { %2713 = vmatpush.bf16.msra.mxu0 %v5371_v3  ;;  %2700 = vmatpush.bf16.msrb.mxu3 %v5374_v9 }
 0xdb7   :  { %v2452_v32 = vpop.f32.mrf.mxu0 }
 0xdbf   :  { %v2454_v34 = vpop.f32.mrf.mxu0 }
 0xdc7   :  { %v2516_v55 = vpop.f32.mrf.mxu0 }
 0xdcd   :  { %v2465_v23 = vpop.f32.mrf.mxu3 }
 0xdce   :  { %v2466_v5 = vadd.f32 %v2465_v23, %v2452_v32 }
 0xdcf   :  { %v2518_v36 = vpop.f32.mrf.mxu0 }
 0xdd0   :  { %v2469_v57 = vadd.f32 %v5095_v45, %v2466_v5  ;;  %v5487_v5 = vld [vmem:[#allocation11 + $0x8] sm:$0xff]  ;;  %v5491_v36 = vld [vmem:[#allocation11] sm:$0xff] }
 0xdd2   :  { %v2470_v1 = vmax.f32 %v2469_v57, 0.0 }
 0xdd4   :  { %v2471_v13 = vpack.c.bf16 %v2470_v1, %v2470_v1 }
 0xdd5   :  { %v2467_v27 = vpop.f32.mrf.mxu3 }
 0xdd6   :  { %2544 = vmatmul.bf16.vlgmr.msrb.gmra.mxu1 %v2471_v13 }
 0xdd7   :  { %v2577_v38 = vpop.f32.mrf.mxu0  ;;  %2661 = vmatpush.bf16.msrb.mxu1 %v5284_v44 }
 0xddb   :  { %2662 = vmatpush.bf16.msrb.mxu1 %v5287_v6 }
 0xddd   :  { %v2529_v40 = vpop.f32.mrf.mxu3 }
 0xdde   :  { %v2530_v43 = vadd.f32 %v2529_v40, %v2516_v55  ;;  %v2659_v55 = vld [vmem:[#allocation2 + $0xb8] sm:$0xff] }
 0xddf   :  { %v2579_v2 = vpop.f32.mrf.mxu0  ;;  %2663 = vmatpush.bf16.msrb.mxu1 %v5290_v49  ;;  %v2660_v23 = vpack.c.bf16 %v2659_v55, %v2659_v55 }
 0xde0   :  { %v2533_v45 = vadd.f32 %v5463_v46, %v2530_v43  ;;  %v5514_v43 = vld [vmem:[%s5705_s9] ss:$0 sm:$0xff] }
 0xde2   :  { %v2534_v14 = vmax.f32 %v2533_v45, 0.0 }
 0xde3   :  { %2664 = vmatpush.bf16.msrb.mxu1 %v5294_v41 }
 0xde4   :  { %v2535_v17 = vpack.c.bf16 %v2534_v14, %v2534_v14 }
 0xde5   :  { %v2531_v29 = vpop.f32.mrf.mxu3 }
 0xde6   :  { %2557 = vmatmul.bf16.vlgmr.msra.gmra.mxu2 %v2535_v17  ;;  %2608 = vmatmul.bf16.vlgmr.msra.gmra.mxu1 %v2535_v17 }
 0xde7   :  { %2665 = vmatpush.bf16.msrb.mxu1 %v5297_v48  ;;  %2683 = vmatpush.bf16.msra.mxu2 %v4015_v7 }
 0xdeb   :  { %2666 = vmatpush.bf16.msrb.mxu1 %v5301_v19  ;;  %2684 = vmatpush.bf16.msra.mxu2 %v5304_v56 }
 0xded   :  { %v2593_v33 = vpop.f32.mrf.mxu3 }
 0xdee   :  { %v2594_v47 = vadd.f32 %v2593_v33, %v2577_v38 }
 0xdef   :  { %2667 = vmatpush.bf16.msrb.mxu1 %v5307_v22 }
 0xdf0   :  { %v2597_v39 = vadd.f32 %v5391_v54, %v2594_v47 }
 0xdf2   :  { %v2598_v24 = vmax.f32 %v2597_v39, 0.0 }
 0xdf3   :  { %2668 = vmatpush.bf16.msrb.mxu1 %v5311_v61 }
 0xdf4   :  { %v2599_v32 = vpack.c.bf16 %v2598_v24, %v2598_v24 }
 0xdf5   :  { %v2595_v34 = vpop.f32.mrf.mxu3 }
 0xdf6   :  { %2621 = vmatmul.bf16.vlgmr.msrb.gmra.mxu2 %v2599_v32  ;;  %2669 = vmatmul.bf16.vlgmr.msrb.gmra.mxu1 %v2599_v32 }
 0xdf7   :  { %2735 = vmatpush.bf16.msra.mxu1 %v5395_v42  ;;  %2722 = vmatpush.bf16.msrb.mxu2 %v5398_v51 }
 0xdfb   :  { %2736 = vmatpush.bf16.msra.mxu1 %v5401_v0  ;;  %2723 = vmatpush.bf16.msrb.mxu2 %v5404_v15 }
 0xdff   :  { %2737 = vmatpush.bf16.msra.mxu1 %v5407_v21  ;;  %2724 = vmatpush.bf16.msrb.mxu2 %v5410_v10 }
 0xe03   :  { %2738 = vmatpush.bf16.msra.mxu1 %v5413_v11  ;;  %2725 = vmatpush.bf16.msrb.mxu2 %v5416_v4 }
 0xe06   :  { %3417 = vmatmul.msk.bf16.vlgmr.msra.gmra.mxu2 %vm265_vm1, %v2660_v23 }
 0xe07   :  { %2739 = vmatpush.bf16.msra.mxu1 %v5419_v50  ;;  %2726 = vmatpush.bf16.msrb.mxu2 %v5423_v52 }
 0xe0b   :  { %2740 = vmatpush.bf16.msra.mxu1 %v5426_v58  ;;  %2727 = vmatpush.bf16.msrb.mxu2 %v5429_v35 }
 0xe0f   :  { %2741 = vmatpush.bf16.msra.mxu1 %v5487_v5  ;;  %2728 = vmatpush.bf16.msrb.mxu2 %v5433_v16 }
 0xe13   :  { %2742 = vmatpush.bf16.msra.mxu1 %v5491_v36  ;;  %2729 = vmatpush.bf16.msrb.mxu2 %v5438_v37 }
 0xe17   :  { %2799 = vmatpush.bf16.msrb.mxu1 %v5330_v18  ;;  %2786 = vmatpush.bf16.msra.mxu2 %v5266_v26 }
 0xe1b   :  { %2800 = vmatpush.bf16.msrb.mxu1 %v5335_v28  ;;  %2787 = vmatpush.bf16.msra.mxu2 %v5338_v30 }
 0xe1f   :  { %2801 = vmatpush.bf16.msrb.mxu1 %v5341_v31  ;;  %2788 = vmatpush.bf16.msra.mxu2 %v5344_v63 }
 0xe23   :  { %2802 = vmatpush.bf16.msrb.mxu1 %v5347_v59  ;;  %2789 = vmatpush.bf16.msra.mxu2 %v5350_v60 }
 0xe27   :  { %2803 = vmatpush.bf16.msrb.mxu1 %v5353_v8  ;;  %2790 = vmatpush.bf16.msra.mxu2 %v5356_v25 }
 0xe2b   :  { %2804 = vmatpush.bf16.msrb.mxu1 %v5359_v53  ;;  %2791 = vmatpush.bf16.msra.mxu2 %v5362_v20 }
 0xe2f   :  { %2805 = vmatpush.bf16.msrb.mxu1 %v5365_v62  ;;  %2792 = vmatpush.bf16.msra.mxu2 %v5368_v12 }
 0xe33   :  { %2806 = vmatpush.bf16.msrb.mxu1 %v5371_v3  ;;  %2793 = vmatpush.bf16.msra.mxu2 %v5374_v9 }
 0xe53   :  { %v2545_v57 = vpop.f32.mrf.mxu1 }
 0xe5b   :  { %v2547_v1 = vpop.f32.mrf.mxu1 }
 0xe63   :  { %v2609_v13 = vpop.f32.mrf.mxu1 }
 0xe69   :  { %v2558_v27 = vpop.f32.mrf.mxu2 }
 0xe6a   :  { %v2559_v38 = vadd.f32 %v2558_v27, %v2545_v57 }
 0xe6b   :  { %v2611_v40 = vpop.f32.mrf.mxu1 }
 0xe6c   :  { %v2562_v2 = vadd.f32 %v5514_v43, %v2559_v38  ;;  %v2752_v40 = vld [vmem:[#allocation2 + $0xc0] sm:$0xff] }
 0xe6e   :  { %v2563_v45 = vmax.f32 %v2562_v2, 0.0  ;;  %v2753_v2 = vpack.c.bf16 %v2752_v40, %v2752_v40 }
 0xe70   :  { %v2564_v14 = vpack.c.bf16 %v2563_v45, %v2563_v45 }
 0xe71   :  { %v2560_v17 = vpop.f32.mrf.mxu2 }
 0xe72   :  { %2637 = vmatmul.bf16.vlgmr.msra.gmra.mxu3 %v2564_v14 }
 0xe73   :  { %v2670_v29 = vpop.f32.mrf.mxu1  ;;  %2754 = vmatpush.bf16.msra.mxu3 %v5284_v44 }
 0xe77   :  { %2755 = vmatpush.bf16.msra.mxu3 %v5287_v6 }
 0xe79   :  { %v2622_v33 = vpop.f32.mrf.mxu2 }
 0xe7a   :  { %v2623_v47 = vadd.f32 %v2622_v33, %v2609_v13 }
 0xe7b   :  { %v2672_v39 = vpop.f32.mrf.mxu1  ;;  %2756 = vmatpush.bf16.msra.mxu3 %v5290_v49 }
 0xe7c   :  { %v2626_v24 = vadd.f32 %v5463_v46, %v2623_v47 }
 0xe7e   :  { %v2627_v32 = vmax.f32 %v2626_v24, 0.0 }
 0xe7f   :  { %2757 = vmatpush.bf16.msra.mxu3 %v5294_v41 }
 0xe80   :  { %v2628_v34 = vpack.c.bf16 %v2627_v32, %v2627_v32 }
 0xe81   :  { %v2624_v55 = vpop.f32.mrf.mxu2 }
 0xe82   :  { %2650 = vmatmul.bf16.vlgmr.msrb.gmra.mxu0 %v2628_v34  ;;  %2701 = vmatmul.bf16.vlgmr.msrb.gmra.mxu3 %v2628_v34 }
 0xe83   :  { %2758 = vmatpush.bf16.msra.mxu3 %v5297_v48  ;;  %2776 = vmatpush.bf16.msrb.mxu0 %v4015_v7 }
 0xe87   :  { %2759 = vmatpush.bf16.msra.mxu3 %v5301_v19  ;;  %2777 = vmatpush.bf16.msrb.mxu0 %v5304_v56 }
 0xe89   :  { %v2686_v23 = vpop.f32.mrf.mxu2 }
 0xe8a   :  { %v2687_v57 = vadd.f32 %v2686_v23, %v2670_v29 }
 0xe8b   :  { %2760 = vmatpush.bf16.msra.mxu3 %v5307_v22 }
 0xe8c   :  { %v2690_v1 = vadd.f32 %v5391_v54, %v2687_v57 }
 0xe8e   :  { %v2691_v13 = vmax.f32 %v2690_v1, 0.0 }
 0xe8f   :  { %2761 = vmatpush.bf16.msra.mxu3 %v5311_v61 }
 0xe90   :  { %v2692_v27 = vpack.c.bf16 %v2691_v13, %v2691_v13 }
 0xe91   :  { %v2688_v38 = vpop.f32.mrf.mxu2 }
 0xe92   :  { %2714 = vmatmul.bf16.vlgmr.msra.gmra.mxu0 %v2692_v27  ;;  %2762 = vmatmul.bf16.vlgmr.msra.gmra.mxu3 %v2692_v27 }
 0xe93   :  { %2828 = vmatpush.bf16.msrb.mxu3 %v5395_v42  ;;  %2815 = vmatpush.bf16.msra.mxu0 %v5398_v51 }
 0xe97   :  { %2829 = vmatpush.bf16.msrb.mxu3 %v5401_v0  ;;  %2816 = vmatpush.bf16.msra.mxu0 %v5404_v15 }
 0xe9b   :  { %2830 = vmatpush.bf16.msrb.mxu3 %v5407_v21  ;;  %2817 = vmatpush.bf16.msra.mxu0 %v5410_v10 }
 0xe9f   :  { %2831 = vmatpush.bf16.msrb.mxu3 %v5413_v11  ;;  %2818 = vmatpush.bf16.msra.mxu0 %v5416_v4 }
 0xea2   :  { %3418 = vmatmul.msk.bf16.vlgmr.msrb.gmra.mxu0 %vm265_vm1, %v2753_v2 }
 0xea3   :  { %2832 = vmatpush.bf16.msrb.mxu3 %v5419_v50  ;;  %2819 = vmatpush.bf16.msra.mxu0 %v5423_v52 }
 0xea7   :  { %2833 = vmatpush.bf16.msrb.mxu3 %v5426_v58  ;;  %2820 = vmatpush.bf16.msra.mxu0 %v5429_v35 }
 0xeab   :  { %2834 = vmatpush.bf16.msrb.mxu3 %v5487_v5  ;;  %2821 = vmatpush.bf16.msra.mxu0 %v5433_v16 }
 0xeaf   :  { %2835 = vmatpush.bf16.msrb.mxu3 %v5491_v36  ;;  %2822 = vmatpush.bf16.msra.mxu0 %v5438_v37 }
 0xeb3   :  { %2892 = vmatpush.bf16.msra.mxu3 %v5330_v18  ;;  %2879 = vmatpush.bf16.msrb.mxu0 %v5266_v26 }
 0xeb7   :  { %2893 = vmatpush.bf16.msra.mxu3 %v5335_v28  ;;  %2880 = vmatpush.bf16.msrb.mxu0 %v5338_v30 }
 0xebb   :  { %2894 = vmatpush.bf16.msra.mxu3 %v5341_v31  ;;  %2881 = vmatpush.bf16.msrb.mxu0 %v5344_v63 }
 0xebf   :  { %2895 = vmatpush.bf16.msra.mxu3 %v5347_v59  ;;  %2882 = vmatpush.bf16.msrb.mxu0 %v5350_v60 }
 0xec3   :  { %2896 = vmatpush.bf16.msra.mxu3 %v5353_v8  ;;  %2883 = vmatpush.bf16.msrb.mxu0 %v5356_v25 }
 0xec7   :  { %2897 = vmatpush.bf16.msra.mxu3 %v5359_v53  ;;  %2884 = vmatpush.bf16.msrb.mxu0 %v5362_v20 }
 0xecb   :  { %2898 = vmatpush.bf16.msra.mxu3 %v5365_v62  ;;  %2885 = vmatpush.bf16.msrb.mxu0 %v5368_v12 }
 0xecf   :  { %2899 = vmatpush.bf16.msra.mxu3 %v5371_v3  ;;  %2886 = vmatpush.bf16.msrb.mxu0 %v5374_v9 }
 0xef5   :  { %v2638_v45 = vpop.f32.mrf.mxu3 }
 0xefd   :  { %v2640_v14 = vpop.f32.mrf.mxu3 }
 0xeff   :  { %v2651_v17 = vpop.f32.mrf.mxu0 }
 0xf00   :  { %v2652_v29 = vadd.f32 %v2651_v17, %v2638_v45 }
 0xf02   :  { %v2655_v33 = vadd.f32 %v5514_v43, %v2652_v29 }
 0xf04   :  { %v2656_v47 = vmax.f32 %v2655_v33, 0.0 }
 0xf05   :  { %v2702_v39 = vpop.f32.mrf.mxu3 }
 0xf06   :  { %v2657_v24 = vpack.c.bf16 %v2656_v47, %v2656_v47  ;;  %v2845_v47 = vld [vmem:[#allocation2 + $0xc8] sm:$0xff] }
 0xf07   :  { %v2653_v32 = vpop.f32.mrf.mxu0 }
 0xf08   :  { %2730 = vmatmul.bf16.vlgmr.msrb.gmra.mxu2 %v2657_v24 }
 0xf09   :  { %2847 = vmatpush.bf16.msrb.mxu2 %v5284_v44 }
 0xf0d   :  { %v2704_v34 = vpop.f32.mrf.mxu3  ;;  %2848 = vmatpush.bf16.msrb.mxu2 %v5287_v6 }
 0xf0f   :  { %v2715_v55 = vpop.f32.mrf.mxu0 }
 0xf10   :  { %v2716_v23 = vadd.f32 %v2715_v55, %v2702_v39  ;;  %v2846_v39 = vpack.c.bf16 %v2845_v47, %v2845_v47 }
 0xf11   :  { %2849 = vmatpush.bf16.msrb.mxu2 %v5290_v49 }
 0xf12   :  { %v2719_v57 = vadd.f32 %v5463_v46, %v2716_v23 }
 0xf14   :  { %v2720_v1 = vmax.f32 %v2719_v57, 0.0 }
 0xf15   :  { %v2763_v13 = vpop.f32.mrf.mxu3  ;;  %2850 = vmatpush.bf16.msrb.mxu2 %v5294_v41 }
 0xf16   :  { %v2721_v27 = vpack.c.bf16 %v2720_v1, %v2720_v1 }
 0xf17   :  { %v2717_v38 = vpop.f32.mrf.mxu0 }
 0xf18   :  { %2743 = vmatmul.bf16.vlgmr.msra.gmra.mxu1 %v2721_v27  ;;  %2794 = vmatmul.bf16.vlgmr.msra.gmra.mxu2 %v2721_v27 }
 0xf19   :  { %2851 = vmatpush.bf16.msrb.mxu2 %v5297_v48  ;;  %2869 = vmatpush.bf16.msra.mxu1 %v4015_v7 }
 0xf1d   :  { %v2765_v40 = vpop.f32.mrf.mxu3  ;;  %2852 = vmatpush.bf16.msrb.mxu2 %v5301_v19  ;;  %2870 = vmatpush.bf16.msra.mxu1 %v5304_v56 }
 0xf1f   :  { %v2779_v2 = vpop.f32.mrf.mxu0 }
 0xf20   :  { %v2780_v45 = vadd.f32 %v2779_v2, %v2763_v13 }
 0xf21   :  { %2853 = vmatpush.bf16.msrb.mxu2 %v5307_v22 }
 0xf22   :  { %v2783_v14 = vadd.f32 %v5391_v54, %v2780_v45 }
 0xf24   :  { %v2784_v17 = vmax.f32 %v2783_v14, 0.0 }
 0xf25   :  { %2854 = vmatpush.bf16.msrb.mxu2 %v5311_v61 }
 0xf26   :  { %v2785_v29 = vpack.c.bf16 %v2784_v17, %v2784_v17 }
 0xf27   :  { %v2781_v33 = vpop.f32.mrf.mxu0 }
 0xf28   :  { %2807 = vmatmul.bf16.vlgmr.msrb.gmra.mxu1 %v2785_v29  ;;  %2855 = vmatmul.bf16.vlgmr.msrb.gmra.mxu2 %v2785_v29 }
 0xf29   :  { %2921 = vmatpush.bf16.msra.mxu2 %v5395_v42  ;;  %2908 = vmatpush.bf16.msrb.mxu1 %v5398_v51 }
 0xf2d   :  { %2922 = vmatpush.bf16.msra.mxu2 %v5401_v0  ;;  %2909 = vmatpush.bf16.msrb.mxu1 %v5404_v15 }
 0xf31   :  { %2923 = vmatpush.bf16.msra.mxu2 %v5407_v21  ;;  %2910 = vmatpush.bf16.msrb.mxu1 %v5410_v10 }
 0xf35   :  { %2924 = vmatpush.bf16.msra.mxu2 %v5413_v11  ;;  %2911 = vmatpush.bf16.msrb.mxu1 %v5416_v4 }
 0xf38   :  { %3419 = vmatmul.msk.bf16.vlgmr.msra.gmra.mxu1 %vm265_vm1, %v2846_v39 }
 0xf39   :  { %2925 = vmatpush.bf16.msra.mxu2 %v5419_v50  ;;  %2912 = vmatpush.bf16.msrb.mxu1 %v5423_v52 }
 0xf3d   :  { %2926 = vmatpush.bf16.msra.mxu2 %v5426_v58  ;;  %2913 = vmatpush.bf16.msrb.mxu1 %v5429_v35 }
 0xf41   :  { %2927 = vmatpush.bf16.msra.mxu2 %v5487_v5  ;;  %2914 = vmatpush.bf16.msrb.mxu1 %v5433_v16 }
 0xf45   :  { %2928 = vmatpush.bf16.msra.mxu2 %v5491_v36  ;;  %2915 = vmatpush.bf16.msrb.mxu1 %v5438_v37 }
 0xf49   :  { %2985 = vmatpush.bf16.msrb.mxu2 %v5330_v18  ;;  %2972 = vmatpush.bf16.msra.mxu1 %v5266_v26 }
 0xf4d   :  { %2986 = vmatpush.bf16.msrb.mxu2 %v5335_v28  ;;  %2973 = vmatpush.bf16.msra.mxu1 %v5338_v30 }
 0xf51   :  { %2987 = vmatpush.bf16.msrb.mxu2 %v5341_v31  ;;  %2974 = vmatpush.bf16.msra.mxu1 %v5344_v63 }
 0xf55   :  { %2988 = vmatpush.bf16.msrb.mxu2 %v5347_v59  ;;  %2975 = vmatpush.bf16.msra.mxu1 %v5350_v60 }
 0xf59   :  { %2989 = vmatpush.bf16.msrb.mxu2 %v5353_v8  ;;  %2976 = vmatpush.bf16.msra.mxu1 %v5356_v25 }
 0xf5d   :  { %2990 = vmatpush.bf16.msrb.mxu2 %v5359_v53  ;;  %2977 = vmatpush.bf16.msra.mxu1 %v5362_v20 }
 0xf61   :  { %2991 = vmatpush.bf16.msrb.mxu2 %v5365_v62  ;;  %2978 = vmatpush.bf16.msra.mxu1 %v5368_v12 }
 0xf65   :  { %2992 = vmatpush.bf16.msrb.mxu2 %v5371_v3  ;;  %2979 = vmatpush.bf16.msra.mxu1 %v5374_v9 }
 0xf8b   :  { %v2731_v24 = vpop.f32.mrf.mxu2 }
 0xf93   :  { %v2733_v32 = vpop.f32.mrf.mxu2 }
 0xf95   :  { %v2744_v34 = vpop.f32.mrf.mxu1 }
 0xf96   :  { %v2745_v55 = vadd.f32 %v2744_v34, %v2731_v24 }
 0xf98   :  { %v2748_v23 = vadd.f32 %v5514_v43, %v2745_v55 }
 0xf9a   :  { %v2749_v57 = vmax.f32 %v2748_v23, 0.0 }
 0xf9b   :  { %v2795_v1 = vpop.f32.mrf.mxu2 }
 0xf9c   :  { %v2750_v13 = vpack.c.bf16 %v2749_v57, %v2749_v57  ;;  %v2938_v57 = vld [vmem:[#allocation2 + $0xd0] sm:$0xff] }
 0xf9d   :  { %v2746_v27 = vpop.f32.mrf.mxu1 }
 0xf9e   :  { %2823 = vmatmul.bf16.vlgmr.msra.gmra.mxu0 %v2750_v13 }
 0xf9f   :  { %2940 = vmatpush.bf16.msra.mxu0 %v5284_v44 }
 0xfa3   :  { %v2797_v38 = vpop.f32.mrf.mxu2  ;;  %2941 = vmatpush.bf16.msra.mxu0 %v5287_v6 }
 0xfa5   :  { %v2808_v40 = vpop.f32.mrf.mxu1 }
 0xfa6   :  { %v2809_v2 = vadd.f32 %v2808_v40, %v2795_v1  ;;  %v2939_v1 = vpack.c.bf16 %v2938_v57, %v2938_v57 }
 0xfa7   :  { %2942 = vmatpush.bf16.msra.mxu0 %v5290_v49 }
 0xfa8   :  { %v2812_v45 = vadd.f32 %v5463_v46, %v2809_v2 }
 0xfaa   :  { %v2813_v14 = vmax.f32 %v2812_v45, 0.0 }
 0xfab   :  { %v2856_v17 = vpop.f32.mrf.mxu2  ;;  %2943 = vmatpush.bf16.msra.mxu0 %v5294_v41 }
 0xfac   :  { %v2814_v29 = vpack.c.bf16 %v2813_v14, %v2813_v14 }
 0xfad   :  { %v2810_v33 = vpop.f32.mrf.mxu1 }
 0xfae   :  { %2836 = vmatmul.bf16.vlgmr.msrb.gmra.mxu3 %v2814_v29  ;;  %2887 = vmatmul.bf16.vlgmr.msrb.gmra.mxu0 %v2814_v29  ;;  %v3503_v33 = vld [vmem:[#allocation14 + $0x38] sm:$0xff] }
 0xfaf   :  { %2944 = vmatpush.bf16.msra.mxu0 %v5297_v48  ;;  %2962 = vmatpush.bf16.msrb.mxu3 %v4015_v7 }
 0xfb3   :  { %v2858_v47 = vpop.f32.mrf.mxu2  ;;  %2945 = vmatpush.bf16.msra.mxu0 %v5301_v19  ;;  %2963 = vmatpush.bf16.msrb.mxu3 %v5304_v56 }
 0xfb4   :  { %v3502_v47 = vld [vmem:[#allocation14 + $0x30] sm:$0xff] }
 0xfb5   :  { %v2872_v39 = vpop.f32.mrf.mxu1 }
 0xfb6   :  { %v2873_v24 = vadd.f32 %v2872_v39, %v2856_v17 }
 0xfb7   :  { %2946 = vmatpush.bf16.msra.mxu0 %v5307_v22 }
 0xfb8   :  { %v2876_v32 = vadd.f32 %v5391_v54, %v2873_v24  ;;  %v3501_v24 = vld [vmem:[#allocation14 + $0x28] sm:$0xff] }
 0xfba   :  { %v2877_v34 = vmax.f32 %v2876_v32, 0.0 }
 0xfbb   :  { %2947 = vmatpush.bf16.msra.mxu0 %v5311_v61 }
 0xfbc   :  { %v2878_v55 = vpack.c.bf16 %v2877_v34, %v2877_v34 }
 0xfbd   :  { %v2874_v23 = vpop.f32.mrf.mxu1 }
 0xfbe   :  { %2900 = vmatmul.bf16.vlgmr.msra.gmra.mxu3 %v2878_v55  ;;  %2948 = vmatmul.bf16.vlgmr.msra.gmra.mxu0 %v2878_v55 }
 0xfbf   :  { %3014 = vmatpush.bf16.msrb.mxu0 %v5395_v42  ;;  %3001 = vmatpush.bf16.msra.mxu3 %v5398_v51 }
 0xfc3   :  { %3015 = vmatpush.bf16.msrb.mxu0 %v5401_v0  ;;  %3002 = vmatpush.bf16.msra.mxu3 %v5404_v15 }
 0xfc7   :  { %3016 = vmatpush.bf16.msrb.mxu0 %v5407_v21  ;;  %3003 = vmatpush.bf16.msra.mxu3 %v5410_v10 }
 0xfcb   :  { %3017 = vmatpush.bf16.msrb.mxu0 %v5413_v11  ;;  %3004 = vmatpush.bf16.msra.mxu3 %v5416_v4 }
 0xfce   :  { %3420 = vmatmul.msk.bf16.vlgmr.msrb.gmra.mxu3 %vm265_vm1, %v2939_v1 }
 0xfcf   :  { %3018 = vmatpush.bf16.msrb.mxu0 %v5419_v50  ;;  %3005 = vmatpush.bf16.msra.mxu3 %v5423_v52 }
 0xfd3   :  { %3019 = vmatpush.bf16.msrb.mxu0 %v5426_v58  ;;  %3006 = vmatpush.bf16.msra.mxu3 %v5429_v35 }
 0xfd7   :  { %3020 = vmatpush.bf16.msrb.mxu0 %v5487_v5  ;;  %3007 = vmatpush.bf16.msra.mxu3 %v5433_v16 }
 0xfdb   :  { %3021 = vmatpush.bf16.msrb.mxu0 %v5491_v36  ;;  %3008 = vmatpush.bf16.msra.mxu3 %v5438_v37 }
 0xfdf   :  { %3078 = vmatpush.bf16.msra.mxu0 %v5330_v18  ;;  %3065 = vmatpush.bf16.msrb.mxu3 %v5266_v26 }
 0xfe3   :  { %3079 = vmatpush.bf16.msra.mxu0 %v5335_v28  ;;  %3066 = vmatpush.bf16.msrb.mxu3 %v5338_v30 }
 0xfe7   :  { %3080 = vmatpush.bf16.msra.mxu0 %v5341_v31  ;;  %3067 = vmatpush.bf16.msrb.mxu3 %v5344_v63 }
 0xfeb   :  { %3081 = vmatpush.bf16.msra.mxu0 %v5347_v59  ;;  %3068 = vmatpush.bf16.msrb.mxu3 %v5350_v60 }
 0xfef   :  { %3082 = vmatpush.bf16.msra.mxu0 %v5353_v8  ;;  %3069 = vmatpush.bf16.msrb.mxu3 %v5356_v25 }
 0xff3   :  { %3083 = vmatpush.bf16.msra.mxu0 %v5359_v53  ;;  %3070 = vmatpush.bf16.msrb.mxu3 %v5362_v20 }
 0xff7   :  { %3084 = vmatpush.bf16.msra.mxu0 %v5365_v62  ;;  %3071 = vmatpush.bf16.msrb.mxu3 %v5368_v12 }
 0xffb   :  { %3085 = vmatpush.bf16.msra.mxu0 %v5371_v3  ;;  %3072 = vmatpush.bf16.msrb.mxu3 %v5374_v9 }
0x101b   :  { %v2824_v26 = vpop.f32.mrf.mxu0 }
0x1023   :  { %v2826_v18 = vpop.f32.mrf.mxu0 }
0x102b   :  { %v2888_v28 = vpop.f32.mrf.mxu0 }
0x1031   :  { %v2837_v30 = vpop.f32.mrf.mxu3 }
0x1032   :  { %v2838_v31 = vadd.f32 %v2837_v30, %v2824_v26 }
0x1033   :  { %v2890_v63 = vpop.f32.mrf.mxu0 }
0x1034   :  { %v2841_v59 = vadd.f32 %v5514_v43, %v2838_v31 }
0x1036   :  { %v2842_v60 = vmax.f32 %v2841_v59, 0.0 }
0x1038   :  { %v2843_v8 = vpack.c.bf16 %v2842_v60, %v2842_v60  ;;  %v3500_v60 = vld [vmem:[#allocation14 + $0x20] sm:$0xff] }
0x1039   :  { %v2839_v25 = vpop.f32.mrf.mxu3 }
0x103a   :  { %2916 = vmatmul.bf16.vlgmr.msrb.gmra.mxu1 %v2843_v8  ;;  %v3499_v8 = vld [vmem:[#allocation14 + $0x18] sm:$0xff]  ;;  %v3498_v25 = vld [vmem:[#allocation14 + $0x10] sm:$0xff] }
0x103b   :  { %v2949_v53 = vpop.f32.mrf.mxu0  ;;  %3033 = vmatpush.bf16.msrb.mxu1 %v5284_v44 }
0x103f   :  { %3034 = vmatpush.bf16.msrb.mxu1 %v5287_v6 }
0x1041   :  { %v2901_v20 = vpop.f32.mrf.mxu3 }
0x1042   :  { %v2902_v62 = vadd.f32 %v2901_v20, %v2888_v28  ;;  %v3496_v20 = vld [vmem:[#allocation14] sm:$0xff] }
0x1043   :  { %v2951_v12 = vpop.f32.mrf.mxu0  ;;  %3035 = vmatpush.bf16.msrb.mxu1 %v5290_v49 }
0x1044   :  { %v2905_v3 = vadd.f32 %v5463_v46, %v2902_v62 }
0x1046   :  { %v2906_v9 = vmax.f32 %v2905_v3, 0.0 }
0x1047   :  { %3036 = vmatpush.bf16.msrb.mxu1 %v5294_v41 }
0x1048   :  { %v2907_v13 = vpack.c.bf16 %v2906_v9, %v2906_v9 }
0x1049   :  { %v2903_v27 = vpop.f32.mrf.mxu3 }
0x104a   :  { %2929 = vmatmul.bf16.vlgmr.msra.gmra.mxu2 %v2907_v13  ;;  %2980 = vmatmul.bf16.vlgmr.msra.gmra.mxu1 %v2907_v13 }
0x104b   :  { %3037 = vmatpush.bf16.msrb.mxu1 %v5297_v48  ;;  %3055 = vmatpush.bf16.msra.mxu2 %v4015_v7  ;;  %v3031_v7 = vld [vmem:[#allocation2 + $0xd8] sm:$0xff] }
0x104c   :  { %v3032_v48 = vpack.c.bf16 %v3031_v7, %v3031_v7 }
0x104f   :  { %3038 = vmatpush.bf16.msrb.mxu1 %v5301_v19  ;;  %3056 = vmatpush.bf16.msra.mxu2 %v5304_v56 }
0x1051   :  { %v2965_v44 = vpop.f32.mrf.mxu3 }
0x1052   :  { %v2966_v6 = vadd.f32 %v2965_v44, %v2949_v53  ;;  %v3497_v53 = vld [vmem:[#allocation14 + $0x8] sm:$0xff] }
0x1053   :  { %3039 = vmatpush.bf16.msrb.mxu1 %v5307_v22 }
0x1054   :  { %v2969_v49 = vadd.f32 %v5391_v54, %v2966_v6  ;;  %v3521_v6 = vld [vmem:[%s5707_s11] ss:$0 sm:$0xff] }
0x1056   :  { %v2970_v38 = vmax.f32 %v2969_v49, 0.0 }
0x1057   :  { %3040 = vmatpush.bf16.msrb.mxu1 %v5311_v61 }
0x1058   :  { %v2971_v41 = vpack.c.bf16 %v2970_v38, %v2970_v38 }
0x1059   :  { %v2967_v40 = vpop.f32.mrf.mxu3 }
0x105a   :  { %2993 = vmatmul.bf16.vlgmr.msrb.gmra.mxu2 %v2971_v41  ;;  %3041 = vmatmul.bf16.vlgmr.msrb.gmra.mxu1 %v2971_v41 }
0x105b   :  { %3107 = vmatpush.bf16.msra.mxu1 %v5395_v42  ;;  %3094 = vmatpush.bf16.msrb.mxu2 %v5398_v51 }
0x105f   :  { %3108 = vmatpush.bf16.msra.mxu1 %v5401_v0  ;;  %3095 = vmatpush.bf16.msrb.mxu2 %v5404_v15 }
0x1063   :  { %3109 = vmatpush.bf16.msra.mxu1 %v5407_v21  ;;  %3096 = vmatpush.bf16.msrb.mxu2 %v5410_v10 }
0x1067   :  { %3110 = vmatpush.bf16.msra.mxu1 %v5413_v11  ;;  %3097 = vmatpush.bf16.msrb.mxu2 %v5416_v4 }
0x106a   :  { %3421 = vmatmul.msk.bf16.vlgmr.msra.gmra.mxu2 %vm265_vm1, %v3032_v48 }
0x106b   :  { %3111 = vmatpush.bf16.msra.mxu1 %v5419_v50  ;;  %3098 = vmatpush.bf16.msrb.mxu2 %v5423_v52 }
0x106f   :  { %3112 = vmatpush.bf16.msra.mxu1 %v5426_v58  ;;  %3099 = vmatpush.bf16.msrb.mxu2 %v5429_v35 }
0x1073   :  { %3113 = vmatpush.bf16.msra.mxu1 %v5487_v5  ;;  %3100 = vmatpush.bf16.msrb.mxu2 %v5433_v16 }
0x1077   :  { %3114 = vmatpush.bf16.msra.mxu1 %v5491_v36  ;;  %3101 = vmatpush.bf16.msrb.mxu2 %v5438_v37 }
0x10b7   :  { %v2917_v19 = vpop.f32.mrf.mxu1 }
0x10bf   :  { %v2919_v56 = vpop.f32.mrf.mxu1 }
0x10c7   :  { %v2981_v22 = vpop.f32.mrf.mxu1 }
0x10cd   :  { %v2930_v61 = vpop.f32.mrf.mxu2 }
0x10ce   :  { %v2931_v42 = vadd.f32 %v2930_v61, %v2917_v19 }
0x10cf   :  { %v2983_v51 = vpop.f32.mrf.mxu1 }
0x10d0   :  { %v2934_v0 = vadd.f32 %v5514_v43, %v2931_v42 }
0x10d2   :  { %v2935_v15 = vmax.f32 %v2934_v0, 0.0 }
0x10d4   :  { %v2936_v21 = vpack.c.bf16 %v2935_v15, %v2935_v15 }
0x10d5   :  { %v2932_v10 = vpop.f32.mrf.mxu2 }
0x10d6   :  { %3009 = vmatmul.bf16.vlgmr.msra.gmra.mxu3 %v2936_v21 }
0x10d7   :  { %v3042_v11 = vpop.f32.mrf.mxu1  ;;  %3191 = vmatpush.bf16.msra.mxu3 %v3503_v33 }
0x10db   :  { %3192 = vmatpush.bf16.msra.mxu3 %v3502_v47 }
0x10dd   :  { %v2994_v4 = vpop.f32.mrf.mxu2 }
0x10de   :  { %v2995_v50 = vadd.f32 %v2994_v4, %v2981_v22 }
0x10df   :  { %v3044_v52 = vpop.f32.mrf.mxu1  ;;  %3193 = vmatpush.bf16.msra.mxu3 %v3501_v24 }
0x10e0   :  { %v2998_v58 = vadd.f32 %v5463_v46, %v2995_v50 }
0x10e2   :  { %v2999_v35 = vmax.f32 %v2998_v58, 0.0 }
0x10e3   :  { %3194 = vmatpush.bf16.msra.mxu3 %v3500_v60 }
0x10e4   :  { %v3000_v16 = vpack.c.bf16 %v2999_v35, %v2999_v35 }
0x10e5   :  { %v2996_v37 = vpop.f32.mrf.mxu2 }
0x10e6   :  { %3022 = vmatmul.bf16.vlgmr.msrb.gmra.mxu0 %v3000_v16  ;;  %3073 = vmatmul.bf16.vlgmr.msrb.gmra.mxu3 %v3000_v16 }
0x10e7   :  { %3195 = vmatpush.bf16.msra.mxu3 %v3499_v8 }
0x10eb   :  { %3196 = vmatpush.bf16.msra.mxu3 %v3498_v25 }
0x10ed   :  { %v3058_v5 = vpop.f32.mrf.mxu2 }
0x10ee   :  { %v3059_v36 = vadd.f32 %v3058_v5, %v3042_v11 }
0x10ef   :  { %3197 = vmatpush.bf16.msra.mxu3 %v3497_v53 }
0x10f0   :  { %v3062_v2 = vadd.f32 %v5391_v54, %v3059_v36 }
0x10f2   :  { %v3063_v45 = vmax.f32 %v3062_v2, 0.0 }
0x10f3   :  { %3198 = vmatpush.bf16.msra.mxu3 %v3496_v20 }
0x10f4   :  { %v3064_v14 = vpack.c.bf16 %v3063_v45, %v3063_v45 }
0x10f5   :  { %v3060_v17 = vpop.f32.mrf.mxu2 }
0x10f6   :  { %3086 = vmatmul.bf16.vlgmr.msra.gmra.mxu0 %v3064_v14 }
0x1159   :  { %v3010_v29 = vpop.f32.mrf.mxu3 }
0x1161   :  { %v3012_v39 = vpop.f32.mrf.mxu3 }
0x1163   :  { %v3023_v32 = vpop.f32.mrf.mxu0 }
0x1164   :  { %v3024_v34 = vadd.f32 %v3023_v32, %v3010_v29 }
0x1166   :  { %v3027_v55 = vadd.f32 %v5514_v43, %v3024_v34 }
0x1168   :  { %v3028_v23 = vmax.f32 %v3027_v55, 0.0 }
0x1169   :  { %v3074_v57 = vpop.f32.mrf.mxu3 }
0x116a   :  { %v3029_v1 = vpack.c.bf16 %v3028_v23, %v3028_v23 }
0x116b   :  { %v3025_v54 = vpop.f32.mrf.mxu0 }
0x116c   :  { %3102 = vmatmul.bf16.vlgmr.msrb.gmra.mxu2 %v3029_v1 }
0x1171   :  { %v3076_v26 = vpop.f32.mrf.mxu3 }
0x1173   :  { %v3087_v18 = vpop.f32.mrf.mxu0 }
0x1174   :  { %v3088_v28 = vadd.f32 %v3087_v18, %v3074_v57 }
0x1176   :  { %v3091_v30 = vadd.f32 %v5463_v46, %v3088_v28 }
0x1178   :  { %v3092_v31 = vmax.f32 %v3091_v30, 0.0 }
0x117a   :  { %v3093_v63 = vpack.c.bf16 %v3092_v31, %v3092_v31 }
0x117b   :  { %v3089_v59 = vpop.f32.mrf.mxu0 }
0x117c   :  { %3115 = vmatmul.bf16.vlgmr.msra.gmra.mxu1 %v3093_v63 }
0x11ef   :  { %v3103_v62 = vpop.f32.mrf.mxu2 }
0x11f7   :  { %v3105_v12 = vpop.f32.mrf.mxu2 }
0x11f9   :  { %v3116_v3 = vpop.f32.mrf.mxu1 }
0x11fa   :  { %v3117_v9 = vadd.f32 %v3116_v3, %v3103_v62 }
0x11fc   :  { %v3120_v46 = vadd.f32 %v5514_v43, %v3117_v9 }
0x11fe   :  { %v3121_v13 = vmax.f32 %v3120_v46, 0.0 }
0x1200   :  { %v3122_v27 = vpack.c.bf16 %v3121_v13, %v3121_v13 }
0x1201   :  { %v3118_v44 = vpop.f32.mrf.mxu1 }
0x1202   :  { %3199 = vmatmul.bf16.vlgmr.msra.gmra.mxu3 %v3122_v27 }
0x1285   :  { %v3200_v49 = vpop.f32.mrf.mxu3 }
0x1286   :  { %v3201_v38 = vadd.f32 %v3521_v6, %v3200_v49 }
0x1288   :  { %3204 = vst [vmem:[#allocation16] sm:$0xff] %v3201_v38 }
0x1289   :  { %3215 = dma.vmem_to_hbm [thread:$0]  %s3211_s21, 128, %s3213_s29, [#allocation4]  }
0x128d   :  { %v3202_v43 = vpop.f32.mrf.mxu3 }
0x128e   :  { %3880 = dma.done.wait [#allocation4], 128  }
0x128f   :  { %3881 = vsyncadd [#allocation4], 4294967168 }
0x1290   :  { %3220 = vsyncpa [#allocation3], 1 }
0x1291   :  { %3221 = vsyncpa [#allocation6], 1 }
0x1292   :  { %3222 = vsyncpa [#allocation9], 1 }
0x1293   :  { %3223 = vsyncpa [#allocation12], 1 }
0x1294   :  { %3224 = vsyncpa [#allocation15], 1 }
0x1295   :  { %3225 = vsyncpa [#allocation4], 1 }

</bundles_post_ra>
